<compile_context>
chip_gen: v5e
topology: v5e:2x2
jax: 0.10.0
libtpu: 0.0.40
codegen_flags: <defaults>
</compile_context>

<pallas_src>
import jax
import jax.numpy as jnp
from jax.experimental import pallas as pl
from jax.experimental.pallas import tpu as pltpu

LANES = 128  # lane-dense output width (all generations)


# ------------------------------ Pallas kernels ------------------------------

def _conv_pool_kernel(p_ref, w_ref, b_ref, o_ref):
    """Fused conv(as matmul) + bias + ReLU + 2x2 maxpool for a batch-block.

    p_ref: (4, Mt, K)   bf16 im2col patches, one slab per 2x2-pool-window pos
    w_ref: (K, 128)     bf16 conv weight, out-channels zero-padded to 128 lanes
    b_ref: (1, 128)     f32 bias, zero-padded
    o_ref: (Mt, 128)    bf16 pooled activations, rows = (b, py, px)
    """
    w = w_ref[...]
    y0 = jnp.dot(p_ref[0], w, preferred_element_type=jnp.float32)
    y1 = jnp.dot(p_ref[1], w, preferred_element_type=jnp.float32)
    y2 = jnp.dot(p_ref[2], w, preferred_element_type=jnp.float32)
    y3 = jnp.dot(p_ref[3], w, preferred_element_type=jnp.float32)
    # max over the pool window commutes with the monotone bias + ReLU epilogue
    y = jnp.maximum(jnp.maximum(y0, y1), jnp.maximum(y2, y3)) + b_ref[...]
    o_ref[...] = jnp.maximum(y, 0.0).astype(o_ref.dtype)


def _conv2_mlp_kernel(p_ref, w2_ref, b2_ref, w1f_ref, b1f_ref,
                      w2f_ref, b2f_ref, w3f_ref, b3f_ref, o_ref):
    """Fused conv2(+bias+ReLU+pool) -> fc1 -> fc2 -> fc3 for Bb images.

    p_ref:  (4, 25*Bb, 256) bf16 conv2 patches, rows ordered (s=(py,px), b)
    w2_ref: (256, 128)      bf16 conv2 weight (K padded 150->256, O 16->128)
    w1f_ref:(25, 128, 128)  bf16 fc1 weight per pooled spatial position s
    w2f_ref/w3f_ref: (128,128) bf16 fc2/fc3 weights (padded)
    b*_ref: (1, 128) f32 biases (padded)
    o_ref:  (Bb, 128) f32 logits (first 10 lanes real)
    """
    bb = o_ref.shape[0]
    w2 = w2_ref[...]
    y0 = jnp.dot(p_ref[0], w2, preferred_element_type=jnp.float32)
    y1 = jnp.dot(p_ref[1], w2, preferred_element_type=jnp.float32)
    y2 = jnp.dot(p_ref[2], w2, preferred_element_type=jnp.float32)
    y3 = jnp.dot(p_ref[3], w2, preferred_element_type=jnp.float32)
    a2 = jnp.maximum(jnp.maximum(y0, y1), jnp.maximum(y2, y3)) + b2_ref[...]
    a2 = jnp.maximum(a2, 0.0).astype(jnp.bfloat16)          # (25*Bb, 128)

    # fc1 as a sum over the 25 pooled spatial rows (no 3200-wide flatten).
    h = jnp.zeros((bb, LANES), jnp.float32)
    for s in range(25):
        h = h + jnp.dot(a2[s * bb:(s + 1) * bb, :], w1f_ref[s],
                        preferred_element_type=jnp.float32)
    h = jnp.maximum(h + b1f_ref[...], 0.0).astype(jnp.bfloat16)

    h = jnp.dot(h, w2f_ref[...], preferred_element_type=jnp.float32) + b2f_ref[...]
    h = jnp.maximum(h, 0.0).astype(jnp.bfloat16)

    o = jnp.dot(h, w3f_ref[...], preferred_element_type=jnp.float32) + b3f_ref[...]
    o_ref[...] = o.astype(o_ref.dtype)


# ------------------------------ pallas_call wrappers ------------------------

def conv1_stage(patches, w, b, bb):
    """patches: (4, B_pad*196, 128) bf16 -> a1 (B_pad*196, 128) bf16."""
    _, m_total, k = patches.shape
    mt = bb * 196
    n_blocks = m_total // mt
    return pl.pallas_call(
        _conv_pool_kernel,
        out_shape=jax.ShapeDtypeStruct((m_total, LANES), jnp.bfloat16),
        grid=(n_blocks,),
        in_specs=[
            pl.BlockSpec((4, mt, k), lambda i: (0, i, 0)),
            pl.BlockSpec((k, LANES), lambda i: (0, 0)),
            pl.BlockSpec((1, LANES), lambda i: (0, 0)),
        ],
        out_specs=pl.BlockSpec((mt, LANES), lambda i: (i, 0)),
        compiler_params=pltpu.CompilerParams(
            dimension_semantics=("parallel",)),
    )(patches, w, b)


def conv2_mlp_stage(patches, kp, bb):
    """patches: (4, B_pad*25, 256) bf16 -> logits (B_pad, 128) f32."""
    _, m_total, k = patches.shape
    mt = bb * 25
    n_blocks = m_total // mt
    b_pad = n_blocks * bb
    return pl.pallas_call(
        _conv2_mlp_kernel,
        out_shape=jax.ShapeDtypeStruct((b_pad, LANES), jnp.float32),
        grid=(n_blocks,),
        in_specs=[
            pl.BlockSpec((4, mt, k), lambda i: (0, i, 0)),
            pl.BlockSpec((k, LANES), lambda i: (0, 0)),        # conv2 weight
            pl.BlockSpec((1, LANES), lambda i: (0, 0)),        # conv2 bias
            pl.BlockSpec((25, LANES, LANES), lambda i: (0, 0, 0)),  # fc1 weight
            pl.BlockSpec((1, LANES), lambda i: (0, 0)),
            pl.BlockSpec((LANES, LANES), lambda i: (0, 0)),    # fc2 weight
            pl.BlockSpec((1, LANES), lambda i: (0, 0)),
            pl.BlockSpec((LANES, LANES), lambda i: (0, 0)),    # fc3 weight
            pl.BlockSpec((1, LANES), lambda i: (0, 0)),
        ],
        out_specs=pl.BlockSpec((bb, LANES), lambda i: (i, 0)),
        compiler_params=pltpu.CompilerParams(
            dimension_semantics=("parallel",)),
    )(patches, kp["w2"], kp["b2"], kp["wfc1"], kp["bfc1"],
      kp["wfc2"], kp["bfc2"], kp["wfc3"], kp["bfc3"])


# ------------------------------ host-side glue -------------------------------
# im2col patch formation stays as XLA glue (strided slices + stack fuse well).

def _conv1_patches(x, k=5):
    """NHWC bf16 -> (4, B*196, 128) patches; slab j=(wy,wx); rows=(b,py,px)."""
    B, H, W, C = x.shape
    Ho, Wo = H - k + 1, W - k + 1
    assert Ho % 2 == 0 and Wo % 2 == 0, "pool requires even conv output"
    Hp, Wp = Ho // 2, Wo // 2
    cols = [x[:, dy:dy + Ho, dx:dx + Wo, :] for dy in range(k) for dx in range(k)]
    p = jnp.stack(cols, axis=3)                      # (B, Ho, Wo, k*k, C)
    p = p.reshape(B, Hp, 2, Wp, 2, k * k * C)        # (oy,ox)->(py,wy,px,wx)
    p = jnp.transpose(p, (2, 4, 0, 1, 3, 5))         # (wy, wx, B, py, px, K)
    p = p.reshape(4, B * Hp * Wp, k * k * C)
    p = jnp.pad(p, ((0, 0), (0, 0), (0, 128 - k * k * C)))   # K: 75 -> 128
    return p, (Hp, Wp)


def _conv2_patches(a1, bb, k=5):
    """a1 (B,14,14,6) bf16 -> (4, B*25, 256); rows within a Bb-block = (s, b)."""
    B, H, W, C = a1.shape
    Ho, Wo = H - k + 1, W - k + 1
    assert Ho % 2 == 0 and Wo % 2 == 0, "pool requires even conv output"
    assert B % bb == 0
    Hp, Wp = Ho // 2, Wo // 2
    cols = [a1[:, dy:dy + Ho, dx:dx + Wo, :] for dy in range(k) for dx in range(k)]
    p = jnp.stack(cols, axis=3)                      # (B, Ho, Wo, k*k, C)
    p = p.reshape(B, Hp, 2, Wp, 2, k * k * C)        # (B, py, wy, px, wx, K)
    p = jnp.transpose(p, (2, 4, 1, 3, 0, 5))         # (wy, wx, py, px, B, K)
    p = p.reshape(4, Hp * Wp, B // bb, bb, k * k * C)
    p = jnp.transpose(p, (0, 2, 1, 3, 4))            # (4, nB, s, b_local, K)
    p = p.reshape(4, B * Hp * Wp, k * k * C)
    p = jnp.pad(p, ((0, 0), (0, 0), (0, 256 - k * k * C)))   # K: 150 -> 256
    return p


def prepare_params(p):
    """One-time reshuffle / zero-pad / bf16-cast of torch-layout weights."""
    def conv_w(w_oihw, k_pad):
        O, I, k, _ = w_oihw.shape
        w2d = jnp.transpose(w_oihw, (2, 3, 1, 0)).reshape(k * k * I, O)
        w2d = jnp.pad(w2d, ((0, k_pad - k * k * I), (0, LANES - O)))
        return w2d.astype(jnp.bfloat16)

    def bias(b):
        return jnp.pad(b, (0, LANES - b.shape[0])).reshape(1, LANES).astype(jnp.float32)

    # fc1: torch input index = c*25 + s (NCHW flatten).  Re-lay out as
    # (s, c_padded, o_padded) so the kernel can do  h += a2[s] @ W1[s].
    wfc1 = p["wfc1"].reshape(16, 25, 120)            # [c, s, o]
    wfc1 = jnp.transpose(wfc1, (1, 0, 2))            # [s, c, o]
    wfc1 = jnp.pad(wfc1, ((0, 0), (0, LANES - 16), (0, LANES - 120)))
    wfc2 = jnp.pad(p["wfc2"], ((0, LANES - 120), (0, LANES - 84)))
    wfc3 = jnp.pad(p["wfc3"], ((0, LANES - 84), (0, LANES - 10)))

    return {
        "w1": conv_w(p["w1"], 128), "b1": bias(p["b1"]),
        "w2": conv_w(p["w2"], 256), "b2": bias(p["b2"]),
        "wfc1": wfc1.astype(jnp.bfloat16), "bfc1": bias(p["bfc1"]),
        "wfc2": wfc2.astype(jnp.bfloat16), "bfc2": bias(p["bfc2"]),
        "wfc3": wfc3.astype(jnp.bfloat16), "bfc3": bias(p["bfc3"]),
    }


def toynet_forward(x_nchw, kp):
    """Forward pass. x_nchw: (B, 3, 32, 32); kp: prepare_params(...) output."""
    B = x_nchw.shape[0]
    # Batch-block size: >=8 keeps all in-kernel slices 8-sublane aligned and
    # gives ~1.5K-3K M rows per conv1 grid step; VMEM stays <~8 MiB/step even
    # at Bb=16 (fine for v7x's 64 MiB physical / 32 MiB scoped budget).
    bb = 16 if B >= 16 else 8
    b_pad = -(-B // bb) * bb

    x = jnp.transpose(x_nchw, (0, 2, 3, 1)).astype(jnp.bfloat16)   # NCHW -> NHWC
    if b_pad != B:
        x = jnp.pad(x, ((0, b_pad - B), (0, 0), (0, 0), (0, 0)))

    p1, (hp1, wp1) = _conv1_patches(x)                    # (4, B_pad*196, 128) bf16
    a1 = conv1_stage(p1, kp["w1"], kp["b1"], bb)          # (B_pad*196, 128) bf16
    a1 = a1.reshape(b_pad, hp1, wp1, LANES)[..., :6]      # (B_pad, 14, 14, 6)

    p2 = _conv2_patches(a1, bb)                           # (4, B_pad*25, 256) bf16
    out = conv2_mlp_stage(p2, kp, bb)                     # (B_pad, 128) f32
    return out[:B, :10]


# ------------------------------ reference + init -----------------------------

def _ref_forward(x_nchw, p):
    """Pure-jnp f32 reference of the torch module (for a sanity check)."""
    x = jnp.transpose(x_nchw, (0, 2, 3, 1))

    def conv_relu_pool_ref(x, w_oihw, b):
        O, I, k, _ = w_oihw.shape
        B, H, W, C = x.shape
        Ho, Wo = H - k + 1, W - k + 1
        cols = [x[:, dy:dy + Ho, dx:dx + Wo, :] for dy in range(k) for dx in range(k)]
        pt = jnp.stack(cols, axis=3).reshape(B, Ho, Wo, k * k * C)
        w2d = jnp.transpose(w_oihw, (2, 3, 1, 0)).reshape(k * k * I, O)
        y = jnp.maximum(pt @ w2d + b, 0.0)
        return jnp.max(y.reshape(B, Ho // 2, 2, Wo // 2, 2, O), axis=(2, 4))

    a1 = conv_relu_pool_ref(x, p["w1"], p["b1"])
    a2 = conv_relu_pool_ref(a1, p["w2"], p["b2"])
    B = x.shape[0]
    f = jnp.transpose(a2, (0, 3, 1, 2)).reshape(B, 16 * 5 * 5)   # torch view order
    f = jnp.maximum(f @ p["wfc1"] + p["bfc1"], 0.0)
    f = jnp.maximum(f @ p["wfc2"] + p["bfc2"], 0.0)
    return f @ p["wfc3"] + p["bfc3"]


def init_params(key):
    """Deterministic kaiming-uniform (fan_in, a=0) weights, zero biases."""
    def kaiming_uniform(k, shape, fan_in):
        bound = (6.0 / fan_in) ** 0.5
        return jax.random.uniform(k, shape, jnp.float32, -bound, bound)

    ks = jax.random.split(key, 5)
    return {
        "w1": kaiming_uniform(ks[0], (6, 3, 5, 5), 3 * 5 * 5),
        "b1": jnp.zeros((6,), jnp.float32),
        "w2": kaiming_uniform(ks[1], (16, 6, 5, 5), 6 * 5 * 5),
        "b2": jnp.zeros((16,), jnp.float32),
        "wfc1": kaiming_uniform(ks[2], (400, 120), 400),
        "bfc1": jnp.zeros((120,), jnp.float32),
        "wfc2": kaiming_uniform(ks[3], (120, 84), 120),
        "bfc2": jnp.zeros((84,), jnp.float32),
        "wfc3": kaiming_uniform(ks[4], (84, 10), 84),
        "bfc3": jnp.zeros((10,), jnp.float32),
    }


if __name__ == "__main__":
    key = jax.random.PRNGKey(0)
    k_params, k_x = jax.random.split(key)
    params = init_params(k_params)
    kparams = prepare_params(params)          # one-time weight prep (outside jit)
    # Spatial size must be 32x32x3 so fc1's 16*5*5 flatten is consistent.
    x = jax.random.normal(k_x, (2, 3, 32, 32), dtype=jnp.float32)

    out = jax.jit(toynet_forward)(x, kparams)
    out = jax.block_until_ready(out)
    assert out.shape == (2, 10) and out.dtype == jnp.float32

    ref = jax.block_until_ready(_ref_forward(x, params))
    max_err = float(jnp.max(jnp.abs(out - ref)))
    scale = float(jnp.max(jnp.abs(ref)))
    # bf16 matmul operands set the error floor; a permutation/indexing bug
    # would show up as O(1) relative error, well above this gate.
    assert max_err < 0.1 * max(scale, 1.0), f"mismatch vs f32 ref: {max_err} (scale {scale})"

    print("KERNEL_OK")
</pallas_src>

<mosaic_0001>
module attributes {stable_mosaic.version = 11 : i64} {
  func.func @_conv_pool_kernel(%arg0: i32, %arg1: memref<4x1568x128xbf16, #tpu.memory_space<vmem>>, %arg2: memref<128x128xbf16, #tpu.memory_space<vmem>>, %arg3: memref<1x128xf32, #tpu.memory_space<vmem>>, %arg4: memref<1568x128xbf16, #tpu.memory_space<vmem>>) attributes {dimension_semantics = [#tpu.dimension_semantics<parallel>], iteration_bounds = array<i64: 1>, scalar_prefetch = 0 : i64, scratch_operands = 0 : i64, tpu.core_type = #tpu.core_type<tc>, window_params = [{transform_indices = @transform_0, window_bounds = array<i64: 4, 1568, 128>}, {pipeline_mode = #tpu.pipeline_mode<synchronous>, transform_indices = @transform_1, window_bounds = array<i64: 128, 128>}, {pipeline_mode = #tpu.pipeline_mode<synchronous>, transform_indices = @transform_2, window_bounds = array<i64: 1, 128>}, {transform_indices = @transform_3, window_bounds = array<i64: 1568, 128>}]} {
    %c0 = arith.constant 0 : index
    %c0_0 = arith.constant 0 : index
    %0 = vector.load %arg2[%c0, %c0_0] : memref<128x128xbf16, #tpu.memory_space<vmem>>, vector<128x128xbf16>
    %c0_1 = arith.constant 0 : index
    %c0_2 = arith.constant 0 : index
    %c0_3 = arith.constant 0 : index
    %1 = vector.load %arg1[%c0_1, %c0_2, %c0_3] : memref<4x1568x128xbf16, #tpu.memory_space<vmem>>, vector<1x1568x128xbf16>
    %2 = vector.shape_cast %1 : vector<1x1568x128xbf16> to vector<1568x128xbf16>
    %cst = arith.constant dense<0.000000e+00> : vector<1568x128xf32>
    %3 = tpu.matmul %2, %0, %cst {dimension_numbers = #tpu.dot_dimension_numbers<[1], [0], [0], [1], [0, 0, 1, 1], [], []>} : vector<1568x128xbf16>, vector<128x128xbf16>, vector<1568x128xf32> -> vector<1568x128xf32>
    %c1 = arith.constant 1 : index
    %c0_4 = arith.constant 0 : index
    %c0_5 = arith.constant 0 : index
    %4 = vector.load %arg1[%c1, %c0_4, %c0_5] : memref<4x1568x128xbf16, #tpu.memory_space<vmem>>, vector<1x1568x128xbf16>
    %5 = vector.shape_cast %4 : vector<1x1568x128xbf16> to vector<1568x128xbf16>
    %cst_6 = arith.constant dense<0.000000e+00> : vector<1568x128xf32>
    %6 = tpu.matmul %5, %0, %cst_6 {dimension_numbers = #tpu.dot_dimension_numbers<[1], [0], [0], [1], [0, 0, 1, 1], [], []>} : vector<1568x128xbf16>, vector<128x128xbf16>, vector<1568x128xf32> -> vector<1568x128xf32>
    %c2 = arith.constant 2 : index
    %c0_7 = arith.constant 0 : index
    %c0_8 = arith.constant 0 : index
    %7 = vector.load %arg1[%c2, %c0_7, %c0_8] : memref<4x1568x128xbf16, #tpu.memory_space<vmem>>, vector<1x1568x128xbf16>
    %8 = vector.shape_cast %7 : vector<1x1568x128xbf16> to vector<1568x128xbf16>
    %cst_9 = arith.constant dense<0.000000e+00> : vector<1568x128xf32>
    %9 = tpu.matmul %8, %0, %cst_9 {dimension_numbers = #tpu.dot_dimension_numbers<[1], [0], [0], [1], [0, 0, 1, 1], [], []>} : vector<1568x128xbf16>, vector<128x128xbf16>, vector<1568x128xf32> -> vector<1568x128xf32>
    %c3 = arith.constant 3 : index
    %c0_10 = arith.constant 0 : index
    %c0_11 = arith.constant 0 : index
    %10 = vector.load %arg1[%c3, %c0_10, %c0_11] : memref<4x1568x128xbf16, #tpu.memory_space<vmem>>, vector<1x1568x128xbf16>
    %11 = vector.shape_cast %10 : vector<1x1568x128xbf16> to vector<1568x128xbf16>
    %cst_12 = arith.constant dense<0.000000e+00> : vector<1568x128xf32>
    %12 = tpu.matmul %11, %0, %cst_12 {dimension_numbers = #tpu.dot_dimension_numbers<[1], [0], [0], [1], [0, 0, 1, 1], [], []>} : vector<1568x128xbf16>, vector<128x128xbf16>, vector<1568x128xf32> -> vector<1568x128xf32>
    %13 = arith.maximumf %3, %6 : vector<1568x128xf32>
    %14 = arith.maximumf %9, %12 : vector<1568x128xf32>
    %15 = arith.maximumf %13, %14 : vector<1568x128xf32>
    %c0_13 = arith.constant 0 : index
    %c0_14 = arith.constant 0 : index
    %16 = vector.load %arg3[%c0_13, %c0_14] : memref<1x128xf32, #tpu.memory_space<vmem>>, vector<1x128xf32>
    %17 = vector.broadcast %16 : vector<1x128xf32> to vector<1568x128xf32>
    %18 = arith.addf %15, %17 : vector<1568x128xf32>
    %cst_15 = arith.constant 0.000000e+00 : f32
    %19 = vector.broadcast %cst_15 : f32 to vector<1568x128xf32>
    %20 = arith.maximumf %18, %19 : vector<1568x128xf32>
    %21 = arith.truncf %20 : vector<1568x128xf32> to vector<1568x128xbf16>
    %c0_16 = arith.constant 0 : index
    %c0_17 = arith.constant 0 : index
    %22 = vector.load %arg4[%c0_16, %c0_17] : memref<1568x128xbf16, #tpu.memory_space<vmem>>, vector<1568x128xbf16>
    tpu.vector_store %arg4[%c0_16, %c0_17], %21 {strides = array<i32>} : memref<1568x128xbf16, #tpu.memory_space<vmem>>, vector<1568x128xbf16>,
    return
  }
  func.func @transform_0(%arg0: i32) -> (i32, i32, i32) {
    %c0_i32 = arith.constant 0 : i32
    %c0_i32_0 = arith.constant 0 : i32
    %c0_i32_1 = arith.constant 0 : i32
    return %c0_i32, %arg0, %c0_i32_0 : i32, i32, i32
  }
  func.func @transform_1(%arg0: i32) -> (i32, i32) {
    %c0_i32 = arith.constant 0 : i32
    %c0_i32_0 = arith.constant 0 : i32
    %c0_i32_1 = arith.constant 0 : i32
    return %c0_i32, %c0_i32_0 : i32, i32
  }
  func.func @transform_2(%arg0: i32) -> (i32, i32) {
    %c0_i32 = arith.constant 0 : i32
    %c0_i32_0 = arith.constant 0 : i32
    %c0_i32_1 = arith.constant 0 : i32
    return %c0_i32, %c0_i32_0 : i32, i32
  }
  func.func @transform_3(%arg0: i32) -> (i32, i32) {
    %c0_i32 = arith.constant 0 : i32
    %c0_i32_0 = arith.constant 0 : i32
    return %arg0, %c0_i32 : i32, i32
  }
}

module attributes {stable_mosaic.version = 11 : i64} {
  func.func @_conv2_mlp_kernel(%arg0: i32, %arg1: memref<4x200x256xbf16, #tpu.memory_space<vmem>>, %arg2: memref<256x128xbf16, #tpu.memory_space<vmem>>, %arg3: memref<1x128xf32, #tpu.memory_space<vmem>>, %arg4: memref<25x128x128xbf16, #tpu.memory_space<vmem>>, %arg5: memref<1x128xf32, #tpu.memory_space<vmem>>, %arg6: memref<128x128xbf16, #tpu.memory_space<vmem>>, %arg7: memref<1x128xf32, #tpu.memory_space<vmem>>, %arg8: memref<128x128xbf16, #tpu.memory_space<vmem>>, %arg9: memref<1x128xf32, #tpu.memory_space<vmem>>, %arg10: memref<8x128xf32, #tpu.memory_space<vmem>>) attributes {dimension_semantics = [#tpu.dimension_semantics<parallel>], iteration_bounds = array<i64: 1>, scalar_prefetch = 0 : i64, scratch_operands = 0 : i64, tpu.core_type = #tpu.core_type<tc>, window_params = [{transform_indices = @transform_0, window_bounds = array<i64: 4, 200, 256>}, {pipeline_mode = #tpu.pipeline_mode<synchronous>, transform_indices = @transform_1, window_bounds = array<i64: 256, 128>}, {pipeline_mode = #tpu.pipeline_mode<synchronous>, transform_indices = @transform_2, window_bounds = array<i64: 1, 128>}, {pipeline_mode = #tpu.pipeline_mode<synchronous>, transform_indices = @transform_3, window_bounds = array<i64: 25, 128, 128>}, {pipeline_mode = #tpu.pipeline_mode<synchronous>, transform_indices = @transform_4, window_bounds = array<i64: 1, 128>}, {pipeline_mode = #tpu.pipeline_mode<synchronous>, transform_indices = @transform_5, window_bounds = array<i64: 128, 128>}, {pipeline_mode = #tpu.pipeline_mode<synchronous>, transform_indices = @transform_6, window_bounds = array<i64: 1, 128>}, {pipeline_mode = #tpu.pipeline_mode<synchronous>, transform_indices = @transform_7, window_bounds = array<i64: 128, 128>}, {pipeline_mode = #tpu.pipeline_mode<synchronous>, transform_indices = @transform_8, window_bounds = array<i64: 1, 128>}, {transform_indices = @transform_9, window_bounds = array<i64: 8, 128>}]} {
    %c0 = arith.constant 0 : index
    %c0_0 = arith.constant 0 : index
    %0 = vector.load %arg2[%c0, %c0_0] : memref<256x128xbf16, #tpu.memory_space<vmem>>, vector<256x128xbf16>
    %c0_1 = arith.constant 0 : index
    %c0_2 = arith.constant 0 : index
    %c0_3 = arith.constant 0 : index
    %1 = vector.load %arg1[%c0_1, %c0_2, %c0_3] : memref<4x200x256xbf16, #tpu.memory_space<vmem>>, vector<1x200x256xbf16>
    %2 = vector.shape_cast %1 : vector<1x200x256xbf16> to vector<200x256xbf16>
    %cst = arith.constant dense<0.000000e+00> : vector<200x128xf32>
    %3 = tpu.matmul %2, %0, %cst {dimension_numbers = #tpu.dot_dimension_numbers<[1], [0], [0], [1], [0, 0, 1, 1], [], []>} : vector<200x256xbf16>, vector<256x128xbf16>, vector<200x128xf32> -> vector<200x128xf32>
    %c1 = arith.constant 1 : index
    %c0_4 = arith.constant 0 : index
    %c0_5 = arith.constant 0 : index
    %4 = vector.load %arg1[%c1, %c0_4, %c0_5] : memref<4x200x256xbf16, #tpu.memory_space<vmem>>, vector<1x200x256xbf16>
    %5 = vector.shape_cast %4 : vector<1x200x256xbf16> to vector<200x256xbf16>
    %cst_6 = arith.constant dense<0.000000e+00> : vector<200x128xf32>
    %6 = tpu.matmul %5, %0, %cst_6 {dimension_numbers = #tpu.dot_dimension_numbers<[1], [0], [0], [1], [0, 0, 1, 1], [], []>} : vector<200x256xbf16>, vector<256x128xbf16>, vector<200x128xf32> -> vector<200x128xf32>
    %c2 = arith.constant 2 : index
    %c0_7 = arith.constant 0 : index
    %c0_8 = arith.constant 0 : index
    %7 = vector.load %arg1[%c2, %c0_7, %c0_8] : memref<4x200x256xbf16, #tpu.memory_space<vmem>>, vector<1x200x256xbf16>
    %8 = vector.shape_cast %7 : vector<1x200x256xbf16> to vector<200x256xbf16>
    %cst_9 = arith.constant dense<0.000000e+00> : vector<200x128xf32>
    %9 = tpu.matmul %8, %0, %cst_9 {dimension_numbers = #tpu.dot_dimension_numbers<[1], [0], [0], [1], [0, 0, 1, 1], [], []>} : vector<200x256xbf16>, vector<256x128xbf16>, vector<200x128xf32> -> vector<200x128xf32>
    %c3 = arith.constant 3 : index
    %c0_10 = arith.constant 0 : index
    %c0_11 = arith.constant 0 : index
    %10 = vector.load %arg1[%c3, %c0_10, %c0_11] : memref<4x200x256xbf16, #tpu.memory_space<vmem>>, vector<1x200x256xbf16>
    %11 = vector.shape_cast %10 : vector<1x200x256xbf16> to vector<200x256xbf16>
    %cst_12 = arith.constant dense<0.000000e+00> : vector<200x128xf32>
    %12 = tpu.matmul %11, %0, %cst_12 {dimension_numbers = #tpu.dot_dimension_numbers<[1], [0], [0], [1], [0, 0, 1, 1], [], []>} : vector<200x256xbf16>, vector<256x128xbf16>, vector<200x128xf32> -> vector<200x128xf32>
    %13 = arith.maximumf %3, %6 : vector<200x128xf32>
    %14 = arith.maximumf %9, %12 : vector<200x128xf32>
    %15 = arith.maximumf %13, %14 : vector<200x128xf32>
    %c0_13 = arith.constant 0 : index
    %c0_14 = arith.constant 0 : index
    %16 = vector.load %arg3[%c0_13, %c0_14] : memref<1x128xf32, #tpu.memory_space<vmem>>, vector<1x128xf32>
    %17 = vector.broadcast %16 : vector<1x128xf32> to vector<200x128xf32>
    %18 = arith.addf %15, %17 : vector<200x128xf32>
    %cst_15 = arith.constant 0.000000e+00 : f32
    %19 = vector.broadcast %cst_15 : f32 to vector<200x128xf32>
    %20 = arith.maximumf %18, %19 : vector<200x128xf32>
    %21 = arith.truncf %20 : vector<200x128xf32> to vector<200x128xbf16>
    %cst_16 = arith.constant 0.000000e+00 : f32
    %22 = vector.broadcast %cst_16 : f32 to vector<8x128xf32>
    %23 = vector.extract_strided_slice %21 {offsets = [0, 0], sizes = [8, 128], strides = [1, 1]} : vector<200x128xbf16> to vector<8x128xbf16>
    %c0_17 = arith.constant 0 : index
    %c0_18 = arith.constant 0 : index
    %c0_19 = arith.constant 0 : index
    %24 = vector.load %arg4[%c0_17, %c0_18, %c0_19] : memref<25x128x128xbf16, #tpu.memory_space<vmem>>, vector<1x128x128xbf16>
    %25 = vector.shape_cast %24 : vector<1x128x128xbf16> to vector<128x128xbf16>
    %cst_20 = arith.constant dense<0.000000e+00> : vector<8x128xf32>
    %26 = tpu.matmul %23, %25, %cst_20 {dimension_numbers = #tpu.dot_dimension_numbers<[1], [0], [0], [1], [0, 0, 1, 1], [], []>} : vector<8x128xbf16>, vector<128x128xbf16>, vector<8x128xf32> -> vector<8x128xf32>
    %27 = arith.addf %22, %26 : vector<8x128xf32>
    %28 = vector.extract_strided_slice %21 {offsets = [8, 0], sizes = [8, 128], strides = [1, 1]} : vector<200x128xbf16> to vector<8x128xbf16>
    %c1_21 = arith.constant 1 : index
    %c0_22 = arith.constant 0 : index
    %c0_23 = arith.constant 0 : index
    %29 = vector.load %arg4[%c1_21, %c0_22, %c0_23] : memref<25x128x128xbf16, #tpu.memory_space<vmem>>, vector<1x128x128xbf16>
    %30 = vector.shape_cast %29 : vector<1x128x128xbf16> to vector<128x128xbf16>
    %cst_24 = arith.constant dense<0.000000e+00> : vector<8x128xf32>
    %31 = tpu.matmul %28, %30, %cst_24 {dimension_numbers = #tpu.dot_dimension_numbers<[1], [0], [0], [1], [0, 0, 1, 1], [], []>} : vector<8x128xbf16>, vector<128x128xbf16>, vector<8x128xf32> -> vector<8x128xf32>
    %32 = arith.addf %27, %31 : vector<8x128xf32>
    %33 = vector.extract_strided_slice %21 {offsets = [16, 0], sizes = [8, 128], strides = [1, 1]} : vector<200x128xbf16> to vector<8x128xbf16>
    %c2_25 = arith.constant 2 : index
    %c0_26 = arith.constant 0 : index
    %c0_27 = arith.constant 0 : index
    %34 = vector.load %arg4[%c2_25, %c0_26, %c0_27] : memref<25x128x128xbf16, #tpu.memory_space<vmem>>, vector<1x128x128xbf16>
    %35 = vector.shape_cast %34 : vector<1x128x128xbf16> to vector<128x128xbf16>
    %cst_28 = arith.constant dense<0.000000e+00> : vector<8x128xf32>
    %36 = tpu.matmul %33, %35, %cst_28 {dimension_numbers = #tpu.dot_dimension_numbers<[1], [0], [0], [1], [0, 0, 1, 1], [], []>} : vector<8x128xbf16>, vector<128x128xbf16>, vector<8x128xf32> -> vector<8x128xf32>
    %37 = arith.addf %32, %36 : vector<8x128xf32>
    %38 = vector.extract_strided_slice %21 {offsets = [24, 0], sizes = [8, 128], strides = [1, 1]} : vector<200x128xbf16> to vector<8x128xbf16>
    %c3_29 = arith.constant 3 : index
    %c0_30 = arith.constant 0 : index
    %c0_31 = arith.constant 0 : index
    %39 = vector.load %arg4[%c3_29, %c0_30, %c0_31] : memref<25x128x128xbf16, #tpu.memory_space<vmem>>, vector<1x128x128xbf16>
    %40 = vector.shape_cast %39 : vector<1x128x128xbf16> to vector<128x128xbf16>
    %cst_32 = arith.constant dense<0.000000e+00> : vector<8x128xf32>
    %41 = tpu.matmul %38, %40, %cst_32 {dimension_numbers = #tpu.dot_dimension_numbers<[1], [0], [0], [1], [0, 0, 1, 1], [], []>} : vector<8x128xbf16>, vector<128x128xbf16>, vector<8x128xf32> -> vector<8x128xf32>
    %42 = arith.addf %37, %41 : vector<8x128xf32>
    %43 = vector.extract_strided_slice %21 {offsets = [32, 0], sizes = [8, 128], strides = [1, 1]} : vector<200x128xbf16> to vector<8x128xbf16>
    %c4 = arith.constant 4 : index
    %c0_33 = arith.constant 0 : index
    %c0_34 = arith.constant 0 : index
    %44 = vector.load %arg4[%c4, %c0_33, %c0_34] : memref<25x128x128xbf16, #tpu.memory_space<vmem>>, vector<1x128x128xbf16>
    %45 = vector.shape_cast %44 : vector<1x128x128xbf16> to vector<128x128xbf16>
    %cst_35 = arith.constant dense<0.000000e+00> : vector<8x128xf32>
    %46 = tpu.matmul %43, %45, %cst_35 {dimension_numbers = #tpu.dot_dimension_numbers<[1], [0], [0], [1], [0, 0, 1, 1], [], []>} : vector<8x128xbf16>, vector<128x128xbf16>, vector<8x128xf32> -> vector<8x128xf32>
    %47 = arith.addf %42, %46 : vector<8x128xf32>
    %48 = vector.extract_strided_slice %21 {offsets = [40, 0], sizes = [8, 128], strides = [1, 1]} : vector<200x128xbf16> to vector<8x128xbf16>
    %c5 = arith.constant 5 : index
    %c0_36 = arith.constant 0 : index
    %c0_37 = arith.constant 0 : index
    %49 = vector.load %arg4[%c5, %c0_36, %c0_37] : memref<25x128x128xbf16, #tpu.memory_space<vmem>>, vector<1x128x128xbf16>
    %50 = vector.shape_cast %49 : vector<1x128x128xbf16> to vector<128x128xbf16>
    %cst_38 = arith.constant dense<0.000000e+00> : vector<8x128xf32>
    %51 = tpu.matmul %48, %50, %cst_38 {dimension_numbers = #tpu.dot_dimension_numbers<[1], [0], [0], [1], [0, 0, 1, 1], [], []>} : vector<8x128xbf16>, vector<128x128xbf16>, vector<8x128xf32> -> vector<8x128xf32>
    %52 = arith.addf %47, %51 : vector<8x128xf32>
    %53 = vector.extract_strided_slice %21 {offsets = [48, 0], sizes = [8, 128], strides = [1, 1]} : vector<200x128xbf16> to vector<8x128xbf16>
    %c6 = arith.constant 6 : index
    %c0_39 = arith.constant 0 : index
    %c0_40 = arith.constant 0 : index
    %54 = vector.load %arg4[%c6, %c0_39, %c0_40] : memref<25x128x128xbf16, #tpu.memory_space<vmem>>, vector<1x128x128xbf16>
    %55 = vector.shape_cast %54 : vector<1x128x128xbf16> to vector<128x128xbf16>
    %cst_41 = arith.constant dense<0.000000e+00> : vector<8x128xf32>
    %56 = tpu.matmul %53, %55, %cst_41 {dimension_numbers = #tpu.dot_dimension_numbers<[1], [0], [0], [1], [0, 0, 1, 1], [], []>} : vector<8x128xbf16>, vector<128x128xbf16>, vector<8x128xf32> -> vector<8x128xf32>
    %57 = arith.addf %52, %56 : vector<8x128xf32>
    %58 = vector.extract_strided_slice %21 {offsets = [56, 0], sizes = [8, 128], strides = [1, 1]} : vector<200x128xbf16> to vector<8x128xbf16>
    %c7 = arith.constant 7 : index
    %c0_42 = arith.constant 0 : index
    %c0_43 = arith.constant 0 : index
    %59 = vector.load %arg4[%c7, %c0_42, %c0_43] : memref<25x128x128xbf16, #tpu.memory_space<vmem>>, vector<1x128x128xbf16>
    %60 = vector.shape_cast %59 : vector<1x128x128xbf16> to vector<128x128xbf16>
    %cst_44 = arith.constant dense<0.000000e+00> : vector<8x128xf32>
    %61 = tpu.matmul %58, %60, %cst_44 {dimension_numbers = #tpu.dot_dimension_numbers<[1], [0], [0], [1], [0, 0, 1, 1], [], []>} : vector<8x128xbf16>, vector<128x128xbf16>, vector<8x128xf32> -> vector<8x128xf32>
    %62 = arith.addf %57, %61 : vector<8x128xf32>
    %63 = vector.extract_strided_slice %21 {offsets = [64, 0], sizes = [8, 128], strides = [1, 1]} : vector<200x128xbf16> to vector<8x128xbf16>
    %c8 = arith.constant 8 : index
    %c0_45 = arith.constant 0 : index
    %c0_46 = arith.constant 0 : index
    %64 = vector.load %arg4[%c8, %c0_45, %c0_46] : memref<25x128x128xbf16, #tpu.memory_space<vmem>>, vector<1x128x128xbf16>
    %65 = vector.shape_cast %64 : vector<1x128x128xbf16> to vector<128x128xbf16>
    %cst_47 = arith.constant dense<0.000000e+00> : vector<8x128xf32>
    %66 = tpu.matmul %63, %65, %cst_47 {dimension_numbers = #tpu.dot_dimension_numbers<[1], [0], [0], [1], [0, 0, 1, 1], [], []>} : vector<8x128xbf16>, vector<128x128xbf16>, vector<8x128xf32> -> vector<8x128xf32>
    %67 = arith.addf %62, %66 : vector<8x128xf32>
    %68 = vector.extract_strided_slice %21 {offsets = [72, 0], sizes = [8, 128], strides = [1, 1]} : vector<200x128xbf16> to vector<8x128xbf16>
    %c9 = arith.constant 9 : index
    %c0_48 = arith.constant 0 : index
    %c0_49 = arith.constant 0 : index
    %69 = vector.load %arg4[%c9, %c0_48, %c0_49] : memref<25x128x128xbf16, #tpu.memory_space<vmem>>, vector<1x128x128xbf16>
    %70 = vector.shape_cast %69 : vector<1x128x128xbf16> to vector<128x128xbf16>
    %cst_50 = arith.constant dense<0.000000e+00> : vector<8x128xf32>
    %71 = tpu.matmul %68, %70, %cst_50 {dimension_numbers = #tpu.dot_dimension_numbers<[1], [0], [0], [1], [0, 0, 1, 1], [], []>} : vector<8x128xbf16>, vector<128x128xbf16>, vector<8x128xf32> -> vector<8x128xf32>
    %72 = arith.addf %67, %71 : vector<8x128xf32>
    %73 = vector.extract_strided_slice %21 {offsets = [80, 0], sizes = [8, 128], strides = [1, 1]} : vector<200x128xbf16> to vector<8x128xbf16>
    %c10 = arith.constant 10 : index
    %c0_51 = arith.constant 0 : index
    %c0_52 = arith.constant 0 : index
    %74 = vector.load %arg4[%c10, %c0_51, %c0_52] : memref<25x128x128xbf16, #tpu.memory_space<vmem>>, vector<1x128x128xbf16>
    %75 = vector.shape_cast %74 : vector<1x128x128xbf16> to vector<128x128xbf16>
    %cst_53 = arith.constant dense<0.000000e+00> : vector<8x128xf32>
    %76 = tpu.matmul %73, %75, %cst_53 {dimension_numbers = #tpu.dot_dimension_numbers<[1], [0], [0], [1], [0, 0, 1, 1], [], []>} : vector<8x128xbf16>, vector<128x128xbf16>, vector<8x128xf32> -> vector<8x128xf32>
    %77 = arith.addf %72, %76 : vector<8x128xf32>
    %78 = vector.extract_strided_slice %21 {offsets = [88, 0], sizes = [8, 128], strides = [1, 1]} : vector<200x128xbf16> to vector<8x128xbf16>
    %c11 = arith.constant 11 : index
    %c0_54 = arith.constant 0 : index
    %c0_55 = arith.constant 0 : index
    %79 = vector.load %arg4[%c11, %c0_54, %c0_55] : memref<25x128x128xbf16, #tpu.memory_space<vmem>>, vector<1x128x128xbf16>
    %80 = vector.shape_cast %79 : vector<1x128x128xbf16> to vector<128x128xbf16>
    %cst_56 = arith.constant dense<0.000000e+00> : vector<8x128xf32>
    %81 = tpu.matmul %78, %80, %cst_56 {dimension_numbers = #tpu.dot_dimension_numbers<[1], [0], [0], [1], [0, 0, 1, 1], [], []>} : vector<8x128xbf16>, vector<128x128xbf16>, vector<8x128xf32> -> vector<8x128xf32>
    %82 = arith.addf %77, %81 : vector<8x128xf32>
    %83 = vector.extract_strided_slice %21 {offsets = [96, 0], sizes = [8, 128], strides = [1, 1]} : vector<200x128xbf16> to vector<8x128xbf16>
    %c12 = arith.constant 12 : index
    %c0_57 = arith.constant 0 : index
    %c0_58 = arith.constant 0 : index
    %84 = vector.load %arg4[%c12, %c0_57, %c0_58] : memref<25x128x128xbf16, #tpu.memory_space<vmem>>, vector<1x128x128xbf16>
    %85 = vector.shape_cast %84 : vector<1x128x128xbf16> to vector<128x128xbf16>
    %cst_59 = arith.constant dense<0.000000e+00> : vector<8x128xf32>
    %86 = tpu.matmul %83, %85, %cst_59 {dimension_numbers = #tpu.dot_dimension_numbers<[1], [0], [0], [1], [0, 0, 1, 1], [], []>} : vector<8x128xbf16>, vector<128x128xbf16>, vector<8x128xf32> -> vector<8x128xf32>
    %87 = arith.addf %82, %86 : vector<8x128xf32>
    %88 = vector.extract_strided_slice %21 {offsets = [104, 0], sizes = [8, 128], strides = [1, 1]} : vector<200x128xbf16> to vector<8x128xbf16>
    %c13 = arith.constant 13 : index
    %c0_60 = arith.constant 0 : index
    %c0_61 = arith.constant 0 : index
    %89 = vector.load %arg4[%c13, %c0_60, %c0_61] : memref<25x128x128xbf16, #tpu.memory_space<vmem>>, vector<1x128x128xbf16>
    %90 = vector.shape_cast %89 : vector<1x128x128xbf16> to vector<128x128xbf16>
    %cst_62 = arith.constant dense<0.000000e+00> : vector<8x128xf32>
    %91 = tpu.matmul %88, %90, %cst_62 {dimension_numbers = #tpu.dot_dimension_numbers<[1], [0], [0], [1], [0, 0, 1, 1], [], []>} : vector<8x128xbf16>, vector<128x128xbf16>, vector<8x128xf32> -> vector<8x128xf32>
    %92 = arith.addf %87, %91 : vector<8x128xf32>
    %93 = vector.extract_strided_slice %21 {offsets = [112, 0], sizes = [8, 128], strides = [1, 1]} : vector<200x128xbf16> to vector<8x128xbf16>
    %c14 = arith.constant 14 : index
    %c0_63 = arith.constant 0 : index
    %c0_64 = arith.constant 0 : index
    %94 = vector.load %arg4[%c14, %c0_63, %c0_64] : memref<25x128x128xbf16, #tpu.memory_space<vmem>>, vector<1x128x128xbf16>
    %95 = vector.shape_cast %94 : vector<1x128x128xbf16> to vector<128x128xbf16>
    %cst_65 = arith.constant dense<0.000000e+00> : vector<8x128xf32>
    %96 = tpu.matmul %93, %95, %cst_65 {dimension_numbers = #tpu.dot_dimension_numbers<[1], [0], [0], [1], [0, 0, 1, 1], [], []>} : vector<8x128xbf16>, vector<128x128xbf16>, vector<8x128xf32> -> vector<8x128xf32>
    %97 = arith.addf %92, %96 : vector<8x128xf32>
    %98 = vector.extract_strided_slice %21 {offsets = [120, 0], sizes = [8, 128], strides = [1, 1]} : vector<200x128xbf16> to vector<8x128xbf16>
    %c15 = arith.constant 15 : index
    %c0_66 = arith.constant 0 : index
    %c0_67 = arith.constant 0 : index
    %99 = vector.load %arg4[%c15, %c0_66, %c0_67] : memref<25x128x128xbf16, #tpu.memory_space<vmem>>, vector<1x128x128xbf16>
    %100 = vector.shape_cast %99 : vector<1x128x128xbf16> to vector<128x128xbf16>
    %cst_68 = arith.constant dense<0.000000e+00> : vector<8x128xf32>
    %101 = tpu.matmul %98, %100, %cst_68 {dimension_numbers = #tpu.dot_dimension_numbers<[1], [0], [0], [1], [0, 0, 1, 1], [], []>} : vector<8x128xbf16>, vector<128x128xbf16>, vector<8x128xf32> -> vector<8x128xf32>
    %102 = arith.addf %97, %101 : vector<8x128xf32>
    %103 = vector.extract_strided_slice %21 {offsets = [128, 0], sizes = [8, 128], strides = [1, 1]} : vector<200x128xbf16> to vector<8x128xbf16>
    %c16 = arith.constant 16 : index
    %c0_69 = arith.constant 0 : index
    %c0_70 = arith.constant 0 : index
    %104 = vector.load %arg4[%c16, %c0_69, %c0_70] : memref<25x128x128xbf16, #tpu.memory_space<vmem>>, vector<1x128x128xbf16>
    %105 = vector.shape_cast %104 : vector<1x128x128xbf16> to vector<128x128xbf16>
    %cst_71 = arith.constant dense<0.000000e+00> : vector<8x128xf32>
    %106 = tpu.matmul %103, %105, %cst_71 {dimension_numbers = #tpu.dot_dimension_numbers<[1], [0], [0], [1], [0, 0, 1, 1], [], []>} : vector<8x128xbf16>, vector<128x128xbf16>, vector<8x128xf32> -> vector<8x128xf32>
    %107 = arith.addf %102, %106 : vector<8x128xf32>
    %108 = vector.extract_strided_slice %21 {offsets = [136, 0], sizes = [8, 128], strides = [1, 1]} : vector<200x128xbf16> to vector<8x128xbf16>
    %c17 = arith.constant 17 : index
    %c0_72 = arith.constant 0 : index
    %c0_73 = arith.constant 0 : index
    %109 = vector.load %arg4[%c17, %c0_72, %c0_73] : memref<25x128x128xbf16, #tpu.memory_space<vmem>>, vector<1x128x128xbf16>
    %110 = vector.shape_cast %109 : vector<1x128x128xbf16> to vector<128x128xbf16>
    %cst_74 = arith.constant dense<0.000000e+00> : vector<8x128xf32>
    %111 = tpu.matmul %108, %110, %cst_74 {dimension_numbers = #tpu.dot_dimension_numbers<[1], [0], [0], [1], [0, 0, 1, 1], [], []>} : vector<8x128xbf16>, vector<128x128xbf16>, vector<8x128xf32> -> vector<8x128xf32>
    %112 = arith.addf %107, %111 : vector<8x128xf32>
    %113 = vector.extract_strided_slice %21 {offsets = [144, 0], sizes = [8, 128], strides = [1, 1]} : vector<200x128xbf16> to vector<8x128xbf16>
    %c18 = arith.constant 18 : index
    %c0_75 = arith.constant 0 : index
    %c0_76 = arith.constant 0 : index
    %114 = vector.load %arg4[%c18, %c0_75, %c0_76] : memref<25x128x128xbf16, #tpu.memory_space<vmem>>, vector<1x128x128xbf16>
    %115 = vector.shape_cast %114 : vector<1x128x128xbf16> to vector<128x128xbf16>
    %cst_77 = arith.constant dense<0.000000e+00> : vector<8x128xf32>
    %116 = tpu.matmul %113, %115, %cst_77 {dimension_numbers = #tpu.dot_dimension_numbers<[1], [0], [0], [1], [0, 0, 1, 1], [], []>} : vector<8x128xbf16>, vector<128x128xbf16>, vector<8x128xf32> -> vector<8x128xf32>
    %117 = arith.addf %112, %116 : vector<8x128xf32>
    %118 = vector.extract_strided_slice %21 {offsets = [152, 0], sizes = [8, 128], strides = [1, 1]} : vector<200x128xbf16> to vector<8x128xbf16>
    %c19 = arith.constant 19 : index
    %c0_78 = arith.constant 0 : index
    %c0_79 = arith.constant 0 : index
    %119 = vector.load %arg4[%c19, %c0_78, %c0_79] : memref<25x128x128xbf16, #tpu.memory_space<vmem>>, vector<1x128x128xbf16>
    %120 = vector.shape_cast %119 : vector<1x128x128xbf16> to vector<128x128xbf16>
    %cst_80 = arith.constant dense<0.000000e+00> : vector<8x128xf32>
    %121 = tpu.matmul %118, %120, %cst_80 {dimension_numbers = #tpu.dot_dimension_numbers<[1], [0], [0], [1], [0, 0, 1, 1], [], []>} : vector<8x128xbf16>, vector<128x128xbf16>, vector<8x128xf32> -> vector<8x128xf32>
    %122 = arith.addf %117, %121 : vector<8x128xf32>
    %123 = vector.extract_strided_slice %21 {offsets = [160, 0], sizes = [8, 128], strides = [1, 1]} : vector<200x128xbf16> to vector<8x128xbf16>
    %c20 = arith.constant 20 : index
    %c0_81 = arith.constant 0 : index
    %c0_82 = arith.constant 0 : index
    %124 = vector.load %arg4[%c20, %c0_81, %c0_82] : memref<25x128x128xbf16, #tpu.memory_space<vmem>>, vector<1x128x128xbf16>
    %125 = vector.shape_cast %124 : vector<1x128x128xbf16> to vector<128x128xbf16>
    %cst_83 = arith.constant dense<0.000000e+00> : vector<8x128xf32>
    %126 = tpu.matmul %123, %125, %cst_83 {dimension_numbers = #tpu.dot_dimension_numbers<[1], [0], [0], [1], [0, 0, 1, 1], [], []>} : vector<8x128xbf16>, vector<128x128xbf16>, vector<8x128xf32> -> vector<8x128xf32>
    %127 = arith.addf %122, %126 : vector<8x128xf32>
    %128 = vector.extract_strided_slice %21 {offsets = [168, 0], sizes = [8, 128], strides = [1, 1]} : vector<200x128xbf16> to vector<8x128xbf16>
    %c21 = arith.constant 21 : index
    %c0_84 = arith.constant 0 : index
    %c0_85 = arith.constant 0 : index
    %129 = vector.load %arg4[%c21, %c0_84, %c0_85] : memref<25x128x128xbf16, #tpu.memory_space<vmem>>, vector<1x128x128xbf16>
    %130 = vector.shape_cast %129 : vector<1x128x128xbf16> to vector<128x128xbf16>
    %cst_86 = arith.constant dense<0.000000e+00> : vector<8x128xf32>
    %131 = tpu.matmul %128, %130, %cst_86 {dimension_numbers = #tpu.dot_dimension_numbers<[1], [0], [0], [1], [0, 0, 1, 1], [], []>} : vector<8x128xbf16>, vector<128x128xbf16>, vector<8x128xf32> -> vector<8x128xf32>
    %132 = arith.addf %127, %131 : vector<8x128xf32>
    %133 = vector.extract_strided_slice %21 {offsets = [176, 0], sizes = [8, 128], strides = [1, 1]} : vector<200x128xbf16> to vector<8x128xbf16>
    %c22 = arith.constant 22 : index
    %c0_87 = arith.constant 0 : index
    %c0_88 = arith.constant 0 : index
    %134 = vector.load %arg4[%c22, %c0_87, %c0_88] : memref<25x128x128xbf16, #tpu.memory_space<vmem>>, vector<1x128x128xbf16>
    %135 = vector.shape_cast %134 : vector<1x128x128xbf16> to vector<128x128xbf16>
    %cst_89 = arith.constant dense<0.000000e+00> : vector<8x128xf32>
    %136 = tpu.matmul %133, %135, %cst_89 {dimension_numbers = #tpu.dot_dimension_numbers<[1], [0], [0], [1], [0, 0, 1, 1], [], []>} : vector<8x128xbf16>, vector<128x128xbf16>, vector<8x128xf32> -> vector<8x128xf32>
    %137 = arith.addf %132, %136 : vector<8x128xf32>
    %138 = vector.extract_strided_slice %21 {offsets = [184, 0], sizes = [8, 128], strides = [1, 1]} : vector<200x128xbf16> to vector<8x128xbf16>
    %c23 = arith.constant 23 : index
    %c0_90 = arith.constant 0 : index
    %c0_91 = arith.constant 0 : index
    %139 = vector.load %arg4[%c23, %c0_90, %c0_91] : memref<25x128x128xbf16, #tpu.memory_space<vmem>>, vector<1x128x128xbf16>
    %140 = vector.shape_cast %139 : vector<1x128x128xbf16> to vector<128x128xbf16>
    %cst_92 = arith.constant dense<0.000000e+00> : vector<8x128xf32>
    %141 = tpu.matmul %138, %140, %cst_92 {dimension_numbers = #tpu.dot_dimension_numbers<[1], [0], [0], [1], [0, 0, 1, 1], [], []>} : vector<8x128xbf16>, vector<128x128xbf16>, vector<8x128xf32> -> vector<8x128xf32>
    %142 = arith.addf %137, %141 : vector<8x128xf32>
    %143 = vector.extract_strided_slice %21 {offsets = [192, 0], sizes = [8, 128], strides = [1, 1]} : vector<200x128xbf16> to vector<8x128xbf16>
    %c24 = arith.constant 24 : index
    %c0_93 = arith.constant 0 : index
    %c0_94 = arith.constant 0 : index
    %144 = vector.load %arg4[%c24, %c0_93, %c0_94] : memref<25x128x128xbf16, #tpu.memory_space<vmem>>, vector<1x128x128xbf16>
    %145 = vector.shape_cast %144 : vector<1x128x128xbf16> to vector<128x128xbf16>
    %cst_95 = arith.constant dense<0.000000e+00> : vector<8x128xf32>
    %146 = tpu.matmul %143, %145, %cst_95 {dimension_numbers = #tpu.dot_dimension_numbers<[1], [0], [0], [1], [0, 0, 1, 1], [], []>} : vector<8x128xbf16>, vector<128x128xbf16>, vector<8x128xf32> -> vector<8x128xf32>
    %147 = arith.addf %142, %146 : vector<8x128xf32>
    %c0_96 = arith.constant 0 : index
    %c0_97 = arith.constant 0 : index
    %148 = vector.load %arg5[%c0_96, %c0_97] : memref<1x128xf32, #tpu.memory_space<vmem>>, vector<1x128xf32>
    %149 = vector.broadcast %148 : vector<1x128xf32> to vector<8x128xf32>
    %150 = arith.addf %147, %149 : vector<8x128xf32>
    %cst_98 = arith.constant 0.000000e+00 : f32
    %151 = vector.broadcast %cst_98 : f32 to vector<8x128xf32>
    %152 = arith.maximumf %150, %151 : vector<8x128xf32>
    %153 = arith.truncf %152 : vector<8x128xf32> to vector<8x128xbf16>
    %c0_99 = arith.constant 0 : index
    %c0_100 = arith.constant 0 : index
    %154 = vector.load %arg6[%c0_99, %c0_100] : memref<128x128xbf16, #tpu.memory_space<vmem>>, vector<128x128xbf16>
    %cst_101 = arith.constant dense<0.000000e+00> : vector<8x128xf32>
    %155 = tpu.matmul %153, %154, %cst_101 {dimension_numbers = #tpu.dot_dimension_numbers<[1], [0], [0], [1], [0, 0, 1, 1], [], []>} : vector<8x128xbf16>, vector<128x128xbf16>, vector<8x128xf32> -> vector<8x128xf32>
    %c0_102 = arith.constant 0 : index
    %c0_103 = arith.constant 0 : index
    %156 = vector.load %arg7[%c0_102, %c0_103] : memref<1x128xf32, #tpu.memory_space<vmem>>, vector<1x128xf32>
    %157 = vector.broadcast %156 : vector<1x128xf32> to vector<8x128xf32>
    %158 = arith.addf %155, %157 : vector<8x128xf32>
    %cst_104 = arith.constant 0.000000e+00 : f32
    %159 = vector.broadcast %cst_104 : f32 to vector<8x128xf32>
    %160 = arith.maximumf %158, %159 : vector<8x128xf32>
    %161 = arith.truncf %160 : vector<8x128xf32> to vector<8x128xbf16>
    %c0_105 = arith.constant 0 : index
    %c0_106 = arith.constant 0 : index
    %162 = vector.load %arg8[%c0_105, %c0_106] : memref<128x128xbf16, #tpu.memory_space<vmem>>, vector<128x128xbf16>
    %cst_107 = arith.constant dense<0.000000e+00> : vector<8x128xf32>
    %163 = tpu.matmul %161, %162, %cst_107 {dimension_numbers = #tpu.dot_dimension_numbers<[1], [0], [0], [1], [0, 0, 1, 1], [], []>} : vector<8x128xbf16>, vector<128x128xbf16>, vector<8x128xf32> -> vector<8x128xf32>
    %c0_108 = arith.constant 0 : index
    %c0_109 = arith.constant 0 : index
    %164 = vector.load %arg9[%c0_108, %c0_109] : memref<1x128xf32, #tpu.memory_space<vmem>>, vector<1x128xf32>
    %165 = vector.broadcast %164 : vector<1x128xf32> to vector<8x128xf32>
    %166 = arith.addf %163, %165 : vector<8x128xf32>
    %c0_110 = arith.constant 0 : index
    %c0_111 = arith.constant 0 : index
    %167 = vector.load %arg10[%c0_110, %c0_111] : memref<8x128xf32, #tpu.memory_space<vmem>>, vector<8x128xf32>
    tpu.vector_store %arg10[%c0_110, %c0_111], %166 {strides = array<i32>} : memref<8x128xf32, #tpu.memory_space<vmem>>, vector<8x128xf32>,
    return
  }
  func.func @transform_0(%arg0: i32) -> (i32, i32, i32) {
    %c0_i32 = arith.constant 0 : i32
    %c0_i32_0 = arith.constant 0 : i32
    %c0_i32_1 = arith.constant 0 : i32
    return %c0_i32, %arg0, %c0_i32_0 : i32, i32, i32
  }
  func.func @transform_1(%arg0: i32) -> (i32, i32) {
    %c0_i32 = arith.constant 0 : i32
    %c0_i32_0 = arith.constant 0 : i32
    %c0_i32_1 = arith.constant 0 : i32
    return %c0_i32, %c0_i32_0 : i32, i32
  }
  func.func @transform_2(%arg0: i32) -> (i32, i32) {
    %c0_i32 = arith.constant 0 : i32
    %c0_i32_0 = arith.constant 0 : i32
    %c0_i32_1 = arith.constant 0 : i32
    return %c0_i32, %c0_i32_0 : i32, i32
  }
  func.func @transform_3(%arg0: i32) -> (i32, i32, i32) {
    %c0_i32 = arith.constant 0 : i32
    %c0_i32_0 = arith.constant 0 : i32
    %c0_i32_1 = arith.constant 0 : i32
    %c0_i32_2 = arith.constant 0 : i32
    return %c0_i32, %c0_i32_0, %c0_i32_1 : i32, i32, i32
  }
  func.func @transform_4(%arg0: i32) -> (i32, i32) {
    %c0_i32 = arith.constant 0 : i32
    %c0_i32_0 = arith.constant 0 : i32
    %c0_i32_1 = arith.constant 0 : i32
    return %c0_i32, %c0_i32_0 : i32, i32
  }
  func.func @transform_5(%arg0: i32) -> (i32, i32) {
    %c0_i32 = arith.constant 0 : i32
    %c0_i32_0 = arith.constant 0 : i32
    %c0_i32_1 = arith.constant 0 : i32
    return %c0_i32, %c0_i32_0 : i32, i32
  }
  func.func @transform_6(%arg0: i32) -> (i32, i32) {
    %c0_i32 = arith.constant 0 : i32
    %c0_i32_0 = arith.constant 0 : i32
    %c0_i32_1 = arith.constant 0 : i32
    return %c0_i32, %c0_i32_0 : i32, i32
  }
  func.func @transform_7(%arg0: i32) -> (i32, i32) {
    %c0_i32 = arith.constant 0 : i32
    %c0_i32_0 = arith.constant 0 : i32
    %c0_i32_1 = arith.constant 0 : i32
    return %c0_i32, %c0_i32_0 : i32, i32
  }
  func.func @transform_8(%arg0: i32) -> (i32, i32) {
    %c0_i32 = arith.constant 0 : i32
    %c0_i32_0 = arith.constant 0 : i32
    %c0_i32_1 = arith.constant 0 : i32
    return %c0_i32, %c0_i32_0 : i32, i32
  }
  func.func @transform_9(%arg0: i32) -> (i32, i32) {
    %c0_i32 = arith.constant 0 : i32
    %c0_i32_0 = arith.constant 0 : i32
    return %arg0, %c0_i32 : i32, i32
  }
}

</mosaic_0001>

<bundles_post_ra>
// kernel: toynet_forward.2
= control target key start
LH: loop header
LB: loop body
LE: loop exit
PB: predicated region body
PF: predicated region fallthrough
CT: control target
= control target key end

     0   :  { %s11508_s1 = inlined_call_operand.vmem [shape: bf16[128,128], index: 1, kind: input, shape index: {}]   ;;  %s11509_s0 = inlined_call_operand.vmem [shape: bf16[4,1568,128], index: 0, kind: input, shape index: {}]   ;;  %s11510_s2 = inlined_call_operand.vmem [shape: f32[1,128], index: 2, kind: input, shape index: {}]   ;;  %s11511_s3 = inlined_call_operand.vmem [shape: bf16[1568,128], index: 3, kind: output, shape index: {}]  }
   0x1   :  { %v8788_v0 = vld [vmem:[%s11508_s1 + $0x38] sm:$0xff]  ;;  %v8787_v1 = vld [vmem:[%s11508_s1 + $0x30] sm:$0xff]  ;;  %v8786_v2 = vld [vmem:[%s11508_s1 + $0x28] sm:$0xff] }
   0x2   :  { %862 = vmatpush.bf16.msra.mxu0 %v8788_v0  ;;  %2146 = vmatpush.bf16.msra.mxu1 %v8788_v0  ;;  %v8785_v3 = vld [vmem:[%s11508_s1 + $0x20] sm:$0xff]  ;;  %v8784_v4 = vld [vmem:[%s11508_s1 + $0x18] sm:$0xff]  ;;  %v8783_v5 = vld [vmem:[%s11508_s1 + $0x10] sm:$0xff] }
   0x3   :  { %3430 = vmatpush.bf16.msra.mxu2 %v8788_v0  ;;  %4714 = vmatpush.bf16.msra.mxu3 %v8788_v0  ;;  %v8782_v6 = vld [vmem:[%s11508_s1 + $0x8] sm:$0xff]  ;;  %v8781_v7 = vld [vmem:[%s11508_s1] sm:$0xff]  ;;  %v8887_v9 = vld [vmem:[%s11509_s0 + $0x310] sm:$0xff] }
   0x4   :  { %v8789_v8 = vld [vmem:[%s11509_s0] sm:$0xff]  ;;  %v9083_v11 = vld [vmem:[%s11509_s0 + $0x930] sm:$0xff]  ;;  %v8790_v12 = vld [vmem:[%s11509_s0 + $0x8] sm:$0xff] }
   0x5   :  { %v8985_v10 = vld [vmem:[%s11509_s0 + $0x620] sm:$0xff]  ;;  %v8888_v13 = vld [vmem:[%s11509_s0 + $0x318] sm:$0xff]  ;;  %v8986_v14 = vld [vmem:[%s11509_s0 + $0x628] sm:$0xff] }
   0x6   :  { %863 = vmatpush.bf16.msra.mxu0 %v8787_v1  ;;  %2147 = vmatpush.bf16.msra.mxu1 %v8787_v1  ;;  %v9084_v15 = vld [vmem:[%s11509_s0 + $0x938] sm:$0xff]  ;;  %v8791_v16 = vld [vmem:[%s11509_s0 + $0x10] sm:$0xff]  ;;  %v8889_v17 = vld [vmem:[%s11509_s0 + $0x320] sm:$0xff] }
   0x7   :  { %3431 = vmatpush.bf16.msra.mxu2 %v8787_v1  ;;  %4715 = vmatpush.bf16.msra.mxu3 %v8787_v1  ;;  %v8987_v18 = vld [vmem:[%s11509_s0 + $0x630] sm:$0xff]  ;;  %v9085_v19 = vld [vmem:[%s11509_s0 + $0x940] sm:$0xff]  ;;  %v8792_v20 = vld [vmem:[%s11509_s0 + $0x18] sm:$0xff] }
   0x8   :  { %v8890_v21 = vld [vmem:[%s11509_s0 + $0x328] sm:$0xff]  ;;  %v8988_v22 = vld [vmem:[%s11509_s0 + $0x638] sm:$0xff]  ;;  %v8793_v24 = vld [vmem:[%s11509_s0 + $0x20] sm:$0xff] }
   0x9   :  { %v9086_v23 = vld [vmem:[%s11509_s0 + $0x948] sm:$0xff]  ;;  %v8891_v25 = vld [vmem:[%s11509_s0 + $0x330] sm:$0xff]  ;;  %v8989_v26 = vld [vmem:[%s11509_s0 + $0x640] sm:$0xff] }
   0xa   :  { %864 = vmatpush.bf16.msra.mxu0 %v8786_v2  ;;  %2148 = vmatpush.bf16.msra.mxu1 %v8786_v2  ;;  %v9087_v27 = vld [vmem:[%s11509_s0 + $0x950] sm:$0xff]  ;;  %v8794_v28 = vld [vmem:[%s11509_s0 + $0x28] sm:$0xff]  ;;  %v8892_v29 = vld [vmem:[%s11509_s0 + $0x338] sm:$0xff] }
   0xb   :  { %3432 = vmatpush.bf16.msra.mxu2 %v8786_v2  ;;  %4716 = vmatpush.bf16.msra.mxu3 %v8786_v2  ;;  %v8990_v30 = vld [vmem:[%s11509_s0 + $0x648] sm:$0xff]  ;;  %v9088_v31 = vld [vmem:[%s11509_s0 + $0x958] sm:$0xff]  ;;  %v8795_v32 = vld [vmem:[%s11509_s0 + $0x30] sm:$0xff] }
   0xc   :  { %v8893_v33 = vld [vmem:[%s11509_s0 + $0x340] sm:$0xff]  ;;  %v8991_v34 = vld [vmem:[%s11509_s0 + $0x650] sm:$0xff]  ;;  %v8796_v36 = vld [vmem:[%s11509_s0 + $0x38] sm:$0xff] }
   0xd   :  { %v9089_v35 = vld [vmem:[%s11509_s0 + $0x960] sm:$0xff]  ;;  %v8894_v37 = vld [vmem:[%s11509_s0 + $0x348] sm:$0xff]  ;;  %v8992_v38 = vld [vmem:[%s11509_s0 + $0x658] sm:$0xff] }
   0xe   :  { %865 = vmatpush.bf16.msra.mxu0 %v8785_v3  ;;  %2149 = vmatpush.bf16.msra.mxu1 %v8785_v3  ;;  %v9090_v39 = vld [vmem:[%s11509_s0 + $0x968] sm:$0xff]  ;;  %v8797_v40 = vld [vmem:[%s11509_s0 + $0x40] sm:$0xff]  ;;  %v8895_v41 = vld [vmem:[%s11509_s0 + $0x350] sm:$0xff] }
   0xf   :  { %3433 = vmatpush.bf16.msra.mxu2 %v8785_v3  ;;  %4717 = vmatpush.bf16.msra.mxu3 %v8785_v3  ;;  %v8993_v44 = vld [vmem:[%s11509_s0 + $0x660] sm:$0xff]  ;;  %v9091_v45 = vld [vmem:[%s11509_s0 + $0x970] sm:$0xff]  ;;  %v8798_v56 = vld [vmem:[%s11509_s0 + $0x48] sm:$0xff] }
  0x10   :  { %v9929_v53 = vld [vmem:[%s11510_s2] ss:$0 sm:$0xff]  ;;  %v8896_v57 = vld [vmem:[%s11509_s0 + $0x358] sm:$0xff]  ;;  %v8994_v62 = vld [vmem:[%s11509_s0 + $0x668] sm:$0xff] }
  0x11   :  { %v9092_v63 = vld [vmem:[%s11509_s0 + $0x978] sm:$0xff] }
  0x12   :  { %866 = vmatpush.bf16.msra.mxu0 %v8784_v4  ;;  %2150 = vmatpush.bf16.msra.mxu1 %v8784_v4 }
  0x13   :  { %3434 = vmatpush.bf16.msra.mxu2 %v8784_v4  ;;  %4718 = vmatpush.bf16.msra.mxu3 %v8784_v4 }
  0x16   :  { %867 = vmatpush.bf16.msra.mxu0 %v8783_v5  ;;  %2151 = vmatpush.bf16.msra.mxu1 %v8783_v5 }
  0x17   :  { %3435 = vmatpush.bf16.msra.mxu2 %v8783_v5  ;;  %4719 = vmatpush.bf16.msra.mxu3 %v8783_v5 }
  0x1a   :  { %868 = vmatpush.bf16.msra.mxu0 %v8782_v6  ;;  %2152 = vmatpush.bf16.msra.mxu1 %v8782_v6 }
  0x1b   :  { %3436 = vmatpush.bf16.msra.mxu2 %v8782_v6  ;;  %4720 = vmatpush.bf16.msra.mxu3 %v8782_v6 }
  0x1e   :  { %869 = vmatpush.bf16.msra.mxu0 %v8781_v7  ;;  %2153 = vmatpush.bf16.msra.mxu1 %v8781_v7 }
  0x1f   :  { %3437 = vmatpush.bf16.msra.mxu2 %v8781_v7  ;;  %4721 = vmatpush.bf16.msra.mxu3 %v8781_v7 }
  0x21   :  { %870 = vmatmul.bf16.vlgmr.msra.gmra.mxu0 %v8789_v8  ;;  %2154 = vmatmul.bf16.vlgmr.msra.gmra.mxu1 %v8887_v9 }
  0x22   :  { %3438 = vmatmul.bf16.vlgmr.msra.gmra.mxu2 %v8985_v10  ;;  %4722 = vmatmul.bf16.vlgmr.msra.gmra.mxu3 %v9083_v11 }
  0x31   :  { %875 = vmatmul.bf16.gmra.mxu0 %v8790_v12  ;;  %2159 = vmatmul.bf16.gmra.mxu1 %v8888_v13 }
  0x32   :  { %3443 = vmatmul.bf16.gmra.mxu2 %v8986_v14  ;;  %4727 = vmatmul.bf16.gmra.mxu3 %v9084_v15  ;;  %v8799_v15 = vld [vmem:[%s11509_s0 + $0x50] sm:$0xff] }
  0x41   :  { %880 = vmatmul.bf16.gmra.mxu0 %v8791_v16  ;;  %2164 = vmatmul.bf16.gmra.mxu1 %v8889_v17  ;;  %v8897_v16 = vld [vmem:[%s11509_s0 + $0x360] sm:$0xff] }
  0x42   :  { %3448 = vmatmul.bf16.gmra.mxu2 %v8987_v18  ;;  %4732 = vmatmul.bf16.gmra.mxu3 %v9085_v19 }
  0x51   :  { %885 = vmatmul.bf16.gmra.mxu0 %v8792_v20  ;;  %2169 = vmatmul.bf16.gmra.mxu1 %v8890_v21  ;;  %v8995_v21 = vld [vmem:[%s11509_s0 + $0x670] sm:$0xff] }
  0x52   :  { %3453 = vmatmul.bf16.gmra.mxu2 %v8988_v22  ;;  %4737 = vmatmul.bf16.gmra.mxu3 %v9086_v23  ;;  %v9093_v22 = vld [vmem:[%s11509_s0 + $0x980] sm:$0xff] }
  0x61   :  { %890 = vmatmul.bf16.gmra.mxu0 %v8793_v24  ;;  %2174 = vmatmul.bf16.gmra.mxu1 %v8891_v25 }
  0x62   :  { %3458 = vmatmul.bf16.gmra.mxu2 %v8989_v26  ;;  %4742 = vmatmul.bf16.gmra.mxu3 %v9087_v27 }
  0x71   :  { %895 = vmatmul.bf16.gmra.mxu0 %v8794_v28  ;;  %2179 = vmatmul.bf16.gmra.mxu1 %v8892_v29 }
  0x72   :  { %3463 = vmatmul.bf16.gmra.mxu2 %v8990_v30  ;;  %4747 = vmatmul.bf16.gmra.mxu3 %v9088_v31 }
  0x81   :  { %900 = vmatmul.bf16.gmra.mxu0 %v8795_v32  ;;  %2184 = vmatmul.bf16.gmra.mxu1 %v8893_v33 }
  0x82   :  { %3468 = vmatmul.bf16.gmra.mxu2 %v8991_v34  ;;  %4752 = vmatmul.bf16.gmra.mxu3 %v9089_v35 }
  0x91   :  { %905 = vmatmul.bf16.gmra.mxu0 %v8796_v36  ;;  %2189 = vmatmul.bf16.gmra.mxu1 %v8894_v37 }
  0x92   :  { %3473 = vmatmul.bf16.gmra.mxu2 %v8992_v38  ;;  %4757 = vmatmul.bf16.gmra.mxu3 %v9090_v39  ;;  %v8800_v38 = vld [vmem:[%s11509_s0 + $0x58] sm:$0xff]  ;;  %v8898_v39 = vld [vmem:[%s11509_s0 + $0x368] sm:$0xff] }
  0x9e   :  { %v871_v42 = vpop.f32.mrf.mxu0  ;;  %v2155_v43 = vpop.f32.mrf.mxu1 }
  0x9f   :  { %v5213_v50 = vmax.f32 %v871_v42, %v2155_v43 }
  0xa1   :  { %910 = vmatmul.bf16.gmra.mxu0 %v8797_v40  ;;  %2194 = vmatmul.bf16.gmra.mxu1 %v8895_v41 }
  0xa2   :  { %3478 = vmatmul.bf16.gmra.mxu2 %v8993_v44  ;;  %4762 = vmatmul.bf16.gmra.mxu3 %v9091_v45  ;;  %v8996_v44 = vld [vmem:[%s11509_s0 + $0x678] sm:$0xff]  ;;  %v9094_v45 = vld [vmem:[%s11509_s0 + $0x988] sm:$0xff] }
  0xa5   :  { %v3439_v46 = vpop.f32.mrf.mxu2  ;;  %v4723_v47 = vpop.f32.mrf.mxu3 }
  0xa6   :  { %v873_v48 = vpop.f32.mrf.mxu0  ;;  %v2157_v49 = vpop.f32.mrf.mxu1  ;;  %v5409_v51 = vmax.f32 %v3439_v46, %v4723_v47 }
  0xa7   :  { %v5214_v58 = vmax.f32 %v873_v48, %v2157_v49 }
  0xa8   :  { %v5605_v52 = vmax.f32 %v5213_v50, %v5409_v51 }
  0xaa   :  { %v5805_v0 = vadd.f32 %v9929_v53, %v5605_v52 }
  0xac   :  { %v6001_v3 = vmax.f32 %v5805_v0, 0.0 }
  0xad   :  { %v3441_v54 = vpop.f32.mrf.mxu2  ;;  %v4725_v55 = vpop.f32.mrf.mxu3 }
  0xae   :  { %v5410_v59 = vmax.f32 %v3441_v54, %v4725_v55  ;;  %v876_v60 = vpop.f32.mrf.mxu0  ;;  %v2160_v61 = vpop.f32.mrf.mxu1 }
  0xaf   :  { %v5215_v10 = vmax.f32 %v876_v60, %v2160_v61 }
  0xb0   :  { %v5606_v1 = vmax.f32 %v5214_v58, %v5410_v59 }
  0xb1   :  { %915 = vmatmul.bf16.gmra.mxu0 %v8798_v56  ;;  %2199 = vmatmul.bf16.gmra.mxu1 %v8896_v57 }
  0xb2   :  { %v5806_v2 = vadd.f32 %v9929_v53, %v5606_v1  ;;  %3483 = vmatmul.bf16.gmra.mxu2 %v8994_v62  ;;  %4767 = vmatmul.bf16.gmra.mxu3 %v9092_v63  ;;  %v8801_v62 = vld [vmem:[%s11509_s0 + $0x60] sm:$0xff]  ;;  %v8899_v63 = vld [vmem:[%s11509_s0 + $0x370] sm:$0xff] }
  0xb4   :  { %v6002_v4 = vmax.f32 %v5806_v2, 0.0 }
  0xb5   :  { %v3444_v5 = vpop.f32.mrf.mxu2  ;;  %v4728_v6 = vpop.f32.mrf.mxu3 }
  0xb6   :  { %v9184_v7 = vpack.c.bf16 %v6002_v4, %v6001_v3  ;;  %v878_v8 = vpop.f32.mrf.mxu0  ;;  %v2162_v9 = vpop.f32.mrf.mxu1  ;;  %v5411_v11 = vmax.f32 %v3444_v5, %v4728_v6  ;;  %v8997_v4 = vld [vmem:[%s11509_s0 + $0x680] sm:$0xff]  ;;  %v9095_v5 = vld [vmem:[%s11509_s0 + $0x990] sm:$0xff] }
  0xb7   :  { %v5216_v17 = vmax.f32 %v878_v8, %v2162_v9 }
  0xb8   :  { %9185 = vst [vmem:[%s11511_s3] sm:$0xff] %v9184_v7   ;;  %v5607_v12 = vmax.f32 %v5215_v10, %v5411_v11 }
  0xba   :  { %v5807_v23 = vadd.f32 %v9929_v53, %v5607_v12 }
  0xbc   :  { %v6003_v26 = vmax.f32 %v5807_v23, 0.0 }
  0xbd   :  { %v3446_v13 = vpop.f32.mrf.mxu2  ;;  %v4730_v14 = vpop.f32.mrf.mxu3 }
  0xbe   :  { %v5412_v18 = vmax.f32 %v3446_v13, %v4730_v14  ;;  %v881_v19 = vpop.f32.mrf.mxu0  ;;  %v2165_v20 = vpop.f32.mrf.mxu1 }
  0xbf   :  { %v5217_v33 = vmax.f32 %v881_v19, %v2165_v20 }
  0xc0   :  { %v5608_v24 = vmax.f32 %v5216_v17, %v5412_v18 }
  0xc1   :  { %920 = vmatmul.bf16.gmra.mxu0 %v8799_v15  ;;  %2204 = vmatmul.bf16.gmra.mxu1 %v8897_v16 }
  0xc2   :  { %v5808_v25 = vadd.f32 %v9929_v53, %v5608_v24  ;;  %3488 = vmatmul.bf16.gmra.mxu2 %v8995_v21  ;;  %4772 = vmatmul.bf16.gmra.mxu3 %v9093_v22  ;;  %v8802_v21 = vld [vmem:[%s11509_s0 + $0x68] sm:$0xff]  ;;  %v8900_v22 = vld [vmem:[%s11509_s0 + $0x378] sm:$0xff] }
  0xc4   :  { %v6004_v27 = vmax.f32 %v5808_v25, 0.0 }
  0xc5   :  { %v3449_v28 = vpop.f32.mrf.mxu2  ;;  %v4733_v29 = vpop.f32.mrf.mxu3 }
  0xc6   :  { %v9189_v30 = vpack.c.bf16 %v6004_v27, %v6003_v26  ;;  %v883_v31 = vpop.f32.mrf.mxu0  ;;  %v2167_v32 = vpop.f32.mrf.mxu1  ;;  %v5413_v34 = vmax.f32 %v3449_v28, %v4733_v29  ;;  %v8998_v27 = vld [vmem:[%s11509_s0 + $0x688] sm:$0xff]  ;;  %v9096_v28 = vld [vmem:[%s11509_s0 + $0x998] sm:$0xff] }
  0xc7   :  { %v5218_v40 = vmax.f32 %v883_v31, %v2167_v32 }
  0xc8   :  { %9671 = vst [vmem:[%s11511_s3 + $0x8] sm:$0xff] %v9189_v30   ;;  %v5609_v35 = vmax.f32 %v5217_v33, %v5413_v34 }
  0xca   :  { %v5809_v46 = vadd.f32 %v9929_v53, %v5609_v35 }
  0xcc   :  { %v6005_v49 = vmax.f32 %v5809_v46, 0.0 }
  0xcd   :  { %v3451_v36 = vpop.f32.mrf.mxu2  ;;  %v4735_v37 = vpop.f32.mrf.mxu3 }
  0xce   :  { %v5414_v41 = vmax.f32 %v3451_v36, %v4735_v37  ;;  %v886_v42 = vpop.f32.mrf.mxu0  ;;  %v2170_v43 = vpop.f32.mrf.mxu1 }
  0xcf   :  { %v5219_v57 = vmax.f32 %v886_v42, %v2170_v43 }
  0xd0   :  { %v5610_v47 = vmax.f32 %v5218_v40, %v5414_v41 }
  0xd1   :  { %925 = vmatmul.bf16.gmra.mxu0 %v8800_v38  ;;  %2209 = vmatmul.bf16.gmra.mxu1 %v8898_v39 }
  0xd2   :  { %v5810_v48 = vadd.f32 %v9929_v53, %v5610_v47  ;;  %3493 = vmatmul.bf16.gmra.mxu2 %v8996_v44  ;;  %4777 = vmatmul.bf16.gmra.mxu3 %v9094_v45  ;;  %v8803_v44 = vld [vmem:[%s11509_s0 + $0x70] sm:$0xff]  ;;  %v8901_v45 = vld [vmem:[%s11509_s0 + $0x380] sm:$0xff] }
  0xd4   :  { %v6006_v50 = vmax.f32 %v5810_v48, 0.0 }
  0xd5   :  { %v3454_v51 = vpop.f32.mrf.mxu2  ;;  %v4738_v52 = vpop.f32.mrf.mxu3 }
  0xd6   :  { %v9194_v54 = vpack.c.bf16 %v6006_v50, %v6005_v49  ;;  %v888_v55 = vpop.f32.mrf.mxu0  ;;  %v2172_v56 = vpop.f32.mrf.mxu1  ;;  %v5415_v58 = vmax.f32 %v3454_v51, %v4738_v52  ;;  %v8999_v50 = vld [vmem:[%s11509_s0 + $0x690] sm:$0xff]  ;;  %v9097_v51 = vld [vmem:[%s11509_s0 + $0x9a0] sm:$0xff] }
  0xd7   :  { %v5220_v0 = vmax.f32 %v888_v55, %v2172_v56 }
  0xd8   :  { %9672 = vst [vmem:[%s11511_s3 + $0x10] sm:$0xff] %v9194_v54   ;;  %v5611_v59 = vmax.f32 %v5219_v57, %v5415_v58 }
  0xda   :  { %v5811_v6 = vadd.f32 %v9929_v53, %v5611_v59 }
  0xdc   :  { %v6007_v9 = vmax.f32 %v5811_v6, 0.0 }
  0xdd   :  { %v3456_v60 = vpop.f32.mrf.mxu2  ;;  %v4740_v61 = vpop.f32.mrf.mxu3 }
  0xde   :  { %v5416_v1 = vmax.f32 %v3456_v60, %v4740_v61  ;;  %v891_v2 = vpop.f32.mrf.mxu0  ;;  %v2175_v3 = vpop.f32.mrf.mxu1 }
  0xdf   :  { %v5221_v16 = vmax.f32 %v891_v2, %v2175_v3 }
  0xe0   :  { %v5612_v7 = vmax.f32 %v5220_v0, %v5416_v1 }
  0xe1   :  { %930 = vmatmul.bf16.gmra.mxu0 %v8801_v62  ;;  %2214 = vmatmul.bf16.gmra.mxu1 %v8899_v63 }
  0xe2   :  { %v5812_v8 = vadd.f32 %v9929_v53, %v5612_v7  ;;  %3498 = vmatmul.bf16.gmra.mxu2 %v8997_v4  ;;  %4782 = vmatmul.bf16.gmra.mxu3 %v9095_v5  ;;  %v8804_v4 = vld [vmem:[%s11509_s0 + $0x78] sm:$0xff]  ;;  %v8902_v5 = vld [vmem:[%s11509_s0 + $0x388] sm:$0xff] }
  0xe4   :  { %v6008_v10 = vmax.f32 %v5812_v8, 0.0 }
  0xe5   :  { %v3459_v11 = vpop.f32.mrf.mxu2  ;;  %v4743_v12 = vpop.f32.mrf.mxu3 }
  0xe6   :  { %v9199_v13 = vpack.c.bf16 %v6008_v10, %v6007_v9  ;;  %v893_v14 = vpop.f32.mrf.mxu0  ;;  %v2177_v15 = vpop.f32.mrf.mxu1  ;;  %v5417_v17 = vmax.f32 %v3459_v11, %v4743_v12  ;;  %v9000_v10 = vld [vmem:[%s11509_s0 + $0x698] sm:$0xff]  ;;  %v9098_v11 = vld [vmem:[%s11509_s0 + $0x9a8] sm:$0xff] }
  0xe7   :  { %v5222_v23 = vmax.f32 %v893_v14, %v2177_v15 }
  0xe8   :  { %9673 = vst [vmem:[%s11511_s3 + $0x18] sm:$0xff] %v9199_v13   ;;  %v5613_v18 = vmax.f32 %v5221_v16, %v5417_v17 }
  0xea   :  { %v5813_v29 = vadd.f32 %v9929_v53, %v5613_v18 }
  0xec   :  { %v6009_v32 = vmax.f32 %v5813_v29, 0.0 }
  0xed   :  { %v3461_v19 = vpop.f32.mrf.mxu2  ;;  %v4745_v20 = vpop.f32.mrf.mxu3 }
  0xee   :  { %v5418_v24 = vmax.f32 %v3461_v19, %v4745_v20  ;;  %v896_v25 = vpop.f32.mrf.mxu0  ;;  %v2180_v26 = vpop.f32.mrf.mxu1 }
  0xef   :  { %v5223_v39 = vmax.f32 %v896_v25, %v2180_v26 }
  0xf0   :  { %v5614_v30 = vmax.f32 %v5222_v23, %v5418_v24 }
  0xf1   :  { %935 = vmatmul.bf16.gmra.mxu0 %v8802_v21  ;;  %2219 = vmatmul.bf16.gmra.mxu1 %v8900_v22 }
  0xf2   :  { %v5814_v31 = vadd.f32 %v9929_v53, %v5614_v30  ;;  %3503 = vmatmul.bf16.gmra.mxu2 %v8998_v27  ;;  %4787 = vmatmul.bf16.gmra.mxu3 %v9096_v28  ;;  %v8805_v27 = vld [vmem:[%s11509_s0 + $0x80] sm:$0xff]  ;;  %v8903_v28 = vld [vmem:[%s11509_s0 + $0x390] sm:$0xff] }
  0xf4   :  { %v6010_v33 = vmax.f32 %v5814_v31, 0.0 }
  0xf5   :  { %v3464_v34 = vpop.f32.mrf.mxu2  ;;  %v4748_v35 = vpop.f32.mrf.mxu3 }
  0xf6   :  { %v9204_v36 = vpack.c.bf16 %v6010_v33, %v6009_v32  ;;  %v898_v37 = vpop.f32.mrf.mxu0  ;;  %v2182_v38 = vpop.f32.mrf.mxu1  ;;  %v5419_v40 = vmax.f32 %v3464_v34, %v4748_v35  ;;  %v9001_v33 = vld [vmem:[%s11509_s0 + $0x6a0] sm:$0xff]  ;;  %v9099_v34 = vld [vmem:[%s11509_s0 + $0x9b0] sm:$0xff] }
  0xf7   :  { %v5224_v46 = vmax.f32 %v898_v37, %v2182_v38 }
  0xf8   :  { %9674 = vst [vmem:[%s11511_s3 + $0x20] sm:$0xff] %v9204_v36   ;;  %v5615_v41 = vmax.f32 %v5223_v39, %v5419_v40 }
  0xfa   :  { %v5815_v52 = vadd.f32 %v9929_v53, %v5615_v41 }
  0xfc   :  { %v6011_v56 = vmax.f32 %v5815_v52, 0.0 }
  0xfd   :  { %v3466_v42 = vpop.f32.mrf.mxu2  ;;  %v4750_v43 = vpop.f32.mrf.mxu3 }
  0xfe   :  { %v5420_v47 = vmax.f32 %v3466_v42, %v4750_v43  ;;  %v901_v48 = vpop.f32.mrf.mxu0  ;;  %v2185_v49 = vpop.f32.mrf.mxu1 }
  0xff   :  { %v5225_v63 = vmax.f32 %v901_v48, %v2185_v49 }
 0x100   :  { %v5616_v54 = vmax.f32 %v5224_v46, %v5420_v47 }
 0x101   :  { %940 = vmatmul.bf16.gmra.mxu0 %v8803_v44  ;;  %2224 = vmatmul.bf16.gmra.mxu1 %v8901_v45 }
 0x102   :  { %v5816_v55 = vadd.f32 %v9929_v53, %v5616_v54  ;;  %3508 = vmatmul.bf16.gmra.mxu2 %v8999_v50  ;;  %4792 = vmatmul.bf16.gmra.mxu3 %v9097_v51  ;;  %v8806_v50 = vld [vmem:[%s11509_s0 + $0x88] sm:$0xff]  ;;  %v8904_v51 = vld [vmem:[%s11509_s0 + $0x398] sm:$0xff] }
 0x104   :  { %v6012_v57 = vmax.f32 %v5816_v55, 0.0 }
 0x105   :  { %v3469_v58 = vpop.f32.mrf.mxu2  ;;  %v4753_v59 = vpop.f32.mrf.mxu3 }
 0x106   :  { %v9209_v60 = vpack.c.bf16 %v6012_v57, %v6011_v56  ;;  %v903_v61 = vpop.f32.mrf.mxu0  ;;  %v2187_v62 = vpop.f32.mrf.mxu1  ;;  %v5421_v0 = vmax.f32 %v3469_v58, %v4753_v59  ;;  %v9002_v57 = vld [vmem:[%s11509_s0 + $0x6a8] sm:$0xff]  ;;  %v9100_v58 = vld [vmem:[%s11509_s0 + $0x9b8] sm:$0xff] }
 0x107   :  { %v5226_v6 = vmax.f32 %v903_v61, %v2187_v62 }
 0x108   :  { %9675 = vst [vmem:[%s11511_s3 + $0x28] sm:$0xff] %v9209_v60   ;;  %v5617_v1 = vmax.f32 %v5225_v63, %v5421_v0 }
 0x10a   :  { %v5817_v12 = vadd.f32 %v9929_v53, %v5617_v1 }
 0x10c   :  { %v6013_v15 = vmax.f32 %v5817_v12, 0.0 }
 0x10d   :  { %v3471_v2 = vpop.f32.mrf.mxu2  ;;  %v4755_v3 = vpop.f32.mrf.mxu3 }
 0x10e   :  { %v5422_v7 = vmax.f32 %v3471_v2, %v4755_v3  ;;  %v906_v8 = vpop.f32.mrf.mxu0  ;;  %v2190_v9 = vpop.f32.mrf.mxu1 }
 0x10f   :  { %v5227_v22 = vmax.f32 %v906_v8, %v2190_v9 }
 0x110   :  { %v5618_v13 = vmax.f32 %v5226_v6, %v5422_v7 }
 0x111   :  { %945 = vmatmul.bf16.gmra.mxu0 %v8804_v4  ;;  %2229 = vmatmul.bf16.gmra.mxu1 %v8902_v5 }
 0x112   :  { %v5818_v14 = vadd.f32 %v9929_v53, %v5618_v13  ;;  %3513 = vmatmul.bf16.gmra.mxu2 %v9000_v10  ;;  %4797 = vmatmul.bf16.gmra.mxu3 %v9098_v11  ;;  %v8807_v10 = vld [vmem:[%s11509_s0 + $0x90] sm:$0xff]  ;;  %v8905_v11 = vld [vmem:[%s11509_s0 + $0x3a0] sm:$0xff] }
 0x114   :  { %v6014_v16 = vmax.f32 %v5818_v14, 0.0 }
 0x115   :  { %v3474_v17 = vpop.f32.mrf.mxu2  ;;  %v4758_v18 = vpop.f32.mrf.mxu3 }
 0x116   :  { %v9214_v19 = vpack.c.bf16 %v6014_v16, %v6013_v15  ;;  %v908_v20 = vpop.f32.mrf.mxu0  ;;  %v2192_v21 = vpop.f32.mrf.mxu1  ;;  %v5423_v23 = vmax.f32 %v3474_v17, %v4758_v18  ;;  %v9003_v16 = vld [vmem:[%s11509_s0 + $0x6b0] sm:$0xff]  ;;  %v9101_v17 = vld [vmem:[%s11509_s0 + $0x9c0] sm:$0xff] }
 0x117   :  { %v5228_v29 = vmax.f32 %v908_v20, %v2192_v21 }
 0x118   :  { %9676 = vst [vmem:[%s11511_s3 + $0x30] sm:$0xff] %v9214_v19   ;;  %v5619_v24 = vmax.f32 %v5227_v22, %v5423_v23 }
 0x11a   :  { %v5819_v35 = vadd.f32 %v9929_v53, %v5619_v24 }
 0x11c   :  { %v6015_v38 = vmax.f32 %v5819_v35, 0.0 }
 0x11d   :  { %v3476_v25 = vpop.f32.mrf.mxu2  ;;  %v4760_v26 = vpop.f32.mrf.mxu3 }
 0x11e   :  { %v5424_v30 = vmax.f32 %v3476_v25, %v4760_v26  ;;  %v911_v31 = vpop.f32.mrf.mxu0  ;;  %v2195_v32 = vpop.f32.mrf.mxu1 }
 0x11f   :  { %v5229_v45 = vmax.f32 %v911_v31, %v2195_v32 }
 0x120   :  { %v5620_v36 = vmax.f32 %v5228_v29, %v5424_v30 }
 0x121   :  { %950 = vmatmul.bf16.gmra.mxu0 %v8805_v27  ;;  %2234 = vmatmul.bf16.gmra.mxu1 %v8903_v28 }
 0x122   :  { %v5820_v37 = vadd.f32 %v9929_v53, %v5620_v36  ;;  %3518 = vmatmul.bf16.gmra.mxu2 %v9001_v33  ;;  %4802 = vmatmul.bf16.gmra.mxu3 %v9099_v34  ;;  %v8808_v33 = vld [vmem:[%s11509_s0 + $0x98] sm:$0xff]  ;;  %v8906_v34 = vld [vmem:[%s11509_s0 + $0x3a8] sm:$0xff] }
 0x124   :  { %v6016_v39 = vmax.f32 %v5820_v37, 0.0 }
 0x125   :  { %v3479_v40 = vpop.f32.mrf.mxu2  ;;  %v4763_v41 = vpop.f32.mrf.mxu3 }
 0x126   :  { %v9219_v42 = vpack.c.bf16 %v6016_v39, %v6015_v38  ;;  %v913_v43 = vpop.f32.mrf.mxu0  ;;  %v2197_v44 = vpop.f32.mrf.mxu1  ;;  %v5425_v46 = vmax.f32 %v3479_v40, %v4763_v41  ;;  %v9004_v39 = vld [vmem:[%s11509_s0 + $0x6b8] sm:$0xff]  ;;  %v9102_v40 = vld [vmem:[%s11509_s0 + $0x9c8] sm:$0xff] }
 0x127   :  { %v5230_v52 = vmax.f32 %v913_v43, %v2197_v44 }
 0x128   :  { %9677 = vst [vmem:[%s11511_s3 + $0x38] sm:$0xff] %v9219_v42   ;;  %v5621_v47 = vmax.f32 %v5229_v45, %v5425_v46 }
 0x12a   :  { %v5821_v59 = vadd.f32 %v9929_v53, %v5621_v47 }
 0x12c   :  { %v6017_v62 = vmax.f32 %v5821_v59, 0.0 }
 0x12d   :  { %v3481_v48 = vpop.f32.mrf.mxu2  ;;  %v4765_v49 = vpop.f32.mrf.mxu3 }
 0x12e   :  { %v5426_v54 = vmax.f32 %v3481_v48, %v4765_v49  ;;  %v916_v55 = vpop.f32.mrf.mxu0  ;;  %v2200_v56 = vpop.f32.mrf.mxu1 }
 0x12f   :  { %v5231_v5 = vmax.f32 %v916_v55, %v2200_v56 }
 0x130   :  { %v5622_v60 = vmax.f32 %v5230_v52, %v5426_v54 }
 0x131   :  { %955 = vmatmul.bf16.gmra.mxu0 %v8806_v50  ;;  %2239 = vmatmul.bf16.gmra.mxu1 %v8904_v51 }
 0x132   :  { %v5822_v61 = vadd.f32 %v9929_v53, %v5622_v60  ;;  %3523 = vmatmul.bf16.gmra.mxu2 %v9002_v57  ;;  %4807 = vmatmul.bf16.gmra.mxu3 %v9100_v58  ;;  %v8809_v57 = vld [vmem:[%s11509_s0 + $0xa0] sm:$0xff]  ;;  %v8907_v58 = vld [vmem:[%s11509_s0 + $0x3b0] sm:$0xff] }
 0x134   :  { %v6018_v63 = vmax.f32 %v5822_v61, 0.0 }
 0x135   :  { %v3484_v0 = vpop.f32.mrf.mxu2  ;;  %v4768_v1 = vpop.f32.mrf.mxu3 }
 0x136   :  { %v9224_v2 = vpack.c.bf16 %v6018_v63, %v6017_v62  ;;  %v918_v3 = vpop.f32.mrf.mxu0  ;;  %v2202_v4 = vpop.f32.mrf.mxu1  ;;  %v5427_v6 = vmax.f32 %v3484_v0, %v4768_v1  ;;  %v9005_v63 = vld [vmem:[%s11509_s0 + $0x6c0] sm:$0xff]  ;;  %v9103_v0 = vld [vmem:[%s11509_s0 + $0x9d0] sm:$0xff] }
 0x137   :  { %v5232_v12 = vmax.f32 %v918_v3, %v2202_v4 }
 0x138   :  { %9678 = vst [vmem:[%s11511_s3 + $0x40] sm:$0xff] %v9224_v2   ;;  %v5623_v7 = vmax.f32 %v5231_v5, %v5427_v6 }
 0x13a   :  { %v5823_v18 = vadd.f32 %v9929_v53, %v5623_v7 }
 0x13c   :  { %v6019_v21 = vmax.f32 %v5823_v18, 0.0 }
 0x13d   :  { %v3486_v8 = vpop.f32.mrf.mxu2  ;;  %v4770_v9 = vpop.f32.mrf.mxu3 }
 0x13e   :  { %v5428_v13 = vmax.f32 %v3486_v8, %v4770_v9  ;;  %v921_v14 = vpop.f32.mrf.mxu0  ;;  %v2205_v15 = vpop.f32.mrf.mxu1 }
 0x13f   :  { %v5233_v28 = vmax.f32 %v921_v14, %v2205_v15 }
 0x140   :  { %v5624_v19 = vmax.f32 %v5232_v12, %v5428_v13 }
 0x141   :  { %960 = vmatmul.bf16.gmra.mxu0 %v8807_v10  ;;  %2244 = vmatmul.bf16.gmra.mxu1 %v8905_v11 }
 0x142   :  { %v5824_v20 = vadd.f32 %v9929_v53, %v5624_v19  ;;  %3528 = vmatmul.bf16.gmra.mxu2 %v9003_v16  ;;  %4812 = vmatmul.bf16.gmra.mxu3 %v9101_v17  ;;  %v8810_v16 = vld [vmem:[%s11509_s0 + $0xa8] sm:$0xff]  ;;  %v8908_v17 = vld [vmem:[%s11509_s0 + $0x3b8] sm:$0xff] }
 0x144   :  { %v6020_v22 = vmax.f32 %v5824_v20, 0.0 }
 0x145   :  { %v3489_v23 = vpop.f32.mrf.mxu2  ;;  %v4773_v24 = vpop.f32.mrf.mxu3 }
 0x146   :  { %v9229_v25 = vpack.c.bf16 %v6020_v22, %v6019_v21  ;;  %v923_v26 = vpop.f32.mrf.mxu0  ;;  %v2207_v27 = vpop.f32.mrf.mxu1  ;;  %v5429_v29 = vmax.f32 %v3489_v23, %v4773_v24  ;;  %v9006_v22 = vld [vmem:[%s11509_s0 + $0x6c8] sm:$0xff]  ;;  %v9104_v23 = vld [vmem:[%s11509_s0 + $0x9d8] sm:$0xff] }
 0x147   :  { %v5234_v35 = vmax.f32 %v923_v26, %v2207_v27 }
 0x148   :  { %9679 = vst [vmem:[%s11511_s3 + $0x48] sm:$0xff] %v9229_v25   ;;  %v5625_v30 = vmax.f32 %v5233_v28, %v5429_v29 }
 0x14a   :  { %v5825_v41 = vadd.f32 %v9929_v53, %v5625_v30 }
 0x14c   :  { %v6021_v44 = vmax.f32 %v5825_v41, 0.0 }
 0x14d   :  { %v3491_v31 = vpop.f32.mrf.mxu2  ;;  %v4775_v32 = vpop.f32.mrf.mxu3 }
 0x14e   :  { %v5430_v36 = vmax.f32 %v3491_v31, %v4775_v32  ;;  %v926_v37 = vpop.f32.mrf.mxu0  ;;  %v2210_v38 = vpop.f32.mrf.mxu1 }
 0x14f   :  { %v5235_v51 = vmax.f32 %v926_v37, %v2210_v38 }
 0x150   :  { %v5626_v42 = vmax.f32 %v5234_v35, %v5430_v36 }
 0x151   :  { %965 = vmatmul.bf16.gmra.mxu0 %v8808_v33  ;;  %2249 = vmatmul.bf16.gmra.mxu1 %v8906_v34 }
 0x152   :  { %v5826_v43 = vadd.f32 %v9929_v53, %v5626_v42  ;;  %3533 = vmatmul.bf16.gmra.mxu2 %v9004_v39  ;;  %4817 = vmatmul.bf16.gmra.mxu3 %v9102_v40  ;;  %v8811_v39 = vld [vmem:[%s11509_s0 + $0xb0] sm:$0xff]  ;;  %v8909_v40 = vld [vmem:[%s11509_s0 + $0x3c0] sm:$0xff] }
 0x154   :  { %v6022_v45 = vmax.f32 %v5826_v43, 0.0 }
 0x155   :  { %v3494_v46 = vpop.f32.mrf.mxu2  ;;  %v4778_v47 = vpop.f32.mrf.mxu3 }
 0x156   :  { %v9234_v48 = vpack.c.bf16 %v6022_v45, %v6021_v44  ;;  %v928_v49 = vpop.f32.mrf.mxu0  ;;  %v2212_v50 = vpop.f32.mrf.mxu1  ;;  %v5431_v52 = vmax.f32 %v3494_v46, %v4778_v47  ;;  %v9007_v45 = vld [vmem:[%s11509_s0 + $0x6d0] sm:$0xff]  ;;  %v9105_v46 = vld [vmem:[%s11509_s0 + $0x9e0] sm:$0xff] }
 0x157   :  { %v5236_v59 = vmax.f32 %v928_v49, %v2212_v50 }
 0x158   :  { %9680 = vst [vmem:[%s11511_s3 + $0x50] sm:$0xff] %v9234_v48   ;;  %v5627_v54 = vmax.f32 %v5235_v51, %v5431_v52 }
 0x15a   :  { %v5827_v1 = vadd.f32 %v9929_v53, %v5627_v54 }
 0x15c   :  { %v6023_v4 = vmax.f32 %v5827_v1, 0.0 }
 0x15d   :  { %v3496_v55 = vpop.f32.mrf.mxu2  ;;  %v4780_v56 = vpop.f32.mrf.mxu3 }
 0x15e   :  { %v5432_v60 = vmax.f32 %v3496_v55, %v4780_v56  ;;  %v931_v61 = vpop.f32.mrf.mxu0  ;;  %v2215_v62 = vpop.f32.mrf.mxu1 }
 0x15f   :  { %v5237_v11 = vmax.f32 %v931_v61, %v2215_v62 }
 0x160   :  { %v5628_v2 = vmax.f32 %v5236_v59, %v5432_v60 }
 0x161   :  { %970 = vmatmul.bf16.gmra.mxu0 %v8809_v57  ;;  %2254 = vmatmul.bf16.gmra.mxu1 %v8907_v58 }
 0x162   :  { %v5828_v3 = vadd.f32 %v9929_v53, %v5628_v2  ;;  %3538 = vmatmul.bf16.gmra.mxu2 %v9005_v63  ;;  %4822 = vmatmul.bf16.gmra.mxu3 %v9103_v0  ;;  %v8812_v63 = vld [vmem:[%s11509_s0 + $0xb8] sm:$0xff]  ;;  %v8910_v0 = vld [vmem:[%s11509_s0 + $0x3c8] sm:$0xff] }
 0x164   :  { %v6024_v5 = vmax.f32 %v5828_v3, 0.0 }
 0x165   :  { %v3499_v6 = vpop.f32.mrf.mxu2  ;;  %v4783_v7 = vpop.f32.mrf.mxu3 }
 0x166   :  { %v9239_v8 = vpack.c.bf16 %v6024_v5, %v6023_v4  ;;  %v933_v9 = vpop.f32.mrf.mxu0  ;;  %v2217_v10 = vpop.f32.mrf.mxu1  ;;  %v5433_v12 = vmax.f32 %v3499_v6, %v4783_v7  ;;  %v9008_v5 = vld [vmem:[%s11509_s0 + $0x6d8] sm:$0xff]  ;;  %v9106_v6 = vld [vmem:[%s11509_s0 + $0x9e8] sm:$0xff] }
 0x167   :  { %v5238_v18 = vmax.f32 %v933_v9, %v2217_v10 }
 0x168   :  { %9681 = vst [vmem:[%s11511_s3 + $0x58] sm:$0xff] %v9239_v8   ;;  %v5629_v13 = vmax.f32 %v5237_v11, %v5433_v12 }
 0x16a   :  { %v5829_v24 = vadd.f32 %v9929_v53, %v5629_v13 }
 0x16c   :  { %v6025_v27 = vmax.f32 %v5829_v24, 0.0 }
 0x16d   :  { %v3501_v14 = vpop.f32.mrf.mxu2  ;;  %v4785_v15 = vpop.f32.mrf.mxu3 }
 0x16e   :  { %v5434_v19 = vmax.f32 %v3501_v14, %v4785_v15  ;;  %v936_v20 = vpop.f32.mrf.mxu0  ;;  %v2220_v21 = vpop.f32.mrf.mxu1 }
 0x16f   :  { %v5239_v34 = vmax.f32 %v936_v20, %v2220_v21 }
 0x170   :  { %v5630_v25 = vmax.f32 %v5238_v18, %v5434_v19 }
 0x171   :  { %975 = vmatmul.bf16.gmra.mxu0 %v8810_v16  ;;  %2259 = vmatmul.bf16.gmra.mxu1 %v8908_v17 }
 0x172   :  { %v5830_v26 = vadd.f32 %v9929_v53, %v5630_v25  ;;  %3543 = vmatmul.bf16.gmra.mxu2 %v9006_v22  ;;  %4827 = vmatmul.bf16.gmra.mxu3 %v9104_v23  ;;  %v8813_v22 = vld [vmem:[%s11509_s0 + $0xc0] sm:$0xff]  ;;  %v8911_v23 = vld [vmem:[%s11509_s0 + $0x3d0] sm:$0xff] }
 0x174   :  { %v6026_v28 = vmax.f32 %v5830_v26, 0.0 }
 0x175   :  { %v3504_v29 = vpop.f32.mrf.mxu2  ;;  %v4788_v30 = vpop.f32.mrf.mxu3 }
 0x176   :  { %v9244_v31 = vpack.c.bf16 %v6026_v28, %v6025_v27  ;;  %v938_v32 = vpop.f32.mrf.mxu0  ;;  %v2222_v33 = vpop.f32.mrf.mxu1  ;;  %v5435_v35 = vmax.f32 %v3504_v29, %v4788_v30  ;;  %v9009_v28 = vld [vmem:[%s11509_s0 + $0x6e0] sm:$0xff]  ;;  %v9107_v29 = vld [vmem:[%s11509_s0 + $0x9f0] sm:$0xff] }
 0x177   :  { %v5240_v41 = vmax.f32 %v938_v32, %v2222_v33 }
 0x178   :  { %9682 = vst [vmem:[%s11511_s3 + $0x60] sm:$0xff] %v9244_v31   ;;  %v5631_v36 = vmax.f32 %v5239_v34, %v5435_v35 }
 0x17a   :  { %v5831_v47 = vadd.f32 %v9929_v53, %v5631_v36 }
 0x17c   :  { %v6027_v50 = vmax.f32 %v5831_v47, 0.0 }
 0x17d   :  { %v3506_v37 = vpop.f32.mrf.mxu2  ;;  %v4790_v38 = vpop.f32.mrf.mxu3 }
 0x17e   :  { %v5436_v42 = vmax.f32 %v3506_v37, %v4790_v38  ;;  %v941_v43 = vpop.f32.mrf.mxu0  ;;  %v2225_v44 = vpop.f32.mrf.mxu1 }
 0x17f   :  { %v5241_v58 = vmax.f32 %v941_v43, %v2225_v44 }
 0x180   :  { %v5632_v48 = vmax.f32 %v5240_v41, %v5436_v42 }
 0x181   :  { %980 = vmatmul.bf16.gmra.mxu0 %v8811_v39  ;;  %2264 = vmatmul.bf16.gmra.mxu1 %v8909_v40 }
 0x182   :  { %v5832_v49 = vadd.f32 %v9929_v53, %v5632_v48  ;;  %3548 = vmatmul.bf16.gmra.mxu2 %v9007_v45  ;;  %4832 = vmatmul.bf16.gmra.mxu3 %v9105_v46  ;;  %v8814_v45 = vld [vmem:[%s11509_s0 + $0xc8] sm:$0xff]  ;;  %v8912_v46 = vld [vmem:[%s11509_s0 + $0x3d8] sm:$0xff] }
 0x184   :  { %v6028_v51 = vmax.f32 %v5832_v49, 0.0 }
 0x185   :  { %v3509_v52 = vpop.f32.mrf.mxu2  ;;  %v4793_v54 = vpop.f32.mrf.mxu3 }
 0x186   :  { %v9249_v55 = vpack.c.bf16 %v6028_v51, %v6027_v50  ;;  %v943_v56 = vpop.f32.mrf.mxu0  ;;  %v2227_v57 = vpop.f32.mrf.mxu1  ;;  %v5437_v59 = vmax.f32 %v3509_v52, %v4793_v54  ;;  %v9010_v51 = vld [vmem:[%s11509_s0 + $0x6e8] sm:$0xff]  ;;  %v9108_v52 = vld [vmem:[%s11509_s0 + $0x9f8] sm:$0xff] }
 0x187   :  { %v5242_v1 = vmax.f32 %v943_v56, %v2227_v57 }
 0x188   :  { %9683 = vst [vmem:[%s11511_s3 + $0x68] sm:$0xff] %v9249_v55   ;;  %v5633_v60 = vmax.f32 %v5241_v58, %v5437_v59 }
 0x18a   :  { %v5833_v7 = vadd.f32 %v9929_v53, %v5633_v60 }
 0x18c   :  { %v6029_v10 = vmax.f32 %v5833_v7, 0.0 }
 0x18d   :  { %v3511_v61 = vpop.f32.mrf.mxu2  ;;  %v4795_v62 = vpop.f32.mrf.mxu3 }
 0x18e   :  { %v5438_v2 = vmax.f32 %v3511_v61, %v4795_v62  ;;  %v946_v3 = vpop.f32.mrf.mxu0  ;;  %v2230_v4 = vpop.f32.mrf.mxu1 }
 0x18f   :  { %v5243_v17 = vmax.f32 %v946_v3, %v2230_v4 }
 0x190   :  { %v5634_v8 = vmax.f32 %v5242_v1, %v5438_v2 }
 0x191   :  { %985 = vmatmul.bf16.gmra.mxu0 %v8812_v63  ;;  %2269 = vmatmul.bf16.gmra.mxu1 %v8910_v0 }
 0x192   :  { %v5834_v9 = vadd.f32 %v9929_v53, %v5634_v8  ;;  %3553 = vmatmul.bf16.gmra.mxu2 %v9008_v5  ;;  %4837 = vmatmul.bf16.gmra.mxu3 %v9106_v6  ;;  %v8815_v5 = vld [vmem:[%s11509_s0 + $0xd0] sm:$0xff]  ;;  %v8913_v6 = vld [vmem:[%s11509_s0 + $0x3e0] sm:$0xff] }
 0x194   :  { %v6030_v11 = vmax.f32 %v5834_v9, 0.0 }
 0x195   :  { %v3514_v12 = vpop.f32.mrf.mxu2  ;;  %v4798_v13 = vpop.f32.mrf.mxu3 }
 0x196   :  { %v9254_v14 = vpack.c.bf16 %v6030_v11, %v6029_v10  ;;  %v948_v15 = vpop.f32.mrf.mxu0  ;;  %v2232_v16 = vpop.f32.mrf.mxu1  ;;  %v5439_v18 = vmax.f32 %v3514_v12, %v4798_v13  ;;  %v9011_v11 = vld [vmem:[%s11509_s0 + $0x6f0] sm:$0xff]  ;;  %v9109_v12 = vld [vmem:[%s11509_s0 + $0xa00] sm:$0xff] }
 0x197   :  { %v5244_v24 = vmax.f32 %v948_v15, %v2232_v16 }
 0x198   :  { %9684 = vst [vmem:[%s11511_s3 + $0x70] sm:$0xff] %v9254_v14   ;;  %v5635_v19 = vmax.f32 %v5243_v17, %v5439_v18 }
 0x19a   :  { %v5835_v30 = vadd.f32 %v9929_v53, %v5635_v19 }
 0x19c   :  { %v6031_v33 = vmax.f32 %v5835_v30, 0.0 }
 0x19d   :  { %v3516_v20 = vpop.f32.mrf.mxu2  ;;  %v4800_v21 = vpop.f32.mrf.mxu3 }
 0x19e   :  { %v5440_v25 = vmax.f32 %v3516_v20, %v4800_v21  ;;  %v951_v26 = vpop.f32.mrf.mxu0  ;;  %v2235_v27 = vpop.f32.mrf.mxu1 }
 0x19f   :  { %v5245_v40 = vmax.f32 %v951_v26, %v2235_v27 }
 0x1a0   :  { %v5636_v31 = vmax.f32 %v5244_v24, %v5440_v25 }
 0x1a1   :  { %990 = vmatmul.bf16.gmra.mxu0 %v8813_v22  ;;  %2274 = vmatmul.bf16.gmra.mxu1 %v8911_v23 }
 0x1a2   :  { %v5836_v32 = vadd.f32 %v9929_v53, %v5636_v31  ;;  %3558 = vmatmul.bf16.gmra.mxu2 %v9009_v28  ;;  %4842 = vmatmul.bf16.gmra.mxu3 %v9107_v29  ;;  %v8914_v28 = vld [vmem:[%s11509_s0 + $0x3e8] sm:$0xff] }
 0x1a4   :  { %v6032_v34 = vmax.f32 %v5836_v32, 0.0 }
 0x1a5   :  { %v3519_v35 = vpop.f32.mrf.mxu2  ;;  %v4803_v36 = vpop.f32.mrf.mxu3 }
 0x1a6   :  { %v9259_v37 = vpack.c.bf16 %v6032_v34, %v6031_v33  ;;  %v953_v38 = vpop.f32.mrf.mxu0  ;;  %v2237_v39 = vpop.f32.mrf.mxu1  ;;  %v5441_v41 = vmax.f32 %v3519_v35, %v4803_v36  ;;  %v9012_v33 = vld [vmem:[%s11509_s0 + $0x6f8] sm:$0xff]  ;;  %v9110_v34 = vld [vmem:[%s11509_s0 + $0xa08] sm:$0xff]  ;;  %v10252_v35 = vld [vmem:[%s11510_s2] ss:$0 sm:$0xff] }
 0x1a7   :  { %v5246_v47 = vmax.f32 %v953_v38, %v2237_v39 }
 0x1a8   :  { %9685 = vst [vmem:[%s11511_s3 + $0x78] sm:$0xff] %v9259_v37   ;;  %v5637_v42 = vmax.f32 %v5245_v40, %v5441_v41 }
 0x1aa   :  { %v5837_v54 = vadd.f32 %v9929_v53, %v5637_v42 }
 0x1ac   :  { %v6033_v57 = vmax.f32 %v5837_v54, 0.0 }
 0x1ad   :  { %v3521_v43 = vpop.f32.mrf.mxu2  ;;  %v4805_v44 = vpop.f32.mrf.mxu3 }
 0x1ae   :  { %v5442_v48 = vmax.f32 %v3521_v43, %v4805_v44  ;;  %v956_v49 = vpop.f32.mrf.mxu0  ;;  %v2240_v50 = vpop.f32.mrf.mxu1 }
 0x1af   :  { %v5247_v0 = vmax.f32 %v956_v49, %v2240_v50 }
 0x1b0   :  { %v5638_v55 = vmax.f32 %v5246_v47, %v5442_v48 }
 0x1b1   :  { %995 = vmatmul.bf16.gmra.mxu0 %v8814_v45  ;;  %2279 = vmatmul.bf16.gmra.mxu1 %v8912_v46 }
 0x1b2   :  { %v5838_v56 = vadd.f32 %v9929_v53, %v5638_v55  ;;  %3563 = vmatmul.bf16.gmra.mxu2 %v9010_v51  ;;  %4847 = vmatmul.bf16.gmra.mxu3 %v9108_v52  ;;  %v8817_v51 = vld [vmem:[%s11509_s0 + $0xe0] sm:$0xff]  ;;  %v8915_v52 = vld [vmem:[%s11509_s0 + $0x3f0] sm:$0xff] }
 0x1b4   :  { %v6034_v58 = vmax.f32 %v5838_v56, 0.0 }
 0x1b5   :  { %v3524_v59 = vpop.f32.mrf.mxu2  ;;  %v4808_v60 = vpop.f32.mrf.mxu3 }
 0x1b6   :  { %v9264_v61 = vpack.c.bf16 %v6034_v58, %v6033_v57  ;;  %v958_v62 = vpop.f32.mrf.mxu0  ;;  %v2242_v63 = vpop.f32.mrf.mxu1  ;;  %v5443_v1 = vmax.f32 %v3524_v59, %v4808_v60  ;;  %v9013_v58 = vld [vmem:[%s11509_s0 + $0x700] sm:$0xff]  ;;  %v9111_v59 = vld [vmem:[%s11509_s0 + $0xa10] sm:$0xff] }
 0x1b7   :  { %v5248_v7 = vmax.f32 %v958_v62, %v2242_v63 }
 0x1b8   :  { %9686 = vst [vmem:[%s11511_s3 + $0x80] sm:$0xff] %v9264_v61   ;;  %v5639_v2 = vmax.f32 %v5247_v0, %v5443_v1 }
 0x1ba   :  { %v5839_v13 = vadd.f32 %v9929_v53, %v5639_v2 }
 0x1bc   :  { %v6035_v16 = vmax.f32 %v5839_v13, 0.0 }
 0x1bd   :  { %v3526_v3 = vpop.f32.mrf.mxu2  ;;  %v4810_v4 = vpop.f32.mrf.mxu3 }
 0x1be   :  { %v5444_v8 = vmax.f32 %v3526_v3, %v4810_v4  ;;  %v961_v9 = vpop.f32.mrf.mxu0  ;;  %v2245_v10 = vpop.f32.mrf.mxu1 }
 0x1bf   :  { %v5249_v23 = vmax.f32 %v961_v9, %v2245_v10 }
 0x1c0   :  { %v5640_v14 = vmax.f32 %v5248_v7, %v5444_v8 }
 0x1c1   :  { %1000 = vmatmul.bf16.gmra.mxu0 %v8815_v5  ;;  %2284 = vmatmul.bf16.gmra.mxu1 %v8913_v6 }
 0x1c2   :  { %v5840_v15 = vadd.f32 %v9929_v53, %v5640_v14  ;;  %3568 = vmatmul.bf16.gmra.mxu2 %v9011_v11  ;;  %4852 = vmatmul.bf16.gmra.mxu3 %v9109_v12  ;;  %v8816_v53 = vld [vmem:[%s11509_s0 + $0xd8] sm:$0xff]  ;;  %v8818_v11 = vld [vmem:[%s11509_s0 + $0xe8] sm:$0xff] }
 0x1c3   :  { %v8916_v12 = vld [vmem:[%s11509_s0 + $0x3f8] sm:$0xff] }
 0x1c4   :  { %v6036_v17 = vmax.f32 %v5840_v15, 0.0 }
 0x1c5   :  { %v3529_v18 = vpop.f32.mrf.mxu2  ;;  %v4813_v19 = vpop.f32.mrf.mxu3 }
 0x1c6   :  { %v9269_v20 = vpack.c.bf16 %v6036_v17, %v6035_v16  ;;  %v963_v21 = vpop.f32.mrf.mxu0  ;;  %v2247_v22 = vpop.f32.mrf.mxu1  ;;  %v5445_v24 = vmax.f32 %v3529_v18, %v4813_v19  ;;  %v9014_v17 = vld [vmem:[%s11509_s0 + $0x708] sm:$0xff]  ;;  %v9112_v18 = vld [vmem:[%s11509_s0 + $0xa18] sm:$0xff] }
 0x1c7   :  { %v5250_v29 = vmax.f32 %v963_v21, %v2247_v22 }
 0x1c8   :  { %9687 = vst [vmem:[%s11511_s3 + $0x88] sm:$0xff] %v9269_v20   ;;  %v5641_v25 = vmax.f32 %v5249_v23, %v5445_v24 }
 0x1ca   :  { %v5841_v36 = vadd.f32 %v10252_v35, %v5641_v25 }
 0x1cc   :  { %v6037_v39 = vmax.f32 %v5841_v36, 0.0 }
 0x1cd   :  { %v3531_v26 = vpop.f32.mrf.mxu2  ;;  %v4815_v27 = vpop.f32.mrf.mxu3 }
 0x1ce   :  { %v5446_v30 = vmax.f32 %v3531_v26, %v4815_v27  ;;  %v966_v31 = vpop.f32.mrf.mxu0  ;;  %v2250_v32 = vpop.f32.mrf.mxu1 }
 0x1cf   :  { %v5251_v46 = vmax.f32 %v966_v31, %v2250_v32 }
 0x1d0   :  { %v5642_v37 = vmax.f32 %v5250_v29, %v5446_v30 }
 0x1d1   :  { %1005 = vmatmul.bf16.gmra.mxu0 %v8816_v53  ;;  %2289 = vmatmul.bf16.gmra.mxu1 %v8914_v28 }
 0x1d2   :  { %v5842_v38 = vadd.f32 %v10252_v35, %v5642_v37  ;;  %3573 = vmatmul.bf16.gmra.mxu2 %v9012_v33  ;;  %4857 = vmatmul.bf16.gmra.mxu3 %v9110_v34  ;;  %v8819_v33 = vld [vmem:[%s11509_s0 + $0xf0] sm:$0xff]  ;;  %v8917_v34 = vld [vmem:[%s11509_s0 + $0x400] sm:$0xff] }
 0x1d4   :  { %v6038_v40 = vmax.f32 %v5842_v38, 0.0 }
 0x1d5   :  { %v3534_v41 = vpop.f32.mrf.mxu2  ;;  %v4818_v42 = vpop.f32.mrf.mxu3 }
 0x1d6   :  { %v9274_v43 = vpack.c.bf16 %v6038_v40, %v6037_v39  ;;  %v968_v44 = vpop.f32.mrf.mxu0  ;;  %v2252_v45 = vpop.f32.mrf.mxu1  ;;  %v5447_v47 = vmax.f32 %v3534_v41, %v4818_v42  ;;  %v9015_v40 = vld [vmem:[%s11509_s0 + $0x710] sm:$0xff]  ;;  %v9113_v41 = vld [vmem:[%s11509_s0 + $0xa20] sm:$0xff] }
 0x1d7   :  { %v5252_v54 = vmax.f32 %v968_v44, %v2252_v45 }
 0x1d8   :  { %9688 = vst [vmem:[%s11511_s3 + $0x90] sm:$0xff] %v9274_v43   ;;  %v5643_v48 = vmax.f32 %v5251_v46, %v5447_v47 }
 0x1da   :  { %v5843_v60 = vadd.f32 %v10252_v35, %v5643_v48 }
 0x1dc   :  { %v6039_v63 = vmax.f32 %v5843_v60, 0.0 }
 0x1dd   :  { %v3536_v49 = vpop.f32.mrf.mxu2  ;;  %v4820_v50 = vpop.f32.mrf.mxu3 }
 0x1de   :  { %v5448_v55 = vmax.f32 %v3536_v49, %v4820_v50  ;;  %v971_v56 = vpop.f32.mrf.mxu0  ;;  %v2255_v57 = vpop.f32.mrf.mxu1 }
 0x1df   :  { %v5253_v6 = vmax.f32 %v971_v56, %v2255_v57 }
 0x1e0   :  { %v5644_v61 = vmax.f32 %v5252_v54, %v5448_v55 }
 0x1e1   :  { %1010 = vmatmul.bf16.gmra.mxu0 %v8817_v51  ;;  %2294 = vmatmul.bf16.gmra.mxu1 %v8915_v52 }
 0x1e2   :  { %v5844_v62 = vadd.f32 %v10252_v35, %v5644_v61  ;;  %3578 = vmatmul.bf16.gmra.mxu2 %v9013_v58  ;;  %4862 = vmatmul.bf16.gmra.mxu3 %v9111_v59  ;;  %v8820_v58 = vld [vmem:[%s11509_s0 + $0xf8] sm:$0xff]  ;;  %v8918_v59 = vld [vmem:[%s11509_s0 + $0x408] sm:$0xff] }
 0x1e4   :  { %v6040_v0 = vmax.f32 %v5844_v62, 0.0 }
 0x1e5   :  { %v3539_v1 = vpop.f32.mrf.mxu2  ;;  %v4823_v2 = vpop.f32.mrf.mxu3 }
 0x1e6   :  { %v9279_v3 = vpack.c.bf16 %v6040_v0, %v6039_v63  ;;  %v973_v4 = vpop.f32.mrf.mxu0  ;;  %v2257_v5 = vpop.f32.mrf.mxu1  ;;  %v5449_v7 = vmax.f32 %v3539_v1, %v4823_v2  ;;  %v9016_v0 = vld [vmem:[%s11509_s0 + $0x718] sm:$0xff]  ;;  %v9114_v1 = vld [vmem:[%s11509_s0 + $0xa28] sm:$0xff] }
 0x1e7   :  { %v5254_v13 = vmax.f32 %v973_v4, %v2257_v5 }
 0x1e8   :  { %9689 = vst [vmem:[%s11511_s3 + $0x98] sm:$0xff] %v9279_v3   ;;  %v5645_v8 = vmax.f32 %v5253_v6, %v5449_v7 }
 0x1ea   :  { %v5845_v19 = vadd.f32 %v10252_v35, %v5645_v8 }
 0x1ec   :  { %v6041_v22 = vmax.f32 %v5845_v19, 0.0 }
 0x1ed   :  { %v3541_v9 = vpop.f32.mrf.mxu2  ;;  %v4825_v10 = vpop.f32.mrf.mxu3 }
 0x1ee   :  { %v5450_v14 = vmax.f32 %v3541_v9, %v4825_v10  ;;  %v976_v15 = vpop.f32.mrf.mxu0  ;;  %v2260_v16 = vpop.f32.mrf.mxu1 }
 0x1ef   :  { %v5255_v28 = vmax.f32 %v976_v15, %v2260_v16 }
 0x1f0   :  { %v5646_v20 = vmax.f32 %v5254_v13, %v5450_v14 }
 0x1f1   :  { %1015 = vmatmul.bf16.gmra.mxu0 %v8818_v11  ;;  %2299 = vmatmul.bf16.gmra.mxu1 %v8916_v12 }
 0x1f2   :  { %v5846_v21 = vadd.f32 %v10252_v35, %v5646_v20  ;;  %3583 = vmatmul.bf16.gmra.mxu2 %v9014_v17  ;;  %4867 = vmatmul.bf16.gmra.mxu3 %v9112_v18  ;;  %v8821_v17 = vld [vmem:[%s11509_s0 + $0x100] sm:$0xff]  ;;  %v8919_v18 = vld [vmem:[%s11509_s0 + $0x410] sm:$0xff] }
 0x1f4   :  { %v6042_v23 = vmax.f32 %v5846_v21, 0.0 }
 0x1f5   :  { %v3544_v24 = vpop.f32.mrf.mxu2  ;;  %v4828_v25 = vpop.f32.mrf.mxu3 }
 0x1f6   :  { %v9284_v26 = vpack.c.bf16 %v6042_v23, %v6041_v22  ;;  %v978_v27 = vpop.f32.mrf.mxu0  ;;  %v2262_v53 = vpop.f32.mrf.mxu1  ;;  %v5451_v29 = vmax.f32 %v3544_v24, %v4828_v25  ;;  %v9017_v23 = vld [vmem:[%s11509_s0 + $0x720] sm:$0xff]  ;;  %v9115_v24 = vld [vmem:[%s11509_s0 + $0xa30] sm:$0xff] }
 0x1f7   :  { %v5256_v36 = vmax.f32 %v978_v27, %v2262_v53 }
 0x1f8   :  { %9690 = vst [vmem:[%s11511_s3 + $0xa0] sm:$0xff] %v9284_v26   ;;  %v5647_v30 = vmax.f32 %v5255_v28, %v5451_v29 }
 0x1fa   :  { %v5847_v42 = vadd.f32 %v10252_v35, %v5647_v30 }
 0x1fc   :  { %v6043_v45 = vmax.f32 %v5847_v42, 0.0 }
 0x1fd   :  { %v3546_v31 = vpop.f32.mrf.mxu2  ;;  %v4830_v32 = vpop.f32.mrf.mxu3 }
 0x1fe   :  { %v5452_v37 = vmax.f32 %v3546_v31, %v4830_v32  ;;  %v981_v38 = vpop.f32.mrf.mxu0  ;;  %v2265_v39 = vpop.f32.mrf.mxu1 }
 0x1ff   :  { %v5257_v52 = vmax.f32 %v981_v38, %v2265_v39 }
 0x200   :  { %v5648_v43 = vmax.f32 %v5256_v36, %v5452_v37 }
 0x201   :  { %1020 = vmatmul.bf16.gmra.mxu0 %v8819_v33  ;;  %2304 = vmatmul.bf16.gmra.mxu1 %v8917_v34 }
 0x202   :  { %v5848_v44 = vadd.f32 %v10252_v35, %v5648_v43  ;;  %3588 = vmatmul.bf16.gmra.mxu2 %v9015_v40  ;;  %4872 = vmatmul.bf16.gmra.mxu3 %v9113_v41  ;;  %v8822_v40 = vld [vmem:[%s11509_s0 + $0x108] sm:$0xff]  ;;  %v8920_v41 = vld [vmem:[%s11509_s0 + $0x418] sm:$0xff] }
 0x204   :  { %v6044_v46 = vmax.f32 %v5848_v44, 0.0 }
 0x205   :  { %v3549_v47 = vpop.f32.mrf.mxu2  ;;  %v4833_v48 = vpop.f32.mrf.mxu3 }
 0x206   :  { %v9289_v49 = vpack.c.bf16 %v6044_v46, %v6043_v45  ;;  %v983_v50 = vpop.f32.mrf.mxu0  ;;  %v2267_v51 = vpop.f32.mrf.mxu1  ;;  %v5453_v54 = vmax.f32 %v3549_v47, %v4833_v48  ;;  %v9018_v46 = vld [vmem:[%s11509_s0 + $0x728] sm:$0xff]  ;;  %v9116_v47 = vld [vmem:[%s11509_s0 + $0xa38] sm:$0xff] }
 0x207   :  { %v5258_v60 = vmax.f32 %v983_v50, %v2267_v51 }
 0x208   :  { %9691 = vst [vmem:[%s11511_s3 + $0xa8] sm:$0xff] %v9289_v49   ;;  %v5649_v55 = vmax.f32 %v5257_v52, %v5453_v54 }
 0x20a   :  { %v5849_v2 = vadd.f32 %v10252_v35, %v5649_v55 }
 0x20c   :  { %v6045_v5 = vmax.f32 %v5849_v2, 0.0 }
 0x20d   :  { %v3551_v56 = vpop.f32.mrf.mxu2  ;;  %v4835_v57 = vpop.f32.mrf.mxu3 }
 0x20e   :  { %v5454_v61 = vmax.f32 %v3551_v56, %v4835_v57  ;;  %v986_v62 = vpop.f32.mrf.mxu0  ;;  %v2270_v63 = vpop.f32.mrf.mxu1 }
 0x20f   :  { %v5259_v12 = vmax.f32 %v986_v62, %v2270_v63 }
 0x210   :  { %v5650_v3 = vmax.f32 %v5258_v60, %v5454_v61 }
 0x211   :  { %1025 = vmatmul.bf16.gmra.mxu0 %v8820_v58  ;;  %2309 = vmatmul.bf16.gmra.mxu1 %v8918_v59 }
 0x212   :  { %v5850_v4 = vadd.f32 %v10252_v35, %v5650_v3  ;;  %3593 = vmatmul.bf16.gmra.mxu2 %v9016_v0  ;;  %4877 = vmatmul.bf16.gmra.mxu3 %v9114_v1  ;;  %v8823_v0 = vld [vmem:[%s11509_s0 + $0x110] sm:$0xff]  ;;  %v8921_v1 = vld [vmem:[%s11509_s0 + $0x420] sm:$0xff] }
 0x214   :  { %v6046_v6 = vmax.f32 %v5850_v4, 0.0 }
 0x215   :  { %v3554_v7 = vpop.f32.mrf.mxu2  ;;  %v4838_v8 = vpop.f32.mrf.mxu3 }
 0x216   :  { %v9294_v9 = vpack.c.bf16 %v6046_v6, %v6045_v5  ;;  %v988_v10 = vpop.f32.mrf.mxu0  ;;  %v2272_v11 = vpop.f32.mrf.mxu1  ;;  %v5455_v13 = vmax.f32 %v3554_v7, %v4838_v8  ;;  %v9019_v6 = vld [vmem:[%s11509_s0 + $0x730] sm:$0xff]  ;;  %v9117_v7 = vld [vmem:[%s11509_s0 + $0xa40] sm:$0xff] }
 0x217   :  { %v5260_v19 = vmax.f32 %v988_v10, %v2272_v11 }
 0x218   :  { %9692 = vst [vmem:[%s11511_s3 + $0xb0] sm:$0xff] %v9294_v9   ;;  %v5651_v14 = vmax.f32 %v5259_v12, %v5455_v13 }
 0x21a   :  { %v5851_v25 = vadd.f32 %v10252_v35, %v5651_v14 }
 0x21c   :  { %v6047_v53 = vmax.f32 %v5851_v25, 0.0 }
 0x21d   :  { %v3556_v15 = vpop.f32.mrf.mxu2  ;;  %v4840_v16 = vpop.f32.mrf.mxu3 }
 0x21e   :  { %v5456_v20 = vmax.f32 %v3556_v15, %v4840_v16  ;;  %v991_v21 = vpop.f32.mrf.mxu0  ;;  %v2275_v22 = vpop.f32.mrf.mxu1 }
 0x21f   :  { %v5261_v34 = vmax.f32 %v991_v21, %v2275_v22 }
 0x220   :  { %v5652_v26 = vmax.f32 %v5260_v19, %v5456_v20 }
 0x221   :  { %1030 = vmatmul.bf16.gmra.mxu0 %v8821_v17  ;;  %2314 = vmatmul.bf16.gmra.mxu1 %v8919_v18 }
 0x222   :  { %v5852_v27 = vadd.f32 %v10252_v35, %v5652_v26  ;;  %3598 = vmatmul.bf16.gmra.mxu2 %v9017_v23  ;;  %4882 = vmatmul.bf16.gmra.mxu3 %v9115_v24  ;;  %v8824_v23 = vld [vmem:[%s11509_s0 + $0x118] sm:$0xff]  ;;  %v8922_v24 = vld [vmem:[%s11509_s0 + $0x428] sm:$0xff] }
 0x224   :  { %v6048_v28 = vmax.f32 %v5852_v27, 0.0 }
 0x225   :  { %v3559_v29 = vpop.f32.mrf.mxu2  ;;  %v4843_v30 = vpop.f32.mrf.mxu3 }
 0x226   :  { %v9299_v31 = vpack.c.bf16 %v6048_v28, %v6047_v53  ;;  %v993_v32 = vpop.f32.mrf.mxu0  ;;  %v2277_v33 = vpop.f32.mrf.mxu1  ;;  %v5457_v36 = vmax.f32 %v3559_v29, %v4843_v30  ;;  %v9020_v28 = vld [vmem:[%s11509_s0 + $0x738] sm:$0xff]  ;;  %v9118_v29 = vld [vmem:[%s11509_s0 + $0xa48] sm:$0xff] }
 0x227   :  { %v5262_v42 = vmax.f32 %v993_v32, %v2277_v33 }
 0x228   :  { %9693 = vst [vmem:[%s11511_s3 + $0xb8] sm:$0xff] %v9299_v31   ;;  %v5653_v37 = vmax.f32 %v5261_v34, %v5457_v36 }
 0x22a   :  { %v5853_v48 = vadd.f32 %v10252_v35, %v5653_v37 }
 0x22c   :  { %v6049_v51 = vmax.f32 %v5853_v48, 0.0 }
 0x22d   :  { %v3561_v38 = vpop.f32.mrf.mxu2  ;;  %v4845_v39 = vpop.f32.mrf.mxu3 }
 0x22e   :  { %v5458_v43 = vmax.f32 %v3561_v38, %v4845_v39  ;;  %v996_v44 = vpop.f32.mrf.mxu0  ;;  %v2280_v45 = vpop.f32.mrf.mxu1 }
 0x22f   :  { %v5263_v59 = vmax.f32 %v996_v44, %v2280_v45 }
 0x230   :  { %v5654_v49 = vmax.f32 %v5262_v42, %v5458_v43 }
 0x231   :  { %1035 = vmatmul.bf16.gmra.mxu0 %v8822_v40  ;;  %2319 = vmatmul.bf16.gmra.mxu1 %v8920_v41 }
 0x232   :  { %v5854_v50 = vadd.f32 %v10252_v35, %v5654_v49  ;;  %3603 = vmatmul.bf16.gmra.mxu2 %v9018_v46  ;;  %4887 = vmatmul.bf16.gmra.mxu3 %v9116_v47  ;;  %v8825_v46 = vld [vmem:[%s11509_s0 + $0x120] sm:$0xff]  ;;  %v8923_v47 = vld [vmem:[%s11509_s0 + $0x430] sm:$0xff] }
 0x234   :  { %v6050_v52 = vmax.f32 %v5854_v50, 0.0 }
 0x235   :  { %v3564_v54 = vpop.f32.mrf.mxu2  ;;  %v4848_v55 = vpop.f32.mrf.mxu3 }
 0x236   :  { %v9304_v56 = vpack.c.bf16 %v6050_v52, %v6049_v51  ;;  %v998_v57 = vpop.f32.mrf.mxu0  ;;  %v2282_v58 = vpop.f32.mrf.mxu1  ;;  %v5459_v60 = vmax.f32 %v3564_v54, %v4848_v55  ;;  %v9021_v52 = vld [vmem:[%s11509_s0 + $0x740] sm:$0xff]  ;;  %v9119_v54 = vld [vmem:[%s11509_s0 + $0xa50] sm:$0xff] }
 0x237   :  { %v5264_v2 = vmax.f32 %v998_v57, %v2282_v58 }
 0x238   :  { %9694 = vst [vmem:[%s11511_s3 + $0xc0] sm:$0xff] %v9304_v56   ;;  %v5655_v61 = vmax.f32 %v5263_v59, %v5459_v60 }
 0x23a   :  { %v5855_v8 = vadd.f32 %v10252_v35, %v5655_v61 }
 0x23c   :  { %v6051_v11 = vmax.f32 %v5855_v8, 0.0 }
 0x23d   :  { %v3566_v62 = vpop.f32.mrf.mxu2  ;;  %v4850_v63 = vpop.f32.mrf.mxu3 }
 0x23e   :  { %v5460_v3 = vmax.f32 %v3566_v62, %v4850_v63  ;;  %v1001_v4 = vpop.f32.mrf.mxu0  ;;  %v2285_v5 = vpop.f32.mrf.mxu1 }
 0x23f   :  { %v5265_v18 = vmax.f32 %v1001_v4, %v2285_v5 }
 0x240   :  { %v5656_v9 = vmax.f32 %v5264_v2, %v5460_v3 }
 0x241   :  { %1040 = vmatmul.bf16.gmra.mxu0 %v8823_v0  ;;  %2324 = vmatmul.bf16.gmra.mxu1 %v8921_v1 }
 0x242   :  { %v5856_v10 = vadd.f32 %v10252_v35, %v5656_v9  ;;  %3608 = vmatmul.bf16.gmra.mxu2 %v9019_v6  ;;  %4892 = vmatmul.bf16.gmra.mxu3 %v9117_v7  ;;  %v8826_v6 = vld [vmem:[%s11509_s0 + $0x128] sm:$0xff]  ;;  %v8924_v7 = vld [vmem:[%s11509_s0 + $0x438] sm:$0xff] }
 0x244   :  { %v6052_v12 = vmax.f32 %v5856_v10, 0.0 }
 0x245   :  { %v3569_v13 = vpop.f32.mrf.mxu2  ;;  %v4853_v14 = vpop.f32.mrf.mxu3 }
 0x246   :  { %v9309_v15 = vpack.c.bf16 %v6052_v12, %v6051_v11  ;;  %v1003_v16 = vpop.f32.mrf.mxu0  ;;  %v2287_v17 = vpop.f32.mrf.mxu1  ;;  %v5461_v19 = vmax.f32 %v3569_v13, %v4853_v14  ;;  %v9022_v12 = vld [vmem:[%s11509_s0 + $0x748] sm:$0xff]  ;;  %v9120_v13 = vld [vmem:[%s11509_s0 + $0xa58] sm:$0xff] }
 0x247   :  { %v5266_v25 = vmax.f32 %v1003_v16, %v2287_v17 }
 0x248   :  { %9695 = vst [vmem:[%s11511_s3 + $0xc8] sm:$0xff] %v9309_v15   ;;  %v5657_v20 = vmax.f32 %v5265_v18, %v5461_v19 }
 0x24a   :  { %v5857_v30 = vadd.f32 %v10252_v35, %v5657_v20 }
 0x24c   :  { %v6053_v33 = vmax.f32 %v5857_v30, 0.0 }
 0x24d   :  { %v3571_v21 = vpop.f32.mrf.mxu2  ;;  %v4855_v22 = vpop.f32.mrf.mxu3 }
 0x24e   :  { %v5462_v26 = vmax.f32 %v3571_v21, %v4855_v22  ;;  %v1006_v27 = vpop.f32.mrf.mxu0  ;;  %v2290_v53 = vpop.f32.mrf.mxu1 }
 0x24f   :  { %v5267_v41 = vmax.f32 %v1006_v27, %v2290_v53 }
 0x250   :  { %v5658_v31 = vmax.f32 %v5266_v25, %v5462_v26 }
 0x251   :  { %1045 = vmatmul.bf16.gmra.mxu0 %v8824_v23  ;;  %2329 = vmatmul.bf16.gmra.mxu1 %v8922_v24 }
 0x252   :  { %v5858_v32 = vadd.f32 %v10252_v35, %v5658_v31  ;;  %3613 = vmatmul.bf16.gmra.mxu2 %v9020_v28  ;;  %4897 = vmatmul.bf16.gmra.mxu3 %v9118_v29  ;;  %v8827_v28 = vld [vmem:[%s11509_s0 + $0x130] sm:$0xff]  ;;  %v8925_v29 = vld [vmem:[%s11509_s0 + $0x440] sm:$0xff] }
 0x254   :  { %v6054_v34 = vmax.f32 %v5858_v32, 0.0 }
 0x255   :  { %v3574_v36 = vpop.f32.mrf.mxu2  ;;  %v4858_v37 = vpop.f32.mrf.mxu3 }
 0x256   :  { %v9314_v38 = vpack.c.bf16 %v6054_v34, %v6053_v33  ;;  %v1008_v39 = vpop.f32.mrf.mxu0  ;;  %v2292_v40 = vpop.f32.mrf.mxu1  ;;  %v5463_v42 = vmax.f32 %v3574_v36, %v4858_v37  ;;  %v9023_v34 = vld [vmem:[%s11509_s0 + $0x750] sm:$0xff]  ;;  %v9121_v36 = vld [vmem:[%s11509_s0 + $0xa60] sm:$0xff] }
 0x257   :  { %v5268_v48 = vmax.f32 %v1008_v39, %v2292_v40 }
 0x258   :  { %9696 = vst [vmem:[%s11511_s3 + $0xd0] sm:$0xff] %v9314_v38   ;;  %v5659_v43 = vmax.f32 %v5267_v41, %v5463_v42 }
 0x25a   :  { %v5859_v55 = vadd.f32 %v10252_v35, %v5659_v43 }
 0x25c   :  { %v6055_v58 = vmax.f32 %v5859_v55, 0.0 }
 0x25d   :  { %v3576_v44 = vpop.f32.mrf.mxu2  ;;  %v4860_v45 = vpop.f32.mrf.mxu3 }
 0x25e   :  { %v5464_v49 = vmax.f32 %v3576_v44, %v4860_v45  ;;  %v1011_v50 = vpop.f32.mrf.mxu0  ;;  %v2295_v51 = vpop.f32.mrf.mxu1 }
 0x25f   :  { %v5269_v1 = vmax.f32 %v1011_v50, %v2295_v51 }
 0x260   :  { %v5660_v56 = vmax.f32 %v5268_v48, %v5464_v49 }
 0x261   :  { %1050 = vmatmul.bf16.gmra.mxu0 %v8825_v46  ;;  %2334 = vmatmul.bf16.gmra.mxu1 %v8923_v47 }
 0x262   :  { %v5860_v57 = vadd.f32 %v10252_v35, %v5660_v56  ;;  %3618 = vmatmul.bf16.gmra.mxu2 %v9021_v52  ;;  %4902 = vmatmul.bf16.gmra.mxu3 %v9119_v54  ;;  %v8828_v52 = vld [vmem:[%s11509_s0 + $0x138] sm:$0xff]  ;;  %v8926_v54 = vld [vmem:[%s11509_s0 + $0x448] sm:$0xff] }
 0x264   :  { %v6056_v59 = vmax.f32 %v5860_v57, 0.0 }
 0x265   :  { %v3579_v60 = vpop.f32.mrf.mxu2  ;;  %v4863_v61 = vpop.f32.mrf.mxu3 }
 0x266   :  { %v9319_v62 = vpack.c.bf16 %v6056_v59, %v6055_v58  ;;  %v1013_v63 = vpop.f32.mrf.mxu0  ;;  %v2297_v0 = vpop.f32.mrf.mxu1  ;;  %v5465_v2 = vmax.f32 %v3579_v60, %v4863_v61  ;;  %v9024_v59 = vld [vmem:[%s11509_s0 + $0x758] sm:$0xff]  ;;  %v9122_v60 = vld [vmem:[%s11509_s0 + $0xa68] sm:$0xff] }
 0x267   :  { %v5270_v8 = vmax.f32 %v1013_v63, %v2297_v0 }
 0x268   :  { %9697 = vst [vmem:[%s11511_s3 + $0xd8] sm:$0xff] %v9319_v62   ;;  %v5661_v3 = vmax.f32 %v5269_v1, %v5465_v2 }
 0x26a   :  { %v5861_v14 = vadd.f32 %v10252_v35, %v5661_v3 }
 0x26c   :  { %v6057_v17 = vmax.f32 %v5861_v14, 0.0 }
 0x26d   :  { %v3581_v4 = vpop.f32.mrf.mxu2  ;;  %v4865_v5 = vpop.f32.mrf.mxu3 }
 0x26e   :  { %v5466_v9 = vmax.f32 %v3581_v4, %v4865_v5  ;;  %v1016_v10 = vpop.f32.mrf.mxu0  ;;  %v2300_v11 = vpop.f32.mrf.mxu1 }
 0x26f   :  { %v5271_v24 = vmax.f32 %v1016_v10, %v2300_v11 }
 0x270   :  { %v5662_v15 = vmax.f32 %v5270_v8, %v5466_v9 }
 0x271   :  { %1055 = vmatmul.bf16.gmra.mxu0 %v8826_v6  ;;  %2339 = vmatmul.bf16.gmra.mxu1 %v8924_v7 }
 0x272   :  { %v5862_v16 = vadd.f32 %v10252_v35, %v5662_v15  ;;  %3623 = vmatmul.bf16.gmra.mxu2 %v9022_v12  ;;  %4907 = vmatmul.bf16.gmra.mxu3 %v9120_v13  ;;  %v8829_v12 = vld [vmem:[%s11509_s0 + $0x140] sm:$0xff]  ;;  %v8927_v13 = vld [vmem:[%s11509_s0 + $0x450] sm:$0xff] }
 0x274   :  { %v6058_v18 = vmax.f32 %v5862_v16, 0.0 }
 0x275   :  { %v3584_v19 = vpop.f32.mrf.mxu2  ;;  %v4868_v20 = vpop.f32.mrf.mxu3 }
 0x276   :  { %v9324_v21 = vpack.c.bf16 %v6058_v18, %v6057_v17  ;;  %v1018_v22 = vpop.f32.mrf.mxu0  ;;  %v2302_v23 = vpop.f32.mrf.mxu1  ;;  %v5467_v25 = vmax.f32 %v3584_v19, %v4868_v20  ;;  %v9025_v18 = vld [vmem:[%s11509_s0 + $0x760] sm:$0xff]  ;;  %v9123_v19 = vld [vmem:[%s11509_s0 + $0xa70] sm:$0xff] }
 0x277   :  { %v5272_v30 = vmax.f32 %v1018_v22, %v2302_v23 }
 0x278   :  { %9698 = vst [vmem:[%s11511_s3 + $0xe0] sm:$0xff] %v9324_v21   ;;  %v5663_v26 = vmax.f32 %v5271_v24, %v5467_v25 }
 0x27a   :  { %v5863_v37 = vadd.f32 %v10252_v35, %v5663_v26 }
 0x27c   :  { %v6059_v40 = vmax.f32 %v5863_v37, 0.0 }
 0x27d   :  { %v3586_v27 = vpop.f32.mrf.mxu2  ;;  %v4870_v53 = vpop.f32.mrf.mxu3 }
 0x27e   :  { %v5468_v31 = vmax.f32 %v3586_v27, %v4870_v53  ;;  %v1021_v32 = vpop.f32.mrf.mxu0  ;;  %v2305_v33 = vpop.f32.mrf.mxu1 }
 0x27f   :  { %v5273_v47 = vmax.f32 %v1021_v32, %v2305_v33 }
 0x280   :  { %v5664_v38 = vmax.f32 %v5272_v30, %v5468_v31 }
 0x281   :  { %1060 = vmatmul.bf16.gmra.mxu0 %v8827_v28  ;;  %2344 = vmatmul.bf16.gmra.mxu1 %v8925_v29 }
 0x282   :  { %v5864_v39 = vadd.f32 %v10252_v35, %v5664_v38  ;;  %3628 = vmatmul.bf16.gmra.mxu2 %v9023_v34  ;;  %4912 = vmatmul.bf16.gmra.mxu3 %v9121_v36  ;;  %v8830_v34 = vld [vmem:[%s11509_s0 + $0x148] sm:$0xff]  ;;  %v8928_v36 = vld [vmem:[%s11509_s0 + $0x458] sm:$0xff] }
 0x284   :  { %v6060_v41 = vmax.f32 %v5864_v39, 0.0 }
 0x285   :  { %v3589_v42 = vpop.f32.mrf.mxu2  ;;  %v4873_v43 = vpop.f32.mrf.mxu3 }
 0x286   :  { %v9329_v44 = vpack.c.bf16 %v6060_v41, %v6059_v40  ;;  %v1023_v45 = vpop.f32.mrf.mxu0  ;;  %v2307_v46 = vpop.f32.mrf.mxu1  ;;  %v5469_v48 = vmax.f32 %v3589_v42, %v4873_v43  ;;  %v9026_v41 = vld [vmem:[%s11509_s0 + $0x768] sm:$0xff]  ;;  %v9124_v42 = vld [vmem:[%s11509_s0 + $0xa78] sm:$0xff] }
 0x287   :  { %v5274_v55 = vmax.f32 %v1023_v45, %v2307_v46 }
 0x288   :  { %9699 = vst [vmem:[%s11511_s3 + $0xe8] sm:$0xff] %v9329_v44   ;;  %v5665_v49 = vmax.f32 %v5273_v47, %v5469_v48 }
 0x28a   :  { %v5865_v61 = vadd.f32 %v10252_v35, %v5665_v49 }
 0x28c   :  { %v6061_v0 = vmax.f32 %v5865_v61, 0.0 }
 0x28d   :  { %v3591_v50 = vpop.f32.mrf.mxu2  ;;  %v4875_v51 = vpop.f32.mrf.mxu3 }
 0x28e   :  { %v5470_v56 = vmax.f32 %v3591_v50, %v4875_v51  ;;  %v1026_v57 = vpop.f32.mrf.mxu0  ;;  %v2310_v58 = vpop.f32.mrf.mxu1 }
 0x28f   :  { %v5275_v7 = vmax.f32 %v1026_v57, %v2310_v58 }
 0x290   :  { %v5666_v62 = vmax.f32 %v5274_v55, %v5470_v56 }
 0x291   :  { %1065 = vmatmul.bf16.gmra.mxu0 %v8828_v52  ;;  %2349 = vmatmul.bf16.gmra.mxu1 %v8926_v54 }
 0x292   :  { %v5866_v63 = vadd.f32 %v10252_v35, %v5666_v62  ;;  %3633 = vmatmul.bf16.gmra.mxu2 %v9024_v59  ;;  %4917 = vmatmul.bf16.gmra.mxu3 %v9122_v60  ;;  %v8831_v59 = vld [vmem:[%s11509_s0 + $0x150] sm:$0xff]  ;;  %v8929_v60 = vld [vmem:[%s11509_s0 + $0x460] sm:$0xff] }
 0x294   :  { %v6062_v1 = vmax.f32 %v5866_v63, 0.0 }
 0x295   :  { %v3594_v2 = vpop.f32.mrf.mxu2  ;;  %v4878_v3 = vpop.f32.mrf.mxu3 }
 0x296   :  { %v9334_v4 = vpack.c.bf16 %v6062_v1, %v6061_v0  ;;  %v1028_v5 = vpop.f32.mrf.mxu0  ;;  %v2312_v6 = vpop.f32.mrf.mxu1  ;;  %v5471_v8 = vmax.f32 %v3594_v2, %v4878_v3  ;;  %v9027_v1 = vld [vmem:[%s11509_s0 + $0x770] sm:$0xff]  ;;  %v9125_v2 = vld [vmem:[%s11509_s0 + $0xa80] sm:$0xff] }
 0x297   :  { %v5276_v14 = vmax.f32 %v1028_v5, %v2312_v6 }
 0x298   :  { %9700 = vst [vmem:[%s11511_s3 + $0xf0] sm:$0xff] %v9334_v4   ;;  %v5667_v9 = vmax.f32 %v5275_v7, %v5471_v8 }
 0x29a   :  { %v5867_v20 = vadd.f32 %v10252_v35, %v5667_v9 }
 0x29c   :  { %v6063_v23 = vmax.f32 %v5867_v20, 0.0 }
 0x29d   :  { %v3596_v10 = vpop.f32.mrf.mxu2  ;;  %v4880_v11 = vpop.f32.mrf.mxu3 }
 0x29e   :  { %v5472_v15 = vmax.f32 %v3596_v10, %v4880_v11  ;;  %v1031_v16 = vpop.f32.mrf.mxu0  ;;  %v2315_v17 = vpop.f32.mrf.mxu1 }
 0x29f   :  { %v5277_v29 = vmax.f32 %v1031_v16, %v2315_v17 }
 0x2a0   :  { %v5668_v21 = vmax.f32 %v5276_v14, %v5472_v15 }
 0x2a1   :  { %1070 = vmatmul.bf16.gmra.mxu0 %v8829_v12  ;;  %2354 = vmatmul.bf16.gmra.mxu1 %v8927_v13 }
 0x2a2   :  { %v5868_v22 = vadd.f32 %v10252_v35, %v5668_v21  ;;  %3638 = vmatmul.bf16.gmra.mxu2 %v9025_v18  ;;  %4922 = vmatmul.bf16.gmra.mxu3 %v9123_v19  ;;  %v8832_v18 = vld [vmem:[%s11509_s0 + $0x158] sm:$0xff]  ;;  %v8930_v19 = vld [vmem:[%s11509_s0 + $0x468] sm:$0xff] }
 0x2a4   :  { %v6064_v24 = vmax.f32 %v5868_v22, 0.0 }
 0x2a5   :  { %v3599_v25 = vpop.f32.mrf.mxu2  ;;  %v4883_v26 = vpop.f32.mrf.mxu3 }
 0x2a6   :  { %v9339_v27 = vpack.c.bf16 %v6064_v24, %v6063_v23  ;;  %v1033_v53 = vpop.f32.mrf.mxu0  ;;  %v2317_v28 = vpop.f32.mrf.mxu1  ;;  %v5473_v30 = vmax.f32 %v3599_v25, %v4883_v26  ;;  %v9028_v24 = vld [vmem:[%s11509_s0 + $0x778] sm:$0xff]  ;;  %v9126_v25 = vld [vmem:[%s11509_s0 + $0xa88] sm:$0xff] }
 0x2a7   :  { %v5278_v37 = vmax.f32 %v1033_v53, %v2317_v28 }
 0x2a8   :  { %9701 = vst [vmem:[%s11511_s3 + $0xf8] sm:$0xff] %v9339_v27   ;;  %v5669_v31 = vmax.f32 %v5277_v29, %v5473_v30 }
 0x2aa   :  { %v5869_v43 = vadd.f32 %v10252_v35, %v5669_v31 }
 0x2ac   :  { %v6065_v46 = vmax.f32 %v5869_v43, 0.0 }
 0x2ad   :  { %v3601_v32 = vpop.f32.mrf.mxu2  ;;  %v4885_v33 = vpop.f32.mrf.mxu3 }
 0x2ae   :  { %v5474_v38 = vmax.f32 %v3601_v32, %v4885_v33  ;;  %v1036_v39 = vpop.f32.mrf.mxu0  ;;  %v2320_v40 = vpop.f32.mrf.mxu1 }
 0x2af   :  { %v5279_v54 = vmax.f32 %v1036_v39, %v2320_v40 }
 0x2b0   :  { %v5670_v44 = vmax.f32 %v5278_v37, %v5474_v38 }
 0x2b1   :  { %1075 = vmatmul.bf16.gmra.mxu0 %v8830_v34  ;;  %2359 = vmatmul.bf16.gmra.mxu1 %v8928_v36 }
 0x2b2   :  { %v5870_v45 = vadd.f32 %v10252_v35, %v5670_v44  ;;  %3643 = vmatmul.bf16.gmra.mxu2 %v9026_v41  ;;  %4927 = vmatmul.bf16.gmra.mxu3 %v9124_v42  ;;  %v8833_v41 = vld [vmem:[%s11509_s0 + $0x160] sm:$0xff]  ;;  %v8931_v42 = vld [vmem:[%s11509_s0 + $0x470] sm:$0xff] }
 0x2b4   :  { %v6066_v47 = vmax.f32 %v5870_v45, 0.0 }
 0x2b5   :  { %v3604_v48 = vpop.f32.mrf.mxu2  ;;  %v4888_v49 = vpop.f32.mrf.mxu3 }
 0x2b6   :  { %v9344_v50 = vpack.c.bf16 %v6066_v47, %v6065_v46  ;;  %v1038_v51 = vpop.f32.mrf.mxu0  ;;  %v2322_v52 = vpop.f32.mrf.mxu1  ;;  %v5475_v55 = vmax.f32 %v3604_v48, %v4888_v49  ;;  %v9029_v47 = vld [vmem:[%s11509_s0 + $0x780] sm:$0xff]  ;;  %v9127_v48 = vld [vmem:[%s11509_s0 + $0xa90] sm:$0xff] }
 0x2b7   :  { %v5280_v61 = vmax.f32 %v1038_v51, %v2322_v52 }
 0x2b8   :  { %9702 = vst [vmem:[%s11511_s3 + $0x100] sm:$0xff] %v9344_v50   ;;  %v5671_v56 = vmax.f32 %v5279_v54, %v5475_v55 }
 0x2ba   :  { %v5871_v3 = vadd.f32 %v10252_v35, %v5671_v56 }
 0x2bc   :  { %v6067_v6 = vmax.f32 %v5871_v3, 0.0 }
 0x2bd   :  { %v3606_v57 = vpop.f32.mrf.mxu2  ;;  %v4890_v58 = vpop.f32.mrf.mxu3 }
 0x2be   :  { %v5476_v62 = vmax.f32 %v3606_v57, %v4890_v58  ;;  %v1041_v63 = vpop.f32.mrf.mxu0  ;;  %v2325_v0 = vpop.f32.mrf.mxu1 }
 0x2bf   :  { %v5281_v13 = vmax.f32 %v1041_v63, %v2325_v0 }
 0x2c0   :  { %v5672_v4 = vmax.f32 %v5280_v61, %v5476_v62 }
 0x2c1   :  { %1080 = vmatmul.bf16.gmra.mxu0 %v8831_v59  ;;  %2364 = vmatmul.bf16.gmra.mxu1 %v8929_v60 }
 0x2c2   :  { %v5872_v5 = vadd.f32 %v10252_v35, %v5672_v4  ;;  %3648 = vmatmul.bf16.gmra.mxu2 %v9027_v1  ;;  %4932 = vmatmul.bf16.gmra.mxu3 %v9125_v2  ;;  %v8834_v1 = vld [vmem:[%s11509_s0 + $0x168] sm:$0xff]  ;;  %v8932_v2 = vld [vmem:[%s11509_s0 + $0x478] sm:$0xff] }
 0x2c4   :  { %v6068_v7 = vmax.f32 %v5872_v5, 0.0 }
 0x2c5   :  { %v3609_v8 = vpop.f32.mrf.mxu2  ;;  %v4893_v9 = vpop.f32.mrf.mxu3 }
 0x2c6   :  { %v9349_v10 = vpack.c.bf16 %v6068_v7, %v6067_v6  ;;  %v1043_v11 = vpop.f32.mrf.mxu0  ;;  %v2327_v12 = vpop.f32.mrf.mxu1  ;;  %v5477_v14 = vmax.f32 %v3609_v8, %v4893_v9  ;;  %v9030_v7 = vld [vmem:[%s11509_s0 + $0x788] sm:$0xff]  ;;  %v9128_v8 = vld [vmem:[%s11509_s0 + $0xa98] sm:$0xff] }
 0x2c7   :  { %v5282_v20 = vmax.f32 %v1043_v11, %v2327_v12 }
 0x2c8   :  { %9703 = vst [vmem:[%s11511_s3 + $0x108] sm:$0xff] %v9349_v10   ;;  %v5673_v15 = vmax.f32 %v5281_v13, %v5477_v14 }
 0x2ca   :  { %v5873_v26 = vadd.f32 %v10252_v35, %v5673_v15 }
 0x2cc   :  { %v6069_v28 = vmax.f32 %v5873_v26, 0.0 }
 0x2cd   :  { %v3611_v16 = vpop.f32.mrf.mxu2  ;;  %v4895_v17 = vpop.f32.mrf.mxu3 }
 0x2ce   :  { %v5478_v21 = vmax.f32 %v3611_v16, %v4895_v17  ;;  %v1046_v22 = vpop.f32.mrf.mxu0  ;;  %v2330_v23 = vpop.f32.mrf.mxu1 }
 0x2cf   :  { %v5283_v36 = vmax.f32 %v1046_v22, %v2330_v23 }
 0x2d0   :  { %v5674_v27 = vmax.f32 %v5282_v20, %v5478_v21 }
 0x2d1   :  { %1085 = vmatmul.bf16.gmra.mxu0 %v8832_v18  ;;  %2369 = vmatmul.bf16.gmra.mxu1 %v8930_v19 }
 0x2d2   :  { %v5874_v53 = vadd.f32 %v10252_v35, %v5674_v27  ;;  %3653 = vmatmul.bf16.gmra.mxu2 %v9028_v24  ;;  %4937 = vmatmul.bf16.gmra.mxu3 %v9126_v25  ;;  %v8933_v24 = vld [vmem:[%s11509_s0 + $0x480] sm:$0xff] }
 0x2d4   :  { %v6070_v29 = vmax.f32 %v5874_v53, 0.0 }
 0x2d5   :  { %v3614_v30 = vpop.f32.mrf.mxu2  ;;  %v4898_v31 = vpop.f32.mrf.mxu3 }
 0x2d6   :  { %v9354_v32 = vpack.c.bf16 %v6070_v29, %v6069_v28  ;;  %v1048_v33 = vpop.f32.mrf.mxu0  ;;  %v2332_v34 = vpop.f32.mrf.mxu1  ;;  %v5479_v37 = vmax.f32 %v3614_v30, %v4898_v31  ;;  %v9031_v28 = vld [vmem:[%s11509_s0 + $0x790] sm:$0xff]  ;;  %v9129_v29 = vld [vmem:[%s11509_s0 + $0xaa0] sm:$0xff] }
 0x2d7   :  { %v5284_v43 = vmax.f32 %v1048_v33, %v2332_v34  ;;  %v10580_v30 = vld [vmem:[%s11510_s2] ss:$0 sm:$0xff] }
 0x2d8   :  { %9704 = vst [vmem:[%s11511_s3 + $0x110] sm:$0xff] %v9354_v32   ;;  %v5675_v38 = vmax.f32 %v5283_v36, %v5479_v37 }
 0x2da   :  { %v5875_v49 = vadd.f32 %v10252_v35, %v5675_v38 }
 0x2dc   :  { %v6071_v52 = vmax.f32 %v5875_v49, 0.0 }
 0x2dd   :  { %v3616_v39 = vpop.f32.mrf.mxu2  ;;  %v4900_v40 = vpop.f32.mrf.mxu3 }
 0x2de   :  { %v5480_v44 = vmax.f32 %v3616_v39, %v4900_v40  ;;  %v1051_v45 = vpop.f32.mrf.mxu0  ;;  %v2335_v46 = vpop.f32.mrf.mxu1 }
 0x2df   :  { %v5285_v60 = vmax.f32 %v1051_v45, %v2335_v46 }
 0x2e0   :  { %v5676_v50 = vmax.f32 %v5284_v43, %v5480_v44 }
 0x2e1   :  { %1090 = vmatmul.bf16.gmra.mxu0 %v8833_v41  ;;  %2374 = vmatmul.bf16.gmra.mxu1 %v8931_v42 }
 0x2e2   :  { %v5876_v51 = vadd.f32 %v10252_v35, %v5676_v50  ;;  %3658 = vmatmul.bf16.gmra.mxu2 %v9029_v47  ;;  %4942 = vmatmul.bf16.gmra.mxu3 %v9127_v48  ;;  %v8836_v47 = vld [vmem:[%s11509_s0 + $0x178] sm:$0xff]  ;;  %v8934_v48 = vld [vmem:[%s11509_s0 + $0x488] sm:$0xff] }
 0x2e4   :  { %v6072_v54 = vmax.f32 %v5876_v51, 0.0 }
 0x2e5   :  { %v3619_v55 = vpop.f32.mrf.mxu2  ;;  %v4903_v56 = vpop.f32.mrf.mxu3 }
 0x2e6   :  { %v9359_v57 = vpack.c.bf16 %v6072_v54, %v6071_v52  ;;  %v1053_v58 = vpop.f32.mrf.mxu0  ;;  %v2337_v59 = vpop.f32.mrf.mxu1  ;;  %v5481_v61 = vmax.f32 %v3619_v55, %v4903_v56  ;;  %v9032_v54 = vld [vmem:[%s11509_s0 + $0x798] sm:$0xff]  ;;  %v9130_v55 = vld [vmem:[%s11509_s0 + $0xaa8] sm:$0xff] }
 0x2e7   :  { %v5286_v3 = vmax.f32 %v1053_v58, %v2337_v59 }
 0x2e8   :  { %9705 = vst [vmem:[%s11511_s3 + $0x118] sm:$0xff] %v9359_v57   ;;  %v5677_v62 = vmax.f32 %v5285_v60, %v5481_v61 }
 0x2ea   :  { %v5877_v9 = vadd.f32 %v10252_v35, %v5677_v62 }
 0x2ec   :  { %v6073_v12 = vmax.f32 %v5877_v9, 0.0 }
 0x2ed   :  { %v3621_v63 = vpop.f32.mrf.mxu2  ;;  %v4905_v0 = vpop.f32.mrf.mxu3 }
 0x2ee   :  { %v5482_v4 = vmax.f32 %v3621_v63, %v4905_v0  ;;  %v1056_v5 = vpop.f32.mrf.mxu0  ;;  %v2340_v6 = vpop.f32.mrf.mxu1 }
 0x2ef   :  { %v5287_v19 = vmax.f32 %v1056_v5, %v2340_v6 }
 0x2f0   :  { %v5678_v10 = vmax.f32 %v5286_v3, %v5482_v4 }
 0x2f1   :  { %1095 = vmatmul.bf16.gmra.mxu0 %v8834_v1  ;;  %2379 = vmatmul.bf16.gmra.mxu1 %v8932_v2 }
 0x2f2   :  { %v5878_v11 = vadd.f32 %v10252_v35, %v5678_v10  ;;  %3663 = vmatmul.bf16.gmra.mxu2 %v9030_v7  ;;  %4947 = vmatmul.bf16.gmra.mxu3 %v9128_v8  ;;  %v8835_v35 = vld [vmem:[%s11509_s0 + $0x170] sm:$0xff]  ;;  %v8837_v7 = vld [vmem:[%s11509_s0 + $0x180] sm:$0xff] }
 0x2f3   :  { %v8935_v8 = vld [vmem:[%s11509_s0 + $0x490] sm:$0xff] }
 0x2f4   :  { %v6074_v13 = vmax.f32 %v5878_v11, 0.0 }
 0x2f5   :  { %v3624_v14 = vpop.f32.mrf.mxu2  ;;  %v4908_v15 = vpop.f32.mrf.mxu3 }
 0x2f6   :  { %v9364_v16 = vpack.c.bf16 %v6074_v13, %v6073_v12  ;;  %v1058_v17 = vpop.f32.mrf.mxu0  ;;  %v2342_v18 = vpop.f32.mrf.mxu1  ;;  %v5483_v20 = vmax.f32 %v3624_v14, %v4908_v15  ;;  %v9033_v13 = vld [vmem:[%s11509_s0 + $0x7a0] sm:$0xff]  ;;  %v9131_v14 = vld [vmem:[%s11509_s0 + $0xab0] sm:$0xff] }
 0x2f7   :  { %v5288_v25 = vmax.f32 %v1058_v17, %v2342_v18 }
 0x2f8   :  { %9706 = vst [vmem:[%s11511_s3 + $0x120] sm:$0xff] %v9364_v16   ;;  %v5679_v21 = vmax.f32 %v5287_v19, %v5483_v20 }
 0x2fa   :  { %v5879_v31 = vadd.f32 %v10580_v30, %v5679_v21 }
 0x2fc   :  { %v6075_v34 = vmax.f32 %v5879_v31, 0.0 }
 0x2fd   :  { %v3626_v22 = vpop.f32.mrf.mxu2  ;;  %v4910_v23 = vpop.f32.mrf.mxu3 }
 0x2fe   :  { %v5484_v26 = vmax.f32 %v3626_v22, %v4910_v23  ;;  %v1061_v27 = vpop.f32.mrf.mxu0  ;;  %v2345_v53 = vpop.f32.mrf.mxu1 }
 0x2ff   :  { %v5289_v42 = vmax.f32 %v1061_v27, %v2345_v53 }
 0x300   :  { %v5680_v32 = vmax.f32 %v5288_v25, %v5484_v26 }
 0x301   :  { %1100 = vmatmul.bf16.gmra.mxu0 %v8835_v35  ;;  %2384 = vmatmul.bf16.gmra.mxu1 %v8933_v24 }
 0x302   :  { %v5880_v33 = vadd.f32 %v10580_v30, %v5680_v32  ;;  %3668 = vmatmul.bf16.gmra.mxu2 %v9031_v28  ;;  %4952 = vmatmul.bf16.gmra.mxu3 %v9129_v29  ;;  %v8838_v28 = vld [vmem:[%s11509_s0 + $0x188] sm:$0xff]  ;;  %v8936_v29 = vld [vmem:[%s11509_s0 + $0x498] sm:$0xff] }
 0x304   :  { %v6076_v36 = vmax.f32 %v5880_v33, 0.0 }
 0x305   :  { %v3629_v37 = vpop.f32.mrf.mxu2  ;;  %v4913_v38 = vpop.f32.mrf.mxu3 }
 0x306   :  { %v9369_v39 = vpack.c.bf16 %v6076_v36, %v6075_v34  ;;  %v1063_v40 = vpop.f32.mrf.mxu0  ;;  %v2347_v41 = vpop.f32.mrf.mxu1  ;;  %v5485_v43 = vmax.f32 %v3629_v37, %v4913_v38  ;;  %v9034_v36 = vld [vmem:[%s11509_s0 + $0x7a8] sm:$0xff]  ;;  %v9132_v37 = vld [vmem:[%s11509_s0 + $0xab8] sm:$0xff] }
 0x307   :  { %v5290_v49 = vmax.f32 %v1063_v40, %v2347_v41 }
 0x308   :  { %9707 = vst [vmem:[%s11511_s3 + $0x128] sm:$0xff] %v9369_v39   ;;  %v5681_v44 = vmax.f32 %v5289_v42, %v5485_v43 }
 0x30a   :  { %v5881_v56 = vadd.f32 %v10580_v30, %v5681_v44 }
 0x30c   :  { %v6077_v59 = vmax.f32 %v5881_v56, 0.0 }
 0x30d   :  { %v3631_v45 = vpop.f32.mrf.mxu2  ;;  %v4915_v46 = vpop.f32.mrf.mxu3 }
 0x30e   :  { %v5486_v50 = vmax.f32 %v3631_v45, %v4915_v46  ;;  %v1066_v51 = vpop.f32.mrf.mxu0  ;;  %v2350_v52 = vpop.f32.mrf.mxu1 }
 0x30f   :  { %v5291_v2 = vmax.f32 %v1066_v51, %v2350_v52 }
 0x310   :  { %v5682_v57 = vmax.f32 %v5290_v49, %v5486_v50 }
 0x311   :  { %1105 = vmatmul.bf16.gmra.mxu0 %v8836_v47  ;;  %2389 = vmatmul.bf16.gmra.mxu1 %v8934_v48 }
 0x312   :  { %v5882_v58 = vadd.f32 %v10580_v30, %v5682_v57  ;;  %3673 = vmatmul.bf16.gmra.mxu2 %v9032_v54  ;;  %4957 = vmatmul.bf16.gmra.mxu3 %v9130_v55  ;;  %v8839_v54 = vld [vmem:[%s11509_s0 + $0x190] sm:$0xff]  ;;  %v8937_v55 = vld [vmem:[%s11509_s0 + $0x4a0] sm:$0xff] }
 0x314   :  { %v6078_v60 = vmax.f32 %v5882_v58, 0.0 }
 0x315   :  { %v3634_v61 = vpop.f32.mrf.mxu2  ;;  %v4918_v62 = vpop.f32.mrf.mxu3 }
 0x316   :  { %v9374_v63 = vpack.c.bf16 %v6078_v60, %v6077_v59  ;;  %v1068_v0 = vpop.f32.mrf.mxu0  ;;  %v2352_v1 = vpop.f32.mrf.mxu1  ;;  %v5487_v3 = vmax.f32 %v3634_v61, %v4918_v62  ;;  %v9035_v60 = vld [vmem:[%s11509_s0 + $0x7b0] sm:$0xff]  ;;  %v9133_v61 = vld [vmem:[%s11509_s0 + $0xac0] sm:$0xff] }
 0x317   :  { %v5292_v9 = vmax.f32 %v1068_v0, %v2352_v1 }
 0x318   :  { %9708 = vst [vmem:[%s11511_s3 + $0x130] sm:$0xff] %v9374_v63   ;;  %v5683_v4 = vmax.f32 %v5291_v2, %v5487_v3 }
 0x31a   :  { %v5883_v15 = vadd.f32 %v10580_v30, %v5683_v4 }
 0x31c   :  { %v6079_v18 = vmax.f32 %v5883_v15, 0.0 }
 0x31d   :  { %v3636_v5 = vpop.f32.mrf.mxu2  ;;  %v4920_v6 = vpop.f32.mrf.mxu3 }
 0x31e   :  { %v5488_v10 = vmax.f32 %v3636_v5, %v4920_v6  ;;  %v1071_v11 = vpop.f32.mrf.mxu0  ;;  %v2355_v12 = vpop.f32.mrf.mxu1 }
 0x31f   :  { %v5293_v24 = vmax.f32 %v1071_v11, %v2355_v12 }
 0x320   :  { %v5684_v16 = vmax.f32 %v5292_v9, %v5488_v10 }
 0x321   :  { %1110 = vmatmul.bf16.gmra.mxu0 %v8837_v7  ;;  %2394 = vmatmul.bf16.gmra.mxu1 %v8935_v8 }
 0x322   :  { %v5884_v17 = vadd.f32 %v10580_v30, %v5684_v16  ;;  %3678 = vmatmul.bf16.gmra.mxu2 %v9033_v13  ;;  %4962 = vmatmul.bf16.gmra.mxu3 %v9131_v14  ;;  %v8840_v13 = vld [vmem:[%s11509_s0 + $0x198] sm:$0xff]  ;;  %v8938_v14 = vld [vmem:[%s11509_s0 + $0x4a8] sm:$0xff] }
 0x324   :  { %v6080_v19 = vmax.f32 %v5884_v17, 0.0 }
 0x325   :  { %v3639_v20 = vpop.f32.mrf.mxu2  ;;  %v4923_v21 = vpop.f32.mrf.mxu3 }
 0x326   :  { %v9379_v22 = vpack.c.bf16 %v6080_v19, %v6079_v18  ;;  %v1073_v23 = vpop.f32.mrf.mxu0  ;;  %v2357_v35 = vpop.f32.mrf.mxu1  ;;  %v5489_v25 = vmax.f32 %v3639_v20, %v4923_v21  ;;  %v9036_v19 = vld [vmem:[%s11509_s0 + $0x7b8] sm:$0xff]  ;;  %v9134_v20 = vld [vmem:[%s11509_s0 + $0xac8] sm:$0xff] }
 0x327   :  { %v5294_v31 = vmax.f32 %v1073_v23, %v2357_v35 }
 0x328   :  { %9709 = vst [vmem:[%s11511_s3 + $0x138] sm:$0xff] %v9379_v22   ;;  %v5685_v26 = vmax.f32 %v5293_v24, %v5489_v25 }
 0x32a   :  { %v5885_v38 = vadd.f32 %v10580_v30, %v5685_v26 }
 0x32c   :  { %v6081_v41 = vmax.f32 %v5885_v38, 0.0 }
 0x32d   :  { %v3641_v27 = vpop.f32.mrf.mxu2  ;;  %v4925_v53 = vpop.f32.mrf.mxu3 }
 0x32e   :  { %v5490_v32 = vmax.f32 %v3641_v27, %v4925_v53  ;;  %v1076_v33 = vpop.f32.mrf.mxu0  ;;  %v2360_v34 = vpop.f32.mrf.mxu1 }
 0x32f   :  { %v5295_v48 = vmax.f32 %v1076_v33, %v2360_v34 }
 0x330   :  { %v5686_v39 = vmax.f32 %v5294_v31, %v5490_v32 }
 0x331   :  { %1115 = vmatmul.bf16.gmra.mxu0 %v8838_v28  ;;  %2399 = vmatmul.bf16.gmra.mxu1 %v8936_v29 }
 0x332   :  { %v5886_v40 = vadd.f32 %v10580_v30, %v5686_v39  ;;  %3683 = vmatmul.bf16.gmra.mxu2 %v9034_v36  ;;  %4967 = vmatmul.bf16.gmra.mxu3 %v9132_v37  ;;  %v8841_v36 = vld [vmem:[%s11509_s0 + $0x1a0] sm:$0xff]  ;;  %v8939_v37 = vld [vmem:[%s11509_s0 + $0x4b0] sm:$0xff] }
 0x334   :  { %v6082_v42 = vmax.f32 %v5886_v40, 0.0 }
 0x335   :  { %v3644_v43 = vpop.f32.mrf.mxu2  ;;  %v4928_v44 = vpop.f32.mrf.mxu3 }
 0x336   :  { %v9384_v45 = vpack.c.bf16 %v6082_v42, %v6081_v41  ;;  %v1078_v46 = vpop.f32.mrf.mxu0  ;;  %v2362_v47 = vpop.f32.mrf.mxu1  ;;  %v5491_v49 = vmax.f32 %v3644_v43, %v4928_v44  ;;  %v9037_v42 = vld [vmem:[%s11509_s0 + $0x7c0] sm:$0xff]  ;;  %v9135_v43 = vld [vmem:[%s11509_s0 + $0xad0] sm:$0xff] }
 0x337   :  { %v5296_v56 = vmax.f32 %v1078_v46, %v2362_v47 }
 0x338   :  { %9710 = vst [vmem:[%s11511_s3 + $0x140] sm:$0xff] %v9384_v45   ;;  %v5687_v50 = vmax.f32 %v5295_v48, %v5491_v49 }
 0x33a   :  { %v5887_v62 = vadd.f32 %v10580_v30, %v5687_v50 }
 0x33c   :  { %v6083_v1 = vmax.f32 %v5887_v62, 0.0 }
 0x33d   :  { %v3646_v51 = vpop.f32.mrf.mxu2  ;;  %v4930_v52 = vpop.f32.mrf.mxu3 }
 0x33e   :  { %v5492_v57 = vmax.f32 %v3646_v51, %v4930_v52  ;;  %v1081_v58 = vpop.f32.mrf.mxu0  ;;  %v2365_v59 = vpop.f32.mrf.mxu1 }
 0x33f   :  { %v5297_v8 = vmax.f32 %v1081_v58, %v2365_v59 }
 0x340   :  { %v5688_v63 = vmax.f32 %v5296_v56, %v5492_v57 }
 0x341   :  { %1120 = vmatmul.bf16.gmra.mxu0 %v8839_v54  ;;  %2404 = vmatmul.bf16.gmra.mxu1 %v8937_v55 }
 0x342   :  { %v5888_v0 = vadd.f32 %v10580_v30, %v5688_v63  ;;  %3688 = vmatmul.bf16.gmra.mxu2 %v9035_v60  ;;  %4972 = vmatmul.bf16.gmra.mxu3 %v9133_v61  ;;  %v8842_v60 = vld [vmem:[%s11509_s0 + $0x1a8] sm:$0xff]  ;;  %v8940_v61 = vld [vmem:[%s11509_s0 + $0x4b8] sm:$0xff] }
 0x344   :  { %v6084_v2 = vmax.f32 %v5888_v0, 0.0 }
 0x345   :  { %v3649_v3 = vpop.f32.mrf.mxu2  ;;  %v4933_v4 = vpop.f32.mrf.mxu3 }
 0x346   :  { %v9389_v5 = vpack.c.bf16 %v6084_v2, %v6083_v1  ;;  %v1083_v6 = vpop.f32.mrf.mxu0  ;;  %v2367_v7 = vpop.f32.mrf.mxu1  ;;  %v5493_v9 = vmax.f32 %v3649_v3, %v4933_v4  ;;  %v9038_v2 = vld [vmem:[%s11509_s0 + $0x7c8] sm:$0xff]  ;;  %v9136_v3 = vld [vmem:[%s11509_s0 + $0xad8] sm:$0xff] }
 0x347   :  { %v5298_v15 = vmax.f32 %v1083_v6, %v2367_v7 }
 0x348   :  { %9711 = vst [vmem:[%s11511_s3 + $0x148] sm:$0xff] %v9389_v5   ;;  %v5689_v10 = vmax.f32 %v5297_v8, %v5493_v9 }
 0x34a   :  { %v5889_v21 = vadd.f32 %v10580_v30, %v5689_v10 }
 0x34c   :  { %v6085_v35 = vmax.f32 %v5889_v21, 0.0 }
 0x34d   :  { %v3651_v11 = vpop.f32.mrf.mxu2  ;;  %v4935_v12 = vpop.f32.mrf.mxu3 }
 0x34e   :  { %v5494_v16 = vmax.f32 %v3651_v11, %v4935_v12  ;;  %v1086_v17 = vpop.f32.mrf.mxu0  ;;  %v2370_v18 = vpop.f32.mrf.mxu1 }
 0x34f   :  { %v5299_v29 = vmax.f32 %v1086_v17, %v2370_v18 }
 0x350   :  { %v5690_v22 = vmax.f32 %v5298_v15, %v5494_v16 }
 0x351   :  { %1125 = vmatmul.bf16.gmra.mxu0 %v8840_v13  ;;  %2409 = vmatmul.bf16.gmra.mxu1 %v8938_v14 }
 0x352   :  { %v5890_v23 = vadd.f32 %v10580_v30, %v5690_v22  ;;  %3693 = vmatmul.bf16.gmra.mxu2 %v9036_v19  ;;  %4977 = vmatmul.bf16.gmra.mxu3 %v9134_v20  ;;  %v8843_v19 = vld [vmem:[%s11509_s0 + $0x1b0] sm:$0xff]  ;;  %v8941_v20 = vld [vmem:[%s11509_s0 + $0x4c0] sm:$0xff] }
 0x354   :  { %v6086_v24 = vmax.f32 %v5890_v23, 0.0 }
 0x355   :  { %v3654_v25 = vpop.f32.mrf.mxu2  ;;  %v4938_v26 = vpop.f32.mrf.mxu3 }
 0x356   :  { %v9394_v27 = vpack.c.bf16 %v6086_v24, %v6085_v35  ;;  %v1088_v53 = vpop.f32.mrf.mxu0  ;;  %v2372_v28 = vpop.f32.mrf.mxu1  ;;  %v5495_v31 = vmax.f32 %v3654_v25, %v4938_v26  ;;  %v9039_v24 = vld [vmem:[%s11509_s0 + $0x7d0] sm:$0xff]  ;;  %v9137_v25 = vld [vmem:[%s11509_s0 + $0xae0] sm:$0xff] }
 0x357   :  { %v5300_v38 = vmax.f32 %v1088_v53, %v2372_v28 }
 0x358   :  { %9712 = vst [vmem:[%s11511_s3 + $0x150] sm:$0xff] %v9394_v27   ;;  %v5691_v32 = vmax.f32 %v5299_v29, %v5495_v31 }
 0x35a   :  { %v5891_v44 = vadd.f32 %v10580_v30, %v5691_v32 }
 0x35c   :  { %v6087_v47 = vmax.f32 %v5891_v44, 0.0 }
 0x35d   :  { %v3656_v33 = vpop.f32.mrf.mxu2  ;;  %v4940_v34 = vpop.f32.mrf.mxu3 }
 0x35e   :  { %v5496_v39 = vmax.f32 %v3656_v33, %v4940_v34  ;;  %v1091_v40 = vpop.f32.mrf.mxu0  ;;  %v2375_v41 = vpop.f32.mrf.mxu1 }
 0x35f   :  { %v5301_v55 = vmax.f32 %v1091_v40, %v2375_v41 }
 0x360   :  { %v5692_v45 = vmax.f32 %v5300_v38, %v5496_v39 }
 0x361   :  { %1130 = vmatmul.bf16.gmra.mxu0 %v8841_v36  ;;  %2414 = vmatmul.bf16.gmra.mxu1 %v8939_v37 }
 0x362   :  { %v5892_v46 = vadd.f32 %v10580_v30, %v5692_v45  ;;  %3698 = vmatmul.bf16.gmra.mxu2 %v9037_v42  ;;  %4982 = vmatmul.bf16.gmra.mxu3 %v9135_v43  ;;  %v8844_v42 = vld [vmem:[%s11509_s0 + $0x1b8] sm:$0xff]  ;;  %v8942_v43 = vld [vmem:[%s11509_s0 + $0x4c8] sm:$0xff] }
 0x364   :  { %v6088_v48 = vmax.f32 %v5892_v46, 0.0 }
 0x365   :  { %v3659_v49 = vpop.f32.mrf.mxu2  ;;  %v4943_v50 = vpop.f32.mrf.mxu3 }
 0x366   :  { %v9399_v51 = vpack.c.bf16 %v6088_v48, %v6087_v47  ;;  %v1093_v52 = vpop.f32.mrf.mxu0  ;;  %v2377_v54 = vpop.f32.mrf.mxu1  ;;  %v5497_v56 = vmax.f32 %v3659_v49, %v4943_v50  ;;  %v9040_v48 = vld [vmem:[%s11509_s0 + $0x7d8] sm:$0xff]  ;;  %v9138_v49 = vld [vmem:[%s11509_s0 + $0xae8] sm:$0xff] }
 0x367   :  { %v5302_v62 = vmax.f32 %v1093_v52, %v2377_v54 }
 0x368   :  { %9713 = vst [vmem:[%s11511_s3 + $0x158] sm:$0xff] %v9399_v51   ;;  %v5693_v57 = vmax.f32 %v5301_v55, %v5497_v56 }
 0x36a   :  { %v5893_v4 = vadd.f32 %v10580_v30, %v5693_v57 }
 0x36c   :  { %v6089_v7 = vmax.f32 %v5893_v4, 0.0 }
 0x36d   :  { %v3661_v58 = vpop.f32.mrf.mxu2  ;;  %v4945_v59 = vpop.f32.mrf.mxu3 }
 0x36e   :  { %v5498_v63 = vmax.f32 %v3661_v58, %v4945_v59  ;;  %v1096_v0 = vpop.f32.mrf.mxu0  ;;  %v2380_v1 = vpop.f32.mrf.mxu1 }
 0x36f   :  { %v5303_v14 = vmax.f32 %v1096_v0, %v2380_v1 }
 0x370   :  { %v5694_v5 = vmax.f32 %v5302_v62, %v5498_v63 }
 0x371   :  { %1135 = vmatmul.bf16.gmra.mxu0 %v8842_v60  ;;  %2419 = vmatmul.bf16.gmra.mxu1 %v8940_v61 }
 0x372   :  { %v5894_v6 = vadd.f32 %v10580_v30, %v5694_v5  ;;  %3703 = vmatmul.bf16.gmra.mxu2 %v9038_v2  ;;  %4987 = vmatmul.bf16.gmra.mxu3 %v9136_v3  ;;  %v8845_v2 = vld [vmem:[%s11509_s0 + $0x1c0] sm:$0xff]  ;;  %v8943_v3 = vld [vmem:[%s11509_s0 + $0x4d0] sm:$0xff] }
 0x374   :  { %v6090_v8 = vmax.f32 %v5894_v6, 0.0 }
 0x375   :  { %v3664_v9 = vpop.f32.mrf.mxu2  ;;  %v4948_v10 = vpop.f32.mrf.mxu3 }
 0x376   :  { %v9404_v11 = vpack.c.bf16 %v6090_v8, %v6089_v7  ;;  %v1098_v12 = vpop.f32.mrf.mxu0  ;;  %v2382_v13 = vpop.f32.mrf.mxu1  ;;  %v5499_v15 = vmax.f32 %v3664_v9, %v4948_v10  ;;  %v9041_v8 = vld [vmem:[%s11509_s0 + $0x7e0] sm:$0xff]  ;;  %v9139_v9 = vld [vmem:[%s11509_s0 + $0xaf0] sm:$0xff] }
 0x377   :  { %v5304_v21 = vmax.f32 %v1098_v12, %v2382_v13 }
 0x378   :  { %9714 = vst [vmem:[%s11511_s3 + $0x160] sm:$0xff] %v9404_v11   ;;  %v5695_v16 = vmax.f32 %v5303_v14, %v5499_v15 }
 0x37a   :  { %v5895_v26 = vadd.f32 %v10580_v30, %v5695_v16 }
 0x37c   :  { %v6091_v28 = vmax.f32 %v5895_v26, 0.0 }
 0x37d   :  { %v3666_v17 = vpop.f32.mrf.mxu2  ;;  %v4950_v18 = vpop.f32.mrf.mxu3 }
 0x37e   :  { %v5500_v22 = vmax.f32 %v3666_v17, %v4950_v18  ;;  %v1101_v23 = vpop.f32.mrf.mxu0  ;;  %v2385_v35 = vpop.f32.mrf.mxu1 }
 0x37f   :  { %v5305_v37 = vmax.f32 %v1101_v23, %v2385_v35 }
 0x380   :  { %v5696_v27 = vmax.f32 %v5304_v21, %v5500_v22 }
 0x381   :  { %1140 = vmatmul.bf16.gmra.mxu0 %v8843_v19  ;;  %2424 = vmatmul.bf16.gmra.mxu1 %v8941_v20 }
 0x382   :  { %v5896_v53 = vadd.f32 %v10580_v30, %v5696_v27  ;;  %3708 = vmatmul.bf16.gmra.mxu2 %v9039_v24  ;;  %4992 = vmatmul.bf16.gmra.mxu3 %v9137_v25  ;;  %v8846_v24 = vld [vmem:[%s11509_s0 + $0x1c8] sm:$0xff]  ;;  %v8944_v25 = vld [vmem:[%s11509_s0 + $0x4d8] sm:$0xff] }
 0x384   :  { %v6092_v29 = vmax.f32 %v5896_v53, 0.0 }
 0x385   :  { %v3669_v31 = vpop.f32.mrf.mxu2  ;;  %v4953_v32 = vpop.f32.mrf.mxu3 }
 0x386   :  { %v9409_v33 = vpack.c.bf16 %v6092_v29, %v6091_v28  ;;  %v1103_v34 = vpop.f32.mrf.mxu0  ;;  %v2387_v36 = vpop.f32.mrf.mxu1  ;;  %v5501_v38 = vmax.f32 %v3669_v31, %v4953_v32  ;;  %v9042_v29 = vld [vmem:[%s11509_s0 + $0x7e8] sm:$0xff]  ;;  %v9140_v31 = vld [vmem:[%s11509_s0 + $0xaf8] sm:$0xff] }
 0x387   :  { %v5306_v44 = vmax.f32 %v1103_v34, %v2387_v36 }
 0x388   :  { %9715 = vst [vmem:[%s11511_s3 + $0x168] sm:$0xff] %v9409_v33   ;;  %v5697_v39 = vmax.f32 %v5305_v37, %v5501_v38 }
 0x38a   :  { %v5897_v50 = vadd.f32 %v10580_v30, %v5697_v39 }
 0x38c   :  { %v6093_v54 = vmax.f32 %v5897_v50, 0.0 }
 0x38d   :  { %v3671_v40 = vpop.f32.mrf.mxu2  ;;  %v4955_v41 = vpop.f32.mrf.mxu3 }
 0x38e   :  { %v5502_v45 = vmax.f32 %v3671_v40, %v4955_v41  ;;  %v1106_v46 = vpop.f32.mrf.mxu0  ;;  %v2390_v47 = vpop.f32.mrf.mxu1 }
 0x38f   :  { %v5307_v61 = vmax.f32 %v1106_v46, %v2390_v47 }
 0x390   :  { %v5698_v51 = vmax.f32 %v5306_v44, %v5502_v45 }
 0x391   :  { %1145 = vmatmul.bf16.gmra.mxu0 %v8844_v42  ;;  %2429 = vmatmul.bf16.gmra.mxu1 %v8942_v43 }
 0x392   :  { %v5898_v52 = vadd.f32 %v10580_v30, %v5698_v51  ;;  %3713 = vmatmul.bf16.gmra.mxu2 %v9040_v48  ;;  %4997 = vmatmul.bf16.gmra.mxu3 %v9138_v49  ;;  %v8847_v48 = vld [vmem:[%s11509_s0 + $0x1d0] sm:$0xff]  ;;  %v8945_v49 = vld [vmem:[%s11509_s0 + $0x4e0] sm:$0xff] }
 0x394   :  { %v6094_v55 = vmax.f32 %v5898_v52, 0.0 }
 0x395   :  { %v3674_v56 = vpop.f32.mrf.mxu2  ;;  %v4958_v57 = vpop.f32.mrf.mxu3 }
 0x396   :  { %v9414_v58 = vpack.c.bf16 %v6094_v55, %v6093_v54  ;;  %v1108_v59 = vpop.f32.mrf.mxu0  ;;  %v2392_v60 = vpop.f32.mrf.mxu1  ;;  %v5503_v62 = vmax.f32 %v3674_v56, %v4958_v57  ;;  %v9043_v55 = vld [vmem:[%s11509_s0 + $0x7f0] sm:$0xff]  ;;  %v9141_v56 = vld [vmem:[%s11509_s0 + $0xb00] sm:$0xff] }
 0x397   :  { %v5308_v4 = vmax.f32 %v1108_v59, %v2392_v60 }
 0x398   :  { %9716 = vst [vmem:[%s11511_s3 + $0x170] sm:$0xff] %v9414_v58   ;;  %v5699_v63 = vmax.f32 %v5307_v61, %v5503_v62 }
 0x39a   :  { %v5899_v10 = vadd.f32 %v10580_v30, %v5699_v63 }
 0x39c   :  { %v6095_v13 = vmax.f32 %v5899_v10, 0.0 }
 0x39d   :  { %v3676_v0 = vpop.f32.mrf.mxu2  ;;  %v4960_v1 = vpop.f32.mrf.mxu3 }
 0x39e   :  { %v5504_v5 = vmax.f32 %v3676_v0, %v4960_v1  ;;  %v1111_v6 = vpop.f32.mrf.mxu0  ;;  %v2395_v7 = vpop.f32.mrf.mxu1 }
 0x39f   :  { %v5309_v20 = vmax.f32 %v1111_v6, %v2395_v7 }
 0x3a0   :  { %v5700_v11 = vmax.f32 %v5308_v4, %v5504_v5 }
 0x3a1   :  { %1150 = vmatmul.bf16.gmra.mxu0 %v8845_v2  ;;  %2434 = vmatmul.bf16.gmra.mxu1 %v8943_v3 }
 0x3a2   :  { %v5900_v12 = vadd.f32 %v10580_v30, %v5700_v11  ;;  %3718 = vmatmul.bf16.gmra.mxu2 %v9041_v8  ;;  %5002 = vmatmul.bf16.gmra.mxu3 %v9139_v9  ;;  %v8848_v8 = vld [vmem:[%s11509_s0 + $0x1d8] sm:$0xff]  ;;  %v8946_v9 = vld [vmem:[%s11509_s0 + $0x4e8] sm:$0xff] }
 0x3a4   :  { %v6096_v14 = vmax.f32 %v5900_v12, 0.0 }
 0x3a5   :  { %v3679_v15 = vpop.f32.mrf.mxu2  ;;  %v4963_v16 = vpop.f32.mrf.mxu3 }
 0x3a6   :  { %v9419_v17 = vpack.c.bf16 %v6096_v14, %v6095_v13  ;;  %v1113_v18 = vpop.f32.mrf.mxu0  ;;  %v2397_v19 = vpop.f32.mrf.mxu1  ;;  %v5505_v21 = vmax.f32 %v3679_v15, %v4963_v16  ;;  %v9044_v14 = vld [vmem:[%s11509_s0 + $0x7f8] sm:$0xff]  ;;  %v9142_v15 = vld [vmem:[%s11509_s0 + $0xb08] sm:$0xff] }
 0x3a7   :  { %v5310_v26 = vmax.f32 %v1113_v18, %v2397_v19 }
 0x3a8   :  { %9717 = vst [vmem:[%s11511_s3 + $0x178] sm:$0xff] %v9419_v17   ;;  %v5701_v22 = vmax.f32 %v5309_v20, %v5505_v21 }
 0x3aa   :  { %v5901_v32 = vadd.f32 %v10580_v30, %v5701_v22 }
 0x3ac   :  { %v6097_v36 = vmax.f32 %v5901_v32, 0.0 }
 0x3ad   :  { %v3681_v23 = vpop.f32.mrf.mxu2  ;;  %v4965_v35 = vpop.f32.mrf.mxu3 }
 0x3ae   :  { %v5506_v27 = vmax.f32 %v3681_v23, %v4965_v35  ;;  %v1116_v53 = vpop.f32.mrf.mxu0  ;;  %v2400_v28 = vpop.f32.mrf.mxu1 }
 0x3af   :  { %v5311_v43 = vmax.f32 %v1116_v53, %v2400_v28 }
 0x3b0   :  { %v5702_v33 = vmax.f32 %v5310_v26, %v5506_v27 }
 0x3b1   :  { %1155 = vmatmul.bf16.gmra.mxu0 %v8846_v24  ;;  %2439 = vmatmul.bf16.gmra.mxu1 %v8944_v25 }
 0x3b2   :  { %v5902_v34 = vadd.f32 %v10580_v30, %v5702_v33  ;;  %3723 = vmatmul.bf16.gmra.mxu2 %v9042_v29  ;;  %5007 = vmatmul.bf16.gmra.mxu3 %v9140_v31  ;;  %v8849_v29 = vld [vmem:[%s11509_s0 + $0x1e0] sm:$0xff]  ;;  %v8947_v31 = vld [vmem:[%s11509_s0 + $0x4f0] sm:$0xff] }
 0x3b4   :  { %v6098_v37 = vmax.f32 %v5902_v34, 0.0 }
 0x3b5   :  { %v3684_v38 = vpop.f32.mrf.mxu2  ;;  %v4968_v39 = vpop.f32.mrf.mxu3 }
 0x3b6   :  { %v9424_v40 = vpack.c.bf16 %v6098_v37, %v6097_v36  ;;  %v1118_v41 = vpop.f32.mrf.mxu0  ;;  %v2402_v42 = vpop.f32.mrf.mxu1  ;;  %v5507_v44 = vmax.f32 %v3684_v38, %v4968_v39  ;;  %v9045_v37 = vld [vmem:[%s11509_s0 + $0x800] sm:$0xff]  ;;  %v9143_v38 = vld [vmem:[%s11509_s0 + $0xb10] sm:$0xff] }
 0x3b7   :  { %v5312_v50 = vmax.f32 %v1118_v41, %v2402_v42 }
 0x3b8   :  { %9718 = vst [vmem:[%s11511_s3 + $0x180] sm:$0xff] %v9424_v40   ;;  %v5703_v45 = vmax.f32 %v5311_v43, %v5507_v44 }
 0x3ba   :  { %v5903_v57 = vadd.f32 %v10580_v30, %v5703_v45 }
 0x3bc   :  { %v6099_v60 = vmax.f32 %v5903_v57, 0.0 }
 0x3bd   :  { %v3686_v46 = vpop.f32.mrf.mxu2  ;;  %v4970_v47 = vpop.f32.mrf.mxu3 }
 0x3be   :  { %v5508_v51 = vmax.f32 %v3686_v46, %v4970_v47  ;;  %v1121_v52 = vpop.f32.mrf.mxu0  ;;  %v2405_v54 = vpop.f32.mrf.mxu1 }
 0x3bf   :  { %v5313_v3 = vmax.f32 %v1121_v52, %v2405_v54 }
 0x3c0   :  { %v5704_v58 = vmax.f32 %v5312_v50, %v5508_v51 }
 0x3c1   :  { %1160 = vmatmul.bf16.gmra.mxu0 %v8847_v48  ;;  %2444 = vmatmul.bf16.gmra.mxu1 %v8945_v49 }
 0x3c2   :  { %v5904_v59 = vadd.f32 %v10580_v30, %v5704_v58  ;;  %3728 = vmatmul.bf16.gmra.mxu2 %v9043_v55  ;;  %5012 = vmatmul.bf16.gmra.mxu3 %v9141_v56  ;;  %v8850_v55 = vld [vmem:[%s11509_s0 + $0x1e8] sm:$0xff]  ;;  %v8948_v56 = vld [vmem:[%s11509_s0 + $0x4f8] sm:$0xff] }
 0x3c4   :  { %v6100_v61 = vmax.f32 %v5904_v59, 0.0 }
 0x3c5   :  { %v3689_v62 = vpop.f32.mrf.mxu2  ;;  %v4973_v63 = vpop.f32.mrf.mxu3 }
 0x3c6   :  { %v9429_v0 = vpack.c.bf16 %v6100_v61, %v6099_v60  ;;  %v1123_v1 = vpop.f32.mrf.mxu0  ;;  %v2407_v2 = vpop.f32.mrf.mxu1  ;;  %v5509_v4 = vmax.f32 %v3689_v62, %v4973_v63  ;;  %v9046_v61 = vld [vmem:[%s11509_s0 + $0x808] sm:$0xff]  ;;  %v9144_v62 = vld [vmem:[%s11509_s0 + $0xb18] sm:$0xff] }
 0x3c7   :  { %v5314_v10 = vmax.f32 %v1123_v1, %v2407_v2 }
 0x3c8   :  { %9719 = vst [vmem:[%s11511_s3 + $0x188] sm:$0xff] %v9429_v0   ;;  %v5705_v5 = vmax.f32 %v5313_v3, %v5509_v4 }
 0x3ca   :  { %v5905_v16 = vadd.f32 %v10580_v30, %v5705_v5 }
 0x3cc   :  { %v6101_v19 = vmax.f32 %v5905_v16, 0.0 }
 0x3cd   :  { %v3691_v6 = vpop.f32.mrf.mxu2  ;;  %v4975_v7 = vpop.f32.mrf.mxu3 }
 0x3ce   :  { %v5510_v11 = vmax.f32 %v3691_v6, %v4975_v7  ;;  %v1126_v12 = vpop.f32.mrf.mxu0  ;;  %v2410_v13 = vpop.f32.mrf.mxu1 }
 0x3cf   :  { %v5315_v25 = vmax.f32 %v1126_v12, %v2410_v13 }
 0x3d0   :  { %v5706_v17 = vmax.f32 %v5314_v10, %v5510_v11 }
 0x3d1   :  { %1165 = vmatmul.bf16.gmra.mxu0 %v8848_v8  ;;  %2449 = vmatmul.bf16.gmra.mxu1 %v8946_v9 }
 0x3d2   :  { %v5906_v18 = vadd.f32 %v10580_v30, %v5706_v17  ;;  %3733 = vmatmul.bf16.gmra.mxu2 %v9044_v14  ;;  %5017 = vmatmul.bf16.gmra.mxu3 %v9142_v15  ;;  %v8851_v14 = vld [vmem:[%s11509_s0 + $0x1f0] sm:$0xff]  ;;  %v8949_v15 = vld [vmem:[%s11509_s0 + $0x500] sm:$0xff] }
 0x3d4   :  { %v6102_v20 = vmax.f32 %v5906_v18, 0.0 }
 0x3d5   :  { %v3694_v21 = vpop.f32.mrf.mxu2  ;;  %v4978_v22 = vpop.f32.mrf.mxu3 }
 0x3d6   :  { %v9434_v23 = vpack.c.bf16 %v6102_v20, %v6101_v19  ;;  %v1128_v35 = vpop.f32.mrf.mxu0  ;;  %v2412_v24 = vpop.f32.mrf.mxu1  ;;  %v5511_v26 = vmax.f32 %v3694_v21, %v4978_v22  ;;  %v9047_v20 = vld [vmem:[%s11509_s0 + $0x810] sm:$0xff]  ;;  %v9145_v21 = vld [vmem:[%s11509_s0 + $0xb20] sm:$0xff] }
 0x3d7   :  { %v5316_v32 = vmax.f32 %v1128_v35, %v2412_v24 }
 0x3d8   :  { %9720 = vst [vmem:[%s11511_s3 + $0x190] sm:$0xff] %v9434_v23   ;;  %v5707_v27 = vmax.f32 %v5315_v25, %v5511_v26 }
 0x3da   :  { %v5907_v39 = vadd.f32 %v10580_v30, %v5707_v27 }
 0x3dc   :  { %v6103_v42 = vmax.f32 %v5907_v39, 0.0 }
 0x3dd   :  { %v3696_v53 = vpop.f32.mrf.mxu2  ;;  %v4980_v28 = vpop.f32.mrf.mxu3 }
 0x3de   :  { %v5512_v33 = vmax.f32 %v3696_v53, %v4980_v28  ;;  %v1131_v34 = vpop.f32.mrf.mxu0  ;;  %v2415_v36 = vpop.f32.mrf.mxu1 }
 0x3df   :  { %v5317_v49 = vmax.f32 %v1131_v34, %v2415_v36 }
 0x3e0   :  { %v5708_v40 = vmax.f32 %v5316_v32, %v5512_v33 }
 0x3e1   :  { %1170 = vmatmul.bf16.gmra.mxu0 %v8849_v29  ;;  %2454 = vmatmul.bf16.gmra.mxu1 %v8947_v31 }
 0x3e2   :  { %v5908_v41 = vadd.f32 %v10580_v30, %v5708_v40  ;;  %3738 = vmatmul.bf16.gmra.mxu2 %v9045_v37  ;;  %5022 = vmatmul.bf16.gmra.mxu3 %v9143_v38  ;;  %v8852_v37 = vld [vmem:[%s11509_s0 + $0x1f8] sm:$0xff]  ;;  %v8950_v38 = vld [vmem:[%s11509_s0 + $0x508] sm:$0xff] }
 0x3e4   :  { %v6104_v43 = vmax.f32 %v5908_v41, 0.0 }
 0x3e5   :  { %v3699_v44 = vpop.f32.mrf.mxu2  ;;  %v4983_v45 = vpop.f32.mrf.mxu3 }
 0x3e6   :  { %v9439_v46 = vpack.c.bf16 %v6104_v43, %v6103_v42  ;;  %v1133_v47 = vpop.f32.mrf.mxu0  ;;  %v2417_v48 = vpop.f32.mrf.mxu1  ;;  %v5513_v50 = vmax.f32 %v3699_v44, %v4983_v45  ;;  %v9048_v43 = vld [vmem:[%s11509_s0 + $0x818] sm:$0xff]  ;;  %v9146_v44 = vld [vmem:[%s11509_s0 + $0xb28] sm:$0xff] }
 0x3e7   :  { %v5318_v57 = vmax.f32 %v1133_v47, %v2417_v48 }
 0x3e8   :  { %9721 = vst [vmem:[%s11511_s3 + $0x198] sm:$0xff] %v9439_v46   ;;  %v5709_v51 = vmax.f32 %v5317_v49, %v5513_v50 }
 0x3ea   :  { %v5909_v63 = vadd.f32 %v10580_v30, %v5709_v51 }
 0x3ec   :  { %v6105_v2 = vmax.f32 %v5909_v63, 0.0 }
 0x3ed   :  { %v3701_v52 = vpop.f32.mrf.mxu2  ;;  %v4985_v54 = vpop.f32.mrf.mxu3 }
 0x3ee   :  { %v5514_v58 = vmax.f32 %v3701_v52, %v4985_v54  ;;  %v1136_v59 = vpop.f32.mrf.mxu0  ;;  %v2420_v60 = vpop.f32.mrf.mxu1 }
 0x3ef   :  { %v5319_v9 = vmax.f32 %v1136_v59, %v2420_v60 }
 0x3f0   :  { %v5710_v0 = vmax.f32 %v5318_v57, %v5514_v58 }
 0x3f1   :  { %1175 = vmatmul.bf16.gmra.mxu0 %v8850_v55  ;;  %2459 = vmatmul.bf16.gmra.mxu1 %v8948_v56 }
 0x3f2   :  { %v5910_v1 = vadd.f32 %v10580_v30, %v5710_v0  ;;  %3743 = vmatmul.bf16.gmra.mxu2 %v9046_v61  ;;  %5027 = vmatmul.bf16.gmra.mxu3 %v9144_v62  ;;  %v8853_v61 = vld [vmem:[%s11509_s0 + $0x200] sm:$0xff]  ;;  %v8951_v62 = vld [vmem:[%s11509_s0 + $0x510] sm:$0xff] }
 0x3f4   :  { %v6106_v3 = vmax.f32 %v5910_v1, 0.0 }
 0x3f5   :  { %v3704_v4 = vpop.f32.mrf.mxu2  ;;  %v4988_v5 = vpop.f32.mrf.mxu3 }
 0x3f6   :  { %v9444_v6 = vpack.c.bf16 %v6106_v3, %v6105_v2  ;;  %v1138_v7 = vpop.f32.mrf.mxu0  ;;  %v2422_v8 = vpop.f32.mrf.mxu1  ;;  %v5515_v10 = vmax.f32 %v3704_v4, %v4988_v5  ;;  %v9049_v3 = vld [vmem:[%s11509_s0 + $0x820] sm:$0xff]  ;;  %v9147_v4 = vld [vmem:[%s11509_s0 + $0xb30] sm:$0xff] }
 0x3f7   :  { %v5320_v16 = vmax.f32 %v1138_v7, %v2422_v8 }
 0x3f8   :  { %9722 = vst [vmem:[%s11511_s3 + $0x1a0] sm:$0xff] %v9444_v6   ;;  %v5711_v11 = vmax.f32 %v5319_v9, %v5515_v10 }
 0x3fa   :  { %v5911_v22 = vadd.f32 %v10580_v30, %v5711_v11 }
 0x3fc   :  { %v6107_v24 = vmax.f32 %v5911_v22, 0.0 }
 0x3fd   :  { %v3706_v12 = vpop.f32.mrf.mxu2  ;;  %v4990_v13 = vpop.f32.mrf.mxu3 }
 0x3fe   :  { %v5516_v17 = vmax.f32 %v3706_v12, %v4990_v13  ;;  %v1141_v18 = vpop.f32.mrf.mxu0  ;;  %v2425_v19 = vpop.f32.mrf.mxu1 }
 0x3ff   :  { %v5321_v31 = vmax.f32 %v1141_v18, %v2425_v19 }
 0x400   :  { %v5712_v23 = vmax.f32 %v5320_v16, %v5516_v17 }
 0x401   :  { %1180 = vmatmul.bf16.gmra.mxu0 %v8851_v14  ;;  %2464 = vmatmul.bf16.gmra.mxu1 %v8949_v15 }
 0x402   :  { %v5912_v35 = vadd.f32 %v10580_v30, %v5712_v23  ;;  %3748 = vmatmul.bf16.gmra.mxu2 %v9047_v20  ;;  %5032 = vmatmul.bf16.gmra.mxu3 %v9145_v21  ;;  %v8952_v20 = vld [vmem:[%s11509_s0 + $0x518] sm:$0xff] }
 0x404   :  { %v6108_v25 = vmax.f32 %v5912_v35, 0.0 }
 0x405   :  { %v3709_v26 = vpop.f32.mrf.mxu2  ;;  %v4993_v27 = vpop.f32.mrf.mxu3 }
 0x406   :  { %v9449_v53 = vpack.c.bf16 %v6108_v25, %v6107_v24  ;;  %v1143_v28 = vpop.f32.mrf.mxu0  ;;  %v2427_v29 = vpop.f32.mrf.mxu1  ;;  %v5517_v32 = vmax.f32 %v3709_v26, %v4993_v27  ;;  %v9050_v24 = vld [vmem:[%s11509_s0 + $0x828] sm:$0xff]  ;;  %v9148_v25 = vld [vmem:[%s11509_s0 + $0xb38] sm:$0xff]  ;;  %v10908_v26 = vld [vmem:[%s11510_s2] ss:$0 sm:$0xff] }
 0x407   :  { %v5322_v39 = vmax.f32 %v1143_v28, %v2427_v29 }
 0x408   :  { %9723 = vst [vmem:[%s11511_s3 + $0x1a8] sm:$0xff] %v9449_v53   ;;  %v5713_v33 = vmax.f32 %v5321_v31, %v5517_v32 }
 0x40a   :  { %v5913_v45 = vadd.f32 %v10580_v30, %v5713_v33 }
 0x40c   :  { %v6109_v48 = vmax.f32 %v5913_v45, 0.0 }
 0x40d   :  { %v3711_v34 = vpop.f32.mrf.mxu2  ;;  %v4995_v36 = vpop.f32.mrf.mxu3 }
 0x40e   :  { %v5518_v40 = vmax.f32 %v3711_v34, %v4995_v36  ;;  %v1146_v41 = vpop.f32.mrf.mxu0  ;;  %v2430_v42 = vpop.f32.mrf.mxu1 }
 0x40f   :  { %v5323_v56 = vmax.f32 %v1146_v41, %v2430_v42 }
 0x410   :  { %v5714_v46 = vmax.f32 %v5322_v39, %v5518_v40 }
 0x411   :  { %1185 = vmatmul.bf16.gmra.mxu0 %v8852_v37  ;;  %2469 = vmatmul.bf16.gmra.mxu1 %v8950_v38 }
 0x412   :  { %v5914_v47 = vadd.f32 %v10580_v30, %v5714_v46  ;;  %3753 = vmatmul.bf16.gmra.mxu2 %v9048_v43  ;;  %5037 = vmatmul.bf16.gmra.mxu3 %v9146_v44  ;;  %v8855_v43 = vld [vmem:[%s11509_s0 + $0x210] sm:$0xff]  ;;  %v8953_v44 = vld [vmem:[%s11509_s0 + $0x520] sm:$0xff] }
 0x414   :  { %v6110_v49 = vmax.f32 %v5914_v47, 0.0 }
 0x415   :  { %v3714_v50 = vpop.f32.mrf.mxu2  ;;  %v4998_v51 = vpop.f32.mrf.mxu3 }
 0x416   :  { %v9454_v52 = vpack.c.bf16 %v6110_v49, %v6109_v48  ;;  %v1148_v54 = vpop.f32.mrf.mxu0  ;;  %v2432_v55 = vpop.f32.mrf.mxu1  ;;  %v5519_v57 = vmax.f32 %v3714_v50, %v4998_v51  ;;  %v9051_v49 = vld [vmem:[%s11509_s0 + $0x830] sm:$0xff]  ;;  %v9149_v50 = vld [vmem:[%s11509_s0 + $0xb40] sm:$0xff] }
 0x417   :  { %v5324_v63 = vmax.f32 %v1148_v54, %v2432_v55 }
 0x418   :  { %9724 = vst [vmem:[%s11511_s3 + $0x1b0] sm:$0xff] %v9454_v52   ;;  %v5715_v58 = vmax.f32 %v5323_v56, %v5519_v57 }
 0x41a   :  { %v5915_v5 = vadd.f32 %v10580_v30, %v5715_v58 }
 0x41c   :  { %v6111_v8 = vmax.f32 %v5915_v5, 0.0 }
 0x41d   :  { %v3716_v59 = vpop.f32.mrf.mxu2  ;;  %v5000_v60 = vpop.f32.mrf.mxu3 }
 0x41e   :  { %v5520_v0 = vmax.f32 %v3716_v59, %v5000_v60  ;;  %v1151_v1 = vpop.f32.mrf.mxu0  ;;  %v2435_v2 = vpop.f32.mrf.mxu1 }
 0x41f   :  { %v5325_v15 = vmax.f32 %v1151_v1, %v2435_v2 }
 0x420   :  { %v5716_v6 = vmax.f32 %v5324_v63, %v5520_v0 }
 0x421   :  { %1190 = vmatmul.bf16.gmra.mxu0 %v8853_v61  ;;  %2474 = vmatmul.bf16.gmra.mxu1 %v8951_v62 }
 0x422   :  { %v5916_v7 = vadd.f32 %v10580_v30, %v5716_v6  ;;  %3758 = vmatmul.bf16.gmra.mxu2 %v9049_v3  ;;  %5042 = vmatmul.bf16.gmra.mxu3 %v9147_v4  ;;  %v8854_v30 = vld [vmem:[%s11509_s0 + $0x208] sm:$0xff]  ;;  %v8856_v3 = vld [vmem:[%s11509_s0 + $0x218] sm:$0xff] }
 0x423   :  { %v8954_v4 = vld [vmem:[%s11509_s0 + $0x528] sm:$0xff] }
 0x424   :  { %v6112_v9 = vmax.f32 %v5916_v7, 0.0 }
 0x425   :  { %v3719_v10 = vpop.f32.mrf.mxu2  ;;  %v5003_v11 = vpop.f32.mrf.mxu3 }
 0x426   :  { %v9459_v12 = vpack.c.bf16 %v6112_v9, %v6111_v8  ;;  %v1153_v13 = vpop.f32.mrf.mxu0  ;;  %v2437_v14 = vpop.f32.mrf.mxu1  ;;  %v5521_v16 = vmax.f32 %v3719_v10, %v5003_v11  ;;  %v9052_v9 = vld [vmem:[%s11509_s0 + $0x838] sm:$0xff]  ;;  %v9150_v10 = vld [vmem:[%s11509_s0 + $0xb48] sm:$0xff] }
 0x427   :  { %v5326_v21 = vmax.f32 %v1153_v13, %v2437_v14 }
 0x428   :  { %9725 = vst [vmem:[%s11511_s3 + $0x1b8] sm:$0xff] %v9459_v12   ;;  %v5717_v17 = vmax.f32 %v5325_v15, %v5521_v16 }
 0x42a   :  { %v5917_v27 = vadd.f32 %v10908_v26, %v5717_v17 }
 0x42c   :  { %v6113_v29 = vmax.f32 %v5917_v27, 0.0 }
 0x42d   :  { %v3721_v18 = vpop.f32.mrf.mxu2  ;;  %v5005_v19 = vpop.f32.mrf.mxu3 }
 0x42e   :  { %v5522_v22 = vmax.f32 %v3721_v18, %v5005_v19  ;;  %v1156_v23 = vpop.f32.mrf.mxu0  ;;  %v2440_v35 = vpop.f32.mrf.mxu1 }
 0x42f   :  { %v5327_v38 = vmax.f32 %v1156_v23, %v2440_v35 }
 0x430   :  { %v5718_v53 = vmax.f32 %v5326_v21, %v5522_v22 }
 0x431   :  { %1195 = vmatmul.bf16.gmra.mxu0 %v8854_v30  ;;  %2479 = vmatmul.bf16.gmra.mxu1 %v8952_v20 }
 0x432   :  { %v5918_v28 = vadd.f32 %v10908_v26, %v5718_v53  ;;  %3763 = vmatmul.bf16.gmra.mxu2 %v9050_v24  ;;  %5047 = vmatmul.bf16.gmra.mxu3 %v9148_v25  ;;  %v8857_v24 = vld [vmem:[%s11509_s0 + $0x220] sm:$0xff]  ;;  %v8955_v25 = vld [vmem:[%s11509_s0 + $0x530] sm:$0xff] }
 0x434   :  { %v6114_v31 = vmax.f32 %v5918_v28, 0.0 }
 0x435   :  { %v3724_v32 = vpop.f32.mrf.mxu2  ;;  %v5008_v33 = vpop.f32.mrf.mxu3 }
 0x436   :  { %v9464_v34 = vpack.c.bf16 %v6114_v31, %v6113_v29  ;;  %v1158_v36 = vpop.f32.mrf.mxu0  ;;  %v2442_v37 = vpop.f32.mrf.mxu1  ;;  %v5523_v39 = vmax.f32 %v3724_v32, %v5008_v33  ;;  %v9053_v31 = vld [vmem:[%s11509_s0 + $0x840] sm:$0xff]  ;;  %v9151_v32 = vld [vmem:[%s11509_s0 + $0xb50] sm:$0xff] }
 0x437   :  { %v5328_v45 = vmax.f32 %v1158_v36, %v2442_v37 }
 0x438   :  { %9726 = vst [vmem:[%s11511_s3 + $0x1c0] sm:$0xff] %v9464_v34   ;;  %v5719_v40 = vmax.f32 %v5327_v38, %v5523_v39 }
 0x43a   :  { %v5919_v51 = vadd.f32 %v10908_v26, %v5719_v40 }
 0x43c   :  { %v6115_v55 = vmax.f32 %v5919_v51, 0.0 }
 0x43d   :  { %v3726_v41 = vpop.f32.mrf.mxu2  ;;  %v5010_v42 = vpop.f32.mrf.mxu3 }
 0x43e   :  { %v5524_v46 = vmax.f32 %v3726_v41, %v5010_v42  ;;  %v1161_v47 = vpop.f32.mrf.mxu0  ;;  %v2445_v48 = vpop.f32.mrf.mxu1 }
 0x43f   :  { %v5329_v62 = vmax.f32 %v1161_v47, %v2445_v48 }
 0x440   :  { %v5720_v52 = vmax.f32 %v5328_v45, %v5524_v46 }
 0x441   :  { %1200 = vmatmul.bf16.gmra.mxu0 %v8855_v43  ;;  %2484 = vmatmul.bf16.gmra.mxu1 %v8953_v44 }
 0x442   :  { %v5920_v54 = vadd.f32 %v10908_v26, %v5720_v52  ;;  %3768 = vmatmul.bf16.gmra.mxu2 %v9051_v49  ;;  %5052 = vmatmul.bf16.gmra.mxu3 %v9149_v50  ;;  %v8858_v49 = vld [vmem:[%s11509_s0 + $0x228] sm:$0xff]  ;;  %v8956_v50 = vld [vmem:[%s11509_s0 + $0x538] sm:$0xff] }
 0x444   :  { %v6116_v56 = vmax.f32 %v5920_v54, 0.0 }
 0x445   :  { %v3729_v57 = vpop.f32.mrf.mxu2  ;;  %v5013_v58 = vpop.f32.mrf.mxu3 }
 0x446   :  { %v9469_v59 = vpack.c.bf16 %v6116_v56, %v6115_v55  ;;  %v1163_v60 = vpop.f32.mrf.mxu0  ;;  %v2447_v61 = vpop.f32.mrf.mxu1  ;;  %v5525_v63 = vmax.f32 %v3729_v57, %v5013_v58  ;;  %v9054_v56 = vld [vmem:[%s11509_s0 + $0x848] sm:$0xff]  ;;  %v9152_v57 = vld [vmem:[%s11509_s0 + $0xb58] sm:$0xff] }
 0x447   :  { %v5330_v5 = vmax.f32 %v1163_v60, %v2447_v61 }
 0x448   :  { %9727 = vst [vmem:[%s11511_s3 + $0x1c8] sm:$0xff] %v9469_v59   ;;  %v5721_v0 = vmax.f32 %v5329_v62, %v5525_v63 }
 0x44a   :  { %v5921_v11 = vadd.f32 %v10908_v26, %v5721_v0 }
 0x44c   :  { %v6117_v14 = vmax.f32 %v5921_v11, 0.0 }
 0x44d   :  { %v3731_v1 = vpop.f32.mrf.mxu2  ;;  %v5015_v2 = vpop.f32.mrf.mxu3 }
 0x44e   :  { %v5526_v6 = vmax.f32 %v3731_v1, %v5015_v2  ;;  %v1166_v7 = vpop.f32.mrf.mxu0  ;;  %v2450_v8 = vpop.f32.mrf.mxu1 }
 0x44f   :  { %v5331_v20 = vmax.f32 %v1166_v7, %v2450_v8 }
 0x450   :  { %v5722_v12 = vmax.f32 %v5330_v5, %v5526_v6 }
 0x451   :  { %1205 = vmatmul.bf16.gmra.mxu0 %v8856_v3  ;;  %2489 = vmatmul.bf16.gmra.mxu1 %v8954_v4 }
 0x452   :  { %v5922_v13 = vadd.f32 %v10908_v26, %v5722_v12  ;;  %3773 = vmatmul.bf16.gmra.mxu2 %v9052_v9  ;;  %5057 = vmatmul.bf16.gmra.mxu3 %v9150_v10  ;;  %v8859_v9 = vld [vmem:[%s11509_s0 + $0x230] sm:$0xff]  ;;  %v8957_v10 = vld [vmem:[%s11509_s0 + $0x540] sm:$0xff] }
 0x454   :  { %v6118_v15 = vmax.f32 %v5922_v13, 0.0 }
 0x455   :  { %v3734_v16 = vpop.f32.mrf.mxu2  ;;  %v5018_v17 = vpop.f32.mrf.mxu3 }
 0x456   :  { %v9474_v18 = vpack.c.bf16 %v6118_v15, %v6117_v14  ;;  %v1168_v19 = vpop.f32.mrf.mxu0  ;;  %v2452_v30 = vpop.f32.mrf.mxu1  ;;  %v5527_v21 = vmax.f32 %v3734_v16, %v5018_v17  ;;  %v9055_v15 = vld [vmem:[%s11509_s0 + $0x850] sm:$0xff]  ;;  %v9153_v16 = vld [vmem:[%s11509_s0 + $0xb60] sm:$0xff] }
 0x457   :  { %v5332_v27 = vmax.f32 %v1168_v19, %v2452_v30 }
 0x458   :  { %9728 = vst [vmem:[%s11511_s3 + $0x1d0] sm:$0xff] %v9474_v18   ;;  %v5723_v22 = vmax.f32 %v5331_v20, %v5527_v21 }
 0x45a   :  { %v5923_v33 = vadd.f32 %v10908_v26, %v5723_v22 }
 0x45c   :  { %v6119_v37 = vmax.f32 %v5923_v33, 0.0 }
 0x45d   :  { %v3736_v23 = vpop.f32.mrf.mxu2  ;;  %v5020_v35 = vpop.f32.mrf.mxu3 }
 0x45e   :  { %v5528_v53 = vmax.f32 %v3736_v23, %v5020_v35  ;;  %v1171_v28 = vpop.f32.mrf.mxu0  ;;  %v2455_v29 = vpop.f32.mrf.mxu1 }
 0x45f   :  { %v5333_v44 = vmax.f32 %v1171_v28, %v2455_v29 }
 0x460   :  { %v5724_v34 = vmax.f32 %v5332_v27, %v5528_v53 }
 0x461   :  { %1210 = vmatmul.bf16.gmra.mxu0 %v8857_v24  ;;  %2494 = vmatmul.bf16.gmra.mxu1 %v8955_v25 }
 0x462   :  { %v5924_v36 = vadd.f32 %v10908_v26, %v5724_v34  ;;  %3778 = vmatmul.bf16.gmra.mxu2 %v9053_v31  ;;  %5062 = vmatmul.bf16.gmra.mxu3 %v9151_v32  ;;  %v8860_v31 = vld [vmem:[%s11509_s0 + $0x238] sm:$0xff]  ;;  %v8958_v32 = vld [vmem:[%s11509_s0 + $0x548] sm:$0xff] }
 0x464   :  { %v6120_v38 = vmax.f32 %v5924_v36, 0.0 }
 0x465   :  { %v3739_v39 = vpop.f32.mrf.mxu2  ;;  %v5023_v40 = vpop.f32.mrf.mxu3 }
 0x466   :  { %v9479_v41 = vpack.c.bf16 %v6120_v38, %v6119_v37  ;;  %v1173_v42 = vpop.f32.mrf.mxu0  ;;  %v2457_v43 = vpop.f32.mrf.mxu1  ;;  %v5529_v45 = vmax.f32 %v3739_v39, %v5023_v40  ;;  %v9056_v38 = vld [vmem:[%s11509_s0 + $0x858] sm:$0xff]  ;;  %v9154_v39 = vld [vmem:[%s11509_s0 + $0xb68] sm:$0xff] }
 0x467   :  { %v5334_v51 = vmax.f32 %v1173_v42, %v2457_v43 }
 0x468   :  { %9729 = vst [vmem:[%s11511_s3 + $0x1d8] sm:$0xff] %v9479_v41   ;;  %v5725_v46 = vmax.f32 %v5333_v44, %v5529_v45 }
 0x46a   :  { %v5925_v58 = vadd.f32 %v10908_v26, %v5725_v46 }
 0x46c   :  { %v6121_v61 = vmax.f32 %v5925_v58, 0.0 }
 0x46d   :  { %v3741_v47 = vpop.f32.mrf.mxu2  ;;  %v5025_v48 = vpop.f32.mrf.mxu3 }
 0x46e   :  { %v5530_v52 = vmax.f32 %v3741_v47, %v5025_v48  ;;  %v1176_v54 = vpop.f32.mrf.mxu0  ;;  %v2460_v55 = vpop.f32.mrf.mxu1 }
 0x46f   :  { %v5335_v4 = vmax.f32 %v1176_v54, %v2460_v55 }
 0x470   :  { %v5726_v59 = vmax.f32 %v5334_v51, %v5530_v52 }
 0x471   :  { %1215 = vmatmul.bf16.gmra.mxu0 %v8858_v49  ;;  %2499 = vmatmul.bf16.gmra.mxu1 %v8956_v50 }
 0x472   :  { %v5926_v60 = vadd.f32 %v10908_v26, %v5726_v59  ;;  %3783 = vmatmul.bf16.gmra.mxu2 %v9054_v56  ;;  %5067 = vmatmul.bf16.gmra.mxu3 %v9152_v57  ;;  %v8861_v56 = vld [vmem:[%s11509_s0 + $0x240] sm:$0xff]  ;;  %v8959_v57 = vld [vmem:[%s11509_s0 + $0x550] sm:$0xff] }
 0x474   :  { %v6122_v62 = vmax.f32 %v5926_v60, 0.0 }
 0x475   :  { %v3744_v63 = vpop.f32.mrf.mxu2  ;;  %v5028_v0 = vpop.f32.mrf.mxu3 }
 0x476   :  { %v9484_v1 = vpack.c.bf16 %v6122_v62, %v6121_v61  ;;  %v1178_v2 = vpop.f32.mrf.mxu0  ;;  %v2462_v3 = vpop.f32.mrf.mxu1  ;;  %v5531_v5 = vmax.f32 %v3744_v63, %v5028_v0  ;;  %v9057_v62 = vld [vmem:[%s11509_s0 + $0x860] sm:$0xff]  ;;  %v9155_v63 = vld [vmem:[%s11509_s0 + $0xb70] sm:$0xff] }
 0x477   :  { %v5336_v11 = vmax.f32 %v1178_v2, %v2462_v3 }
 0x478   :  { %9730 = vst [vmem:[%s11511_s3 + $0x1e0] sm:$0xff] %v9484_v1   ;;  %v5727_v6 = vmax.f32 %v5335_v4, %v5531_v5 }
 0x47a   :  { %v5927_v17 = vadd.f32 %v10908_v26, %v5727_v6 }
 0x47c   :  { %v6123_v30 = vmax.f32 %v5927_v17, 0.0 }
 0x47d   :  { %v3746_v7 = vpop.f32.mrf.mxu2  ;;  %v5030_v8 = vpop.f32.mrf.mxu3 }
 0x47e   :  { %v5532_v12 = vmax.f32 %v3746_v7, %v5030_v8  ;;  %v1181_v13 = vpop.f32.mrf.mxu0  ;;  %v2465_v14 = vpop.f32.mrf.mxu1 }
 0x47f   :  { %v5337_v25 = vmax.f32 %v1181_v13, %v2465_v14 }
 0x480   :  { %v5728_v18 = vmax.f32 %v5336_v11, %v5532_v12 }
 0x481   :  { %1220 = vmatmul.bf16.gmra.mxu0 %v8859_v9  ;;  %2504 = vmatmul.bf16.gmra.mxu1 %v8957_v10 }
 0x482   :  { %v5928_v19 = vadd.f32 %v10908_v26, %v5728_v18  ;;  %3788 = vmatmul.bf16.gmra.mxu2 %v9055_v15  ;;  %5072 = vmatmul.bf16.gmra.mxu3 %v9153_v16  ;;  %v8862_v15 = vld [vmem:[%s11509_s0 + $0x248] sm:$0xff]  ;;  %v8960_v16 = vld [vmem:[%s11509_s0 + $0x558] sm:$0xff] }
 0x484   :  { %v6124_v20 = vmax.f32 %v5928_v19, 0.0 }
 0x485   :  { %v3749_v21 = vpop.f32.mrf.mxu2  ;;  %v5033_v22 = vpop.f32.mrf.mxu3 }
 0x486   :  { %v9489_v23 = vpack.c.bf16 %v6124_v20, %v6123_v30  ;;  %v1183_v35 = vpop.f32.mrf.mxu0  ;;  %v2467_v24 = vpop.f32.mrf.mxu1  ;;  %v5533_v27 = vmax.f32 %v3749_v21, %v5033_v22  ;;  %v9058_v20 = vld [vmem:[%s11509_s0 + $0x868] sm:$0xff]  ;;  %v9156_v21 = vld [vmem:[%s11509_s0 + $0xb78] sm:$0xff] }
 0x487   :  { %v5338_v33 = vmax.f32 %v1183_v35, %v2467_v24 }
 0x488   :  { %9731 = vst [vmem:[%s11511_s3 + $0x1e8] sm:$0xff] %v9489_v23   ;;  %v5729_v53 = vmax.f32 %v5337_v25, %v5533_v27 }
 0x48a   :  { %v5929_v40 = vadd.f32 %v10908_v26, %v5729_v53 }
 0x48c   :  { %v6125_v43 = vmax.f32 %v5929_v40, 0.0 }
 0x48d   :  { %v3751_v28 = vpop.f32.mrf.mxu2  ;;  %v5035_v29 = vpop.f32.mrf.mxu3 }
 0x48e   :  { %v5534_v34 = vmax.f32 %v3751_v28, %v5035_v29  ;;  %v1186_v36 = vpop.f32.mrf.mxu0  ;;  %v2470_v37 = vpop.f32.mrf.mxu1 }
 0x48f   :  { %v5339_v50 = vmax.f32 %v1186_v36, %v2470_v37 }
 0x490   :  { %v5730_v41 = vmax.f32 %v5338_v33, %v5534_v34 }
 0x491   :  { %1225 = vmatmul.bf16.gmra.mxu0 %v8860_v31  ;;  %2509 = vmatmul.bf16.gmra.mxu1 %v8958_v32 }
 0x492   :  { %v5930_v42 = vadd.f32 %v10908_v26, %v5730_v41  ;;  %3793 = vmatmul.bf16.gmra.mxu2 %v9056_v38  ;;  %5077 = vmatmul.bf16.gmra.mxu3 %v9154_v39  ;;  %v8863_v38 = vld [vmem:[%s11509_s0 + $0x250] sm:$0xff]  ;;  %v8961_v39 = vld [vmem:[%s11509_s0 + $0x560] sm:$0xff] }
 0x494   :  { %v6126_v44 = vmax.f32 %v5930_v42, 0.0 }
 0x495   :  { %v3754_v45 = vpop.f32.mrf.mxu2  ;;  %v5038_v46 = vpop.f32.mrf.mxu3 }
 0x496   :  { %v9494_v47 = vpack.c.bf16 %v6126_v44, %v6125_v43  ;;  %v1188_v48 = vpop.f32.mrf.mxu0  ;;  %v2472_v49 = vpop.f32.mrf.mxu1  ;;  %v5535_v51 = vmax.f32 %v3754_v45, %v5038_v46  ;;  %v9059_v44 = vld [vmem:[%s11509_s0 + $0x870] sm:$0xff]  ;;  %v9157_v45 = vld [vmem:[%s11509_s0 + $0xb80] sm:$0xff] }
 0x497   :  { %v5340_v58 = vmax.f32 %v1188_v48, %v2472_v49 }
 0x498   :  { %9732 = vst [vmem:[%s11511_s3 + $0x1f0] sm:$0xff] %v9494_v47   ;;  %v5731_v52 = vmax.f32 %v5339_v50, %v5535_v51 }
 0x49a   :  { %v5931_v0 = vadd.f32 %v10908_v26, %v5731_v52 }
 0x49c   :  { %v6127_v3 = vmax.f32 %v5931_v0, 0.0 }
 0x49d   :  { %v3756_v54 = vpop.f32.mrf.mxu2  ;;  %v5040_v55 = vpop.f32.mrf.mxu3 }
 0x49e   :  { %v5536_v59 = vmax.f32 %v3756_v54, %v5040_v55  ;;  %v1191_v60 = vpop.f32.mrf.mxu0  ;;  %v2475_v61 = vpop.f32.mrf.mxu1 }
 0x49f   :  { %v5341_v10 = vmax.f32 %v1191_v60, %v2475_v61 }
 0x4a0   :  { %v5732_v1 = vmax.f32 %v5340_v58, %v5536_v59 }
 0x4a1   :  { %1230 = vmatmul.bf16.gmra.mxu0 %v8861_v56  ;;  %2514 = vmatmul.bf16.gmra.mxu1 %v8959_v57 }
 0x4a2   :  { %v5932_v2 = vadd.f32 %v10908_v26, %v5732_v1  ;;  %3798 = vmatmul.bf16.gmra.mxu2 %v9057_v62  ;;  %5082 = vmatmul.bf16.gmra.mxu3 %v9155_v63  ;;  %v8864_v62 = vld [vmem:[%s11509_s0 + $0x258] sm:$0xff]  ;;  %v8962_v63 = vld [vmem:[%s11509_s0 + $0x568] sm:$0xff] }
 0x4a4   :  { %v6128_v4 = vmax.f32 %v5932_v2, 0.0 }
 0x4a5   :  { %v3759_v5 = vpop.f32.mrf.mxu2  ;;  %v5043_v6 = vpop.f32.mrf.mxu3 }
 0x4a6   :  { %v9499_v7 = vpack.c.bf16 %v6128_v4, %v6127_v3  ;;  %v1193_v8 = vpop.f32.mrf.mxu0  ;;  %v2477_v9 = vpop.f32.mrf.mxu1  ;;  %v5537_v11 = vmax.f32 %v3759_v5, %v5043_v6  ;;  %v9060_v4 = vld [vmem:[%s11509_s0 + $0x878] sm:$0xff]  ;;  %v9158_v5 = vld [vmem:[%s11509_s0 + $0xb88] sm:$0xff] }
 0x4a7   :  { %v5342_v17 = vmax.f32 %v1193_v8, %v2477_v9 }
 0x4a8   :  { %9733 = vst [vmem:[%s11511_s3 + $0x1f8] sm:$0xff] %v9499_v7   ;;  %v5733_v12 = vmax.f32 %v5341_v10, %v5537_v11 }
 0x4aa   :  { %v5933_v22 = vadd.f32 %v10908_v26, %v5733_v12 }
 0x4ac   :  { %v6129_v24 = vmax.f32 %v5933_v22, 0.0 }
 0x4ad   :  { %v3761_v13 = vpop.f32.mrf.mxu2  ;;  %v5045_v14 = vpop.f32.mrf.mxu3 }
 0x4ae   :  { %v5538_v18 = vmax.f32 %v3761_v13, %v5045_v14  ;;  %v1196_v19 = vpop.f32.mrf.mxu0  ;;  %v2480_v30 = vpop.f32.mrf.mxu1 }
 0x4af   :  { %v5343_v32 = vmax.f32 %v1196_v19, %v2480_v30 }
 0x4b0   :  { %v5734_v23 = vmax.f32 %v5342_v17, %v5538_v18 }
 0x4b1   :  { %1235 = vmatmul.bf16.gmra.mxu0 %v8862_v15  ;;  %2519 = vmatmul.bf16.gmra.mxu1 %v8960_v16 }
 0x4b2   :  { %v5934_v35 = vadd.f32 %v10908_v26, %v5734_v23  ;;  %3803 = vmatmul.bf16.gmra.mxu2 %v9058_v20  ;;  %5087 = vmatmul.bf16.gmra.mxu3 %v9156_v21  ;;  %v8865_v20 = vld [vmem:[%s11509_s0 + $0x260] sm:$0xff]  ;;  %v8963_v21 = vld [vmem:[%s11509_s0 + $0x570] sm:$0xff] }
 0x4b4   :  { %v6130_v25 = vmax.f32 %v5934_v35, 0.0 }
 0x4b5   :  { %v3764_v27 = vpop.f32.mrf.mxu2  ;;  %v5048_v53 = vpop.f32.mrf.mxu3 }
 0x4b6   :  { %v9504_v28 = vpack.c.bf16 %v6130_v25, %v6129_v24  ;;  %v1198_v29 = vpop.f32.mrf.mxu0  ;;  %v2482_v31 = vpop.f32.mrf.mxu1  ;;  %v5539_v33 = vmax.f32 %v3764_v27, %v5048_v53  ;;  %v9061_v25 = vld [vmem:[%s11509_s0 + $0x880] sm:$0xff]  ;;  %v9159_v27 = vld [vmem:[%s11509_s0 + $0xb90] sm:$0xff] }
 0x4b7   :  { %v5344_v40 = vmax.f32 %v1198_v29, %v2482_v31 }
 0x4b8   :  { %9734 = vst [vmem:[%s11511_s3 + $0x200] sm:$0xff] %v9504_v28   ;;  %v5735_v34 = vmax.f32 %v5343_v32, %v5539_v33 }
 0x4ba   :  { %v5935_v46 = vadd.f32 %v10908_v26, %v5735_v34 }
 0x4bc   :  { %v6131_v49 = vmax.f32 %v5935_v46, 0.0 }
 0x4bd   :  { %v3766_v36 = vpop.f32.mrf.mxu2  ;;  %v5050_v37 = vpop.f32.mrf.mxu3 }
 0x4be   :  { %v5540_v41 = vmax.f32 %v3766_v36, %v5050_v37  ;;  %v1201_v42 = vpop.f32.mrf.mxu0  ;;  %v2485_v43 = vpop.f32.mrf.mxu1 }
 0x4bf   :  { %v5345_v57 = vmax.f32 %v1201_v42, %v2485_v43 }
 0x4c0   :  { %v5736_v47 = vmax.f32 %v5344_v40, %v5540_v41 }
 0x4c1   :  { %1240 = vmatmul.bf16.gmra.mxu0 %v8863_v38  ;;  %2524 = vmatmul.bf16.gmra.mxu1 %v8961_v39 }
 0x4c2   :  { %v5936_v48 = vadd.f32 %v10908_v26, %v5736_v47  ;;  %3808 = vmatmul.bf16.gmra.mxu2 %v9059_v44  ;;  %5092 = vmatmul.bf16.gmra.mxu3 %v9157_v45  ;;  %v8866_v44 = vld [vmem:[%s11509_s0 + $0x268] sm:$0xff]  ;;  %v8964_v45 = vld [vmem:[%s11509_s0 + $0x578] sm:$0xff] }
 0x4c4   :  { %v6132_v50 = vmax.f32 %v5936_v48, 0.0 }
 0x4c5   :  { %v3769_v51 = vpop.f32.mrf.mxu2  ;;  %v5053_v52 = vpop.f32.mrf.mxu3 }
 0x4c6   :  { %v9509_v54 = vpack.c.bf16 %v6132_v50, %v6131_v49  ;;  %v1203_v55 = vpop.f32.mrf.mxu0  ;;  %v2487_v56 = vpop.f32.mrf.mxu1  ;;  %v5541_v58 = vmax.f32 %v3769_v51, %v5053_v52  ;;  %v9062_v50 = vld [vmem:[%s11509_s0 + $0x888] sm:$0xff]  ;;  %v9160_v51 = vld [vmem:[%s11509_s0 + $0xb98] sm:$0xff] }
 0x4c7   :  { %v5346_v0 = vmax.f32 %v1203_v55, %v2487_v56 }
 0x4c8   :  { %9735 = vst [vmem:[%s11511_s3 + $0x208] sm:$0xff] %v9509_v54   ;;  %v5737_v59 = vmax.f32 %v5345_v57, %v5541_v58 }
 0x4ca   :  { %v5937_v6 = vadd.f32 %v10908_v26, %v5737_v59 }
 0x4cc   :  { %v6133_v9 = vmax.f32 %v5937_v6, 0.0 }
 0x4cd   :  { %v3771_v60 = vpop.f32.mrf.mxu2  ;;  %v5055_v61 = vpop.f32.mrf.mxu3 }
 0x4ce   :  { %v5542_v1 = vmax.f32 %v3771_v60, %v5055_v61  ;;  %v1206_v2 = vpop.f32.mrf.mxu0  ;;  %v2490_v3 = vpop.f32.mrf.mxu1 }
 0x4cf   :  { %v5347_v16 = vmax.f32 %v1206_v2, %v2490_v3 }
 0x4d0   :  { %v5738_v7 = vmax.f32 %v5346_v0, %v5542_v1 }
 0x4d1   :  { %1245 = vmatmul.bf16.gmra.mxu0 %v8864_v62  ;;  %2529 = vmatmul.bf16.gmra.mxu1 %v8962_v63 }
 0x4d2   :  { %v5938_v8 = vadd.f32 %v10908_v26, %v5738_v7  ;;  %3813 = vmatmul.bf16.gmra.mxu2 %v9060_v4  ;;  %5097 = vmatmul.bf16.gmra.mxu3 %v9158_v5  ;;  %v8867_v4 = vld [vmem:[%s11509_s0 + $0x270] sm:$0xff]  ;;  %v8965_v5 = vld [vmem:[%s11509_s0 + $0x580] sm:$0xff] }
 0x4d4   :  { %v6134_v10 = vmax.f32 %v5938_v8, 0.0 }
 0x4d5   :  { %v3774_v11 = vpop.f32.mrf.mxu2  ;;  %v5058_v12 = vpop.f32.mrf.mxu3 }
 0x4d6   :  { %v9514_v13 = vpack.c.bf16 %v6134_v10, %v6133_v9  ;;  %v1208_v14 = vpop.f32.mrf.mxu0  ;;  %v2492_v15 = vpop.f32.mrf.mxu1  ;;  %v5543_v17 = vmax.f32 %v3774_v11, %v5058_v12  ;;  %v9063_v10 = vld [vmem:[%s11509_s0 + $0x890] sm:$0xff]  ;;  %v9161_v11 = vld [vmem:[%s11509_s0 + $0xba0] sm:$0xff] }
 0x4d7   :  { %v5348_v22 = vmax.f32 %v1208_v14, %v2492_v15 }
 0x4d8   :  { %9736 = vst [vmem:[%s11511_s3 + $0x210] sm:$0xff] %v9514_v13   ;;  %v5739_v18 = vmax.f32 %v5347_v16, %v5543_v17 }
 0x4da   :  { %v5939_v53 = vadd.f32 %v10908_v26, %v5739_v18 }
 0x4dc   :  { %v6135_v31 = vmax.f32 %v5939_v53, 0.0 }
 0x4dd   :  { %v3776_v19 = vpop.f32.mrf.mxu2  ;;  %v5060_v30 = vpop.f32.mrf.mxu3 }
 0x4de   :  { %v5544_v23 = vmax.f32 %v3776_v19, %v5060_v30  ;;  %v1211_v35 = vpop.f32.mrf.mxu0  ;;  %v2495_v24 = vpop.f32.mrf.mxu1 }
 0x4df   :  { %v5349_v39 = vmax.f32 %v1211_v35, %v2495_v24 }
 0x4e0   :  { %v5740_v28 = vmax.f32 %v5348_v22, %v5544_v23 }
 0x4e1   :  { %1250 = vmatmul.bf16.gmra.mxu0 %v8865_v20  ;;  %2534 = vmatmul.bf16.gmra.mxu1 %v8963_v21 }
 0x4e2   :  { %v5940_v29 = vadd.f32 %v10908_v26, %v5740_v28  ;;  %3818 = vmatmul.bf16.gmra.mxu2 %v9061_v25  ;;  %5102 = vmatmul.bf16.gmra.mxu3 %v9159_v27  ;;  %v8868_v25 = vld [vmem:[%s11509_s0 + $0x278] sm:$0xff]  ;;  %v8966_v27 = vld [vmem:[%s11509_s0 + $0x588] sm:$0xff] }
 0x4e4   :  { %v6136_v32 = vmax.f32 %v5940_v29, 0.0 }
 0x4e5   :  { %v3779_v33 = vpop.f32.mrf.mxu2  ;;  %v5063_v34 = vpop.f32.mrf.mxu3 }
 0x4e6   :  { %v9519_v36 = vpack.c.bf16 %v6136_v32, %v6135_v31  ;;  %v1213_v37 = vpop.f32.mrf.mxu0  ;;  %v2497_v38 = vpop.f32.mrf.mxu1  ;;  %v5545_v40 = vmax.f32 %v3779_v33, %v5063_v34  ;;  %v9064_v32 = vld [vmem:[%s11509_s0 + $0x898] sm:$0xff]  ;;  %v9162_v33 = vld [vmem:[%s11509_s0 + $0xba8] sm:$0xff] }
 0x4e7   :  { %v5350_v46 = vmax.f32 %v1213_v37, %v2497_v38 }
 0x4e8   :  { %9737 = vst [vmem:[%s11511_s3 + $0x218] sm:$0xff] %v9519_v36   ;;  %v5741_v41 = vmax.f32 %v5349_v39, %v5545_v40 }
 0x4ea   :  { %v5941_v52 = vadd.f32 %v10908_v26, %v5741_v41 }
 0x4ec   :  { %v6137_v56 = vmax.f32 %v5941_v52, 0.0 }
 0x4ed   :  { %v3781_v42 = vpop.f32.mrf.mxu2  ;;  %v5065_v43 = vpop.f32.mrf.mxu3 }
 0x4ee   :  { %v5546_v47 = vmax.f32 %v3781_v42, %v5065_v43  ;;  %v1216_v48 = vpop.f32.mrf.mxu0  ;;  %v2500_v49 = vpop.f32.mrf.mxu1 }
 0x4ef   :  { %v5351_v63 = vmax.f32 %v1216_v48, %v2500_v49 }
 0x4f0   :  { %v5742_v54 = vmax.f32 %v5350_v46, %v5546_v47 }
 0x4f1   :  { %1255 = vmatmul.bf16.gmra.mxu0 %v8866_v44  ;;  %2539 = vmatmul.bf16.gmra.mxu1 %v8964_v45 }
 0x4f2   :  { %v5942_v55 = vadd.f32 %v10908_v26, %v5742_v54  ;;  %3823 = vmatmul.bf16.gmra.mxu2 %v9062_v50  ;;  %5107 = vmatmul.bf16.gmra.mxu3 %v9160_v51  ;;  %v8869_v50 = vld [vmem:[%s11509_s0 + $0x280] sm:$0xff]  ;;  %v8967_v51 = vld [vmem:[%s11509_s0 + $0x590] sm:$0xff] }
 0x4f4   :  { %v6138_v57 = vmax.f32 %v5942_v55, 0.0 }
 0x4f5   :  { %v3784_v58 = vpop.f32.mrf.mxu2  ;;  %v5068_v59 = vpop.f32.mrf.mxu3 }
 0x4f6   :  { %v9524_v60 = vpack.c.bf16 %v6138_v57, %v6137_v56  ;;  %v1218_v61 = vpop.f32.mrf.mxu0  ;;  %v2502_v62 = vpop.f32.mrf.mxu1  ;;  %v5547_v0 = vmax.f32 %v3784_v58, %v5068_v59  ;;  %v9065_v57 = vld [vmem:[%s11509_s0 + $0x8a0] sm:$0xff]  ;;  %v9163_v58 = vld [vmem:[%s11509_s0 + $0xbb0] sm:$0xff] }
 0x4f7   :  { %v5352_v6 = vmax.f32 %v1218_v61, %v2502_v62 }
 0x4f8   :  { %9738 = vst [vmem:[%s11511_s3 + $0x220] sm:$0xff] %v9524_v60   ;;  %v5743_v1 = vmax.f32 %v5351_v63, %v5547_v0 }
 0x4fa   :  { %v5943_v12 = vadd.f32 %v10908_v26, %v5743_v1 }
 0x4fc   :  { %v6139_v15 = vmax.f32 %v5943_v12, 0.0 }
 0x4fd   :  { %v3786_v2 = vpop.f32.mrf.mxu2  ;;  %v5070_v3 = vpop.f32.mrf.mxu3 }
 0x4fe   :  { %v5548_v7 = vmax.f32 %v3786_v2, %v5070_v3  ;;  %v1221_v8 = vpop.f32.mrf.mxu0  ;;  %v2505_v9 = vpop.f32.mrf.mxu1 }
 0x4ff   :  { %v5353_v21 = vmax.f32 %v1221_v8, %v2505_v9 }
 0x500   :  { %v5744_v13 = vmax.f32 %v5352_v6, %v5548_v7 }
 0x501   :  { %1260 = vmatmul.bf16.gmra.mxu0 %v8867_v4  ;;  %2544 = vmatmul.bf16.gmra.mxu1 %v8965_v5 }
 0x502   :  { %v5944_v14 = vadd.f32 %v10908_v26, %v5744_v13  ;;  %3828 = vmatmul.bf16.gmra.mxu2 %v9063_v10  ;;  %5112 = vmatmul.bf16.gmra.mxu3 %v9161_v11  ;;  %v8870_v10 = vld [vmem:[%s11509_s0 + $0x288] sm:$0xff]  ;;  %v8968_v11 = vld [vmem:[%s11509_s0 + $0x598] sm:$0xff] }
 0x504   :  { %v6140_v16 = vmax.f32 %v5944_v14, 0.0 }
 0x505   :  { %v3789_v17 = vpop.f32.mrf.mxu2  ;;  %v5073_v18 = vpop.f32.mrf.mxu3 }
 0x506   :  { %v9529_v19 = vpack.c.bf16 %v6140_v16, %v6139_v15  ;;  %v1223_v30 = vpop.f32.mrf.mxu0  ;;  %v2507_v20 = vpop.f32.mrf.mxu1  ;;  %v5549_v22 = vmax.f32 %v3789_v17, %v5073_v18  ;;  %v9066_v16 = vld [vmem:[%s11509_s0 + $0x8a8] sm:$0xff]  ;;  %v9164_v17 = vld [vmem:[%s11509_s0 + $0xbb8] sm:$0xff] }
 0x507   :  { %v5354_v53 = vmax.f32 %v1223_v30, %v2507_v20 }
 0x508   :  { %9739 = vst [vmem:[%s11511_s3 + $0x228] sm:$0xff] %v9529_v19   ;;  %v5745_v23 = vmax.f32 %v5353_v21, %v5549_v22 }
 0x50a   :  { %v5945_v34 = vadd.f32 %v10908_v26, %v5745_v23 }
 0x50c   :  { %v6141_v38 = vmax.f32 %v5945_v34, 0.0 }
 0x50d   :  { %v3791_v35 = vpop.f32.mrf.mxu2  ;;  %v5075_v24 = vpop.f32.mrf.mxu3 }
 0x50e   :  { %v5550_v28 = vmax.f32 %v3791_v35, %v5075_v24  ;;  %v1226_v29 = vpop.f32.mrf.mxu0  ;;  %v2510_v31 = vpop.f32.mrf.mxu1 }
 0x50f   :  { %v5355_v45 = vmax.f32 %v1226_v29, %v2510_v31 }
 0x510   :  { %v5746_v36 = vmax.f32 %v5354_v53, %v5550_v28 }
 0x511   :  { %1265 = vmatmul.bf16.gmra.mxu0 %v8868_v25  ;;  %2549 = vmatmul.bf16.gmra.mxu1 %v8966_v27 }
 0x512   :  { %v5946_v37 = vadd.f32 %v10908_v26, %v5746_v36  ;;  %3833 = vmatmul.bf16.gmra.mxu2 %v9064_v32  ;;  %5117 = vmatmul.bf16.gmra.mxu3 %v9162_v33  ;;  %v8871_v32 = vld [vmem:[%s11509_s0 + $0x290] sm:$0xff]  ;;  %v8969_v33 = vld [vmem:[%s11509_s0 + $0x5a0] sm:$0xff] }
 0x514   :  { %v6142_v39 = vmax.f32 %v5946_v37, 0.0 }
 0x515   :  { %v3794_v40 = vpop.f32.mrf.mxu2  ;;  %v5078_v41 = vpop.f32.mrf.mxu3 }
 0x516   :  { %v9534_v42 = vpack.c.bf16 %v6142_v39, %v6141_v38  ;;  %v1228_v43 = vpop.f32.mrf.mxu0  ;;  %v2512_v44 = vpop.f32.mrf.mxu1  ;;  %v5551_v46 = vmax.f32 %v3794_v40, %v5078_v41  ;;  %v9067_v39 = vld [vmem:[%s11509_s0 + $0x8b0] sm:$0xff]  ;;  %v9165_v40 = vld [vmem:[%s11509_s0 + $0xbc0] sm:$0xff] }
 0x517   :  { %v5356_v52 = vmax.f32 %v1228_v43, %v2512_v44 }
 0x518   :  { %9740 = vst [vmem:[%s11511_s3 + $0x230] sm:$0xff] %v9534_v42   ;;  %v5747_v47 = vmax.f32 %v5355_v45, %v5551_v46 }
 0x51a   :  { %v5947_v59 = vadd.f32 %v10908_v26, %v5747_v47 }
 0x51c   :  { %v6143_v62 = vmax.f32 %v5947_v59, 0.0 }
 0x51d   :  { %v3796_v48 = vpop.f32.mrf.mxu2  ;;  %v5080_v49 = vpop.f32.mrf.mxu3 }
 0x51e   :  { %v5552_v54 = vmax.f32 %v3796_v48, %v5080_v49  ;;  %v1231_v55 = vpop.f32.mrf.mxu0  ;;  %v2515_v56 = vpop.f32.mrf.mxu1 }
 0x51f   :  { %v5357_v5 = vmax.f32 %v1231_v55, %v2515_v56 }
 0x520   :  { %v5748_v60 = vmax.f32 %v5356_v52, %v5552_v54 }
 0x521   :  { %1270 = vmatmul.bf16.gmra.mxu0 %v8869_v50  ;;  %2554 = vmatmul.bf16.gmra.mxu1 %v8967_v51 }
 0x522   :  { %v5948_v61 = vadd.f32 %v10908_v26, %v5748_v60  ;;  %3838 = vmatmul.bf16.gmra.mxu2 %v9065_v57  ;;  %5122 = vmatmul.bf16.gmra.mxu3 %v9163_v58  ;;  %v8872_v57 = vld [vmem:[%s11509_s0 + $0x298] sm:$0xff]  ;;  %v8970_v58 = vld [vmem:[%s11509_s0 + $0x5a8] sm:$0xff] }
 0x524   :  { %v6144_v63 = vmax.f32 %v5948_v61, 0.0 }
 0x525   :  { %v3799_v0 = vpop.f32.mrf.mxu2  ;;  %v5083_v1 = vpop.f32.mrf.mxu3 }
 0x526   :  { %v9539_v2 = vpack.c.bf16 %v6144_v63, %v6143_v62  ;;  %v1233_v3 = vpop.f32.mrf.mxu0  ;;  %v2517_v4 = vpop.f32.mrf.mxu1  ;;  %v5553_v6 = vmax.f32 %v3799_v0, %v5083_v1  ;;  %v9068_v63 = vld [vmem:[%s11509_s0 + $0x8b8] sm:$0xff]  ;;  %v9166_v0 = vld [vmem:[%s11509_s0 + $0xbc8] sm:$0xff] }
 0x527   :  { %v5358_v12 = vmax.f32 %v1233_v3, %v2517_v4 }
 0x528   :  { %9741 = vst [vmem:[%s11511_s3 + $0x238] sm:$0xff] %v9539_v2   ;;  %v5749_v7 = vmax.f32 %v5357_v5, %v5553_v6 }
 0x52a   :  { %v5949_v18 = vadd.f32 %v10908_v26, %v5749_v7 }
 0x52c   :  { %v6145_v20 = vmax.f32 %v5949_v18, 0.0 }
 0x52d   :  { %v3801_v8 = vpop.f32.mrf.mxu2  ;;  %v5085_v9 = vpop.f32.mrf.mxu3 }
 0x52e   :  { %v5554_v13 = vmax.f32 %v3801_v8, %v5085_v9  ;;  %v1236_v14 = vpop.f32.mrf.mxu0  ;;  %v2520_v15 = vpop.f32.mrf.mxu1 }
 0x52f   :  { %v5359_v27 = vmax.f32 %v1236_v14, %v2520_v15 }
 0x530   :  { %v5750_v19 = vmax.f32 %v5358_v12, %v5554_v13 }
 0x531   :  { %1275 = vmatmul.bf16.gmra.mxu0 %v8870_v10  ;;  %2559 = vmatmul.bf16.gmra.mxu1 %v8968_v11 }
 0x532   :  { %v5950_v30 = vadd.f32 %v10908_v26, %v5750_v19  ;;  %3843 = vmatmul.bf16.gmra.mxu2 %v9066_v16  ;;  %5127 = vmatmul.bf16.gmra.mxu3 %v9164_v17  ;;  %v8971_v16 = vld [vmem:[%s11509_s0 + $0x5b0] sm:$0xff] }
 0x534   :  { %v6146_v21 = vmax.f32 %v5950_v30, 0.0 }
 0x535   :  { %v3804_v22 = vpop.f32.mrf.mxu2  ;;  %v5088_v23 = vpop.f32.mrf.mxu3 }
 0x536   :  { %v9544_v35 = vpack.c.bf16 %v6146_v21, %v6145_v20  ;;  %v1238_v24 = vpop.f32.mrf.mxu0  ;;  %v2522_v25 = vpop.f32.mrf.mxu1  ;;  %v5555_v53 = vmax.f32 %v3804_v22, %v5088_v23  ;;  %v9069_v20 = vld [vmem:[%s11509_s0 + $0x8c0] sm:$0xff]  ;;  %v9167_v21 = vld [vmem:[%s11509_s0 + $0xbd0] sm:$0xff] }
 0x537   :  { %v5360_v34 = vmax.f32 %v1238_v24, %v2522_v25  ;;  %v11236_v22 = vld [vmem:[%s11510_s2] ss:$0 sm:$0xff] }
 0x538   :  { %9742 = vst [vmem:[%s11511_s3 + $0x240] sm:$0xff] %v9544_v35   ;;  %v5751_v28 = vmax.f32 %v5359_v27, %v5555_v53 }
 0x53a   :  { %v5951_v41 = vadd.f32 %v10908_v26, %v5751_v28 }
 0x53c   :  { %v6147_v44 = vmax.f32 %v5951_v41, 0.0 }
 0x53d   :  { %v3806_v29 = vpop.f32.mrf.mxu2  ;;  %v5090_v31 = vpop.f32.mrf.mxu3 }
 0x53e   :  { %v5556_v36 = vmax.f32 %v3806_v29, %v5090_v31  ;;  %v1241_v37 = vpop.f32.mrf.mxu0  ;;  %v2525_v38 = vpop.f32.mrf.mxu1 }
 0x53f   :  { %v5361_v51 = vmax.f32 %v1241_v37, %v2525_v38 }
 0x540   :  { %v5752_v42 = vmax.f32 %v5360_v34, %v5556_v36 }
 0x541   :  { %1280 = vmatmul.bf16.gmra.mxu0 %v8871_v32  ;;  %2564 = vmatmul.bf16.gmra.mxu1 %v8969_v33 }
 0x542   :  { %v5952_v43 = vadd.f32 %v10908_v26, %v5752_v42  ;;  %3848 = vmatmul.bf16.gmra.mxu2 %v9067_v39  ;;  %5132 = vmatmul.bf16.gmra.mxu3 %v9165_v40  ;;  %v8874_v39 = vld [vmem:[%s11509_s0 + $0x2a8] sm:$0xff]  ;;  %v8972_v40 = vld [vmem:[%s11509_s0 + $0x5b8] sm:$0xff] }
 0x544   :  { %v6148_v45 = vmax.f32 %v5952_v43, 0.0 }
 0x545   :  { %v3809_v46 = vpop.f32.mrf.mxu2  ;;  %v5093_v47 = vpop.f32.mrf.mxu3 }
 0x546   :  { %v9549_v48 = vpack.c.bf16 %v6148_v45, %v6147_v44  ;;  %v1243_v49 = vpop.f32.mrf.mxu0  ;;  %v2527_v50 = vpop.f32.mrf.mxu1  ;;  %v5557_v52 = vmax.f32 %v3809_v46, %v5093_v47  ;;  %v9070_v45 = vld [vmem:[%s11509_s0 + $0x8c8] sm:$0xff]  ;;  %v9168_v46 = vld [vmem:[%s11509_s0 + $0xbd8] sm:$0xff] }
 0x547   :  { %v5362_v59 = vmax.f32 %v1243_v49, %v2527_v50 }
 0x548   :  { %9743 = vst [vmem:[%s11511_s3 + $0x248] sm:$0xff] %v9549_v48   ;;  %v5753_v54 = vmax.f32 %v5361_v51, %v5557_v52 }
 0x54a   :  { %v5953_v1 = vadd.f32 %v10908_v26, %v5753_v54 }
 0x54c   :  { %v6149_v4 = vmax.f32 %v5953_v1, 0.0 }
 0x54d   :  { %v3811_v55 = vpop.f32.mrf.mxu2  ;;  %v5095_v56 = vpop.f32.mrf.mxu3 }
 0x54e   :  { %v5558_v60 = vmax.f32 %v3811_v55, %v5095_v56  ;;  %v1246_v61 = vpop.f32.mrf.mxu0  ;;  %v2530_v62 = vpop.f32.mrf.mxu1 }
 0x54f   :  { %v5363_v11 = vmax.f32 %v1246_v61, %v2530_v62 }
 0x550   :  { %v5754_v2 = vmax.f32 %v5362_v59, %v5558_v60 }
 0x551   :  { %1285 = vmatmul.bf16.gmra.mxu0 %v8872_v57  ;;  %2569 = vmatmul.bf16.gmra.mxu1 %v8970_v58 }
 0x552   :  { %v5954_v3 = vadd.f32 %v10908_v26, %v5754_v2  ;;  %3853 = vmatmul.bf16.gmra.mxu2 %v9068_v63  ;;  %5137 = vmatmul.bf16.gmra.mxu3 %v9166_v0  ;;  %v8873_v26 = vld [vmem:[%s11509_s0 + $0x2a0] sm:$0xff]  ;;  %v8875_v63 = vld [vmem:[%s11509_s0 + $0x2b0] sm:$0xff] }
 0x553   :  { %v8973_v0 = vld [vmem:[%s11509_s0 + $0x5c0] sm:$0xff] }
 0x554   :  { %v6150_v5 = vmax.f32 %v5954_v3, 0.0 }
 0x555   :  { %v3814_v6 = vpop.f32.mrf.mxu2  ;;  %v5098_v7 = vpop.f32.mrf.mxu3 }
 0x556   :  { %v9554_v8 = vpack.c.bf16 %v6150_v5, %v6149_v4  ;;  %v1248_v9 = vpop.f32.mrf.mxu0  ;;  %v2532_v10 = vpop.f32.mrf.mxu1  ;;  %v5559_v12 = vmax.f32 %v3814_v6, %v5098_v7  ;;  %v9071_v5 = vld [vmem:[%s11509_s0 + $0x8d0] sm:$0xff]  ;;  %v9169_v6 = vld [vmem:[%s11509_s0 + $0xbe0] sm:$0xff] }
 0x557   :  { %v5364_v17 = vmax.f32 %v1248_v9, %v2532_v10 }
 0x558   :  { %9744 = vst [vmem:[%s11511_s3 + $0x250] sm:$0xff] %v9554_v8   ;;  %v5755_v13 = vmax.f32 %v5363_v11, %v5559_v12 }
 0x55a   :  { %v5955_v23 = vadd.f32 %v11236_v22, %v5755_v13 }
 0x55c   :  { %v6151_v25 = vmax.f32 %v5955_v23, 0.0 }
 0x55d   :  { %v3816_v14 = vpop.f32.mrf.mxu2  ;;  %v5100_v15 = vpop.f32.mrf.mxu3 }
 0x55e   :  { %v5560_v18 = vmax.f32 %v3816_v14, %v5100_v15  ;;  %v1251_v19 = vpop.f32.mrf.mxu0  ;;  %v2535_v30 = vpop.f32.mrf.mxu1 }
 0x55f   :  { %v5365_v33 = vmax.f32 %v1251_v19, %v2535_v30 }
 0x560   :  { %v5756_v35 = vmax.f32 %v5364_v17, %v5560_v18 }
 0x561   :  { %1290 = vmatmul.bf16.gmra.mxu0 %v8873_v26  ;;  %2574 = vmatmul.bf16.gmra.mxu1 %v8971_v16 }
 0x562   :  { %v5956_v24 = vadd.f32 %v11236_v22, %v5756_v35  ;;  %3858 = vmatmul.bf16.gmra.mxu2 %v9069_v20  ;;  %5142 = vmatmul.bf16.gmra.mxu3 %v9167_v21  ;;  %v8876_v20 = vld [vmem:[%s11509_s0 + $0x2b8] sm:$0xff]  ;;  %v8974_v21 = vld [vmem:[%s11509_s0 + $0x5c8] sm:$0xff] }
 0x564   :  { %v6152_v27 = vmax.f32 %v5956_v24, 0.0 }
 0x565   :  { %v3819_v53 = vpop.f32.mrf.mxu2  ;;  %v5103_v28 = vpop.f32.mrf.mxu3 }
 0x566   :  { %v9559_v29 = vpack.c.bf16 %v6152_v27, %v6151_v25  ;;  %v1253_v31 = vpop.f32.mrf.mxu0  ;;  %v2537_v32 = vpop.f32.mrf.mxu1  ;;  %v5561_v34 = vmax.f32 %v3819_v53, %v5103_v28  ;;  %v9072_v27 = vld [vmem:[%s11509_s0 + $0x8d8] sm:$0xff]  ;;  %v9170_v53 = vld [vmem:[%s11509_s0 + $0xbe8] sm:$0xff] }
 0x567   :  { %v5366_v41 = vmax.f32 %v1253_v31, %v2537_v32 }
 0x568   :  { %9745 = vst [vmem:[%s11511_s3 + $0x258] sm:$0xff] %v9559_v29   ;;  %v5757_v36 = vmax.f32 %v5365_v33, %v5561_v34 }
 0x56a   :  { %v5957_v47 = vadd.f32 %v11236_v22, %v5757_v36 }
 0x56c   :  { %v6153_v50 = vmax.f32 %v5957_v47, 0.0 }
 0x56d   :  { %v3821_v37 = vpop.f32.mrf.mxu2  ;;  %v5105_v38 = vpop.f32.mrf.mxu3 }
 0x56e   :  { %v5562_v42 = vmax.f32 %v3821_v37, %v5105_v38  ;;  %v1256_v43 = vpop.f32.mrf.mxu0  ;;  %v2540_v44 = vpop.f32.mrf.mxu1 }
 0x56f   :  { %v5367_v58 = vmax.f32 %v1256_v43, %v2540_v44 }
 0x570   :  { %v5758_v48 = vmax.f32 %v5366_v41, %v5562_v42 }
 0x571   :  { %1295 = vmatmul.bf16.gmra.mxu0 %v8874_v39  ;;  %2579 = vmatmul.bf16.gmra.mxu1 %v8972_v40 }
 0x572   :  { %v5958_v49 = vadd.f32 %v11236_v22, %v5758_v48  ;;  %3863 = vmatmul.bf16.gmra.mxu2 %v9070_v45  ;;  %5147 = vmatmul.bf16.gmra.mxu3 %v9168_v46  ;;  %v8877_v45 = vld [vmem:[%s11509_s0 + $0x2c0] sm:$0xff]  ;;  %v8975_v46 = vld [vmem:[%s11509_s0 + $0x5d0] sm:$0xff] }
 0x574   :  { %v6154_v51 = vmax.f32 %v5958_v49, 0.0 }
 0x575   :  { %v3824_v52 = vpop.f32.mrf.mxu2  ;;  %v5108_v54 = vpop.f32.mrf.mxu3 }
 0x576   :  { %v9564_v55 = vpack.c.bf16 %v6154_v51, %v6153_v50  ;;  %v1258_v56 = vpop.f32.mrf.mxu0  ;;  %v2542_v57 = vpop.f32.mrf.mxu1  ;;  %v5563_v59 = vmax.f32 %v3824_v52, %v5108_v54  ;;  %v9073_v51 = vld [vmem:[%s11509_s0 + $0x8e0] sm:$0xff]  ;;  %v9171_v52 = vld [vmem:[%s11509_s0 + $0xbf0] sm:$0xff] }
 0x577   :  { %v5368_v1 = vmax.f32 %v1258_v56, %v2542_v57 }
 0x578   :  { %9746 = vst [vmem:[%s11511_s3 + $0x260] sm:$0xff] %v9564_v55   ;;  %v5759_v60 = vmax.f32 %v5367_v58, %v5563_v59 }
 0x57a   :  { %v5959_v7 = vadd.f32 %v11236_v22, %v5759_v60 }
 0x57c   :  { %v6155_v10 = vmax.f32 %v5959_v7, 0.0 }
 0x57d   :  { %v3826_v61 = vpop.f32.mrf.mxu2  ;;  %v5110_v62 = vpop.f32.mrf.mxu3 }
 0x57e   :  { %v5564_v2 = vmax.f32 %v3826_v61, %v5110_v62  ;;  %v1261_v3 = vpop.f32.mrf.mxu0  ;;  %v2545_v4 = vpop.f32.mrf.mxu1 }
 0x57f   :  { %v5369_v16 = vmax.f32 %v1261_v3, %v2545_v4 }
 0x580   :  { %v5760_v8 = vmax.f32 %v5368_v1, %v5564_v2 }
 0x581   :  { %1300 = vmatmul.bf16.gmra.mxu0 %v8875_v63  ;;  %2584 = vmatmul.bf16.gmra.mxu1 %v8973_v0 }
 0x582   :  { %v5960_v9 = vadd.f32 %v11236_v22, %v5760_v8  ;;  %3868 = vmatmul.bf16.gmra.mxu2 %v9071_v5  ;;  %5152 = vmatmul.bf16.gmra.mxu3 %v9169_v6  ;;  %v8878_v5 = vld [vmem:[%s11509_s0 + $0x2c8] sm:$0xff]  ;;  %v8976_v6 = vld [vmem:[%s11509_s0 + $0x5d8] sm:$0xff] }
 0x584   :  { %v6156_v11 = vmax.f32 %v5960_v9, 0.0 }
 0x585   :  { %v3829_v12 = vpop.f32.mrf.mxu2  ;;  %v5113_v13 = vpop.f32.mrf.mxu3 }
 0x586   :  { %v9569_v14 = vpack.c.bf16 %v6156_v11, %v6155_v10  ;;  %v1263_v15 = vpop.f32.mrf.mxu0  ;;  %v2547_v26 = vpop.f32.mrf.mxu1  ;;  %v5565_v17 = vmax.f32 %v3829_v12, %v5113_v13  ;;  %v9074_v11 = vld [vmem:[%s11509_s0 + $0x8e8] sm:$0xff]  ;;  %v9172_v12 = vld [vmem:[%s11509_s0 + $0xbf8] sm:$0xff] }
 0x587   :  { %v5370_v23 = vmax.f32 %v1263_v15, %v2547_v26 }
 0x588   :  { %9747 = vst [vmem:[%s11511_s3 + $0x268] sm:$0xff] %v9569_v14   ;;  %v5761_v18 = vmax.f32 %v5369_v16, %v5565_v17 }
 0x58a   :  { %v5961_v28 = vadd.f32 %v11236_v22, %v5761_v18 }
 0x58c   :  { %v6157_v32 = vmax.f32 %v5961_v28, 0.0 }
 0x58d   :  { %v3831_v19 = vpop.f32.mrf.mxu2  ;;  %v5115_v30 = vpop.f32.mrf.mxu3 }
 0x58e   :  { %v5566_v35 = vmax.f32 %v3831_v19, %v5115_v30  ;;  %v1266_v24 = vpop.f32.mrf.mxu0  ;;  %v2550_v25 = vpop.f32.mrf.mxu1 }
 0x58f   :  { %v5371_v40 = vmax.f32 %v1266_v24, %v2550_v25 }
 0x590   :  { %v5762_v29 = vmax.f32 %v5370_v23, %v5566_v35 }
 0x591   :  { %1305 = vmatmul.bf16.gmra.mxu0 %v8876_v20  ;;  %2589 = vmatmul.bf16.gmra.mxu1 %v8974_v21 }
 0x592   :  { %v5962_v31 = vadd.f32 %v11236_v22, %v5762_v29  ;;  %3873 = vmatmul.bf16.gmra.mxu2 %v9072_v27  ;;  %5157 = vmatmul.bf16.gmra.mxu3 %v9170_v53  ;;  %v8879_v27 = vld [vmem:[%s11509_s0 + $0x2d0] sm:$0xff]  ;;  %v8977_v53 = vld [vmem:[%s11509_s0 + $0x5e0] sm:$0xff] }
 0x594   :  { %v6158_v33 = vmax.f32 %v5962_v31, 0.0 }
 0x595   :  { %v3834_v34 = vpop.f32.mrf.mxu2  ;;  %v5118_v36 = vpop.f32.mrf.mxu3 }
 0x596   :  { %v9574_v37 = vpack.c.bf16 %v6158_v33, %v6157_v32  ;;  %v1268_v38 = vpop.f32.mrf.mxu0  ;;  %v2552_v39 = vpop.f32.mrf.mxu1  ;;  %v5567_v41 = vmax.f32 %v3834_v34, %v5118_v36  ;;  %v9075_v33 = vld [vmem:[%s11509_s0 + $0x8f0] sm:$0xff]  ;;  %v9173_v34 = vld [vmem:[%s11509_s0 + $0xc00] sm:$0xff] }
 0x597   :  { %v5372_v47 = vmax.f32 %v1268_v38, %v2552_v39 }
 0x598   :  { %9748 = vst [vmem:[%s11511_s3 + $0x270] sm:$0xff] %v9574_v37   ;;  %v5763_v42 = vmax.f32 %v5371_v40, %v5567_v41 }
 0x59a   :  { %v5963_v54 = vadd.f32 %v11236_v22, %v5763_v42 }
 0x59c   :  { %v6159_v57 = vmax.f32 %v5963_v54, 0.0 }
 0x59d   :  { %v3836_v43 = vpop.f32.mrf.mxu2  ;;  %v5120_v44 = vpop.f32.mrf.mxu3 }
 0x59e   :  { %v5568_v48 = vmax.f32 %v3836_v43, %v5120_v44  ;;  %v1271_v49 = vpop.f32.mrf.mxu0  ;;  %v2555_v50 = vpop.f32.mrf.mxu1 }
 0x59f   :  { %v5373_v0 = vmax.f32 %v1271_v49, %v2555_v50 }
 0x5a0   :  { %v5764_v55 = vmax.f32 %v5372_v47, %v5568_v48 }
 0x5a1   :  { %1310 = vmatmul.bf16.gmra.mxu0 %v8877_v45  ;;  %2594 = vmatmul.bf16.gmra.mxu1 %v8975_v46 }
 0x5a2   :  { %v5964_v56 = vadd.f32 %v11236_v22, %v5764_v55  ;;  %3878 = vmatmul.bf16.gmra.mxu2 %v9073_v51  ;;  %5162 = vmatmul.bf16.gmra.mxu3 %v9171_v52  ;;  %v8880_v51 = vld [vmem:[%s11509_s0 + $0x2d8] sm:$0xff]  ;;  %v8978_v52 = vld [vmem:[%s11509_s0 + $0x5e8] sm:$0xff] }
 0x5a4   :  { %v6160_v58 = vmax.f32 %v5964_v56, 0.0 }
 0x5a5   :  { %v3839_v59 = vpop.f32.mrf.mxu2  ;;  %v5123_v60 = vpop.f32.mrf.mxu3 }
 0x5a6   :  { %v9579_v61 = vpack.c.bf16 %v6160_v58, %v6159_v57  ;;  %v1273_v62 = vpop.f32.mrf.mxu0  ;;  %v2557_v63 = vpop.f32.mrf.mxu1  ;;  %v5569_v1 = vmax.f32 %v3839_v59, %v5123_v60  ;;  %v9076_v58 = vld [vmem:[%s11509_s0 + $0x8f8] sm:$0xff]  ;;  %v9174_v59 = vld [vmem:[%s11509_s0 + $0xc08] sm:$0xff] }
 0x5a7   :  { %v5374_v7 = vmax.f32 %v1273_v62, %v2557_v63 }
 0x5a8   :  { %9749 = vst [vmem:[%s11511_s3 + $0x278] sm:$0xff] %v9579_v61   ;;  %v5765_v2 = vmax.f32 %v5373_v0, %v5569_v1 }
 0x5aa   :  { %v5965_v13 = vadd.f32 %v11236_v22, %v5765_v2 }
 0x5ac   :  { %v6161_v26 = vmax.f32 %v5965_v13, 0.0 }
 0x5ad   :  { %v3841_v3 = vpop.f32.mrf.mxu2  ;;  %v5125_v4 = vpop.f32.mrf.mxu3 }
 0x5ae   :  { %v5570_v8 = vmax.f32 %v3841_v3, %v5125_v4  ;;  %v1276_v9 = vpop.f32.mrf.mxu0  ;;  %v2560_v10 = vpop.f32.mrf.mxu1 }
 0x5af   :  { %v5375_v21 = vmax.f32 %v1276_v9, %v2560_v10 }
 0x5b0   :  { %v5766_v14 = vmax.f32 %v5374_v7, %v5570_v8 }
 0x5b1   :  { %1315 = vmatmul.bf16.gmra.mxu0 %v8878_v5  ;;  %2599 = vmatmul.bf16.gmra.mxu1 %v8976_v6 }
 0x5b2   :  { %v5966_v15 = vadd.f32 %v11236_v22, %v5766_v14  ;;  %3883 = vmatmul.bf16.gmra.mxu2 %v9074_v11  ;;  %5167 = vmatmul.bf16.gmra.mxu3 %v9172_v12  ;;  %v8881_v11 = vld [vmem:[%s11509_s0 + $0x2e0] sm:$0xff]  ;;  %v8979_v12 = vld [vmem:[%s11509_s0 + $0x5f0] sm:$0xff] }
 0x5b4   :  { %v6162_v16 = vmax.f32 %v5966_v15, 0.0 }
 0x5b5   :  { %v3844_v17 = vpop.f32.mrf.mxu2  ;;  %v5128_v18 = vpop.f32.mrf.mxu3 }
 0x5b6   :  { %v9584_v19 = vpack.c.bf16 %v6162_v16, %v6161_v26  ;;  %v1278_v30 = vpop.f32.mrf.mxu0  ;;  %v2562_v20 = vpop.f32.mrf.mxu1  ;;  %v5571_v23 = vmax.f32 %v3844_v17, %v5128_v18  ;;  %v9077_v16 = vld [vmem:[%s11509_s0 + $0x900] sm:$0xff]  ;;  %v9175_v17 = vld [vmem:[%s11509_s0 + $0xc10] sm:$0xff] }
 0x5b7   :  { %v5376_v28 = vmax.f32 %v1278_v30, %v2562_v20 }
 0x5b8   :  { %9750 = vst [vmem:[%s11511_s3 + $0x280] sm:$0xff] %v9584_v19   ;;  %v5767_v35 = vmax.f32 %v5375_v21, %v5571_v23 }
 0x5ba   :  { %v5967_v36 = vadd.f32 %v11236_v22, %v5767_v35 }
 0x5bc   :  { %v6163_v39 = vmax.f32 %v5967_v36, 0.0 }
 0x5bd   :  { %v3846_v24 = vpop.f32.mrf.mxu2  ;;  %v5130_v25 = vpop.f32.mrf.mxu3 }
 0x5be   :  { %v5572_v29 = vmax.f32 %v3846_v24, %v5130_v25  ;;  %v1281_v31 = vpop.f32.mrf.mxu0  ;;  %v2565_v32 = vpop.f32.mrf.mxu1 }
 0x5bf   :  { %v5377_v46 = vmax.f32 %v1281_v31, %v2565_v32 }
 0x5c0   :  { %v5768_v37 = vmax.f32 %v5376_v28, %v5572_v29 }
 0x5c1   :  { %1320 = vmatmul.bf16.gmra.mxu0 %v8879_v27  ;;  %2604 = vmatmul.bf16.gmra.mxu1 %v8977_v53 }
 0x5c2   :  { %v5968_v38 = vadd.f32 %v11236_v22, %v5768_v37  ;;  %3888 = vmatmul.bf16.gmra.mxu2 %v9075_v33  ;;  %5172 = vmatmul.bf16.gmra.mxu3 %v9173_v34  ;;  %v8882_v33 = vld [vmem:[%s11509_s0 + $0x2e8] sm:$0xff]  ;;  %v8980_v34 = vld [vmem:[%s11509_s0 + $0x5f8] sm:$0xff] }
 0x5c4   :  { %v6164_v40 = vmax.f32 %v5968_v38, 0.0 }
 0x5c5   :  { %v3849_v41 = vpop.f32.mrf.mxu2  ;;  %v5133_v42 = vpop.f32.mrf.mxu3 }
 0x5c6   :  { %v9589_v43 = vpack.c.bf16 %v6164_v40, %v6163_v39  ;;  %v1283_v44 = vpop.f32.mrf.mxu0  ;;  %v2567_v45 = vpop.f32.mrf.mxu1  ;;  %v5573_v47 = vmax.f32 %v3849_v41, %v5133_v42  ;;  %v9078_v40 = vld [vmem:[%s11509_s0 + $0x908] sm:$0xff]  ;;  %v9176_v41 = vld [vmem:[%s11509_s0 + $0xc18] sm:$0xff] }
 0x5c7   :  { %v5378_v54 = vmax.f32 %v1283_v44, %v2567_v45 }
 0x5c8   :  { %9751 = vst [vmem:[%s11511_s3 + $0x288] sm:$0xff] %v9589_v43   ;;  %v5769_v48 = vmax.f32 %v5377_v46, %v5573_v47 }
 0x5ca   :  { %v5969_v60 = vadd.f32 %v11236_v22, %v5769_v48 }
 0x5cc   :  { %v6165_v63 = vmax.f32 %v5969_v60, 0.0 }
 0x5cd   :  { %v3851_v49 = vpop.f32.mrf.mxu2  ;;  %v5135_v50 = vpop.f32.mrf.mxu3 }
 0x5ce   :  { %v5574_v55 = vmax.f32 %v3851_v49, %v5135_v50  ;;  %v1286_v56 = vpop.f32.mrf.mxu0  ;;  %v2570_v57 = vpop.f32.mrf.mxu1 }
 0x5cf   :  { %v5379_v6 = vmax.f32 %v1286_v56, %v2570_v57 }
 0x5d0   :  { %v5770_v61 = vmax.f32 %v5378_v54, %v5574_v55 }
 0x5d1   :  { %1325 = vmatmul.bf16.gmra.mxu0 %v8880_v51  ;;  %2609 = vmatmul.bf16.gmra.mxu1 %v8978_v52 }
 0x5d2   :  { %v5970_v62 = vadd.f32 %v11236_v22, %v5770_v61  ;;  %3893 = vmatmul.bf16.gmra.mxu2 %v9076_v58  ;;  %5177 = vmatmul.bf16.gmra.mxu3 %v9174_v59  ;;  %v8883_v58 = vld [vmem:[%s11509_s0 + $0x2f0] sm:$0xff]  ;;  %v8981_v59 = vld [vmem:[%s11509_s0 + $0x600] sm:$0xff] }
 0x5d4   :  { %v6166_v0 = vmax.f32 %v5970_v62, 0.0 }
 0x5d5   :  { %v3854_v1 = vpop.f32.mrf.mxu2  ;;  %v5138_v2 = vpop.f32.mrf.mxu3 }
 0x5d6   :  { %v9594_v3 = vpack.c.bf16 %v6166_v0, %v6165_v63  ;;  %v1288_v4 = vpop.f32.mrf.mxu0  ;;  %v2572_v5 = vpop.f32.mrf.mxu1  ;;  %v5575_v7 = vmax.f32 %v3854_v1, %v5138_v2  ;;  %v9079_v0 = vld [vmem:[%s11509_s0 + $0x910] sm:$0xff]  ;;  %v9177_v1 = vld [vmem:[%s11509_s0 + $0xc20] sm:$0xff] }
 0x5d7   :  { %v5380_v13 = vmax.f32 %v1288_v4, %v2572_v5 }
 0x5d8   :  { %9752 = vst [vmem:[%s11511_s3 + $0x290] sm:$0xff] %v9594_v3   ;;  %v5771_v8 = vmax.f32 %v5379_v6, %v5575_v7 }
 0x5da   :  { %v5971_v18 = vadd.f32 %v11236_v22, %v5771_v8 }
 0x5dc   :  { %v6167_v20 = vmax.f32 %v5971_v18, 0.0 }
 0x5dd   :  { %v3856_v9 = vpop.f32.mrf.mxu2  ;;  %v5140_v10 = vpop.f32.mrf.mxu3 }
 0x5de   :  { %v5576_v14 = vmax.f32 %v3856_v9, %v5140_v10  ;;  %v1291_v15 = vpop.f32.mrf.mxu0  ;;  %v2575_v26 = vpop.f32.mrf.mxu1 }
 0x5df   :  { %v5381_v53 = vmax.f32 %v1291_v15, %v2575_v26 }
 0x5e0   :  { %v5772_v19 = vmax.f32 %v5380_v13, %v5576_v14 }
 0x5e1   :  { %1330 = vmatmul.bf16.gmra.mxu0 %v8881_v11  ;;  %2614 = vmatmul.bf16.gmra.mxu1 %v8979_v12 }
 0x5e2   :  { %v5972_v30 = vadd.f32 %v11236_v22, %v5772_v19  ;;  %3898 = vmatmul.bf16.gmra.mxu2 %v9077_v16  ;;  %5182 = vmatmul.bf16.gmra.mxu3 %v9175_v17  ;;  %v8884_v16 = vld [vmem:[%s11509_s0 + $0x2f8] sm:$0xff]  ;;  %v8982_v17 = vld [vmem:[%s11509_s0 + $0x608] sm:$0xff] }
 0x5e4   :  { %v6168_v21 = vmax.f32 %v5972_v30, 0.0 }
 0x5e5   :  { %v3859_v23 = vpop.f32.mrf.mxu2  ;;  %v5143_v35 = vpop.f32.mrf.mxu3 }
 0x5e6   :  { %v9599_v24 = vpack.c.bf16 %v6168_v21, %v6167_v20  ;;  %v1293_v25 = vpop.f32.mrf.mxu0  ;;  %v2577_v27 = vpop.f32.mrf.mxu1  ;;  %v5577_v28 = vmax.f32 %v3859_v23, %v5143_v35  ;;  %v9080_v21 = vld [vmem:[%s11509_s0 + $0x918] sm:$0xff]  ;;  %v9178_v23 = vld [vmem:[%s11509_s0 + $0xc28] sm:$0xff] }
 0x5e7   :  { %v5382_v36 = vmax.f32 %v1293_v25, %v2577_v27 }
 0x5e8   :  { %9753 = vst [vmem:[%s11511_s3 + $0x298] sm:$0xff] %v9599_v24   ;;  %v5773_v29 = vmax.f32 %v5381_v53, %v5577_v28 }
 0x5ea   :  { %v5973_v42 = vadd.f32 %v11236_v22, %v5773_v29 }
 0x5ec   :  { %v6169_v45 = vmax.f32 %v5973_v42, 0.0 }
 0x5ed   :  { %v3861_v31 = vpop.f32.mrf.mxu2  ;;  %v5145_v32 = vpop.f32.mrf.mxu3 }
 0x5ee   :  { %v5578_v37 = vmax.f32 %v3861_v31, %v5145_v32  ;;  %v1296_v38 = vpop.f32.mrf.mxu0  ;;  %v2580_v39 = vpop.f32.mrf.mxu1 }
 0x5ef   :  { %v5383_v52 = vmax.f32 %v1296_v38, %v2580_v39 }
 0x5f0   :  { %v5774_v43 = vmax.f32 %v5382_v36, %v5578_v37 }
 0x5f1   :  { %1335 = vmatmul.bf16.gmra.mxu0 %v8882_v33  ;;  %2619 = vmatmul.bf16.gmra.mxu1 %v8980_v34 }
 0x5f2   :  { %v5974_v44 = vadd.f32 %v11236_v22, %v5774_v43  ;;  %3903 = vmatmul.bf16.gmra.mxu2 %v9078_v40  ;;  %5187 = vmatmul.bf16.gmra.mxu3 %v9176_v41  ;;  %v8885_v40 = vld [vmem:[%s11509_s0 + $0x300] sm:$0xff]  ;;  %v8983_v41 = vld [vmem:[%s11509_s0 + $0x610] sm:$0xff] }
 0x5f4   :  { %v6170_v46 = vmax.f32 %v5974_v44, 0.0 }
 0x5f5   :  { %v3864_v47 = vpop.f32.mrf.mxu2  ;;  %v5148_v48 = vpop.f32.mrf.mxu3 }
 0x5f6   :  { %v9604_v49 = vpack.c.bf16 %v6170_v46, %v6169_v45  ;;  %v1298_v50 = vpop.f32.mrf.mxu0  ;;  %v2582_v51 = vpop.f32.mrf.mxu1  ;;  %v5579_v54 = vmax.f32 %v3864_v47, %v5148_v48  ;;  %v9081_v46 = vld [vmem:[%s11509_s0 + $0x920] sm:$0xff]  ;;  %v9179_v47 = vld [vmem:[%s11509_s0 + $0xc30] sm:$0xff] }
 0x5f7   :  { %v5384_v60 = vmax.f32 %v1298_v50, %v2582_v51 }
 0x5f8   :  { %9754 = vst [vmem:[%s11511_s3 + $0x2a0] sm:$0xff] %v9604_v49   ;;  %v5775_v55 = vmax.f32 %v5383_v52, %v5579_v54 }
 0x5fa   :  { %v5975_v2 = vadd.f32 %v11236_v22, %v5775_v55 }
 0x5fc   :  { %v6171_v5 = vmax.f32 %v5975_v2, 0.0 }
 0x5fd   :  { %v3866_v56 = vpop.f32.mrf.mxu2  ;;  %v5150_v57 = vpop.f32.mrf.mxu3 }
 0x5fe   :  { %v5580_v61 = vmax.f32 %v3866_v56, %v5150_v57  ;;  %v1301_v62 = vpop.f32.mrf.mxu0  ;;  %v2585_v63 = vpop.f32.mrf.mxu1 }
 0x5ff   :  { %v5385_v12 = vmax.f32 %v1301_v62, %v2585_v63 }
 0x600   :  { %v5776_v3 = vmax.f32 %v5384_v60, %v5580_v61 }
 0x601   :  { %1340 = vmatmul.bf16.gmra.mxu0 %v8883_v58  ;;  %2624 = vmatmul.bf16.gmra.mxu1 %v8981_v59 }
 0x602   :  { %v5976_v4 = vadd.f32 %v11236_v22, %v5776_v3  ;;  %3908 = vmatmul.bf16.gmra.mxu2 %v9079_v0  ;;  %5192 = vmatmul.bf16.gmra.mxu3 %v9177_v1  ;;  %v8886_v0 = vld [vmem:[%s11509_s0 + $0x308] sm:$0xff]  ;;  %v8984_v1 = vld [vmem:[%s11509_s0 + $0x618] sm:$0xff] }
 0x604   :  { %v6172_v6 = vmax.f32 %v5976_v4, 0.0 }
 0x605   :  { %v3869_v7 = vpop.f32.mrf.mxu2  ;;  %v5153_v8 = vpop.f32.mrf.mxu3 }
 0x606   :  { %v9609_v9 = vpack.c.bf16 %v6172_v6, %v6171_v5  ;;  %v1303_v10 = vpop.f32.mrf.mxu0  ;;  %v2587_v11 = vpop.f32.mrf.mxu1  ;;  %v5581_v13 = vmax.f32 %v3869_v7, %v5153_v8  ;;  %v9082_v6 = vld [vmem:[%s11509_s0 + $0x928] sm:$0xff]  ;;  %v9180_v7 = vld [vmem:[%s11509_s0 + $0xc38] sm:$0xff] }
 0x607   :  { %v5386_v18 = vmax.f32 %v1303_v10, %v2587_v11 }
 0x608   :  { %9755 = vst [vmem:[%s11511_s3 + $0x2a8] sm:$0xff] %v9609_v9   ;;  %v5777_v14 = vmax.f32 %v5385_v12, %v5581_v13 }
 0x60a   :  { %v5977_v35 = vadd.f32 %v11236_v22, %v5777_v14 }
 0x60c   :  { %v6173_v27 = vmax.f32 %v5977_v35, 0.0 }
 0x60d   :  { %v3871_v15 = vpop.f32.mrf.mxu2  ;;  %v5155_v26 = vpop.f32.mrf.mxu3 }
 0x60e   :  { %v5582_v19 = vmax.f32 %v3871_v15, %v5155_v26  ;;  %v1306_v30 = vpop.f32.mrf.mxu0  ;;  %v2590_v20 = vpop.f32.mrf.mxu1 }
 0x60f   :  { %v5387_v34 = vmax.f32 %v1306_v30, %v2590_v20 }
 0x610   :  { %v5778_v24 = vmax.f32 %v5386_v18, %v5582_v19 }
 0x611   :  { %1345 = vmatmul.bf16.gmra.mxu0 %v8884_v16  ;;  %2629 = vmatmul.bf16.gmra.mxu1 %v8982_v17 }
 0x612   :  { %v5978_v25 = vadd.f32 %v11236_v22, %v5778_v24  ;;  %3913 = vmatmul.bf16.gmra.mxu2 %v9080_v21  ;;  %5197 = vmatmul.bf16.gmra.mxu3 %v9178_v23 }
 0x614   :  { %v6174_v53 = vmax.f32 %v5978_v25, 0.0 }
 0x615   :  { %v3874_v28 = vpop.f32.mrf.mxu2  ;;  %v5158_v29 = vpop.f32.mrf.mxu3 }
 0x616   :  { %v9614_v31 = vpack.c.bf16 %v6174_v53, %v6173_v27  ;;  %v1308_v32 = vpop.f32.mrf.mxu0  ;;  %v2592_v33 = vpop.f32.mrf.mxu1  ;;  %v5583_v36 = vmax.f32 %v3874_v28, %v5158_v29 }
 0x617   :  { %v5388_v42 = vmax.f32 %v1308_v32, %v2592_v33 }
 0x618   :  { %9756 = vst [vmem:[%s11511_s3 + $0x2b0] sm:$0xff] %v9614_v31   ;;  %v5779_v37 = vmax.f32 %v5387_v34, %v5583_v36 }
 0x61a   :  { %v5979_v48 = vadd.f32 %v11236_v22, %v5779_v37 }
 0x61c   :  { %v6175_v51 = vmax.f32 %v5979_v48, 0.0 }
 0x61d   :  { %v3876_v38 = vpop.f32.mrf.mxu2  ;;  %v5160_v39 = vpop.f32.mrf.mxu3 }
 0x61e   :  { %v5584_v43 = vmax.f32 %v3876_v38, %v5160_v39  ;;  %v1311_v44 = vpop.f32.mrf.mxu0  ;;  %v2595_v45 = vpop.f32.mrf.mxu1 }
 0x61f   :  { %v5389_v59 = vmax.f32 %v1311_v44, %v2595_v45 }
 0x620   :  { %v5780_v49 = vmax.f32 %v5388_v42, %v5584_v43 }
 0x621   :  { %1350 = vmatmul.bf16.gmra.mxu0 %v8885_v40  ;;  %2634 = vmatmul.bf16.gmra.mxu1 %v8983_v41 }
 0x622   :  { %v5980_v50 = vadd.f32 %v11236_v22, %v5780_v49  ;;  %3918 = vmatmul.bf16.gmra.mxu2 %v9081_v46  ;;  %5202 = vmatmul.bf16.gmra.mxu3 %v9179_v47 }
 0x624   :  { %v6176_v52 = vmax.f32 %v5980_v50, 0.0 }
 0x625   :  { %v3879_v54 = vpop.f32.mrf.mxu2  ;;  %v5163_v55 = vpop.f32.mrf.mxu3 }
 0x626   :  { %v9619_v56 = vpack.c.bf16 %v6176_v52, %v6175_v51  ;;  %v1313_v57 = vpop.f32.mrf.mxu0  ;;  %v2597_v58 = vpop.f32.mrf.mxu1  ;;  %v5585_v60 = vmax.f32 %v3879_v54, %v5163_v55 }
 0x627   :  { %v5390_v2 = vmax.f32 %v1313_v57, %v2597_v58 }
 0x628   :  { %9757 = vst [vmem:[%s11511_s3 + $0x2b8] sm:$0xff] %v9619_v56   ;;  %v5781_v61 = vmax.f32 %v5389_v59, %v5585_v60 }
 0x62a   :  { %v5981_v8 = vadd.f32 %v11236_v22, %v5781_v61 }
 0x62c   :  { %v6177_v11 = vmax.f32 %v5981_v8, 0.0 }
 0x62d   :  { %v3881_v62 = vpop.f32.mrf.mxu2  ;;  %v5165_v63 = vpop.f32.mrf.mxu3 }
 0x62e   :  { %v5586_v3 = vmax.f32 %v3881_v62, %v5165_v63  ;;  %v1316_v4 = vpop.f32.mrf.mxu0  ;;  %v2600_v5 = vpop.f32.mrf.mxu1 }
 0x62f   :  { %v5391_v17 = vmax.f32 %v1316_v4, %v2600_v5 }
 0x630   :  { %v5782_v9 = vmax.f32 %v5390_v2, %v5586_v3 }
 0x631   :  { %1355 = vmatmul.bf16.gmra.mxu0 %v8886_v0  ;;  %2639 = vmatmul.bf16.gmra.mxu1 %v8984_v1 }
 0x632   :  { %v5982_v10 = vadd.f32 %v11236_v22, %v5782_v9  ;;  %3923 = vmatmul.bf16.gmra.mxu2 %v9082_v6  ;;  %5207 = vmatmul.bf16.gmra.mxu3 %v9180_v7 }
 0x634   :  { %v6178_v12 = vmax.f32 %v5982_v10, 0.0 }
 0x635   :  { %v3884_v13 = vpop.f32.mrf.mxu2  ;;  %v5168_v14 = vpop.f32.mrf.mxu3 }
 0x636   :  { %v9624_v15 = vpack.c.bf16 %v6178_v12, %v6177_v11  ;;  %v1318_v26 = vpop.f32.mrf.mxu0  ;;  %v2602_v16 = vpop.f32.mrf.mxu1  ;;  %v5587_v18 = vmax.f32 %v3884_v13, %v5168_v14 }
 0x637   :  { %v5392_v21 = vmax.f32 %v1318_v26, %v2602_v16 }
 0x638   :  { %9758 = vst [vmem:[%s11511_s3 + $0x2c0] sm:$0xff] %v9624_v15   ;;  %v5783_v19 = vmax.f32 %v5391_v17, %v5587_v18 }
 0x63a   :  { %v5983_v25 = vadd.f32 %v11236_v22, %v5783_v19 }
 0x63c   :  { %v6179_v28 = vmax.f32 %v5983_v25, 0.0 }
 0x63d   :  { %v3886_v30 = vpop.f32.mrf.mxu2  ;;  %v5170_v20 = vpop.f32.mrf.mxu3 }
 0x63e   :  { %v5588_v23 = vmax.f32 %v3886_v30, %v5170_v20  ;;  %v1321_v35 = vpop.f32.mrf.mxu0  ;;  %v2605_v24 = vpop.f32.mrf.mxu1 }
 0x63f   :  { %v5393_v37 = vmax.f32 %v1321_v35, %v2605_v24 }
 0x640   :  { %v5784_v27 = vmax.f32 %v5392_v21, %v5588_v23 }
 0x642   :  { %v5984_v53 = vadd.f32 %v11236_v22, %v5784_v27 }
 0x644   :  { %v6180_v29 = vmax.f32 %v5984_v53, 0.0 }
 0x645   :  { %v3889_v31 = vpop.f32.mrf.mxu2  ;;  %v5173_v32 = vpop.f32.mrf.mxu3 }
 0x646   :  { %v9629_v33 = vpack.c.bf16 %v6180_v29, %v6179_v28  ;;  %v1323_v34 = vpop.f32.mrf.mxu0  ;;  %v2607_v36 = vpop.f32.mrf.mxu1  ;;  %v5589_v38 = vmax.f32 %v3889_v31, %v5173_v32 }
 0x647   :  { %v5394_v42 = vmax.f32 %v1323_v34, %v2607_v36 }
 0x648   :  { %9759 = vst [vmem:[%s11511_s3 + $0x2c8] sm:$0xff] %v9629_v33   ;;  %v5785_v39 = vmax.f32 %v5393_v37, %v5589_v38 }
 0x64a   :  { %v5985_v46 = vadd.f32 %v11236_v22, %v5785_v39 }
 0x64c   :  { %v6181_v49 = vmax.f32 %v5985_v46, 0.0 }
 0x64d   :  { %v3891_v40 = vpop.f32.mrf.mxu2  ;;  %v5175_v41 = vpop.f32.mrf.mxu3 }
 0x64e   :  { %v5590_v43 = vmax.f32 %v3891_v40, %v5175_v41  ;;  %v1326_v44 = vpop.f32.mrf.mxu0  ;;  %v2610_v45 = vpop.f32.mrf.mxu1 }
 0x64f   :  { %v5395_v57 = vmax.f32 %v1326_v44, %v2610_v45 }
 0x650   :  { %v5786_v47 = vmax.f32 %v5394_v42, %v5590_v43 }
 0x652   :  { %v5986_v48 = vadd.f32 %v11236_v22, %v5786_v47 }
 0x654   :  { %v6182_v50 = vmax.f32 %v5986_v48, 0.0 }
 0x655   :  { %v3894_v51 = vpop.f32.mrf.mxu2  ;;  %v5178_v52 = vpop.f32.mrf.mxu3 }
 0x656   :  { %v9634_v54 = vpack.c.bf16 %v6182_v50, %v6181_v49  ;;  %v1328_v55 = vpop.f32.mrf.mxu0  ;;  %v2612_v56 = vpop.f32.mrf.mxu1  ;;  %v5591_v58 = vmax.f32 %v3894_v51, %v5178_v52 }
 0x657   :  { %v5396_v62 = vmax.f32 %v1328_v55, %v2612_v56 }
 0x658   :  { %9760 = vst [vmem:[%s11511_s3 + $0x2d0] sm:$0xff] %v9634_v54   ;;  %v5787_v59 = vmax.f32 %v5395_v57, %v5591_v58 }
 0x65a   :  { %v5987_v2 = vadd.f32 %v11236_v22, %v5787_v59 }
 0x65c   :  { %v6183_v5 = vmax.f32 %v5987_v2, 0.0 }
 0x65d   :  { %v3896_v60 = vpop.f32.mrf.mxu2  ;;  %v5180_v61 = vpop.f32.mrf.mxu3 }
 0x65e   :  { %v5592_v63 = vmax.f32 %v3896_v60, %v5180_v61  ;;  %v1331_v0 = vpop.f32.mrf.mxu0  ;;  %v2615_v1 = vpop.f32.mrf.mxu1 }
 0x65f   :  { %v5397_v12 = vmax.f32 %v1331_v0, %v2615_v1 }
 0x660   :  { %v5788_v3 = vmax.f32 %v5396_v62, %v5592_v63 }
 0x662   :  { %v5988_v4 = vadd.f32 %v11236_v22, %v5788_v3 }
 0x664   :  { %v6184_v6 = vmax.f32 %v5988_v4, 0.0 }
 0x665   :  { %v3899_v7 = vpop.f32.mrf.mxu2  ;;  %v5183_v8 = vpop.f32.mrf.mxu3 }
 0x666   :  { %v9639_v9 = vpack.c.bf16 %v6184_v6, %v6183_v5  ;;  %v1333_v10 = vpop.f32.mrf.mxu0  ;;  %v2617_v11 = vpop.f32.mrf.mxu1  ;;  %v5593_v13 = vmax.f32 %v3899_v7, %v5183_v8 }
 0x667   :  { %v5398_v16 = vmax.f32 %v1333_v10, %v2617_v11 }
 0x668   :  { %9761 = vst [vmem:[%s11511_s3 + $0x2d8] sm:$0xff] %v9639_v9   ;;  %v5789_v14 = vmax.f32 %v5397_v12, %v5593_v13 }
 0x66a   :  { %v5989_v30 = vadd.f32 %v11236_v22, %v5789_v14 }
 0x66c   :  { %v6185_v23 = vmax.f32 %v5989_v30, 0.0 }
 0x66d   :  { %v3901_v15 = vpop.f32.mrf.mxu2  ;;  %v5185_v26 = vpop.f32.mrf.mxu3 }
 0x66e   :  { %v5594_v17 = vmax.f32 %v3901_v15, %v5185_v26  ;;  %v1336_v18 = vpop.f32.mrf.mxu0  ;;  %v2620_v19 = vpop.f32.mrf.mxu1 }
 0x66f   :  { %v5399_v29 = vmax.f32 %v1336_v18, %v2620_v19 }
 0x670   :  { %v5790_v20 = vmax.f32 %v5398_v16, %v5594_v17 }
 0x672   :  { %v5990_v21 = vadd.f32 %v11236_v22, %v5790_v20 }
 0x674   :  { %v6186_v35 = vmax.f32 %v5990_v21, 0.0 }
 0x675   :  { %v3904_v24 = vpop.f32.mrf.mxu2  ;;  %v5188_v25 = vpop.f32.mrf.mxu3 }
 0x676   :  { %v9644_v27 = vpack.c.bf16 %v6186_v35, %v6185_v23  ;;  %v1338_v53 = vpop.f32.mrf.mxu0  ;;  %v2622_v28 = vpop.f32.mrf.mxu1  ;;  %v5595_v31 = vmax.f32 %v3904_v24, %v5188_v25 }
 0x677   :  { %v5400_v36 = vmax.f32 %v1338_v53, %v2622_v28 }
 0x678   :  { %9762 = vst [vmem:[%s11511_s3 + $0x2e0] sm:$0xff] %v9644_v27   ;;  %v5791_v32 = vmax.f32 %v5399_v29, %v5595_v31 }
 0x67a   :  { %v5991_v40 = vadd.f32 %v11236_v22, %v5791_v32 }
 0x67c   :  { %v6187_v43 = vmax.f32 %v5991_v40, 0.0 }
 0x67d   :  { %v3906_v33 = vpop.f32.mrf.mxu2  ;;  %v5190_v34 = vpop.f32.mrf.mxu3 }
 0x67e   :  { %v5596_v37 = vmax.f32 %v3906_v33, %v5190_v34  ;;  %v1341_v38 = vpop.f32.mrf.mxu0  ;;  %v2625_v39 = vpop.f32.mrf.mxu1 }
 0x67f   :  { %v5401_v50 = vmax.f32 %v1341_v38, %v2625_v39 }
 0x680   :  { %v5792_v41 = vmax.f32 %v5400_v36, %v5596_v37 }
 0x682   :  { %v5992_v42 = vadd.f32 %v11236_v22, %v5792_v41 }
 0x684   :  { %v6188_v44 = vmax.f32 %v5992_v42, 0.0 }
 0x685   :  { %v3909_v45 = vpop.f32.mrf.mxu2  ;;  %v5193_v46 = vpop.f32.mrf.mxu3 }
 0x686   :  { %v9649_v47 = vpack.c.bf16 %v6188_v44, %v6187_v43  ;;  %v1343_v48 = vpop.f32.mrf.mxu0  ;;  %v2627_v49 = vpop.f32.mrf.mxu1  ;;  %v5597_v51 = vmax.f32 %v3909_v45, %v5193_v46 }
 0x687   :  { %v5402_v56 = vmax.f32 %v1343_v48, %v2627_v49 }
 0x688   :  { %9763 = vst [vmem:[%s11511_s3 + $0x2e8] sm:$0xff] %v9649_v47   ;;  %v5793_v52 = vmax.f32 %v5401_v50, %v5597_v51 }
 0x68a   :  { %v5993_v60 = vadd.f32 %v11236_v22, %v5793_v52 }
 0x68c   :  { %v6189_v63 = vmax.f32 %v5993_v60, 0.0 }
 0x68d   :  { %v3911_v54 = vpop.f32.mrf.mxu2  ;;  %v5195_v55 = vpop.f32.mrf.mxu3 }
 0x68e   :  { %v5598_v57 = vmax.f32 %v3911_v54, %v5195_v55  ;;  %v1346_v58 = vpop.f32.mrf.mxu0  ;;  %v2630_v59 = vpop.f32.mrf.mxu1 }
 0x68f   :  { %v5403_v6 = vmax.f32 %v1346_v58, %v2630_v59 }
 0x690   :  { %v5794_v61 = vmax.f32 %v5402_v56, %v5598_v57 }
 0x692   :  { %v5994_v62 = vadd.f32 %v11236_v22, %v5794_v61 }
 0x694   :  { %v6190_v0 = vmax.f32 %v5994_v62, 0.0 }
 0x695   :  { %v3914_v1 = vpop.f32.mrf.mxu2  ;;  %v5198_v2 = vpop.f32.mrf.mxu3 }
 0x696   :  { %v9654_v3 = vpack.c.bf16 %v6190_v0, %v6189_v63  ;;  %v1348_v4 = vpop.f32.mrf.mxu0  ;;  %v2632_v5 = vpop.f32.mrf.mxu1  ;;  %v5599_v7 = vmax.f32 %v3914_v1, %v5198_v2 }
 0x697   :  { %v5404_v11 = vmax.f32 %v1348_v4, %v2632_v5 }
 0x698   :  { %9764 = vst [vmem:[%s11511_s3 + $0x2f0] sm:$0xff] %v9654_v3   ;;  %v5795_v8 = vmax.f32 %v5403_v6, %v5599_v7 }
 0x69a   :  { %v5995_v15 = vadd.f32 %v11236_v22, %v5795_v8 }
 0x69c   :  { %v6191_v17 = vmax.f32 %v5995_v15, 0.0 }
 0x69d   :  { %v3916_v9 = vpop.f32.mrf.mxu2  ;;  %v5200_v10 = vpop.f32.mrf.mxu3 }
 0x69e   :  { %v5600_v12 = vmax.f32 %v3916_v9, %v5200_v10  ;;  %v1351_v13 = vpop.f32.mrf.mxu0  ;;  %v2635_v14 = vpop.f32.mrf.mxu1 }
 0x69f   :  { %v5405_v35 = vmax.f32 %v1351_v13, %v2635_v14 }
 0x6a0   :  { %v5796_v26 = vmax.f32 %v5404_v11, %v5600_v12 }
 0x6a2   :  { %v5996_v16 = vadd.f32 %v11236_v22, %v5796_v26  ;;  %v9773_v22 = vld [vmem:[%s11510_s2] ss:$0 sm:$0xff] }
 0x6a4   :  { %v6192_v18 = vmax.f32 %v5996_v16, 0.0 }
 0x6a5   :  { %v3919_v19 = vpop.f32.mrf.mxu2  ;;  %v5203_v30 = vpop.f32.mrf.mxu3 }
 0x6a6   :  { %v9659_v20 = vpack.c.bf16 %v6192_v18, %v6191_v17  ;;  %v1353_v21 = vpop.f32.mrf.mxu0  ;;  %v2637_v23 = vpop.f32.mrf.mxu1  ;;  %v5601_v24 = vmax.f32 %v3919_v19, %v5203_v30 }
 0x6a7   :  { %v5406_v28 = vmax.f32 %v1353_v21, %v2637_v23 }
 0x6a8   :  { %9765 = vst [vmem:[%s11511_s3 + $0x2f8] sm:$0xff] %v9659_v20   ;;  %v5797_v25 = vmax.f32 %v5405_v35, %v5601_v24 }
 0x6aa   :  { %v5997_v31 = vadd.f32 %v9773_v22, %v5797_v25 }
 0x6ac   :  { %v6193_v37 = vmax.f32 %v5997_v31, 0.0 }
 0x6ad   :  { %v3921_v27 = vpop.f32.mrf.mxu2  ;;  %v5205_v53 = vpop.f32.mrf.mxu3 }
 0x6ae   :  { %v5602_v29 = vmax.f32 %v3921_v27, %v5205_v53  ;;  %v1356_v33 = vpop.f32.mrf.mxu0  ;;  %v2640_v34 = vpop.f32.mrf.mxu1 }
 0x6af   :  { %v5407_v42 = vmax.f32 %v1356_v33, %v2640_v34 }
 0x6b0   :  { %v5798_v32 = vmax.f32 %v5406_v28, %v5602_v29 }
 0x6b2   :  { %v5998_v36 = vadd.f32 %v9773_v22, %v5798_v32 }
 0x6b4   :  { %v6194_v38 = vmax.f32 %v5998_v36, 0.0 }
 0x6b5   :  { %v3924_v39 = vpop.f32.mrf.mxu2  ;;  %v5208_v40 = vpop.f32.mrf.mxu3 }
 0x6b6   :  { %v9664_v41 = vpack.c.bf16 %v6194_v38, %v6193_v37  ;;  %v5603_v43 = vmax.f32 %v3924_v39, %v5208_v40  ;;  %v1358_v44 = vpop.f32.mrf.mxu0  ;;  %v2642_v45 = vpop.f32.mrf.mxu1 }
 0x6b7   :  { %v5408_v49 = vmax.f32 %v1358_v44, %v2642_v45 }
 0x6b8   :  { %9766 = vst [vmem:[%s11511_s3 + $0x300] sm:$0xff] %v9664_v41   ;;  %v5799_v46 = vmax.f32 %v5407_v42, %v5603_v43 }
 0x6ba   :  { %v5999_v51 = vadd.f32 %v9773_v22, %v5799_v46 }
 0x6bc   :  { %v6195_v55 = vmax.f32 %v5999_v51, 0.0 }
 0x6bd   :  { %v3926_v47 = vpop.f32.mrf.mxu2  ;;  %v5210_v48 = vpop.f32.mrf.mxu3 }
 0x6be   :  { %v5604_v50 = vmax.f32 %v3926_v47, %v5210_v48 }
 0x6c0   :  { %v5800_v52 = vmax.f32 %v5408_v49, %v5604_v50 }
 0x6c2   :  { %v6000_v54 = vadd.f32 %v9773_v22, %v5800_v52 }
 0x6c4   :  { %v6196_v56 = vmax.f32 %v6000_v54, 0.0 }
 0x6c6   :  { %v9669_v57 = vpack.c.bf16 %v6196_v56, %v6195_v55 }
 0x6c8   :  { %9767 = vst [vmem:[%s11511_s3 + $0x308] sm:$0xff] %v9669_v57  }

// kernel: toynet_forward.3
= control target key start
LH: loop header
LB: loop body
LE: loop exit
PB: predicated region body
PF: predicated region fallthrough
CT: control target
= control target key end

     0   :  { %s7604_s1 = inlined_call_operand.vmem [shape: bf16[256,128], index: 1, kind: input, shape index: {}]   ;;  %s7605_s0 = inlined_call_operand.vmem [shape: bf16[4,200,256], index: 0, kind: input, shape index: {}]   ;;  %s7606_s2 = inlined_call_operand.vmem [shape: f32[1,128], index: 2, kind: input, shape index: {}]   ;;  %s7607_s3 = inlined_call_operand.vmem [shape: bf16[25,128,128], index: 3, kind: input, shape index: {}]   ;;  %s7608_s4 = inlined_call_operand.vmem [shape: f32[1,128], index: 4, kind: input, shape index: {}]   ;;  %s7609_s6 = inlined_call_operand.vmem [shape: f32[1,128], index: 6, kind: input, shape index: {}]   ;;  %s7610_s5 = inlined_call_operand.vmem [shape: bf16[128,128], index: 5, kind: input, shape index: {}]   ;;  %s7611_s7 = inlined_call_operand.vmem [shape: bf16[128,128], index: 7, kind: input, shape index: {}]   ;;  %s7612_s8 = inlined_call_operand.vmem [shape: f32[1,128], index: 8, kind: input, shape index: {}]   ;;  %s7613_s9 = inlined_call_operand.vmem [shape: f32[8,128], index: 9, kind: output, shape index: {}]  }
   0x1   :  { %v5814_v0 = vld [vmem:[%s7604_s1 + $0x38] sm:$0xff]  ;;  %v5826_v2 = vld [vmem:[%s7604_s1 + $0x30] sm:$0xff]  ;;  %v5840_v4 = vld [vmem:[%s7604_s1 + $0x28] sm:$0xff] }
   0x2   :  { %v5819_v1 = vld [vmem:[%s7604_s1 + $0x78] sm:$0xff]  ;;  %312 = vmatpush.bf16.msra.mxu0 %v5814_v0  ;;  %v5831_v3 = vld [vmem:[%s7604_s1 + $0x70] sm:$0xff]  ;;  %611 = vmatpush.bf16.msra.mxu2 %v5814_v0  ;;  %v5845_v5 = vld [vmem:[%s7604_s1 + $0x68] sm:$0xff] }
   0x3   :  { %385 = vmatpush.bf16.msra.mxu1 %v5819_v1  ;;  %684 = vmatpush.bf16.msra.mxu3 %v5819_v1  ;;  %v5854_v6 = vld [vmem:[%s7604_s1 + $0x20] sm:$0xff]  ;;  %v5868_v8 = vld [vmem:[%s7604_s1 + $0x18] sm:$0xff]  ;;  %v5882_v10 = vld [vmem:[%s7604_s1 + $0x10] sm:$0xff] }
   0x4   :  { %v5859_v7 = vld [vmem:[%s7604_s1 + $0x60] sm:$0xff]  ;;  %v5873_v9 = vld [vmem:[%s7604_s1 + $0x58] sm:$0xff]  ;;  %v5887_v11 = vld [vmem:[%s7604_s1 + $0x50] sm:$0xff] }
   0x5   :  { %v5896_v12 = vld [vmem:[%s7604_s1 + $0x8] sm:$0xff]  ;;  %v5908_v14 = vld [vmem:[%s7604_s1] sm:$0xff]  ;;  %v5469_v21 = vld [vmem:[%s7605_s0 + $0xcc] sm:$0xf0] }
   0x6   :  { %313 = vmatpush.bf16.msra.mxu0 %v5826_v2  ;;  %612 = vmatpush.bf16.msra.mxu2 %v5826_v2  ;;  %v5901_v13 = vld [vmem:[%s7604_s1 + $0x48] sm:$0xff]  ;;  %v5913_v15 = vld [vmem:[%s7604_s1 + $0x40] sm:$0xff]  ;;  %v3846_v23 = vld [vmem:[%s7605_s0 + $0xd0] sm:$0xf0] }
   0x7   :  { %386 = vmatpush.bf16.msra.mxu1 %v5831_v3  ;;  %685 = vmatpush.bf16.msra.mxu3 %v5831_v3  ;;  %v3659_v16 = vld [vmem:[%s7605_s0] sm:$0xf]  ;;  %v5445_v17 = vld [vmem:[%s7605_s0 + $0x4] sm:$0xf0]  ;;  %v5444_v18 = vld [vmem:[%s7605_s0 + $0x4] sm:$0xf] }
   0x8   :  { %v3661_v19 = vld [vmem:[%s7605_s0 + $0x8] sm:$0xf0]  ;;  %v3844_v20 = vld [vmem:[%s7605_s0 + $0xc8] sm:$0xf]  ;;  %v3660_v24 = vor.u32 %v5445_v17, %v3659_v16  ;;  %v3667_v28 = vld [vmem:[%s7605_s0 + $0x10] sm:$0xf] }
   0x9   :  { %v5468_v22 = vld [vmem:[%s7605_s0 + $0xcc] sm:$0xf]  ;;  %v3664_v25 = vor.u32 %v5444_v18, %v3661_v19  ;;  %v3845_v26 = vor.u32 %v5469_v21, %v3844_v20  ;;  %v5447_v29 = vld [vmem:[%s7605_s0 + $0x14] sm:$0xf0]  ;;  %v5446_v30 = vld [vmem:[%s7605_s0 + $0x14] sm:$0xf] }
   0xa   :  { %314 = vmatpush.bf16.msra.mxu0 %v5840_v4  ;;  %613 = vmatpush.bf16.msra.mxu2 %v5840_v4  ;;  %v3849_v27 = vor.u32 %v5468_v22, %v3846_v23  ;;  %v3669_v31 = vld [vmem:[%s7605_s0 + $0x18] sm:$0xf0]  ;;  %v3852_v32 = vld [vmem:[%s7605_s0 + $0xd8] sm:$0xf]  ;;  %v5471_v33 = vld [vmem:[%s7605_s0 + $0xdc] sm:$0xf0]  ;;  %v3668_v36 = vor.u32 %v5447_v29, %v3667_v28 }
   0xb   :  { %387 = vmatpush.bf16.msra.mxu1 %v5845_v5  ;;  %686 = vmatpush.bf16.msra.mxu3 %v5845_v5  ;;  %v5470_v34 = vld [vmem:[%s7605_s0 + $0xdc] sm:$0xf]  ;;  %v3854_v35 = vld [vmem:[%s7605_s0 + $0xe0] sm:$0xf0]  ;;  %v3672_v37 = vor.u32 %v5446_v30, %v3669_v31  ;;  %v3853_v38 = vor.u32 %v5471_v33, %v3852_v32  ;;  %v3675_v40 = vld [vmem:[%s7605_s0 + $0x20] sm:$0xf] }
   0xc   :  { %v3857_v39 = vor.u32 %v5470_v34, %v3854_v35  ;;  %v5449_v41 = vld [vmem:[%s7605_s0 + $0x24] sm:$0xf0]  ;;  %v5448_v42 = vld [vmem:[%s7605_s0 + $0x24] sm:$0xf]  ;;  %v3677_v43 = vld [vmem:[%s7605_s0 + $0x28] sm:$0xf0] }
   0xd   :  { %v3860_v44 = vld [vmem:[%s7605_s0 + $0xe8] sm:$0xf]  ;;  %v5473_v45 = vld [vmem:[%s7605_s0 + $0xec] sm:$0xf0]  ;;  %v5472_v46 = vld [vmem:[%s7605_s0 + $0xec] sm:$0xf]  ;;  %v3676_v48 = vor.u32 %v5449_v41, %v3675_v40  ;;  %v3680_v49 = vor.u32 %v5448_v42, %v3677_v43 }
   0xe   :  { %315 = vmatpush.bf16.msra.mxu0 %v5854_v6  ;;  %614 = vmatpush.bf16.msra.mxu2 %v5854_v6  ;;  %v3862_v47 = vld [vmem:[%s7605_s0 + $0xf0] sm:$0xf0]  ;;  %v3861_v50 = vor.u32 %v5473_v45, %v3860_v44  ;;  %v3683_v52 = vld [vmem:[%s7605_s0 + $0x30] sm:$0xf]  ;;  %v5451_v53 = vld [vmem:[%s7605_s0 + $0x34] sm:$0xf0] }
   0xf   :  { %388 = vmatpush.bf16.msra.mxu1 %v5859_v7  ;;  %687 = vmatpush.bf16.msra.mxu3 %v5859_v7  ;;  %v3865_v51 = vor.u32 %v5472_v46, %v3862_v47  ;;  %v5450_v54 = vld [vmem:[%s7605_s0 + $0x34] sm:$0xf]  ;;  %v3685_v55 = vld [vmem:[%s7605_s0 + $0x38] sm:$0xf0]  ;;  %v3868_v56 = vld [vmem:[%s7605_s0 + $0xf8] sm:$0xf]  ;;  %v3684_v60 = vor.u32 %v5451_v53, %v3683_v52 }
  0x10   :  { %v5475_v57 = vld [vmem:[%s7605_s0 + $0xfc] sm:$0xf0]  ;;  %v5474_v58 = vld [vmem:[%s7605_s0 + $0xfc] sm:$0xf]  ;;  %v3870_v59 = vld [vmem:[%s7605_s0 + $0x100] sm:$0xf0]  ;;  %v3688_v61 = vor.u32 %v5450_v54, %v3685_v55 }
  0x11   :  { %v3869_v62 = vor.u32 %v5475_v57, %v3868_v56  ;;  %v3873_v63 = vor.u32 %v5474_v58, %v3870_v59  ;;  %v3884_v16 = vld [vmem:[%s7605_s0 + $0x118] sm:$0xf]  ;;  %v5479_v17 = vld [vmem:[%s7605_s0 + $0x11c] sm:$0xf0]  ;;  %v5478_v18 = vld [vmem:[%s7605_s0 + $0x11c] sm:$0xf] }
  0x12   :  { %316 = vmatpush.bf16.msra.mxu0 %v5868_v8  ;;  %615 = vmatpush.bf16.msra.mxu2 %v5868_v8  ;;  %v3886_v19 = vld [vmem:[%s7605_s0 + $0x120] sm:$0xf0]  ;;  %v3885_v22 = vor.u32 %v5479_v17, %v3884_v16  ;;  %v3892_v28 = vld [vmem:[%s7605_s0 + $0x128] sm:$0xf]  ;;  %v5481_v29 = vld [vmem:[%s7605_s0 + $0x12c] sm:$0xf0] }
  0x13   :  { %389 = vmatpush.bf16.msra.mxu1 %v5873_v9  ;;  %688 = vmatpush.bf16.msra.mxu3 %v5873_v9  ;;  %v3889_v23 = vor.u32 %v5478_v18, %v3886_v19  ;;  %v5480_v30 = vld [vmem:[%s7605_s0 + $0x12c] sm:$0xf]  ;;  %v3894_v31 = vld [vmem:[%s7605_s0 + $0x130] sm:$0xf0]  ;;  %v3893_v34 = vor.u32 %v5481_v29, %v3892_v28  ;;  %v3900_v40 = vld [vmem:[%s7605_s0 + $0x138] sm:$0xf] }
  0x14   :  { %v3897_v35 = vor.u32 %v5480_v30, %v3894_v31  ;;  %v5483_v41 = vld [vmem:[%s7605_s0 + $0x13c] sm:$0xf0]  ;;  %v5482_v42 = vld [vmem:[%s7605_s0 + $0x13c] sm:$0xf]  ;;  %v3902_v43 = vld [vmem:[%s7605_s0 + $0x140] sm:$0xf0] }
  0x15   :  { %v3901_v46 = vor.u32 %v5483_v41, %v3900_v40  ;;  %v3905_v47 = vor.u32 %v5482_v42, %v3902_v43  ;;  %v3908_v52 = vld [vmem:[%s7605_s0 + $0x148] sm:$0xf]  ;;  %v5485_v53 = vld [vmem:[%s7605_s0 + $0x14c] sm:$0xf0]  ;;  %v5484_v54 = vld [vmem:[%s7605_s0 + $0x14c] sm:$0xf] }
  0x16   :  { %317 = vmatpush.bf16.msra.mxu0 %v5882_v10  ;;  %616 = vmatpush.bf16.msra.mxu2 %v5882_v10  ;;  %v3910_v55 = vld [vmem:[%s7605_s0 + $0x150] sm:$0xf0] }
  0x17   :  { %390 = vmatpush.bf16.msra.mxu1 %v5887_v11  ;;  %689 = vmatpush.bf16.msra.mxu3 %v5887_v11 }
  0x1a   :  { %318 = vmatpush.bf16.msra.mxu0 %v5896_v12  ;;  %617 = vmatpush.bf16.msra.mxu2 %v5896_v12 }
  0x1b   :  { %391 = vmatpush.bf16.msra.mxu1 %v5901_v13  ;;  %690 = vmatpush.bf16.msra.mxu3 %v5901_v13 }
  0x1e   :  { %319 = vmatpush.bf16.msra.mxu0 %v5908_v14  ;;  %618 = vmatpush.bf16.msra.mxu2 %v5908_v14 }
  0x1f   :  { %392 = vmatpush.bf16.msra.mxu1 %v5913_v15  ;;  %691 = vmatpush.bf16.msra.mxu3 %v5913_v15 }
  0x21   :  { %320 = vmatmul.bf16.vlgmr.msra.gmra.mxu0 %v3660_v24  ;;  %619 = vmatmul.bf16.vlgmr.msra.gmra.mxu2 %v3845_v26  ;;  %v3707_v24 = vld [vmem:[%s7605_s0 + $0x60] sm:$0xf]  ;;  %v5456_v26 = vld [vmem:[%s7605_s0 + $0x64] sm:$0xf] }
  0x22   :  { %1209 = vmatpush.bf16.msrb.mxu2 %v5814_v0  ;;  %393 = vmatmul.bf16.vlgmr.msra.gmra.mxu1 %v3664_v25  ;;  %v5457_v25 = vld [vmem:[%s7605_s0 + $0x64] sm:$0xf0] }
  0x23   :  { %1282 = vmatpush.bf16.msrb.mxu3 %v5819_v1  ;;  %910 = vmatpush.bf16.msrb.mxu0 %v5814_v0  ;;  %v3691_v0 = vld [vmem:[%s7605_s0 + $0x40] sm:$0xf]  ;;  %v3708_v32 = vor.u32 %v5457_v25, %v3707_v24 }
  0x24   :  { %692 = vmatmul.bf16.vlgmr.msra.gmra.mxu3 %v3849_v27  ;;  %983 = vmatpush.bf16.msrb.mxu1 %v5819_v1  ;;  %v5453_v1 = vld [vmem:[%s7605_s0 + $0x44] sm:$0xf0]  ;;  %v3709_v27 = vld [vmem:[%s7605_s0 + $0x68] sm:$0xf0] }
  0x25   :  { %v3712_v33 = vor.u32 %v5456_v26, %v3709_v27 }
  0x26   :  { %1210 = vmatpush.bf16.msrb.mxu2 %v5826_v2 }
  0x27   :  { %1283 = vmatpush.bf16.msrb.mxu3 %v5831_v3  ;;  %911 = vmatpush.bf16.msrb.mxu0 %v5826_v2  ;;  %v5452_v2 = vld [vmem:[%s7605_s0 + $0x44] sm:$0xf] }
  0x28   :  { %984 = vmatpush.bf16.msrb.mxu1 %v5831_v3  ;;  %v3693_v3 = vld [vmem:[%s7605_s0 + $0x48] sm:$0xf0] }
  0x2a   :  { %1211 = vmatpush.bf16.msrb.mxu2 %v5840_v4 }
  0x2b   :  { %1284 = vmatpush.bf16.msrb.mxu3 %v5845_v5  ;;  %912 = vmatpush.bf16.msrb.mxu0 %v5840_v4  ;;  %v3876_v4 = vld [vmem:[%s7605_s0 + $0x108] sm:$0xf] }
  0x2c   :  { %985 = vmatpush.bf16.msrb.mxu1 %v5845_v5  ;;  %v5477_v5 = vld [vmem:[%s7605_s0 + $0x10c] sm:$0xf0] }
  0x2e   :  { %1212 = vmatpush.bf16.msrb.mxu2 %v5854_v6 }
  0x2f   :  { %1285 = vmatpush.bf16.msrb.mxu3 %v5859_v7  ;;  %913 = vmatpush.bf16.msrb.mxu0 %v5854_v6  ;;  %v5476_v6 = vld [vmem:[%s7605_s0 + $0x10c] sm:$0xf] }
  0x30   :  { %986 = vmatpush.bf16.msrb.mxu1 %v5859_v7  ;;  %v3878_v7 = vld [vmem:[%s7605_s0 + $0x110] sm:$0xf0] }
  0x31   :  { %325 = vmatmul.bf16.gmra.mxu0 %v3668_v36  ;;  %624 = vmatmul.bf16.gmra.mxu2 %v3853_v38  ;;  %v3715_v36 = vld [vmem:[%s7605_s0 + $0x70] sm:$0xf]  ;;  %v5458_v38 = vld [vmem:[%s7605_s0 + $0x74] sm:$0xf] }
  0x32   :  { %1213 = vmatpush.bf16.msrb.mxu2 %v5868_v8  ;;  %398 = vmatmul.bf16.gmra.mxu1 %v3672_v37  ;;  %v5459_v37 = vld [vmem:[%s7605_s0 + $0x74] sm:$0xf0] }
  0x33   :  { %1286 = vmatpush.bf16.msrb.mxu3 %v5873_v9  ;;  %914 = vmatpush.bf16.msrb.mxu0 %v5868_v8  ;;  %v3692_v8 = vor.u32 %v5453_v1, %v3691_v0  ;;  %v3716_v44 = vor.u32 %v5459_v37, %v3715_v36  ;;  %v3924_v36 = vld [vmem:[%s7605_s0 + $0x168] sm:$0xf]  ;;  %v5489_v37 = vld [vmem:[%s7605_s0 + $0x16c] sm:$0xf0] }
  0x34   :  { %697 = vmatmul.bf16.gmra.mxu3 %v3857_v39  ;;  %987 = vmatpush.bf16.msrb.mxu1 %v5873_v9  ;;  %v3696_v9 = vor.u32 %v5452_v2, %v3693_v3  ;;  %v3717_v39 = vld [vmem:[%s7605_s0 + $0x78] sm:$0xf0] }
  0x35   :  { %v3720_v45 = vor.u32 %v5458_v38, %v3717_v39  ;;  %v5488_v38 = vld [vmem:[%s7605_s0 + $0x16c] sm:$0xf]  ;;  %v3926_v39 = vld [vmem:[%s7605_s0 + $0x170] sm:$0xf0] }
  0x36   :  { %1214 = vmatpush.bf16.msrb.mxu2 %v5882_v10 }
  0x37   :  { %1287 = vmatpush.bf16.msrb.mxu3 %v5887_v11  ;;  %915 = vmatpush.bf16.msrb.mxu0 %v5882_v10  ;;  %v3877_v10 = vor.u32 %v5477_v5, %v3876_v4 }
  0x38   :  { %988 = vmatpush.bf16.msrb.mxu1 %v5887_v11  ;;  %v3881_v11 = vor.u32 %v5476_v6, %v3878_v7  ;;  %v3731_v6 = vld [vmem:[%s7605_s0 + $0x90] sm:$0xf]  ;;  %v5463_v7 = vld [vmem:[%s7605_s0 + $0x94] sm:$0xf0] }
  0x39   :  { %v3732_v16 = vor.u32 %v5463_v7, %v3731_v6 }
  0x3a   :  { %1215 = vmatpush.bf16.msrb.mxu2 %v5896_v12 }
  0x3b   :  { %1288 = vmatpush.bf16.msrb.mxu3 %v5901_v13  ;;  %916 = vmatpush.bf16.msrb.mxu0 %v5896_v12  ;;  %v3699_v12 = vld [vmem:[%s7605_s0 + $0x50] sm:$0xf] }
  0x3c   :  { %989 = vmatpush.bf16.msrb.mxu1 %v5901_v13  ;;  %v5455_v13 = vld [vmem:[%s7605_s0 + $0x54] sm:$0xf0] }
  0x3d   :  { %v3700_v20 = vor.u32 %v5455_v13, %v3699_v12  ;;  %v5486_v12 = vld [vmem:[%s7605_s0 + $0x15c] sm:$0xf]  ;;  %v3918_v13 = vld [vmem:[%s7605_s0 + $0x160] sm:$0xf0] }
  0x3e   :  { %1216 = vmatpush.bf16.msrb.mxu2 %v5908_v14 }
  0x3f   :  { %1289 = vmatpush.bf16.msrb.mxu3 %v5913_v15  ;;  %917 = vmatpush.bf16.msrb.mxu0 %v5908_v14  ;;  %v5454_v14 = vld [vmem:[%s7605_s0 + $0x54] sm:$0xf] }
  0x40   :  { %990 = vmatpush.bf16.msrb.mxu1 %v5913_v15  ;;  %v3701_v15 = vld [vmem:[%s7605_s0 + $0x58] sm:$0xf0] }
  0x41   :  { %330 = vmatmul.bf16.gmra.mxu0 %v3676_v48  ;;  %629 = vmatmul.bf16.gmra.mxu2 %v3861_v50  ;;  %v3704_v21 = vor.u32 %v5454_v14, %v3701_v15  ;;  %v3723_v48 = vld [vmem:[%s7605_s0 + $0x80] sm:$0xf]  ;;  %v5460_v50 = vld [vmem:[%s7605_s0 + $0x84] sm:$0xf] }
  0x42   :  { %403 = vmatmul.bf16.gmra.mxu1 %v3680_v49  ;;  %v5461_v49 = vld [vmem:[%s7605_s0 + $0x84] sm:$0xf0] }
  0x43   :  { %v3724_v56 = vor.u32 %v5461_v49, %v3723_v48  ;;  %v3929_v48 = vor.u32 %v5488_v38, %v3926_v39 }
  0x44   :  { %702 = vmatmul.bf16.gmra.mxu3 %v3865_v51  ;;  %v3725_v51 = vld [vmem:[%s7605_s0 + $0x88] sm:$0xf0] }
  0x45   :  { %v3728_v57 = vor.u32 %v5460_v50, %v3725_v51 }
  0x51   :  { %335 = vmatmul.bf16.gmra.mxu0 %v3684_v60  ;;  %634 = vmatmul.bf16.gmra.mxu2 %v3869_v62  ;;  %v3909_v60 = vor.u32 %v5485_v53, %v3908_v52 }
  0x52   :  { %408 = vmatmul.bf16.gmra.mxu1 %v3688_v61  ;;  %v3913_v61 = vor.u32 %v5484_v54, %v3910_v55 }
  0x54   :  { %707 = vmatmul.bf16.gmra.mxu3 %v3873_v63 }
  0x61   :  { %340 = vmatmul.bf16.gmra.mxu0 %v3692_v8  ;;  %639 = vmatmul.bf16.gmra.mxu2 %v3877_v10  ;;  %v5462_v8 = vld [vmem:[%s7605_s0 + $0x94] sm:$0xf]  ;;  %v3916_v10 = vld [vmem:[%s7605_s0 + $0x158] sm:$0xf] }
  0x62   :  { %413 = vmatmul.bf16.gmra.mxu1 %v3696_v9  ;;  %v3733_v9 = vld [vmem:[%s7605_s0 + $0x98] sm:$0xf0] }
  0x63   :  { %v3736_v17 = vor.u32 %v5462_v8, %v3733_v9 }
  0x64   :  { %712 = vmatmul.bf16.gmra.mxu3 %v3881_v11  ;;  %v5487_v11 = vld [vmem:[%s7605_s0 + $0x15c] sm:$0xf0] }
  0x71   :  { %345 = vmatmul.bf16.gmra.mxu0 %v3700_v20  ;;  %644 = vmatmul.bf16.gmra.mxu2 %v3885_v22  ;;  %v3921_v22 = vor.u32 %v5486_v12, %v3918_v13 }
  0x72   :  { %418 = vmatmul.bf16.gmra.mxu1 %v3704_v21  ;;  %v3917_v21 = vor.u32 %v5487_v11, %v3916_v10 }
  0x74   :  { %717 = vmatmul.bf16.gmra.mxu3 %v3889_v23 }
  0x81   :  { %350 = vmatmul.bf16.gmra.mxu0 %v3708_v32  ;;  %649 = vmatmul.bf16.gmra.mxu2 %v3893_v34  ;;  %v3739_v32 = vld [vmem:[%s7605_s0 + $0xa0] sm:$0xf]  ;;  %v5464_v34 = vld [vmem:[%s7605_s0 + $0xa4] sm:$0xf] }
  0x82   :  { %423 = vmatmul.bf16.gmra.mxu1 %v3712_v33  ;;  %v5465_v33 = vld [vmem:[%s7605_s0 + $0xa4] sm:$0xf0] }
  0x83   :  { %v3740_v42 = vor.u32 %v5465_v33, %v3739_v32 }
  0x84   :  { %722 = vmatmul.bf16.gmra.mxu3 %v3897_v35  ;;  %v3741_v35 = vld [vmem:[%s7605_s0 + $0xa8] sm:$0xf0] }
  0x85   :  { %v3744_v43 = vor.u32 %v5464_v34, %v3741_v35 }
  0x91   :  { %355 = vmatmul.bf16.gmra.mxu0 %v3716_v44  ;;  %654 = vmatmul.bf16.gmra.mxu2 %v3901_v46 }
  0x92   :  { %428 = vmatmul.bf16.gmra.mxu1 %v3720_v45 }
  0x94   :  { %727 = vmatmul.bf16.gmra.mxu3 %v3905_v47  ;;  %v3925_v47 = vor.u32 %v5489_v37, %v3924_v36 }
  0x9e   :  { %v321_v58 = vpop.f32.mrf.mxu0 }
  0x9f   :  { %v394_v59 = vpop.f32.mrf.mxu1 }
  0xa0   :  { %v6171_v62 = vadd.f32 %v394_v59, %v321_v58  ;;  %v3747_v58 = vld [vmem:[%s7605_s0 + $0xb0] sm:$0xf]  ;;  %v5467_v59 = vld [vmem:[%s7605_s0 + $0xb4] sm:$0xf0] }
  0xa1   :  { %360 = vmatmul.bf16.gmra.mxu0 %v3724_v56  ;;  %659 = vmatmul.bf16.gmra.mxu2 %v3909_v60  ;;  %v5466_v60 = vld [vmem:[%s7605_s0 + $0xb4] sm:$0xf]  ;;  %v3748_v8 = vor.u32 %v5467_v59, %v3747_v58 }
  0xa2   :  { %433 = vmatmul.bf16.gmra.mxu1 %v3728_v57 }
  0xa4   :  { %732 = vmatmul.bf16.gmra.mxu3 %v3913_v61  ;;  %v620_v63 = vpop.f32.mrf.mxu2  ;;  %v3749_v61 = vld [vmem:[%s7605_s0 + $0xb8] sm:$0xf0] }
  0xa5   :  { %v3752_v9 = vor.u32 %v5466_v60, %v3749_v61  ;;  %v3965_v60 = vld [vmem:[%s7605_s0 + $0x190] sm:$0xf]  ;;  %v5493_v61 = vld [vmem:[%s7605_s0 + $0x194] sm:$0xf0] }
  0xa6   :  { %v323_v2 = vpop.f32.mrf.mxu0 }
  0xa7   :  { %v693_v0 = vpop.f32.mrf.mxu3  ;;  %v396_v3 = vpop.f32.mrf.mxu1 }
  0xa8   :  { %v6173_v1 = vadd.f32 %v693_v0, %v620_v63  ;;  %v6175_v4 = vadd.f32 %v396_v3, %v323_v2  ;;  %v3932_v63 = vld [vmem:[%s7605_s0 + $0x178] sm:$0xf]  ;;  %v5491_v0 = vld [vmem:[%s7605_s0 + $0x17c] sm:$0xf0]  ;;  %v5490_v2 = vld [vmem:[%s7605_s0 + $0x17c] sm:$0xf] }
  0xa9   :  { %v3934_v3 = vld [vmem:[%s7605_s0 + $0x180] sm:$0xf0]  ;;  %v3933_v13 = vor.u32 %v5491_v0, %v3932_v63  ;;  %v5492_v63 = vld [vmem:[%s7605_s0 + $0x194] sm:$0xf]  ;;  %v3967_v0 = vld [vmem:[%s7605_s0 + $0x198] sm:$0xf0] }
  0xac   :  { %v622_v14 = vpop.f32.mrf.mxu2 }
  0xae   :  { %v326_v19 = vpop.f32.mrf.mxu0 }
  0xaf   :  { %v695_v15 = vpop.f32.mrf.mxu3  ;;  %v399_v20 = vpop.f32.mrf.mxu1 }
  0xb0   :  { %v6203_v18 = vadd.f32 %v695_v15, %v622_v14  ;;  %v6205_v23 = vadd.f32 %v399_v20, %v326_v19  ;;  %v3937_v14 = vor.u32 %v5490_v2, %v3934_v3  ;;  %v4086_v2 = vld [vmem:[%s7605_s0 + $0x258] sm:$0xf]  ;;  %v5517_v3 = vld [vmem:[%s7605_s0 + $0x25c] sm:$0xf0] }
  0xb1   :  { %365 = vmatmul.bf16.gmra.mxu0 %v3732_v16  ;;  %664 = vmatmul.bf16.gmra.mxu2 %v3917_v21  ;;  %v5561_v16 = vld [vmem:[%s7607_s3 + $0xa8] sm:$0xff] }
  0xb2   :  { %438 = vmatmul.bf16.gmra.mxu1 %v3736_v17 }
  0xb4   :  { %737 = vmatmul.bf16.gmra.mxu3 %v3921_v22  ;;  %v625_v25 = vpop.f32.mrf.mxu2 }
  0xb6   :  { %v328_v28 = vpop.f32.mrf.mxu0 }
  0xb7   :  { %v698_v26 = vpop.f32.mrf.mxu3  ;;  %v401_v29 = vpop.f32.mrf.mxu1 }
  0xb8   :  { %v6209_v27 = vadd.f32 %v698_v26, %v625_v25  ;;  %v6211_v30 = vadd.f32 %v401_v29, %v328_v28  ;;  %v88_v25 = vld [vmem:[%s7605_s0 + $0xc0] sm:$0xff]  ;;  %v3841_v28 = vld [vmem:[%s7605_s0 + $0x188] sm:$0xff] }
  0xb9   :  { %v162_v32 = vunpack.c.l.b16 %v88_v25  ;;  %v163_v33 = vunpack.c.h.b16 %v88_v25  ;;  %v557_v34 = vunpack.c.l.b16 %v3841_v28  ;;  %v558_v35 = vunpack.c.h.b16 %v3841_v28 }
  0xbb   :  { %v188_v38 = vpack.c.b16 %v162_v32, %v162_v32  ;;  %v189_v39 = vpack.c.b16 %v163_v33, %v163_v33 }
  0xbc   :  { %v627_v40 = vpop.f32.mrf.mxu2 }
  0xbe   :  { %v331_v45 = vpop.f32.mrf.mxu0 }
  0xbf   :  { %v700_v41 = vpop.f32.mrf.mxu3  ;;  %v404_v46 = vpop.f32.mrf.mxu1 }
  0xc0   :  { %v6239_v44 = vadd.f32 %v700_v41, %v627_v40  ;;  %v6241_v49 = vadd.f32 %v404_v46, %v331_v45  ;;  %v584_v45 = vpack.c.b16 %v558_v35, %v558_v35 }
  0xc1   :  { %370 = vmatmul.bf16.gmra.mxu0 %v3740_v42  ;;  %669 = vmatmul.bf16.gmra.mxu2 %v3925_v47 }
  0xc2   :  { %443 = vmatmul.bf16.gmra.mxu1 %v3744_v43  ;;  %v583_v43 = vpack.c.b16 %v557_v34, %v557_v34 }
  0xc4   :  { %742 = vmatmul.bf16.gmra.mxu3 %v3929_v48  ;;  %v630_v51 = vpop.f32.mrf.mxu2 }
  0xc6   :  { %v333_v54 = vpop.f32.mrf.mxu0 }
  0xc7   :  { %v703_v52 = vpop.f32.mrf.mxu3  ;;  %v406_v55 = vpop.f32.mrf.mxu1 }
  0xc8   :  { %v6245_v53 = vadd.f32 %v703_v52, %v630_v51  ;;  %v6247_v56 = vadd.f32 %v406_v55, %v333_v54 }
  0xcc   :  { %v632_v6 = vpop.f32.mrf.mxu2 }
  0xce   :  { %v336_v11 = vpop.f32.mrf.mxu0 }
  0xcf   :  { %v705_v7 = vpop.f32.mrf.mxu3  ;;  %v409_v12 = vpop.f32.mrf.mxu1 }
  0xd0   :  { %v6275_v10 = vadd.f32 %v705_v7, %v632_v6  ;;  %v6277_v15 = vadd.f32 %v409_v12, %v336_v11  ;;  %v5516_v6 = vld [vmem:[%s7605_s0 + $0x25c] sm:$0xf]  ;;  %v4088_v7 = vld [vmem:[%s7605_s0 + $0x260] sm:$0xf0]  ;;  %v3966_v11 = vor.u32 %v5493_v61, %v3965_v60  ;;  %v3970_v12 = vor.u32 %v5492_v63, %v3967_v0 }
  0xd1   :  { %375 = vmatmul.bf16.gmra.mxu0 %v3748_v8  ;;  %674 = vmatmul.bf16.gmra.mxu2 %v3933_v13 }
  0xd2   :  { %448 = vmatmul.bf16.gmra.mxu1 %v3752_v9 }
  0xd4   :  { %747 = vmatmul.bf16.gmra.mxu3 %v3937_v14  ;;  %v635_v17 = vpop.f32.mrf.mxu2 }
  0xd6   :  { %v338_v21 = vpop.f32.mrf.mxu0 }
  0xd7   :  { %v708_v19 = vpop.f32.mrf.mxu3  ;;  %v411_v22 = vpop.f32.mrf.mxu1 }
  0xd8   :  { %v6281_v20 = vadd.f32 %v708_v19, %v635_v17  ;;  %v6286_v26 = vadd.f32 %v411_v22, %v338_v21  ;;  %v4087_v19 = vor.u32 %v5517_v3, %v4086_v2  ;;  %v4091_v21 = vor.u32 %v5516_v6, %v4088_v7 }
  0xdc   :  { %v637_v36 = vpop.f32.mrf.mxu2 }
  0xde   :  { %v341_v41 = vpop.f32.mrf.mxu0 }
  0xdf   :  { %v710_v37 = vpop.f32.mrf.mxu3  ;;  %v414_v42 = vpop.f32.mrf.mxu1 }
  0xe0   :  { %v6293_v40 = vadd.f32 %v710_v37, %v637_v36  ;;  %v6295_v46 = vadd.f32 %v414_v42, %v341_v41  ;;  %v5494_v41 = vld [vmem:[%s7605_s0 + $0x1a4] sm:$0xf]  ;;  %v3975_v42 = vld [vmem:[%s7605_s0 + $0x1a8] sm:$0xf0] }
  0xe1   :  { %380 = vmatmul.bf16.gmra.mxu0 %v188_v38  ;;  %679 = vmatmul.bf16.gmra.mxu2 %v583_v43  ;;  %v3973_v38 = vld [vmem:[%s7605_s0 + $0x1a0] sm:$0xf]  ;;  %v4094_v43 = vld [vmem:[%s7605_s0 + $0x268] sm:$0xf]  ;;  %v3978_v61 = vor.u32 %v5494_v41, %v3975_v42  ;;  %v4102_v41 = vld [vmem:[%s7605_s0 + $0x278] sm:$0xf] }
  0xe2   :  { %453 = vmatmul.bf16.gmra.mxu1 %v189_v39  ;;  %v5495_v39 = vld [vmem:[%s7605_s0 + $0x1a4] sm:$0xf0]  ;;  %v5521_v42 = vld [vmem:[%s7605_s0 + $0x27c] sm:$0xf0] }
  0xe3   :  { %v3974_v60 = vor.u32 %v5495_v39, %v3973_v38  ;;  %v5496_v38 = vld [vmem:[%s7605_s0 + $0x1b4] sm:$0xf]  ;;  %v3983_v39 = vld [vmem:[%s7605_s0 + $0x1b8] sm:$0xf0] }
  0xe4   :  { %752 = vmatmul.bf16.gmra.mxu3 %v584_v45  ;;  %v640_v48 = vpop.f32.mrf.mxu2  ;;  %v5519_v45 = vld [vmem:[%s7605_s0 + $0x26c] sm:$0xf0] }
  0xe5   :  { %v4095_v3 = vor.u32 %v5519_v45, %v4094_v43  ;;  %v5520_v43 = vld [vmem:[%s7605_s0 + $0x27c] sm:$0xf]  ;;  %v4104_v45 = vld [vmem:[%s7605_s0 + $0x280] sm:$0xf0] }
  0xe6   :  { %v343_v54 = vpop.f32.mrf.mxu0 }
  0xe7   :  { %v713_v51 = vpop.f32.mrf.mxu3  ;;  %v416_v55 = vpop.f32.mrf.mxu1 }
  0xe8   :  { %v6299_v52 = vadd.f32 %v713_v51, %v640_v48  ;;  %v6301_v58 = vadd.f32 %v416_v55, %v343_v54  ;;  %v5518_v48 = vld [vmem:[%s7605_s0 + $0x26c] sm:$0xf]  ;;  %v4096_v51 = vld [vmem:[%s7605_s0 + $0x270] sm:$0xf0] }
  0xe9   :  { %v4099_v6 = vor.u32 %v5518_v48, %v4096_v51 }
  0xec   :  { %v642_v8 = vpop.f32.mrf.mxu2 }
  0xee   :  { %v346_v14 = vpop.f32.mrf.mxu0 }
  0xef   :  { %v715_v9 = vpop.f32.mrf.mxu3  ;;  %v419_v17 = vpop.f32.mrf.mxu1 }
  0xf0   :  { %v6329_v13 = vadd.f32 %v715_v9, %v642_v8  ;;  %v6331_v22 = vadd.f32 %v419_v17, %v346_v14 }
  0xf1   :  { %918 = vmatmul.bf16.vlgmr.msrb.gmra.mxu0 %v3966_v11  ;;  %1217 = vmatmul.bf16.vlgmr.msrb.gmra.mxu2 %v4087_v19 }
  0xf2   :  { %991 = vmatmul.bf16.vlgmr.msrb.gmra.mxu1 %v3970_v12 }
  0xf4   :  { %1290 = vmatmul.bf16.vlgmr.msrb.gmra.mxu3 %v4091_v21  ;;  %v645_v28 = vpop.f32.mrf.mxu2 }
  0xf6   :  { %v348_v34 = vpop.f32.mrf.mxu0 }
  0xf7   :  { %v718_v32 = vpop.f32.mrf.mxu3  ;;  %v421_v35 = vpop.f32.mrf.mxu1 }
  0xf8   :  { %v6335_v33 = vadd.f32 %v718_v32, %v645_v28  ;;  %v6337_v36 = vadd.f32 %v421_v35, %v348_v34  ;;  %v5555_v28 = vld [vmem:[%s7607_s3 + $0x78] sm:$0xff]  ;;  %v3981_v34 = vld [vmem:[%s7605_s0 + $0x1b0] sm:$0xf] }
  0xf9   :  { %v5563_v32 = vld [vmem:[%s7607_s3 + $0xb8] sm:$0xff]  ;;  %1590 = vmatpush.bf16.msra.mxu0 %v5555_v28 }
  0xfa   :  { %v5497_v35 = vld [vmem:[%s7605_s0 + $0x1b4] sm:$0xf0]  ;;  %1729 = vmatpush.bf16.msra.mxu2 %v5563_v32 }
  0xfc   :  { %v647_v54 = vpop.f32.mrf.mxu2 }
  0xfe   :  { %v351_v0 = vpop.f32.mrf.mxu0 }
  0xff   :  { %v720_v55 = vpop.f32.mrf.mxu3  ;;  %v424_v2 = vpop.f32.mrf.mxu1 }
 0x100   :  { %v6365_v63 = vadd.f32 %v720_v55, %v647_v54  ;;  %v6367_v7 = vadd.f32 %v424_v2, %v351_v0  ;;  %v3982_v54 = vor.u32 %v5497_v35, %v3981_v34  ;;  %v3986_v55 = vor.u32 %v5496_v38, %v3983_v39 }
 0x101   :  { %923 = vmatmul.bf16.gmra.mxu0 %v3974_v60  ;;  %1222 = vmatmul.bf16.gmra.mxu2 %v4095_v3  ;;  %v4103_v2 = vor.u32 %v5521_v42, %v4102_v41  ;;  %v4107_v3 = vor.u32 %v5520_v43, %v4104_v45  ;;  %v3989_v41 = vld [vmem:[%s7605_s0 + $0x1c0] sm:$0xf]  ;;  %v5499_v42 = vld [vmem:[%s7605_s0 + $0x1c4] sm:$0xf0]  ;;  %v5498_v43 = vld [vmem:[%s7605_s0 + $0x1c4] sm:$0xf] }
 0x102   :  { %7640 = vst [vmem:[#allocation2_spill] sm:$0xff] %v6367_v7  ;;  %996 = vmatmul.bf16.gmra.mxu1 %v3978_v61  ;;  %v3991_v45 = vld [vmem:[%s7605_s0 + $0x1c8] sm:$0xf0] }
 0x104   :  { %1295 = vmatmul.bf16.gmra.mxu3 %v4099_v6  ;;  %v650_v9 = vpop.f32.mrf.mxu2 }
 0x106   :  { %v353_v14 = vpop.f32.mrf.mxu0 }
 0x107   :  { %v723_v11 = vpop.f32.mrf.mxu3  ;;  %v426_v17 = vpop.f32.mrf.mxu1 }
 0x108   :  { %v6371_v12 = vadd.f32 %v723_v11, %v650_v9  ;;  %v6373_v19 = vadd.f32 %v426_v17, %v353_v14  ;;  %v5571_v11 = vld [vmem:[%s7607_s3 + $0xf8] sm:$0xff]  ;;  %v5554_v9 = vld [vmem:[%s7607_s3 + $0x70] sm:$0xff] }
 0x109   :  { %v5547_v14 = vld [vmem:[%s7607_s3 + $0x38] sm:$0xff]  ;;  %1808 = vmatpush.bf16.msra.mxu3 %v5571_v11  ;;  %1591 = vmatpush.bf16.msra.mxu0 %v5554_v9  ;;  %v5546_v9 = vld [vmem:[%s7607_s3 + $0x30] sm:$0xff] }
 0x10a   :  { %7641 = vst [vmem:[#allocation3_spill] sm:$0xff] %v6371_v12  ;;  %1651 = vmatpush.bf16.msra.mxu1 %v5547_v14  ;;  %v5588_v12 = vld [vmem:[%s7607_s3 + $0x180] sm:$0xff] }
 0x10b   :  { %7642 = vst [vmem:[#allocation4_spill] sm:$0xff] %v6373_v19  ;;  %v5572_v19 = vld [vmem:[%s7607_s3 + $0x100] sm:$0xff] }
 0x10c   :  { %v652_v48 = vpop.f32.mrf.mxu2 }
 0x10e   :  { %v356_v61 = vpop.f32.mrf.mxu0  ;;  %1652 = vmatpush.bf16.msra.mxu1 %v5546_v9 }
 0x10f   :  { %v725_v51 = vpop.f32.mrf.mxu3  ;;  %v429_v0 = vpop.f32.mrf.mxu1 }
 0x110   :  { %v6407_v60 = vadd.f32 %v725_v51, %v652_v48  ;;  %v6409_v6 = vadd.f32 %v429_v0, %v356_v61  ;;  %v4110_v48 = vld [vmem:[%s7605_s0 + $0x288] sm:$0xf]  ;;  %v5523_v51 = vld [vmem:[%s7605_s0 + $0x28c] sm:$0xf0] }
 0x111   :  { %928 = vmatmul.bf16.gmra.mxu0 %v3982_v54  ;;  %1227 = vmatmul.bf16.gmra.mxu2 %v4103_v2  ;;  %v5522_v54 = vld [vmem:[%s7605_s0 + $0x28c] sm:$0xf]  ;;  %v3990_v2 = vor.u32 %v5499_v42, %v3989_v41 }
 0x112   :  { %7643 = vst [vmem:[#allocation5_spill] sm:$0xff] %v6407_v60  ;;  %1001 = vmatmul.bf16.gmra.mxu1 %v3986_v55  ;;  %v4112_v55 = vld [vmem:[%s7605_s0 + $0x290] sm:$0xf0] }
 0x113   :  { %7644 = vst [vmem:[#allocation6_spill] sm:$0xff] %v6409_v6 }
 0x114   :  { %1300 = vmatmul.bf16.gmra.mxu3 %v4107_v3  ;;  %v655_v17 = vpop.f32.mrf.mxu2  ;;  %v3994_v3 = vor.u32 %v5498_v43, %v3991_v45 }
 0x116   :  { %v358_v34 = vpop.f32.mrf.mxu0 }
 0x117   :  { %v728_v28 = vpop.f32.mrf.mxu3  ;;  %v431_v35 = vpop.f32.mrf.mxu1 }
 0x118   :  { %v6419_v32 = vadd.f32 %v728_v28, %v655_v17  ;;  %v6421_v38 = vadd.f32 %v431_v35, %v358_v34  ;;  %v4111_v28 = vor.u32 %v5523_v51, %v4110_v48  ;;  %v4115_v34 = vor.u32 %v5522_v54, %v4112_v55  ;;  %v5562_v55 = vld [vmem:[%s7607_s3 + $0xb0] sm:$0xff] }
 0x119   :  { %1730 = vmatpush.bf16.msra.mxu2 %v5562_v55 }
 0x11a   :  { %7645 = vst [vmem:[#allocation7_spill] sm:$0xff] %v6419_v32 }
 0x11b   :  { %7646 = vst [vmem:[#allocation8_spill] sm:$0xff] %v6421_v38 }
 0x11c   :  { %v657_v61 = vpop.f32.mrf.mxu2 }
 0x11d   :  { %1731 = vmatpush.bf16.msra.mxu2 %v5561_v16  ;;  %v5505_v16 = vld [vmem:[%s7605_s0 + $0x1f4] sm:$0xf0] }
 0x11e   :  { %v361_v14 = vpop.f32.mrf.mxu0 }
 0x11f   :  { %v730_v0 = vpop.f32.mrf.mxu3  ;;  %v434_v17 = vpop.f32.mrf.mxu1 }
 0x120   :  { %v6449_v11 = vadd.f32 %v730_v0, %v657_v61  ;;  %v6451_v35 = vadd.f32 %v434_v17, %v361_v14  ;;  %v5570_v61 = vld [vmem:[%s7607_s3 + $0xf0] sm:$0xff]  ;;  %v3999_v14 = vld [vmem:[%s7605_s0 + $0x1d8] sm:$0xf0]  ;;  %v4118_v17 = vld [vmem:[%s7605_s0 + $0x298] sm:$0xf] }
 0x121   :  { %933 = vmatmul.bf16.gmra.mxu0 %v3990_v2  ;;  %1232 = vmatmul.bf16.gmra.mxu2 %v4111_v28  ;;  %v3997_v0 = vld [vmem:[%s7605_s0 + $0x1d0] sm:$0xf]  ;;  %v5501_v2 = vld [vmem:[%s7605_s0 + $0x1d4] sm:$0xf0]  ;;  %v5525_v28 = vld [vmem:[%s7605_s0 + $0x29c] sm:$0xf0] }
 0x122   :  { %7647 = vst [vmem:[#allocation9_spill] sm:$0xff] %v6449_v11  ;;  %1006 = vmatmul.bf16.gmra.mxu1 %v3994_v3  ;;  %v5500_v3 = vld [vmem:[%s7605_s0 + $0x1d4] sm:$0xf]  ;;  %1809 = vmatpush.bf16.msra.mxu3 %v5570_v61  ;;  %v4119_v21 = vor.u32 %v5525_v28, %v4118_v17  ;;  %v5553_v17 = vld [vmem:[%s7607_s3 + $0x68] sm:$0xff] }
 0x123   :  { %7648 = vst [vmem:[#allocation10_spill] sm:$0xff] %v6451_v35  ;;  %v4002_v54 = vor.u32 %v5500_v3, %v3999_v14  ;;  %v4126_v28 = vld [vmem:[%s7605_s0 + $0x2a8] sm:$0xf]  ;;  %1592 = vmatpush.bf16.msra.mxu0 %v5553_v17 }
 0x124   :  { %1305 = vmatmul.bf16.gmra.mxu3 %v4115_v34  ;;  %v660_v41 = vpop.f32.mrf.mxu2  ;;  %v5524_v34 = vld [vmem:[%s7605_s0 + $0x29c] sm:$0xf]  ;;  %v5581_v35 = vld [vmem:[%s7607_s3 + $0x148] sm:$0xff] }
 0x125   :  { %v5597_v11 = vld [vmem:[%s7607_s3 + $0x1c8] sm:$0xff] }
 0x126   :  { %v363_v45 = vpop.f32.mrf.mxu0 }
 0x127   :  { %v733_v42 = vpop.f32.mrf.mxu3  ;;  %v436_v48 = vpop.f32.mrf.mxu1 }
 0x128   :  { %v6458_v43 = vadd.f32 %v733_v42, %v660_v41  ;;  %v6460_v51 = vadd.f32 %v436_v48, %v363_v45  ;;  %v4120_v41 = vld [vmem:[%s7605_s0 + $0x2a0] sm:$0xf0]  ;;  %v3998_v48 = vor.u32 %v5501_v2, %v3997_v0 }
 0x129   :  { %v4123_v8 = vor.u32 %v5524_v34, %v4120_v41  ;;  %v5527_v34 = vld [vmem:[%s7605_s0 + $0x2ac] sm:$0xf0]  ;;  %v5526_v41 = vld [vmem:[%s7605_s0 + $0x2ac] sm:$0xf] }
 0x12a   :  { %7649 = vst [vmem:[#allocation11_spill] sm:$0xff] %v6458_v43  ;;  %v4127_v17 = vor.u32 %v5527_v34, %v4126_v28  ;;  %v5592_v43 = vld [vmem:[%s7607_s3 + $0x1a0] sm:$0xff] }
 0x12b   :  { %7650 = vst [vmem:[#allocation12_spill] sm:$0xff] %v6460_v51  ;;  %v5576_v51 = vld [vmem:[%s7607_s3 + $0x120] sm:$0xff] }
 0x12c   :  { %v662_v42 = vpop.f32.mrf.mxu2 }
 0x12e   :  { %v366_v55 = vpop.f32.mrf.mxu0 }
 0x12f   :  { %v735_v45 = vpop.f32.mrf.mxu3  ;;  %v439_v61 = vpop.f32.mrf.mxu1 }
 0x130   :  { %v6497_v39 = vadd.f32 %v735_v45, %v662_v42  ;;  %v6499_v37 = vadd.f32 %v439_v61, %v366_v55  ;;  %v4128_v42 = vld [vmem:[%s7605_s0 + $0x2b0] sm:$0xf0] }
 0x131   :  { %938 = vmatmul.bf16.gmra.mxu0 %v3998_v48  ;;  %1237 = vmatmul.bf16.gmra.mxu2 %v4119_v21  ;;  %v4005_v21 = vld [vmem:[%s7605_s0 + $0x1e0] sm:$0xf]  ;;  %v4131_v14 = vor.u32 %v5526_v41, %v4128_v42 }
 0x132   :  { %7651 = vst [vmem:[#allocation13_spill] sm:$0xff] %v6497_v39  ;;  %1011 = vmatmul.bf16.gmra.mxu1 %v4002_v54  ;;  %v4007_v54 = vld [vmem:[%s7605_s0 + $0x1e8] sm:$0xf0] }
 0x133   :  { %7652 = vst [vmem:[#allocation14_spill] sm:$0xff] %v6499_v37 }
 0x134   :  { %1310 = vmatmul.bf16.gmra.mxu3 %v4123_v8  ;;  %v665_v9 = vpop.f32.mrf.mxu2  ;;  %v5502_v8 = vld [vmem:[%s7605_s0 + $0x1e4] sm:$0xf] }
 0x135   :  { %v4010_v61 = vor.u32 %v5502_v8, %v4007_v54 }
 0x136   :  { %v368_v0 = vpop.f32.mrf.mxu0 }
 0x137   :  { %v738_v59 = vpop.f32.mrf.mxu3  ;;  %v441_v2 = vpop.f32.mrf.mxu1 }
 0x138   :  { %v6503_v47 = vadd.f32 %v738_v59, %v665_v9  ;;  %v6505_v3 = vadd.f32 %v441_v2, %v368_v0  ;;  %v5503_v59 = vld [vmem:[%s7605_s0 + $0x1e4] sm:$0xf0] }
 0x139   :  { %v4006_v55 = vor.u32 %v5503_v59, %v4005_v21  ;;  %v5569_v21 = vld [vmem:[%s7607_s3 + $0xe8] sm:$0xff] }
 0x13a   :  { %7653 = vst [vmem:[#allocation15_spill] sm:$0xff] %v6503_v47  ;;  %v5545_v59 = vld [vmem:[%s7607_s3 + $0x28] sm:$0xff]  ;;  %1810 = vmatpush.bf16.msra.mxu3 %v5569_v21 }
 0x13b   :  { %7654 = vst [vmem:[#allocation16_spill] sm:$0xff] %v6505_v3  ;;  %1653 = vmatpush.bf16.msra.mxu1 %v5545_v59 }
 0x13c   :  { %v667_v45 = vpop.f32.mrf.mxu2 }
 0x13e   :  { %v371_v0 = vpop.f32.mrf.mxu0 }
 0x13f   :  { %v740_v48 = vpop.f32.mrf.mxu3  ;;  %v444_v2 = vpop.f32.mrf.mxu1 }
 0x140   :  { %v6536_v9 = vadd.f32 %v740_v48, %v667_v45  ;;  %v6538_v25 = vadd.f32 %v444_v2, %v371_v0  ;;  %v5504_v48 = vld [vmem:[%s7605_s0 + $0x1f4] sm:$0xf]  ;;  %v5529_v0 = vld [vmem:[%s7605_s0 + $0x2bc] sm:$0xf0]  ;;  %v5528_v2 = vld [vmem:[%s7605_s0 + $0x2bc] sm:$0xf] }
 0x141   :  { %943 = vmatmul.bf16.gmra.mxu0 %v4006_v55  ;;  %1242 = vmatmul.bf16.gmra.mxu2 %v4127_v17  ;;  %v4015_v55 = vld [vmem:[%s7605_s0 + $0x1f8] sm:$0xf0]  ;;  %v4136_v17 = vld [vmem:[%s7605_s0 + $0x2c0] sm:$0xf0] }
 0x142   :  { %7655 = vst [vmem:[#allocation17_spill] sm:$0xff] %v6536_v9  ;;  %1016 = vmatmul.bf16.gmra.mxu1 %v4010_v61  ;;  %v4134_v61 = vld [vmem:[%s7605_s0 + $0x2b8] sm:$0xf]  ;;  %v4139_v57 = vor.u32 %v5528_v2, %v4136_v17  ;;  %v5506_v17 = vld [vmem:[%s7605_s0 + $0x204] sm:$0xf] }
 0x143   :  { %7656 = vst [vmem:[#allocation18_spill] sm:$0xff] %v6538_v25  ;;  %v4135_v29 = vor.u32 %v5529_v0, %v4134_v61 }
 0x144   :  { %1315 = vmatmul.bf16.gmra.mxu3 %v4131_v14  ;;  %v670_v8 = vpop.f32.mrf.mxu2  ;;  %v4013_v14 = vld [vmem:[%s7605_s0 + $0x1f0] sm:$0xf] }
 0x146   :  { %v373_v34 = vpop.f32.mrf.mxu0 }
 0x147   :  { %v743_v54 = vpop.f32.mrf.mxu3  ;;  %v446_v41 = vpop.f32.mrf.mxu1 }
 0x148   :  { %v6551_v28 = vadd.f32 %v743_v54, %v670_v8  ;;  %v6553_v42 = vadd.f32 %v446_v41, %v373_v34  ;;  %v4014_v8 = vor.u32 %v5505_v16, %v4013_v14  ;;  %v4018_v54 = vor.u32 %v5504_v48, %v4015_v55  ;;  %v5552_v14 = vld [vmem:[%s7607_s3 + $0x60] sm:$0xff] }
 0x149   :  { %1593 = vmatpush.bf16.msra.mxu0 %v5552_v14 }
 0x14a   :  { %7657 = vst [vmem:[#allocation19_spill] sm:$0xff] %v6551_v28  ;;  %v5585_v28 = vld [vmem:[%s7607_s3 + $0x168] sm:$0xff] }
 0x14b   :  { %7658 = vst [vmem:[#allocation20_spill] sm:$0xff] %v6553_v42 }
 0x14c   :  { %v672_v21 = vpop.f32.mrf.mxu2 }
 0x14e   :  { %v376_v41 = vpop.f32.mrf.mxu0 }
 0x14f   :  { %v745_v59 = vpop.f32.mrf.mxu3  ;;  %v449_v45 = vpop.f32.mrf.mxu1 }
 0x150   :  { %v6581_v34 = vadd.f32 %v745_v59, %v672_v21  ;;  %v6583_v50 = vadd.f32 %v449_v45, %v376_v41  ;;  %v4023_v21 = vld [vmem:[%s7605_s0 + $0x208] sm:$0xf0]  ;;  %v4142_v59 = vld [vmem:[%s7605_s0 + $0x2c8] sm:$0xf]  ;;  %v4144_v41 = vld [vmem:[%s7605_s0 + $0x2d0] sm:$0xf0] }
 0x151   :  { %948 = vmatmul.bf16.gmra.mxu0 %v4014_v8  ;;  %1247 = vmatmul.bf16.gmra.mxu2 %v4135_v29  ;;  %v5507_v29 = vld [vmem:[%s7605_s0 + $0x204] sm:$0xf0]  ;;  %v5531_v8 = vld [vmem:[%s7605_s0 + $0x2cc] sm:$0xf0] }
 0x152   :  { %7659 = vst [vmem:[#allocation21_spill] sm:$0xff] %v6581_v34  ;;  %1021 = vmatmul.bf16.gmra.mxu1 %v4018_v54  ;;  %v5530_v54 = vld [vmem:[%s7605_s0 + $0x2cc] sm:$0xf]  ;;  %v4143_v24 = vor.u32 %v5531_v8, %v4142_v59  ;;  %v5560_v34 = vld [vmem:[%s7607_s3 + $0xa0] sm:$0xff] }
 0x153   :  { %7660 = vst [vmem:[#allocation22_spill] sm:$0xff] %v6583_v50  ;;  %v4147_v5 = vor.u32 %v5530_v54, %v4144_v41  ;;  %1732 = vmatpush.bf16.msra.mxu2 %v5560_v34  ;;  %v5544_v8 = vld [vmem:[%s7607_s3 + $0x20] sm:$0xff]  ;;  %v5508_v34 = vld [vmem:[%s7605_s0 + $0x214] sm:$0xf]  ;;  %v4031_v54 = vld [vmem:[%s7605_s0 + $0x218] sm:$0xf0] }
 0x154   :  { %1320 = vmatmul.bf16.gmra.mxu3 %v4139_v57  ;;  %v675_v16 = vpop.f32.mrf.mxu2  ;;  %v4021_v57 = vld [vmem:[%s7605_s0 + $0x200] sm:$0xf]  ;;  %v4150_v41 = vld [vmem:[%s7605_s0 + $0x2d8] sm:$0xf]  ;;  %1654 = vmatpush.bf16.msra.mxu1 %v5544_v8 }
 0x156   :  { %v378_v61 = vpop.f32.mrf.mxu0 }
 0x157   :  { %v748_v48 = vpop.f32.mrf.mxu3  ;;  %v451_v0 = vpop.f32.mrf.mxu1 }
 0x158   :  { %v6590_v55 = vadd.f32 %v748_v48, %v675_v16  ;;  %v6592_v45 = vadd.f32 %v451_v0, %v378_v61  ;;  %v4022_v48 = vor.u32 %v5507_v29, %v4021_v57  ;;  %v4026_v61 = vor.u32 %v5506_v17, %v4023_v21  ;;  %v5568_v57 = vld [vmem:[%s7607_s3 + $0xe0] sm:$0xff] }
 0x159   :  { %1811 = vmatpush.bf16.msra.mxu3 %v5568_v57 }
 0x15a   :  { %7661 = vst [vmem:[#allocation23_spill] sm:$0xff] %v6590_v55 }
 0x15b   :  { %7662 = vst [vmem:[#allocation24_spill] sm:$0xff] %v6592_v45 }
 0x15c   :  { %v677_v14 = vpop.f32.mrf.mxu2 }
 0x15e   :  { %v381_v2 = vpop.f32.mrf.mxu0 }
 0x15f   :  { %v750_v16 = vpop.f32.mrf.mxu3  ;;  %v454_v31 = vpop.f32.mrf.mxu1 }
 0x160   :  { %v6620_v0 = vadd.f32 %v750_v16, %v677_v14  ;;  %v6622_v55 = vadd.f32 %v454_v31, %v381_v2  ;;  %v5533_v14 = vld [vmem:[%s7605_s0 + $0x2dc] sm:$0xf0]  ;;  %v5532_v16 = vld [vmem:[%s7605_s0 + $0x2dc] sm:$0xf] }
 0x161   :  { %953 = vmatmul.bf16.gmra.mxu0 %v4022_v48  ;;  %1252 = vmatmul.bf16.gmra.mxu2 %v4143_v24  ;;  %v4029_v24 = vld [vmem:[%s7605_s0 + $0x210] sm:$0xf]  ;;  %v4152_v48 = vld [vmem:[%s7605_s0 + $0x2e0] sm:$0xf0]  ;;  %v4151_v59 = vor.u32 %v5533_v14, %v4150_v41  ;;  %v4039_v14 = vld [vmem:[%s7605_s0 + $0x228] sm:$0xf0] }
 0x162   :  { %7663 = vst [vmem:[#allocation25_spill] sm:$0xff] %v6620_v0  ;;  %1026 = vmatmul.bf16.gmra.mxu1 %v4026_v61  ;;  %v4155_v8 = vor.u32 %v5532_v16, %v4152_v48  ;;  %v5510_v41 = vld [vmem:[%s7605_s0 + $0x224] sm:$0xf]  ;;  %v7666_v16 = vmax.f32 %v6171_v62, %v6173_v1  ;;  %v4160_v62 = vld [vmem:[%s7605_s0 + $0x2f0] sm:$0xf0] }
 0x163   :  { %7664 = vst [vmem:[#allocation26_spill] sm:$0xff] %v6622_v55  ;;  %v5566_v1 = vld [vmem:[%s7607_s3 + $0xd0] sm:$0xff] }
 0x164   :  { %1325 = vmatmul.bf16.gmra.mxu3 %v4147_v5  ;;  %v680_v29 = vpop.f32.mrf.mxu2  ;;  %v5509_v5 = vld [vmem:[%s7605_s0 + $0x214] sm:$0xf0] }
 0x166   :  { %v383_v17 = vpop.f32.mrf.mxu0 }
 0x167   :  { %v753_v31 = vpop.f32.mrf.mxu3  ;;  %v456_v21 = vpop.f32.mrf.mxu1 }
 0x168   :  { %v6632_v2 = vadd.f32 %v753_v31, %v680_v29  ;;  %v4030_v29 = vor.u32 %v5509_v5, %v4029_v24  ;;  %v4034_v31 = vor.u32 %v5508_v34, %v4031_v54  ;;  %v5551_v24 = vld [vmem:[%s7607_s3 + $0x58] sm:$0xff]  ;;  %v4037_v34 = vld [vmem:[%s7605_s0 + $0x220] sm:$0xf]  ;;  %v5511_v54 = vld [vmem:[%s7605_s0 + $0x224] sm:$0xf0] }
 0x169   :  { %v5559_v5 = vld [vmem:[%s7607_s3 + $0x98] sm:$0xff]  ;;  %1594 = vmatpush.bf16.msra.mxu0 %v5551_v24  ;;  %v4042_v24 = vor.u32 %v5510_v41, %v4039_v14  ;;  %v5548_v41 = vld [vmem:[%s7607_s3 + $0x40] sm:$0xff] }
 0x16a   :  { %7665 = vst [vmem:[#allocation27_spill] sm:$0xff] %v6632_v2  ;;  %1733 = vmatpush.bf16.msra.mxu2 %v5559_v5  ;;  %v5556_v14 = vld [vmem:[%s7607_s3 + $0x80] sm:$0xff] }
 0x16c   :  { %v682_v61 = vpop.f32.mrf.mxu2 }
 0x16d   :  { %v5550_v61 = vld [vmem:[%s7607_s3 + $0x50] sm:$0xff] }
 0x16e   :  { %v919_v17 = vpop.f32.mrf.mxu0  ;;  %1595 = vmatpush.bf16.msra.mxu0 %v5550_v61  ;;  %v5557_v61 = vld [vmem:[%s7607_s3 + $0x88] sm:$0xff] }
 0x16f   :  { %v755_v57 = vpop.f32.mrf.mxu3  ;;  %v992_v21 = vpop.f32.mrf.mxu1 }
 0x170   :  { %v993_v50 = vadd.f32 %v992_v21, %v919_v17  ;;  %v5542_v57 = vld [vmem:[%s7607_s3 + $0x10] sm:$0xff] }
 0x171   :  { %958 = vmatmul.bf16.gmra.mxu0 %v4030_v29  ;;  %1257 = vmatmul.bf16.gmra.mxu2 %v4151_v59  ;;  %v5567_v59 = vld [vmem:[%s7607_s3 + $0xd8] sm:$0xff]  ;;  %v5558_v29 = vld [vmem:[%s7607_s3 + $0x90] sm:$0xff] }
 0x172   :  { %1031 = vmatmul.bf16.gmra.mxu1 %v4034_v31  ;;  %1812 = vmatpush.bf16.msra.mxu3 %v5567_v59  ;;  %v5534_v31 = vld [vmem:[%s7605_s0 + $0x2ec] sm:$0xf] }
 0x173   :  { %1734 = vmatpush.bf16.msra.mxu2 %v5558_v29  ;;  %v5587_v29 = vld [vmem:[%s7607_s3 + $0x178] sm:$0xff] }
 0x174   :  { %1330 = vmatmul.bf16.gmra.mxu3 %v4155_v8  ;;  %v1218_v2 = vpop.f32.mrf.mxu2  ;;  %v4038_v8 = vor.u32 %v5511_v54, %v4037_v34  ;;  %v5541_v34 = vld [vmem:[%s7607_s3 + $0x8] sm:$0xff] }
 0x175   :  { %v5565_v54 = vld [vmem:[%s7607_s3 + $0xc8] sm:$0xff] }
 0x176   :  { %v6663_v45 = vpop.f32.mrf.mxu0  ;;  %1813 = vmatpush.bf16.msra.mxu3 %v5566_v1 }
 0x177   :  { %v1291_v55 = vpop.f32.mrf.mxu3  ;;  %v6665_v42 = vpop.f32.mrf.mxu1  ;;  %1735 = vmatpush.bf16.msra.mxu2 %v5557_v61  ;;  %v4045_v61 = vld [vmem:[%s7605_s0 + $0x230] sm:$0xf] }
 0x178   :  { %v1292_v0 = vadd.f32 %v1291_v55, %v1218_v2  ;;  %v5543_v55 = vld [vmem:[%s7607_s3 + $0x18] sm:$0xff] }
 0x179   :  { %1655 = vmatpush.bf16.msra.mxu1 %v5543_v55 }
 0x17a   :  { %v1380_v2 = vmax.f32 %v993_v50, %v1292_v0  ;;  %v4158_v50 = vld [vmem:[%s7605_s0 + $0x2e8] sm:$0xf]  ;;  %v5535_v0 = vld [vmem:[%s7605_s0 + $0x2ec] sm:$0xf0]  ;;  %1814 = vmatpush.bf16.msra.mxu3 %v5565_v54 }
 0x17b   :  { %v4159_v55 = vor.u32 %v5535_v0, %v4158_v50  ;;  %v5540_v50 = vld [vmem:[%s7607_s3] sm:$0xff]  ;;  %1736 = vmatpush.bf16.msra.mxu2 %v5556_v14  ;;  %v5602_v54 = vld [vmem:[%s7607_s3 + $0x1f0] sm:$0xff] }
 0x17c   :  { %v6700_v48 = vmax.f32 %v7666_v16, %v1380_v2  ;;  %v6720_v17 = vpop.f32.mrf.mxu2  ;;  %v4163_v2 = vor.u32 %v5534_v31, %v4160_v62  ;;  %v5549_v16 = vld [vmem:[%s7607_s3 + $0x48] sm:$0xff]  ;;  %v5564_v0 = vld [vmem:[%s7607_s3 + $0xc0] sm:$0xff]  ;;  %v5595_v31 = vld [vmem:[%s7607_s3 + $0x1b8] sm:$0xff] }
 0x17d   :  { %1656 = vmatpush.bf16.msra.mxu1 %v5542_v57  ;;  %1596 = vmatpush.bf16.msra.mxu0 %v5549_v16  ;;  %v5579_v57 = vld [vmem:[%s7607_s3 + $0x138] sm:$0xff]  ;;  %v5594_v16 = vld [vmem:[%s7607_s3 + $0x1b0] sm:$0xff] }
 0x17e   :  { %v6724_v5 = vpop.f32.mrf.mxu0  ;;  %v5603_v62 = vld [vmem:[%s7607_s3 + $0x1f8] sm:$0xff]  ;;  %1815 = vmatpush.bf16.msra.mxu3 %v5564_v0  ;;  %v5512_v14 = vld [vmem:[%s7605_s0 + $0x234] sm:$0xf] }
 0x17f   :  { %v6722_v21 = vpop.f32.mrf.mxu3  ;;  %v6726_v59 = vpop.f32.mrf.mxu1  ;;  %2045 = vmatpush.bf16.msrb.mxu2 %v5595_v31  ;;  %v4166_v0 = vld [vmem:[%s7605_s0 + $0x2f8] sm:$0xf]  ;;  %v4168_v31 = vld [vmem:[%s7605_s0 + $0x300] sm:$0xf0] }
 0x181   :  { %963 = vmatmul.bf16.gmra.mxu0 %v4038_v8  ;;  %1262 = vmatmul.bf16.gmra.mxu2 %v4159_v55 }
 0x182   :  { %1036 = vmatmul.bf16.gmra.mxu1 %v4042_v24  ;;  %1597 = vmatpush.bf16.msra.mxu0 %v5548_v41  ;;  %v5513_v41 = vld [vmem:[%s7605_s0 + $0x234] sm:$0xf0] }
 0x183   :  { %1657 = vmatpush.bf16.msra.mxu1 %v5541_v34  ;;  %2124 = vmatpush.bf16.msrb.mxu3 %v5603_v62  ;;  %v5586_v34 = vld [vmem:[%s7607_s3 + $0x170] sm:$0xff]  ;;  %v5577_v62 = vld [vmem:[%s7607_s3 + $0x128] sm:$0xff]  ;;  %v4046_v3 = vor.u32 %v5513_v41, %v4045_v61  ;;  %v5584_v61 = vld [vmem:[%s7607_s3 + $0x160] sm:$0xff] }
 0x184   :  { %1335 = vmatmul.bf16.gmra.mxu3 %v4163_v2  ;;  %v6764_v1 = vpop.f32.mrf.mxu2  ;;  %v5578_v2 = vld [vmem:[%s7607_s3 + $0x130] sm:$0xff]  ;;  %2046 = vmatpush.bf16.msrb.mxu2 %v5594_v16  ;;  %v5601_v16 = vld [vmem:[%s7607_s3 + $0x1e8] sm:$0xff]  ;;  %v5600_v41 = vld [vmem:[%s7607_s3 + $0x1e0] sm:$0xff] }
 0x186   :  { %1887 = vmatpush.bf16.msrb.mxu0 %v5579_v57  ;;  %v6768_v24 = vpop.f32.mrf.mxu0  ;;  %v5537_v57 = vld [vmem:[%s7605_s0 + $0x2fc] sm:$0xf0] }
 0x187   :  { %v6766_v8 = vpop.f32.mrf.mxu3  ;;  %v6770_v55 = vpop.f32.mrf.mxu1  ;;  %1658 = vmatpush.bf16.msra.mxu1 %v5540_v50  ;;  %v4047_v50 = vld [vmem:[%s7605_s0 + $0x238] sm:$0xf0]  ;;  %2125 = vmatpush.bf16.msrb.mxu3 %v5602_v54 }
 0x188   :  { %v4050_v47 = vor.u32 %v5512_v14, %v4047_v50  ;;  %v5575_v14 = vld [vmem:[%s7607_s3 + $0x118] sm:$0xff] }
 0x189   :  { %v5583_v50 = vld [vmem:[%s7607_s3 + $0x158] sm:$0xff] }
 0x18a   :  { %1888 = vmatpush.bf16.msrb.mxu0 %v5578_v2  ;;  %v5593_v2 = vld [vmem:[%s7607_s3 + $0x1a8] sm:$0xff] }
 0x18b   :  { %1966 = vmatpush.bf16.msrb.mxu1 %v5587_v29  ;;  %v5536_v29 = vld [vmem:[%s7605_s0 + $0x2fc] sm:$0xf]  ;;  %2047 = vmatpush.bf16.msrb.mxu2 %v5593_v2  ;;  %v5598_v2 = vld [vmem:[%s7607_s3 + $0x1d0] sm:$0xff] }
 0x18c   :  { %v6820_v25 = vpop.f32.mrf.mxu2  ;;  %v4171_v54 = vor.u32 %v5536_v29, %v4168_v31  ;;  %2126 = vmatpush.bf16.msrb.mxu3 %v5601_v16  ;;  %v5590_v29 = vld [vmem:[%s7607_s3 + $0x190] sm:$0xff]  ;;  %v4053_v31 = vld [vmem:[%s7605_s0 + $0x240] sm:$0xf]  ;;  %v5515_v16 = vld [vmem:[%s7605_s0 + $0x244] sm:$0xf0] }
 0x18d   :  { %v4054_v38 = vor.u32 %v5515_v16, %v4053_v31  ;;  %v5580_v31 = vld [vmem:[%s7607_s3 + $0x140] sm:$0xff] }
 0x18e   :  { %1889 = vmatpush.bf16.msrb.mxu0 %v5577_v62  ;;  %v6824_v37 = vpop.f32.mrf.mxu0  ;;  %v5582_v62 = vld [vmem:[%s7607_s3 + $0x150] sm:$0xff]  ;;  %v5596_v16 = vld [vmem:[%s7607_s3 + $0x1c0] sm:$0xff] }
 0x18f   :  { %1967 = vmatpush.bf16.msrb.mxu1 %v5586_v34  ;;  %v6822_v9 = vpop.f32.mrf.mxu3  ;;  %v6826_v39 = vpop.f32.mrf.mxu1  ;;  %v4167_v34 = vor.u32 %v5537_v57, %v4166_v0  ;;  %2048 = vmatpush.bf16.msrb.mxu2 %v5592_v43  ;;  %v5574_v57 = vld [vmem:[%s7607_s3 + $0x110] sm:$0xff] }
 0x190   :  { %2127 = vmatpush.bf16.msrb.mxu3 %v5600_v41  ;;  %v5539_v41 = vld [vmem:[%s7605_s0 + $0x30c] sm:$0xf0] }
 0x191   :  { %968 = vmatmul.bf16.gmra.mxu0 %v4046_v3  ;;  %1267 = vmatmul.bf16.gmra.mxu2 %v4167_v34  ;;  %v5514_v34 = vld [vmem:[%s7605_s0 + $0x244] sm:$0xf] }
 0x192   :  { %1041 = vmatmul.bf16.gmra.mxu1 %v4050_v47  ;;  %1890 = vmatpush.bf16.msrb.mxu0 %v5576_v51  ;;  %v5599_v47 = vld [vmem:[%s7607_s3 + $0x1d8] sm:$0xff] }
 0x193   :  { %1968 = vmatpush.bf16.msrb.mxu1 %v5585_v28  ;;  %v5591_v28 = vld [vmem:[%s7607_s3 + $0x198] sm:$0xff] }
 0x194   :  { %1340 = vmatmul.bf16.gmra.mxu3 %v4171_v54  ;;  %v6852_v51 = vpop.f32.mrf.mxu2  ;;  %2049 = vmatpush.bf16.msrb.mxu2 %v5591_v28  ;;  %v4055_v54 = vld [vmem:[%s7605_s0 + $0x248] sm:$0xf0]  ;;  %v4176_v28 = vld [vmem:[%s7605_s0 + $0x310] sm:$0xf0] }
 0x195   :  { %2128 = vmatpush.bf16.msrb.mxu3 %v5599_v47  ;;  %v5589_v47 = vld [vmem:[%s7607_s3 + $0x188] sm:$0xff]  ;;  %v4058_v32 = vor.u32 %v5514_v34, %v4055_v54 }
 0x196   :  { %v6856_v3 = vpop.f32.mrf.mxu0  ;;  %1891 = vmatpush.bf16.msrb.mxu0 %v5575_v14  ;;  %v5538_v14 = vld [vmem:[%s7605_s0 + $0x30c] sm:$0xf] }
 0x197   :  { %1969 = vmatpush.bf16.msrb.mxu1 %v5584_v61  ;;  %v6854_v43 = vpop.f32.mrf.mxu3  ;;  %v6858_v0 = vpop.f32.mrf.mxu1  ;;  %v4174_v61 = vld [vmem:[%s7605_s0 + $0x308] sm:$0xf] }
 0x198   :  { %2050 = vmatpush.bf16.msrb.mxu2 %v5590_v29 }
 0x199   :  { %2129 = vmatpush.bf16.msrb.mxu3 %v5598_v2  ;;  %v4179_v2 = vor.u32 %v5538_v14, %v4176_v28 }
 0x19a   :  { %1892 = vmatpush.bf16.msrb.mxu0 %v5574_v57 }
 0x19b   :  { %1970 = vmatpush.bf16.msrb.mxu1 %v5583_v50  ;;  %v5573_v50 = vld [vmem:[%s7607_s3 + $0x108] sm:$0xff] }
 0x19c   :  { %v6908_v57 = vpop.f32.mrf.mxu2  ;;  %2051 = vmatpush.bf16.msrb.mxu2 %v5589_v47  ;;  %v995_v47 = vadd.f32 %v6665_v42, %v6663_v45  ;;  %v6953_v42 = vld [vmem:[%s7606_s2] ss:$0 sm:$0xff]  ;;  %v7667_v45 = vmax.f32 %v6175_v4, %v6203_v18 }
 0x19d   :  { %2130 = vmatpush.bf16.msrb.mxu3 %v5597_v11  ;;  %v1434_v4 = vadd.f32 %v6953_v42, %v6700_v48  ;;  %v1003_v48 = vadd.f32 %v6826_v39, %v6824_v37  ;;  %v5611_v37 = vld [vmem:[%s7607_s3 + $0x238] sm:$0xff] }
 0x19e   :  { %v6912_v6 = vpop.f32.mrf.mxu0  ;;  %1893 = vmatpush.bf16.msrb.mxu0 %v5573_v50  ;;  %v1299_v50 = vadd.f32 %v6822_v9, %v6820_v25 }
 0x19f   :  { %1971 = vmatpush.bf16.msrb.mxu1 %v5582_v62  ;;  %v6910_v29 = vpop.f32.mrf.mxu3  ;;  %v6914_v60 = vpop.f32.mrf.mxu1  ;;  %v4175_v62 = vor.u32 %v5539_v41, %v4174_v61  ;;  %v3962_v61 = vld [vmem:[%s7605_s0 + $0x250] sm:$0xff]  ;;  %v4083_v41 = vld [vmem:[%s7605_s0 + $0x318] sm:$0xff] }
 0x1a0   :  { %2052 = vmatpush.bf16.msrb.mxu2 %v5588_v12  ;;  %v1155_v14 = vunpack.c.l.b16 %v4083_v41  ;;  %v1156_v28 = vunpack.c.h.b16 %v4083_v41  ;;  %v1294_v12 = vadd.f32 %v6722_v21, %v6720_v17  ;;  %v1000_v41 = vadd.f32 %v6770_v55, %v6768_v24 }
 0x1a1   :  { %973 = vmatmul.bf16.gmra.mxu0 %v4054_v38  ;;  %1272 = vmatmul.bf16.gmra.mxu2 %v4175_v62  ;;  %v856_v38 = vunpack.c.l.b16 %v3962_v61  ;;  %v998_v62 = vadd.f32 %v6726_v59, %v6724_v5  ;;  %v7668_v59 = vmax.f32 %v6205_v23, %v6209_v27  ;;  %v7669_v55 = vmax.f32 %v6211_v30, %v6239_v44 }
 0x1a2   :  { %1046 = vmatmul.bf16.gmra.mxu1 %v4058_v32  ;;  %1894 = vmatpush.bf16.msrb.mxu0 %v5572_v19  ;;  %v857_v32 = vunpack.c.h.b16 %v3962_v61  ;;  %v1297_v19 = vadd.f32 %v6766_v8, %v6764_v1  ;;  %v1181_v1 = vpack.c.b16 %v1155_v14, %v1155_v14  ;;  %v1182_v8 = vpack.c.b16 %v1156_v28, %v1156_v28 }
 0x1a3   :  { %1972 = vmatpush.bf16.msrb.mxu1 %v5581_v35  ;;  %2131 = vmatpush.bf16.msrb.mxu3 %v5596_v16  ;;  %v882_v16 = vpack.c.b16 %v856_v38, %v856_v38  ;;  %v1381_v25 = vmax.f32 %v995_v47, %v1294_v12  ;;  %v1383_v7 = vmax.f32 %v1000_v41, %v1299_v50 }
 0x1a4   :  { %1345 = vmatmul.bf16.gmra.mxu3 %v4179_v2  ;;  %v1233_v34 = vpop.f32.mrf.mxu2  ;;  %v883_v61 = vpack.c.b16 %v857_v32, %v857_v32  ;;  %v1382_v9 = vmax.f32 %v998_v62, %v1297_v19  ;;  %v1302_v30 = vadd.f32 %v6854_v43, %v6852_v51  ;;  %v1304_v44 = vadd.f32 %v6910_v29, %v6908_v57 }
 0x1a5   :  { %v1406_v5 = vmax.f32 %v7667_v45, %v1381_v25  ;;  %v1408_v38 = vmax.f32 %v7669_v55, %v1383_v7  ;;  %v1459_v7 = vmax.f32 %v1434_v4, 0.0  ;;  %v1008_v41 = vadd.f32 %v6914_v60, %v6912_v6  ;;  %v5619_v60 = vld [vmem:[%s7607_s3 + $0x278] sm:$0xff] }
 0x1a6   :  { %v936_v35 = vpop.f32.mrf.mxu0  ;;  %v1407_v24 = vmax.f32 %v7668_v59, %v1382_v9  ;;  %v1384_v43 = vmax.f32 %v1003_v48, %v1302_v30  ;;  %v5616_v48 = vld [vmem:[%s7607_s3 + $0x260] sm:$0xff] }
 0x1a7   :  { %1973 = vmatpush.bf16.msrb.mxu1 %v5580_v31  ;;  %v1306_v54 = vpop.f32.mrf.mxu3  ;;  %v1009_v11 = vpop.f32.mrf.mxu1  ;;  %v1435_v18 = vadd.f32 %v6953_v42, %v1406_v5  ;;  %v1437_v27 = vadd.f32 %v6953_v42, %v1408_v38  ;;  %v7672_v5 = vmax.f32 %v6277_v15, %v6281_v20  ;;  %v5634_v15 = vld [vmem:[%s7607_s3 + $0x2f0] sm:$0xff] }
 0x1a8   :  { %v1436_v23 = vadd.f32 %v6953_v42, %v1407_v24  ;;  %v1307_v47 = vadd.f32 %v1306_v54, %v1233_v34  ;;  %v1010_v57 = vadd.f32 %v1009_v11, %v936_v35  ;;  %v1484_v34 = vpack.c.bf16 %v1459_v7, %v1459_v7  ;;  %v5635_v35 = vld [vmem:[%s7607_s3 + $0x2f8] sm:$0xff]  ;;  %v5610_v24 = vld [vmem:[%s7607_s3 + $0x230] sm:$0xff]  ;;  %v5633_v7 = vld [vmem:[%s7607_s3 + $0x2e8] sm:$0xff] }
 0x1a9   :  { %v1460_v19 = vmax.f32 %v1435_v18, 0.0  ;;  %v1462_v62 = vmax.f32 %v1437_v27, 0.0  ;;  %v7670_v11 = vmax.f32 %v6241_v49, %v6245_v53  ;;  %v5618_v49 = vld [vmem:[%s7607_s3 + $0x270] sm:$0xff]  ;;  %v7673_v53 = vmax.f32 %v6286_v26, %v6293_v40  ;;  %v5609_v40 = vld [vmem:[%s7607_s3 + $0x228] sm:$0xff] }
 0x1aa   :  { %v1461_v50 = vmax.f32 %v1436_v23, 0.0  ;;  %v1386_v9 = vmax.f32 %v1008_v41, %v1307_v47  ;;  %v5617_v27 = vld [vmem:[%s7607_s3 + $0x268] sm:$0xff]  ;;  %v5632_v41 = vld [vmem:[%s7607_s3 + $0x2e0] sm:$0xff] }
 0x1ab   :  { %v1485_v54 = vpack.c.bf16 %v1460_v19, %v1460_v19  ;;  %v1487_v39 = vpack.c.bf16 %v1462_v62, %v1462_v62  ;;  %v5608_v62 = vld [vmem:[%s7607_s3 + $0x220] sm:$0xff] }
 0x1ac   :  { %v1235_v2 = vpop.f32.mrf.mxu2  ;;  %v1486_v6 = vpack.c.bf16 %v1461_v50, %v1461_v50  ;;  %v1411_v59 = vmax.f32 %v7672_v5, %v1386_v9  ;;  %v5630_v5 = vld [vmem:[%s7607_s3 + $0x2d0] sm:$0xff] }
 0x1ae   :  { %v6946_v17 = vpop.f32.mrf.mxu0  ;;  %v1440_v26 = vadd.f32 %v6953_v42, %v1411_v59  ;;  %v7674_v59 = vmax.f32 %v6295_v46, %v6299_v52  ;;  %v5605_v52 = vld [vmem:[%s7607_s3 + $0x208] sm:$0xff] }
 0x1af   :  { %v1308_v31 = vpop.f32.mrf.mxu3  ;;  %v6948_v21 = vpop.f32.mrf.mxu1 }
 0x1b0   :  { %v1465_v47 = vmax.f32 %v1440_v26, 0.0  ;;  %v5612_v26 = vld [vmem:[%s7607_s3 + $0x240] sm:$0xff] }
 0x1b1   :  { %978 = vmatmul.bf16.gmra.mxu0 %v882_v16  ;;  %1277 = vmatmul.bf16.gmra.mxu2 %v1181_v1  ;;  %v1005_v16 = vadd.f32 %v6858_v0, %v6856_v3  ;;  %v5627_v0 = vld [vmem:[%s7607_s3 + $0x2b8] sm:$0xff] }
 0x1b2   :  { %1051 = vmatmul.bf16.gmra.mxu1 %v883_v61  ;;  %v1309_v61 = vadd.f32 %v1308_v31, %v1235_v2  ;;  %v1409_v2 = vmax.f32 %v7670_v11, %v1384_v43  ;;  %v7671_v31 = vmax.f32 %v6247_v56, %v6275_v10  ;;  %v5626_v10 = vld [vmem:[%s7607_s3 + $0x2b0] sm:$0xff] }
 0x1b4   :  { %1350 = vmatmul.bf16.gmra.mxu3 %v1182_v8  ;;  %v6964_v32 = vpop.f32.mrf.mxu2  ;;  %v1385_v8 = vmax.f32 %v1005_v16, %v1304_v44  ;;  %v1387_v3 = vmax.f32 %v1010_v57, %v1309_v61  ;;  %v1438_v38 = vadd.f32 %v6953_v42, %v1409_v2  ;;  %v5625_v44 = vld [vmem:[%s7607_s3 + $0x2a8] sm:$0xff]  ;;  %v5624_v61 = vld [vmem:[%s7607_s3 + $0x2a0] sm:$0xff] }
 0x1b6   :  { %v6968_v28 = vpop.f32.mrf.mxu0  ;;  %v1410_v45 = vmax.f32 %v7671_v31, %v1385_v8  ;;  %v1412_v56 = vmax.f32 %v7673_v53, %v1387_v3  ;;  %v1463_v19 = vmax.f32 %v1438_v38, 0.0  ;;  %v1490_v3 = vpack.c.bf16 %v1465_v47, %v1465_v47  ;;  %v5651_v47 = vld [vmem:[%s7607_s3 + $0x378] sm:$0xff] }
 0x1b7   :  { %v6966_v14 = vpop.f32.mrf.mxu3  ;;  %v6970_v12 = vpop.f32.mrf.mxu1 }
 0x1b8   :  { %v1439_v4 = vadd.f32 %v6953_v42, %v1410_v45  ;;  %v1441_v30 = vadd.f32 %v6953_v42, %v1412_v56  ;;  %v1312_v43 = vadd.f32 %v6966_v14, %v6964_v32  ;;  %v5607_v32 = vld [vmem:[%s7607_s3 + $0x218] sm:$0xff]  ;;  %v5622_v45 = vld [vmem:[%s7607_s3 + $0x290] sm:$0xff] }
 0x1b9   :  { %v5615_v14 = vld [vmem:[%s7607_s3 + $0x258] sm:$0xff] }
 0x1ba   :  { %v1464_v50 = vmax.f32 %v1439_v4, 0.0  ;;  %v1466_v16 = vmax.f32 %v1441_v30, 0.0 }
 0x1bc   :  { %v1240_v1 = vpop.f32.mrf.mxu2  ;;  %v1489_v9 = vpack.c.bf16 %v1464_v50, %v1464_v50  ;;  %v5643_v50 = vld [vmem:[%s7607_s3 + $0x338] sm:$0xff] }
 0x1be   :  { %v6987_v29 = vpop.f32.mrf.mxu0 }
 0x1bf   :  { %v1313_v51 = vpop.f32.mrf.mxu3  ;;  %v6989_v25 = vpop.f32.mrf.mxu1 }
 0x1c0   :  { %v1314_v8 = vadd.f32 %v1313_v51, %v1240_v1  ;;  %v1491_v1 = vpack.c.bf16 %v1466_v16, %v1466_v16  ;;  %v1018_v51 = vadd.f32 %v6989_v25, %v6987_v29  ;;  %v5606_v29 = vld [vmem:[%s7607_s3 + $0x210] sm:$0xff] }
 0x1c1   :  { %1598 = vmatmul.bf16.vlgmr.msra.gmra.mxu0 %v1485_v54  ;;  %1737 = vmatmul.bf16.vlgmr.msra.gmra.mxu2 %v1486_v6  ;;  %v1488_v54 = vpack.c.bf16 %v1463_v19, %v1463_v19  ;;  %v5614_v25 = vld [vmem:[%s7607_s3 + $0x250] sm:$0xff] }
 0x1c2   :  { %1659 = vmatmul.bf16.vlgmr.msra.gmra.mxu1 %v1484_v34  ;;  %2203 = vmatpush.bf16.msra.mxu0 %v5611_v37 }
 0x1c3   :  { %2282 = vmatpush.bf16.msra.mxu1 %v5619_v60  ;;  %2361 = vmatpush.bf16.msra.mxu2 %v5627_v0  ;;  %v1013_v0 = vadd.f32 %v6948_v21, %v6946_v17  ;;  %v5623_v17 = vld [vmem:[%s7607_s3 + $0x298] sm:$0xff] }
 0x1c4   :  { %1816 = vmatmul.bf16.vlgmr.msra.gmra.mxu3 %v1487_v39  ;;  %v1243_v20 = vpop.f32.mrf.mxu2  ;;  %v5631_v21 = vld [vmem:[%s7607_s3 + $0x2d8] sm:$0xff] }
 0x1c5   :  { %2440 = vmatpush.bf16.msra.mxu3 %v5635_v35  ;;  %v1015_v35 = vadd.f32 %v6970_v12, %v6968_v28  ;;  %v1388_v28 = vmax.f32 %v1013_v0, %v1312_v43  ;;  %v5667_v43 = vld [vmem:[%s7607_s3 + $0x3f8] sm:$0xff] }
 0x1c6   :  { %v946_v18 = vpop.f32.mrf.mxu0  ;;  %2204 = vmatpush.bf16.msra.mxu0 %v5610_v24 }
 0x1c7   :  { %v1316_v55 = vpop.f32.mrf.mxu3  ;;  %v1019_v23 = vpop.f32.mrf.mxu1  ;;  %2283 = vmatpush.bf16.msra.mxu1 %v5618_v49  ;;  %2362 = vmatpush.bf16.msra.mxu2 %v5626_v10  ;;  %v1389_v12 = vmax.f32 %v1015_v35, %v1314_v8  ;;  %v1413_v24 = vmax.f32 %v7674_v59, %v1388_v28  ;;  %v7675_v49 = vmax.f32 %v6301_v58, %v6329_v13  ;;  %v5613_v58 = vld [vmem:[%s7607_s3 + $0x248] sm:$0xff]  ;;  %v5648_v28 = vld [vmem:[%s7607_s3 + $0x360] sm:$0xff] }
 0x1c8   :  { %v1317_v37 = vadd.f32 %v1316_v55, %v1243_v20  ;;  %v1020_v11 = vadd.f32 %v1019_v23, %v946_v18  ;;  %v7677_v55 = vmax.f32 %v6337_v36, %v6365_v63  ;;  %v5621_v13 = vld [vmem:[%s7607_s3 + $0x288] sm:$0xff]  ;;  %v5604_v23 = vld [vmem:[%s7607_s3 + $0x200] sm:$0xff] }
 0x1c9   :  { %2441 = vmatpush.bf16.msra.mxu3 %v5634_v15  ;;  %v1414_v53 = vmax.f32 %v7675_v49, %v1389_v12  ;;  %v7676_v15 = vmax.f32 %v6331_v22, %v6335_v33  ;;  %v5629_v22 = vld [vmem:[%s7607_s3 + $0x2c8] sm:$0xff]  ;;  %v1442_v33 = vadd.f32 %v6953_v42, %v1413_v24  ;;  %v5656_v12 = vld [vmem:[%s7607_s3 + $0x3a0] sm:$0xff]  ;;  %v5639_v49 = vld [vmem:[%s7607_s3 + $0x318] sm:$0xff] }
 0x1ca   :  { %2205 = vmatpush.bf16.msra.mxu0 %v5609_v40  ;;  %v1390_v2 = vmax.f32 %v1018_v51, %v1317_v37  ;;  %v5620_v40 = vld [vmem:[%s7607_s3 + $0x280] sm:$0xff] }
 0x1cb   :  { %2284 = vmatpush.bf16.msra.mxu1 %v5617_v27  ;;  %2363 = vmatpush.bf16.msra.mxu2 %v5625_v44  ;;  %v1443_v36 = vadd.f32 %v6953_v42, %v1414_v53  ;;  %v5628_v27 = vld [vmem:[%s7607_s3 + $0x2c0] sm:$0xff]  ;;  %v1467_v30 = vmax.f32 %v1442_v33, 0.0  ;;  %v5647_v53 = vld [vmem:[%s7607_s3 + $0x358] sm:$0xff]  ;;  %v5662_v33 = vld [vmem:[%s7607_s3 + $0x3d0] sm:$0xff] }
 0x1cc   :  { %v1245_v57 = vpop.f32.mrf.mxu2  ;;  %v1415_v20 = vmax.f32 %v7676_v15, %v1390_v2  ;;  %v5664_v2 = vld [vmem:[%s7607_s3 + $0x3e0] sm:$0xff] }
 0x1cd   :  { %2442 = vmatpush.bf16.msra.mxu3 %v5633_v7  ;;  %v1468_v44 = vmax.f32 %v1443_v36, 0.0  ;;  %v1492_v8 = vpack.c.bf16 %v1467_v30, %v1467_v30  ;;  %v7678_v36 = vld [vmem:[#allocation2_spill] sm:$0xff] }
 0x1ce   :  { %v7057_v6 = vpop.f32.mrf.mxu0  ;;  %2206 = vmatpush.bf16.msra.mxu0 %v5608_v62  ;;  %v1444_v63 = vadd.f32 %v6953_v42, %v1415_v20  ;;  %v5655_v20 = vld [vmem:[%s7607_s3 + $0x398] sm:$0xff] }
 0x1cf   :  { %v1318_v34 = vpop.f32.mrf.mxu3  ;;  %v7059_v39 = vpop.f32.mrf.mxu1  ;;  %2285 = vmatpush.bf16.msra.mxu1 %v5616_v48  ;;  %2364 = vmatpush.bf16.msra.mxu2 %v5624_v61 }
 0x1d0   :  { %v1319_v60 = vadd.f32 %v1318_v34, %v1245_v57  ;;  %v1469_v62 = vmax.f32 %v1444_v63, 0.0  ;;  %v1493_v57 = vpack.c.bf16 %v1468_v44, %v1468_v44  ;;  %v5642_v34 = vld [vmem:[%s7607_s3 + $0x330] sm:$0xff]  ;;  %v7679_v63 = vld [vmem:[#allocation3_spill] sm:$0xff]  ;;  %v7684_v44 = vld [vmem:[#allocation6_spill] sm:$0xff] }
 0x1d1   :  { %2443 = vmatpush.bf16.msra.mxu3 %v5632_v41  ;;  %1895 = vmatmul.bf16.vlgmr.msrb.gmra.mxu0 %v1488_v54  ;;  %v5659_v41 = vld [vmem:[%s7607_s3 + $0x3b8] sm:$0xff]  ;;  %v5650_v54 = vld [vmem:[%s7607_s3 + $0x370] sm:$0xff] }
 0x1d2   :  { %1974 = vmatmul.bf16.vlgmr.msrb.gmra.mxu1 %v1489_v9  ;;  %v1391_v31 = vmax.f32 %v1020_v11, %v1319_v60  ;;  %2053 = vmatmul.bf16.vlgmr.msrb.gmra.mxu2 %v1490_v3  ;;  %v1494_v9 = vpack.c.bf16 %v1469_v62, %v1469_v62  ;;  %v5658_v60 = vld [vmem:[%s7607_s3 + $0x3b0] sm:$0xff]  ;;  %v5657_v11 = vld [vmem:[%s7607_s3 + $0x3a8] sm:$0xff]  ;;  %v7688_v62 = vld [vmem:[#allocation9_spill] sm:$0xff] }
 0x1d3   :  { %2207 = vmatpush.bf16.msra.mxu0 %v5607_v32  ;;  %2286 = vmatpush.bf16.msra.mxu1 %v5615_v14  ;;  %v5666_v3 = vld [vmem:[%s7607_s3 + $0x3f0] sm:$0xff]  ;;  %v5641_v32 = vld [vmem:[%s7607_s3 + $0x328] sm:$0xff] }
 0x1d4   :  { %2132 = vmatmul.bf16.vlgmr.msrb.gmra.mxu3 %v1491_v1  ;;  %2365 = vmatpush.bf16.msra.mxu2 %v5623_v17  ;;  %v7097_v56 = vpop.f32.mrf.mxu2  ;;  %v1416_v38 = vmax.f32 %v7677_v55, %v1391_v31  ;;  %v5649_v14 = vld [vmem:[%s7607_s3 + $0x368] sm:$0xff]  ;;  %v5663_v55 = vld [vmem:[%s7607_s3 + $0x3d8] sm:$0xff] }
 0x1d5   :  { %2444 = vmatpush.bf16.msra.mxu3 %v5631_v21  ;;  %v5665_v17 = vld [vmem:[%s7607_s3 + $0x3e8] sm:$0xff]  ;;  %v5640_v21 = vld [vmem:[%s7607_s3 + $0x320] sm:$0xff] }
 0x1d6   :  { %v7107_v4 = vpop.f32.mrf.mxu0  ;;  %v1445_v18 = vadd.f32 %v6953_v42, %v1416_v38 }
 0x1d7   :  { %v7099_v10 = vpop.f32.mrf.mxu3  ;;  %v7109_v46 = vpop.f32.mrf.mxu1  ;;  %2208 = vmatpush.bf16.msra.mxu0 %v5606_v29  ;;  %2287 = vmatpush.bf16.msra.mxu1 %v5614_v25 }
 0x1d8   :  { %2366 = vmatpush.bf16.msra.mxu2 %v5622_v45  ;;  %v1470_v48 = vmax.f32 %v1445_v18, 0.0  ;;  %v1322_v31 = vadd.f32 %v7099_v10, %v7097_v56  ;;  %v1023_v45 = vadd.f32 %v7059_v39, %v7057_v6  ;;  %v7680_v18 = vmax.f32 %v7678_v36, %v7679_v63  ;;  %v5680_v36 = vld [vmem:[%s7607_s3 + $0x460] sm:$0xff] }
 0x1d9   :  { %2445 = vmatpush.bf16.msra.mxu3 %v5630_v5  ;;  %v1025_v5 = vadd.f32 %v7109_v46, %v7107_v4 }
 0x1da   :  { %v1495_v37 = vpack.c.bf16 %v1470_v48, %v1470_v48  ;;  %v1392_v38 = vmax.f32 %v1023_v45, %v1322_v31  ;;  %v5699_v31 = vld [vmem:[%s7607_s3 + $0x4f8] sm:$0xff] }
 0x1db   :  { %2209 = vmatpush.bf16.msra.mxu0 %v5605_v52  ;;  %2288 = vmatpush.bf16.msra.mxu1 %v5613_v58  ;;  %v5638_v58 = vld [vmem:[%s7607_s3 + $0x310] sm:$0xff] }
 0x1dc   :  { %2367 = vmatpush.bf16.msra.mxu2 %v5621_v13  ;;  %v1250_v7 = vpop.f32.mrf.mxu2  ;;  %v5646_v13 = vld [vmem:[%s7607_s3 + $0x350] sm:$0xff] }
 0x1dd   :  { %2446 = vmatpush.bf16.msra.mxu3 %v5629_v22  ;;  %v5654_v22 = vld [vmem:[%s7607_s3 + $0x390] sm:$0xff] }
 0x1de   :  { %v954_v16 = vpop.f32.mrf.mxu0 }
 0x1df   :  { %v1323_v19 = vpop.f32.mrf.mxu3  ;;  %v1027_v61 = vpop.f32.mrf.mxu1  ;;  %2210 = vmatpush.bf16.msra.mxu0 %v5604_v23  ;;  %2289 = vmatpush.bf16.msra.mxu1 %v5612_v26  ;;  %v1417_v23 = vmax.f32 %v7680_v18, %v1392_v38  ;;  %v7681_v26 = vld [vmem:[#allocation4_spill] sm:$0xff]  ;;  %v5681_v38 = vld [vmem:[%s7607_s3 + $0x468] sm:$0xff]  ;;  %v5688_v18 = vld [vmem:[%s7607_s3 + $0x4a0] sm:$0xff] }
 0x1e0   :  { %2368 = vmatpush.bf16.msra.mxu2 %v5620_v40  ;;  %v1324_v29 = vadd.f32 %v1323_v19, %v1250_v7  ;;  %v1028_v56 = vadd.f32 %v1027_v61, %v954_v16  ;;  %v7682_v40 = vld [vmem:[#allocation5_spill] sm:$0xff]  ;;  %v7685_v7 = vld [vmem:[#allocation7_spill] sm:$0xff] }
 0x1e1   :  { %2447 = vmatpush.bf16.msra.mxu3 %v5628_v27  ;;  %v7683_v27 = vmax.f32 %v7681_v26, %v7682_v40  ;;  %v7686_v19 = vmax.f32 %v7684_v44, %v7685_v7  ;;  %v5671_v7 = vld [vmem:[%s7607_s3 + $0x418] sm:$0xff] }
 0x1e2   :  { %2211 = vmatmul.bf16.vlgmr.msra.gmra.mxu0 %v1492_v8  ;;  %2290 = vmatmul.bf16.vlgmr.msra.gmra.mxu1 %v1493_v57  ;;  %v1393_v4 = vmax.f32 %v1025_v5, %v1324_v29  ;;  %v5645_v8 = vld [vmem:[%s7607_s3 + $0x348] sm:$0xff] }
 0x1e3   :  { %2519 = vmatpush.bf16.msrb.mxu0 %v5643_v50  ;;  %2598 = vmatpush.bf16.msrb.mxu1 %v5651_v47  ;;  %v7687_v47 = vld [vmem:[#allocation8_spill] sm:$0xff] }
 0x1e4   :  { %2677 = vmatpush.bf16.msrb.mxu2 %v5659_v41  ;;  %2448 = vmatmul.bf16.vlgmr.msra.gmra.mxu3 %v1495_v37  ;;  %v1253_v0 = vpop.f32.mrf.mxu2  ;;  %v1418_v30 = vmax.f32 %v7683_v27, %v1393_v4  ;;  %v7689_v48 = vmax.f32 %v7687_v47, %v7688_v62  ;;  %v1446_v37 = vadd.f32 %v6953_v42, %v1417_v23  ;;  %v5689_v4 = vld [vmem:[%s7607_s3 + $0x4a8] sm:$0xff]  ;;  %v5696_v23 = vld [vmem:[%s7607_s3 + $0x4e0] sm:$0xff] }
 0x1e5   :  { %2756 = vmatpush.bf16.msrb.mxu3 %v5667_v43  ;;  %2369 = vmatmul.bf16.vlgmr.msra.gmra.mxu2 %v1494_v9  ;;  %v5637_v43 = vld [vmem:[%s7607_s3 + $0x308] sm:$0xff] }
 0x1e6   :  { %v956_v1 = vpop.f32.mrf.mxu0  ;;  %v5661_v9 = vld [vmem:[%s7607_s3 + $0x3c8] sm:$0xff] }
 0x1e7   :  { %2520 = vmatpush.bf16.msrb.mxu0 %v5642_v34  ;;  %2599 = vmatpush.bf16.msrb.mxu1 %v5650_v54  ;;  %v1326_v35 = vpop.f32.mrf.mxu3  ;;  %v1029_v51 = vpop.f32.mrf.mxu1  ;;  %v5653_v54 = vld [vmem:[%s7607_s3 + $0x388] sm:$0xff] }
 0x1e8   :  { %2678 = vmatpush.bf16.msrb.mxu2 %v5658_v60  ;;  %v1327_v25 = vadd.f32 %v1326_v35, %v1253_v0  ;;  %v1030_v10 = vadd.f32 %v1029_v51, %v956_v1  ;;  %v1447_v60 = vadd.f32 %v6953_v42, %v1418_v30  ;;  %v5636_v35 = vld [vmem:[%s7607_s3 + $0x300] sm:$0xff]  ;;  %v1471_v51 = vmax.f32 %v1446_v37, 0.0 }
 0x1e9   :  { %2757 = vmatpush.bf16.msrb.mxu3 %v5666_v3  ;;  %v5660_v1 = vld [vmem:[%s7607_s3 + $0x3c0] sm:$0xff] }
 0x1ea   :  { %v1394_v46 = vmax.f32 %v1028_v56, %v1327_v25 }
 0x1eb   :  { %2521 = vmatpush.bf16.msrb.mxu0 %v5641_v32  ;;  %2600 = vmatpush.bf16.msrb.mxu1 %v5649_v14  ;;  %v5644_v32 = vld [vmem:[%s7607_s3 + $0x340] sm:$0xff] }
 0x1ec   :  { %2679 = vmatpush.bf16.msrb.mxu2 %v5657_v11  ;;  %v1255_v59 = vpop.f32.mrf.mxu2  ;;  %v1419_v50 = vmax.f32 %v7686_v19, %v1394_v46  ;;  %v5652_v14 = vld [vmem:[%s7607_s3 + $0x380] sm:$0xff]  ;;  %v1472_v11 = vmax.f32 %v1447_v60, 0.0  ;;  %v5697_v46 = vld [vmem:[%s7607_s3 + $0x4e8] sm:$0xff]  ;;  %v5679_v19 = vld [vmem:[%s7607_s3 + $0x458] sm:$0xff] }
 0x1ed   :  { %2758 = vmatpush.bf16.msrb.mxu3 %v5665_v17  ;;  %v5675_v17 = vld [vmem:[%s7607_s3 + $0x438] sm:$0xff] }
 0x1ee   :  { %v7199_v39 = vpop.f32.mrf.mxu0  ;;  %v1448_v3 = vadd.f32 %v6953_v42, %v1419_v50 }
 0x1ef   :  { %2522 = vmatpush.bf16.msrb.mxu0 %v5640_v21  ;;  %2601 = vmatpush.bf16.msrb.mxu1 %v5648_v28  ;;  %v1328_v24 = vpop.f32.mrf.mxu3  ;;  %v7201_v15 = vpop.f32.mrf.mxu1  ;;  %v5683_v21 = vld [vmem:[%s7607_s3 + $0x478] sm:$0xff] }
 0x1f0   :  { %2680 = vmatpush.bf16.msrb.mxu2 %v5656_v12  ;;  %v1329_v6 = vadd.f32 %v1328_v24, %v1255_v59  ;;  %v1473_v28 = vmax.f32 %v1448_v3, 0.0  ;;  %v1496_v59 = vpack.c.bf16 %v1471_v51, %v1471_v51  ;;  %v1497_v24 = vpack.c.bf16 %v1472_v11, %v1472_v11  ;;  %v7696_v11 = vld [vmem:[#allocation14_spill] sm:$0xff] }
 0x1f1   :  { %2759 = vmatpush.bf16.msrb.mxu3 %v5664_v2  ;;  %v5691_v2 = vld [vmem:[%s7607_s3 + $0x4b8] sm:$0xff]  ;;  %v1033_v27 = vadd.f32 %v7201_v15, %v7199_v39 }
 0x1f2   :  { %v1395_v52 = vmax.f32 %v1030_v10, %v1329_v6  ;;  %v1498_v56 = vpack.c.bf16 %v1473_v28, %v1473_v28  ;;  %v5690_v6 = vld [vmem:[%s7607_s3 + $0x4b0] sm:$0xff]  ;;  %v5687_v39 = vld [vmem:[%s7607_s3 + $0x498] sm:$0xff] }
 0x1f3   :  { %2523 = vmatpush.bf16.msrb.mxu0 %v5639_v49  ;;  %2602 = vmatpush.bf16.msrb.mxu1 %v5647_v53  ;;  %v5674_v49 = vld [vmem:[%s7607_s3 + $0x430] sm:$0xff]  ;;  %v5695_v15 = vld [vmem:[%s7607_s3 + $0x4d8] sm:$0xff] }
 0x1f4   :  { %2681 = vmatpush.bf16.msrb.mxu2 %v5655_v20  ;;  %v1420_v16 = vmax.f32 %v7689_v48, %v1395_v52  ;;  %v7233_v61 = vpop.f32.mrf.mxu2  ;;  %v5682_v53 = vld [vmem:[%s7607_s3 + $0x470] sm:$0xff] }
 0x1f5   :  { %2760 = vmatpush.bf16.msrb.mxu3 %v5663_v55  ;;  %v5698_v20 = vld [vmem:[%s7607_s3 + $0x4f0] sm:$0xff]  ;;  %v5673_v55 = vld [vmem:[%s7607_s3 + $0x428] sm:$0xff] }
 0x1f6   :  { %v7243_v57 = vpop.f32.mrf.mxu0  ;;  %v1449_v0 = vadd.f32 %v6953_v42, %v1420_v16 }
 0x1f7   :  { %2524 = vmatpush.bf16.msrb.mxu0 %v5638_v58  ;;  %2603 = vmatpush.bf16.msrb.mxu1 %v5646_v13  ;;  %v7235_v41 = vpop.f32.mrf.mxu3  ;;  %v7245_v34 = vpop.f32.mrf.mxu1 }
 0x1f8   :  { %2682 = vmatpush.bf16.msrb.mxu2 %v5654_v22  ;;  %v1474_v12 = vmax.f32 %v1449_v0, 0.0  ;;  %v1332_v63 = vadd.f32 %v7235_v41, %v7233_v61  ;;  %v1035_v30 = vadd.f32 %v7245_v34, %v7243_v57  ;;  %v5670_v57 = vld [vmem:[%s7607_s3 + $0x410] sm:$0xff] }
 0x1f9   :  { %2761 = vmatpush.bf16.msrb.mxu3 %v5662_v33  ;;  %v5672_v33 = vld [vmem:[%s7607_s3 + $0x420] sm:$0xff]  ;;  %v5678_v34 = vld [vmem:[%s7607_s3 + $0x450] sm:$0xff] }
 0x1fa   :  { %v1499_v10 = vpack.c.bf16 %v1474_v12, %v1474_v12  ;;  %v1396_v50 = vmax.f32 %v1033_v27, %v1332_v63  ;;  %v5686_v0 = vld [vmem:[%s7607_s3 + $0x490] sm:$0xff]  ;;  %v5715_v63 = vld [vmem:[%s7607_s3 + $0x578] sm:$0xff] }
 0x1fb   :  { %2525 = vmatpush.bf16.msrb.mxu0 %v5637_v43  ;;  %2604 = vmatpush.bf16.msrb.mxu1 %v5645_v8  ;;  %v7699_v12 = vld [vmem:[#allocation16_spill] sm:$0xff] }
 0x1fc   :  { %2683 = vmatpush.bf16.msrb.mxu2 %v5653_v54  ;;  %v1260_v29 = vpop.f32.mrf.mxu2  ;;  %v7690_v54 = vld [vmem:[#allocation10_spill] sm:$0xff] }
 0x1fd   :  { %2762 = vmatpush.bf16.msrb.mxu3 %v5661_v9  ;;  %v7691_v9 = vld [vmem:[#allocation11_spill] sm:$0xff] }
 0x1fe   :  { %v964_v45 = vpop.f32.mrf.mxu0  ;;  %v7692_v37 = vmax.f32 %v7690_v54, %v7691_v9  ;;  %v5704_v54 = vld [vmem:[%s7607_s3 + $0x520] sm:$0xff] }
 0x1ff   :  { %2526 = vmatpush.bf16.msrb.mxu0 %v5636_v35  ;;  %2605 = vmatpush.bf16.msrb.mxu1 %v5644_v32  ;;  %v1333_v25 = vpop.f32.mrf.mxu3  ;;  %v1037_v5 = vpop.f32.mrf.mxu1  ;;  %v5694_v35 = vld [vmem:[%s7607_s3 + $0x4d0] sm:$0xff] }
 0x200   :  { %2684 = vmatpush.bf16.msrb.mxu2 %v5652_v14  ;;  %v1334_v26 = vadd.f32 %v1333_v25, %v1260_v29  ;;  %v1038_v44 = vadd.f32 %v1037_v5, %v964_v45  ;;  %v1421_v60 = vmax.f32 %v7692_v37, %v1396_v50  ;;  %v7693_v32 = vld [vmem:[#allocation12_spill] sm:$0xff]  ;;  %v7694_v14 = vld [vmem:[#allocation13_spill] sm:$0xff]  ;;  %v5669_v25 = vld [vmem:[%s7607_s3 + $0x408] sm:$0xff] }
 0x201   :  { %2763 = vmatpush.bf16.msrb.mxu3 %v5660_v1  ;;  %v7695_v1 = vmax.f32 %v7693_v32, %v7694_v14  ;;  %v5677_v45 = vld [vmem:[%s7607_s3 + $0x448] sm:$0xff]  ;;  %v5714_v50 = vld [vmem:[%s7607_s3 + $0x570] sm:$0xff]  ;;  %v5712_v37 = vld [vmem:[%s7607_s3 + $0x560] sm:$0xff] }
 0x202   :  { %2527 = vmatmul.bf16.vlgmr.msrb.gmra.mxu0 %v1496_v59  ;;  %2606 = vmatmul.bf16.vlgmr.msrb.gmra.mxu1 %v1497_v24  ;;  %v1397_v47 = vmax.f32 %v1035_v30, %v1334_v26  ;;  %v1450_v5 = vadd.f32 %v6953_v42, %v1421_v60  ;;  %v5685_v24 = vld [vmem:[%s7607_s3 + $0x488] sm:$0xff]  ;;  %v5731_v30 = vld [vmem:[%s7607_s3 + $0x5f8] sm:$0xff]  ;;  %v5720_v60 = vld [vmem:[%s7607_s3 + $0x5a0] sm:$0xff] }
 0x203   :  { %2835 = vmatpush.bf16.msra.mxu0 %v5675_v17  ;;  %2914 = vmatpush.bf16.msra.mxu1 %v5683_v21  ;;  %v7697_v17 = vld [vmem:[#allocation15_spill] sm:$0xff] }
 0x204   :  { %2993 = vmatpush.bf16.msra.mxu2 %v5691_v2  ;;  %2764 = vmatmul.bf16.vlgmr.msrb.gmra.mxu3 %v1499_v10  ;;  %v1263_v52 = vpop.f32.mrf.mxu2  ;;  %v1422_v51 = vmax.f32 %v7695_v1, %v1397_v47  ;;  %v7698_v21 = vmax.f32 %v7696_v11, %v7697_v17  ;;  %v7700_v2 = vld [vmem:[#allocation17_spill] sm:$0xff] }
 0x205   :  { %3072 = vmatpush.bf16.msra.mxu3 %v5699_v31  ;;  %2685 = vmatmul.bf16.vlgmr.msrb.gmra.mxu2 %v1498_v56  ;;  %v7701_v31 = vmax.f32 %v7699_v12, %v7700_v2  ;;  %v5703_v11 = vld [vmem:[%s7607_s3 + $0x518] sm:$0xff] }
 0x206   :  { %v966_v13 = vpop.f32.mrf.mxu0  ;;  %v5727_v2 = vld [vmem:[%s7607_s3 + $0x5d8] sm:$0xff] }
 0x207   :  { %2836 = vmatpush.bf16.msra.mxu0 %v5674_v49  ;;  %2915 = vmatpush.bf16.msra.mxu1 %v5682_v53  ;;  %v1336_v58 = vpop.f32.mrf.mxu3  ;;  %v1039_v22 = vpop.f32.mrf.mxu1  ;;  %v5693_v49 = vld [vmem:[%s7607_s3 + $0x4c8] sm:$0xff]  ;;  %v1451_v53 = vadd.f32 %v6953_v42, %v1422_v51  ;;  %v5728_v51 = vld [vmem:[%s7607_s3 + $0x5e0] sm:$0xff] }
 0x208   :  { %2994 = vmatpush.bf16.msra.mxu2 %v5690_v6  ;;  %v1337_v40 = vadd.f32 %v1336_v58, %v1263_v52  ;;  %v1040_v61 = vadd.f32 %v1039_v22, %v966_v13  ;;  %v5684_v58 = vld [vmem:[%s7607_s3 + $0x480] sm:$0xff] }
 0x209   :  { %3073 = vmatpush.bf16.msra.mxu3 %v5698_v20  ;;  %v5692_v13 = vld [vmem:[%s7607_s3 + $0x4c0] sm:$0xff]  ;;  %v1476_v22 = vmax.f32 %v1451_v53, 0.0 }
 0x20a   :  { %v1398_v62 = vmax.f32 %v1038_v44, %v1337_v40 }
 0x20b   :  { %2837 = vmatpush.bf16.msra.mxu0 %v5673_v55  ;;  %2916 = vmatpush.bf16.msra.mxu1 %v5681_v38  ;;  %v5668_v38 = vld [vmem:[%s7607_s3 + $0x400] sm:$0xff]  ;;  %v1501_v40 = vpack.c.bf16 %v1476_v22, %v1476_v22 }
 0x20c   :  { %2995 = vmatpush.bf16.msra.mxu2 %v5689_v4  ;;  %v1265_v48 = vpop.f32.mrf.mxu2  ;;  %v1423_v28 = vmax.f32 %v7698_v21, %v1398_v62  ;;  %v5676_v4 = vld [vmem:[%s7607_s3 + $0x440] sm:$0xff]  ;;  %v5730_v62 = vld [vmem:[%s7607_s3 + $0x5f0] sm:$0xff] }
 0x20d   :  { %3074 = vmatpush.bf16.msra.mxu3 %v5697_v46  ;;  %v1475_v46 = vmax.f32 %v1450_v5, 0.0  ;;  %v7703_v5 = vld [vmem:[#allocation19_spill] sm:$0xff] }
 0x20e   :  { %v7335_v43 = vpop.f32.mrf.mxu0  ;;  %v1452_v56 = vadd.f32 %v6953_v42, %v1423_v28 }
 0x20f   :  { %2838 = vmatpush.bf16.msra.mxu0 %v5672_v33  ;;  %2917 = vmatpush.bf16.msra.mxu1 %v5680_v36  ;;  %v1338_v16 = vpop.f32.mrf.mxu3  ;;  %v7337_v8 = vpop.f32.mrf.mxu1  ;;  %v5707_v36 = vld [vmem:[%s7607_s3 + $0x538] sm:$0xff] }
 0x210   :  { %2996 = vmatpush.bf16.msra.mxu2 %v5688_v18  ;;  %v1339_v41 = vadd.f32 %v1338_v16, %v1265_v48  ;;  %v1477_v33 = vmax.f32 %v1452_v56, 0.0  ;;  %v5723_v18 = vld [vmem:[%s7607_s3 + $0x5b8] sm:$0xff]  ;;  %v5705_v48 = vld [vmem:[%s7607_s3 + $0x528] sm:$0xff]  ;;  %v1043_v32 = vadd.f32 %v7337_v8, %v7335_v43  ;;  %v5710_v56 = vld [vmem:[%s7607_s3 + $0x550] sm:$0xff] }
 0x211   :  { %3075 = vmatpush.bf16.msra.mxu3 %v5696_v23  ;;  %v1500_v23 = vpack.c.bf16 %v1475_v46, %v1475_v46  ;;  %v5713_v16 = vld [vmem:[%s7607_s3 + $0x568] sm:$0xff]  ;;  %v5711_v43 = vld [vmem:[%s7607_s3 + $0x558] sm:$0xff] }
 0x212   :  { %v1399_v3 = vmax.f32 %v1040_v61, %v1339_v41  ;;  %v1502_v27 = vpack.c.bf16 %v1477_v33, %v1477_v33  ;;  %v5721_v61 = vld [vmem:[%s7607_s3 + $0x5a8] sm:$0xff]  ;;  %v5719_v8 = vld [vmem:[%s7607_s3 + $0x598] sm:$0xff] }
 0x213   :  { %2839 = vmatpush.bf16.msra.mxu0 %v5671_v7  ;;  %2918 = vmatpush.bf16.msra.mxu1 %v5679_v19  ;;  %v5706_v19 = vld [vmem:[%s7607_s3 + $0x530] sm:$0xff]  ;;  %v5729_v41 = vld [vmem:[%s7607_s3 + $0x5e8] sm:$0xff] }
 0x214   :  { %2997 = vmatpush.bf16.msra.mxu2 %v5687_v39  ;;  %v1424_v29 = vmax.f32 %v7701_v31, %v1399_v3  ;;  %v1268_v10 = vpop.f32.mrf.mxu2  ;;  %v5722_v39 = vld [vmem:[%s7607_s3 + $0x5b0] sm:$0xff] }
 0x215   :  { %3076 = vmatpush.bf16.msra.mxu3 %v5695_v15 }
 0x216   :  { %v1453_v59 = vadd.f32 %v6953_v42, %v1424_v29  ;;  %v7379_v20 = vpop.f32.mrf.mxu0 }
 0x217   :  { %2840 = vmatpush.bf16.msra.mxu0 %v5670_v57  ;;  %2919 = vmatpush.bf16.msra.mxu1 %v5678_v34  ;;  %v1341_v6 = vpop.f32.mrf.mxu3  ;;  %v7381_v55 = vpop.f32.mrf.mxu1 }
 0x218   :  { %2998 = vmatpush.bf16.msra.mxu2 %v5686_v0  ;;  %v1478_v52 = vmax.f32 %v1453_v59, 0.0  ;;  %v1342_v9 = vadd.f32 %v1341_v6, %v1268_v10  ;;  %v1045_v1 = vadd.f32 %v7381_v55, %v7379_v20  ;;  %v5718_v10 = vld [vmem:[%s7607_s3 + $0x590] sm:$0xff] }
 0x219   :  { %3077 = vmatpush.bf16.msra.mxu3 %v5694_v35  ;;  %v7705_v55 = vld [vmem:[#allocation20_spill] sm:$0xff] }
 0x21a   :  { %v1503_v26 = vpack.c.bf16 %v1478_v52, %v1478_v52  ;;  %v1400_v17 = vmax.f32 %v1043_v32, %v1342_v9  ;;  %v7708_v52 = vld [vmem:[#allocation22_spill] sm:$0xff] }
 0x21b   :  { %2841 = vmatpush.bf16.msra.mxu0 %v5669_v25  ;;  %2920 = vmatpush.bf16.msra.mxu1 %v5677_v45  ;;  %v5702_v25 = vld [vmem:[%s7607_s3 + $0x510] sm:$0xff]  ;;  %v7702_v45 = vld [vmem:[#allocation18_spill] sm:$0xff] }
 0x21c   :  { %2999 = vmatpush.bf16.msra.mxu2 %v5685_v24  ;;  %v1270_v44 = vpop.f32.mrf.mxu2  ;;  %v7704_v59 = vmax.f32 %v7702_v45, %v7703_v5  ;;  %v5735_v45 = vld [vmem:[%s7607_s3 + $0x618] sm:$0xff] }
 0x21d   :  { %3078 = vmatpush.bf16.msra.mxu3 %v5693_v49 }
 0x21e   :  { %v974_v15 = vpop.f32.mrf.mxu0  ;;  %v1425_v24 = vmax.f32 %v7704_v59, %v1400_v17  ;;  %v5737_v17 = vld [vmem:[%s7607_s3 + $0x628] sm:$0xff] }
 0x21f   :  { %2842 = vmatpush.bf16.msra.mxu0 %v5668_v38  ;;  %2921 = vmatpush.bf16.msra.mxu1 %v5676_v4  ;;  %v1343_v7 = vpop.f32.mrf.mxu3  ;;  %v1047_v47 = vpop.f32.mrf.mxu1  ;;  %v7706_v38 = vld [vmem:[#allocation21_spill] sm:$0xff] }
 0x220   :  { %3000 = vmatpush.bf16.msra.mxu2 %v5684_v58  ;;  %v1344_v35 = vadd.f32 %v1343_v7, %v1270_v44  ;;  %v1048_v21 = vadd.f32 %v1047_v47, %v974_v15  ;;  %v7707_v4 = vmax.f32 %v7705_v55, %v7706_v38  ;;  %v7709_v58 = vld [vmem:[#allocation23_spill] sm:$0xff] }
 0x221   :  { %3079 = vmatpush.bf16.msra.mxu3 %v5692_v13  ;;  %v7710_v13 = vmax.f32 %v7708_v52, %v7709_v58  ;;  %v5717_v44 = vld [vmem:[%s7607_s3 + $0x588] sm:$0xff]  ;;  %v5760_v52 = vld [vmem:[%s7606_s2] ss:$0 sm:$0xff] }
 0x222   :  { %2843 = vmatmul.bf16.vlgmr.msra.gmra.mxu0 %v1500_v23  ;;  %2922 = vmatmul.bf16.vlgmr.msra.gmra.mxu1 %v1501_v40  ;;  %v1401_v28 = vmax.f32 %v1045_v1, %v1344_v35  ;;  %v7711_v23 = vld [vmem:[#allocation24_spill] sm:$0xff] }
 0x223   :  { %3151 = vmatpush.bf16.msrb.mxu0 %v5707_v36  ;;  %3230 = vmatpush.bf16.msrb.mxu1 %v5715_v63  ;;  %v5726_v36 = vld [vmem:[%s7607_s3 + $0x5d0] sm:$0xff]  ;;  %v5701_v63 = vld [vmem:[%s7607_s3 + $0x508] sm:$0xff] }
 0x224   :  { %3309 = vmatpush.bf16.msrb.mxu2 %v5723_v18  ;;  %3080 = vmatmul.bf16.vlgmr.msra.gmra.mxu3 %v1503_v26  ;;  %v1273_v57 = vpop.f32.mrf.mxu2  ;;  %v1426_v46 = vmax.f32 %v7707_v4, %v1401_v28  ;;  %v1454_v18 = vadd.f32 %v6953_v42, %v1425_v24  ;;  %v7712_v26 = vld [vmem:[#allocation25_spill] sm:$0xff]  ;;  %v5734_v24 = vld [vmem:[%s7607_s3 + $0x610] sm:$0xff]  ;;  %v5733_v4 = vld [vmem:[%s7607_s3 + $0x608] sm:$0xff] }
 0x225   :  { %3001 = vmatmul.bf16.vlgmr.msra.gmra.mxu2 %v1502_v27  ;;  %3388 = vmatpush.bf16.msrb.mxu3 %v5731_v30  ;;  %v7713_v40 = vmax.f32 %v7711_v23, %v7712_v26  ;;  %v5709_v30 = vld [vmem:[%s7607_s3 + $0x548] sm:$0xff] }
 0x226   :  { %v976_v3 = vpop.f32.mrf.mxu0  ;;  %v1455_v7 = vadd.f32 %v6953_v42, %v1426_v46 }
 0x227   :  { %3152 = vmatpush.bf16.msrb.mxu0 %v5706_v19  ;;  %3231 = vmatpush.bf16.msrb.mxu1 %v5714_v50  ;;  %v1346_v34 = vpop.f32.mrf.mxu3  ;;  %v1049_v0 = vpop.f32.mrf.mxu1 }
 0x228   :  { %3310 = vmatpush.bf16.msrb.mxu2 %v5722_v39  ;;  %v1347_v14 = vadd.f32 %v1346_v34, %v1273_v57  ;;  %v1050_v49 = vadd.f32 %v1049_v0, %v976_v3  ;;  %v5725_v39 = vld [vmem:[%s7607_s3 + $0x5c8] sm:$0xff]  ;;  %v1480_v57 = vmax.f32 %v1455_v7, 0.0  ;;  %v5739_v34 = vld [vmem:[%s7607_s3 + $0x638] sm:$0xff]  ;;  %v5738_v0 = vld [vmem:[%s7607_s3 + $0x630] sm:$0xff] }
 0x229   :  { %3389 = vmatpush.bf16.msrb.mxu3 %v5730_v62  ;;  %v5700_v62 = vld [vmem:[%s7607_s3 + $0x500] sm:$0xff] }
 0x22a   :  { %v1402_v12 = vmax.f32 %v1048_v21, %v1347_v14  ;;  %v1505_v3 = vpack.c.bf16 %v1480_v57, %v1480_v57 }
 0x22b   :  { %3153 = vmatpush.bf16.msrb.mxu0 %v5705_v48  ;;  %3232 = vmatpush.bf16.msrb.mxu1 %v5713_v16  ;;  %v1479_v48 = vmax.f32 %v1454_v18, 0.0  ;;  %v5708_v16 = vld [vmem:[%s7607_s3 + $0x540] sm:$0xff] }
 0x22c   :  { %3311 = vmatpush.bf16.msrb.mxu2 %v5721_v61  ;;  %v1275_v31 = vpop.f32.mrf.mxu2  ;;  %v1427_v22 = vmax.f32 %v7710_v13, %v1402_v12 }
 0x22d   :  { %3390 = vmatpush.bf16.msrb.mxu3 %v5729_v41 }
 0x22e   :  { %v7471_v6 = vpop.f32.mrf.mxu0  ;;  %v1456_v19 = vadd.f32 %v6953_v42, %v1427_v22  ;;  %v5732_v22 = vld [vmem:[%s7607_s3 + $0x600] sm:$0xff] }
 0x22f   :  { %3154 = vmatpush.bf16.msrb.mxu0 %v5704_v54  ;;  %3233 = vmatpush.bf16.msrb.mxu1 %v5712_v37  ;;  %v1348_v29 = vpop.f32.mrf.mxu3  ;;  %v1052_v20 = vpop.f32.mrf.mxu1  ;;  %v5724_v37 = vld [vmem:[%s7607_s3 + $0x5c0] sm:$0xff] }
 0x230   :  { %3312 = vmatpush.bf16.msrb.mxu2 %v5720_v60  ;;  %v1349_v53 = vadd.f32 %v1348_v29, %v1275_v31  ;;  %v1481_v54 = vmax.f32 %v1456_v19, 0.0  ;;  %v1504_v60 = vpack.c.bf16 %v1479_v48, %v1479_v48 }
 0x231   :  { %3391 = vmatpush.bf16.msrb.mxu3 %v5728_v51 }
 0x232   :  { %v1403_v33 = vmax.f32 %v1050_v49, %v1349_v53  ;;  %v1506_v35 = vpack.c.bf16 %v1481_v54, %v1481_v54  ;;  %v7714_v49 = vld [vmem:[#allocation26_spill] sm:$0xff]  ;;  %v7715_v53 = vld [vmem:[#allocation27_spill] sm:$0xff] }
 0x233   :  { %3155 = vmatpush.bf16.msrb.mxu0 %v5703_v11  ;;  %3234 = vmatpush.bf16.msrb.mxu1 %v5711_v43  ;;  %v5736_v43 = vld [vmem:[%s7607_s3 + $0x620] sm:$0xff] }
 0x234   :  { %3313 = vmatpush.bf16.msrb.mxu2 %v5719_v8  ;;  %v1428_v27 = vmax.f32 %v7713_v40, %v1403_v33  ;;  %v1278_v15 = vpop.f32.mrf.mxu2 }
 0x235   :  { %3392 = vmatpush.bf16.msrb.mxu3 %v5727_v2  ;;  %v1053_v2 = vadd.f32 %v1052_v20, %v7471_v6 }
 0x236   :  { %v1457_v50 = vadd.f32 %v6953_v42, %v1428_v27  ;;  %v5716_v42 = vld [vmem:[%s7607_s3 + $0x580] sm:$0xff]  ;;  %v981_v61 = vpop.f32.mrf.mxu0 }
 0x237   :  { %3156 = vmatpush.bf16.msrb.mxu0 %v5702_v25  ;;  %3235 = vmatpush.bf16.msrb.mxu1 %v5710_v56  ;;  %v1351_v47 = vpop.f32.mrf.mxu3  ;;  %v1054_v41 = vpop.f32.mrf.mxu1  ;;  %v7716_v56 = vmax.f32 %v7714_v49, %v7715_v53  ;;  %v5740_v53 = vld [vmem:[%s7610_s5] sm:$0xff] }
 0x238   :  { %3314 = vmatpush.bf16.msrb.mxu2 %v5718_v10  ;;  %v1482_v9 = vmax.f32 %v1457_v50, 0.0  ;;  %v1352_v8 = vadd.f32 %v1351_v47, %v1278_v15 }
 0x239   :  { %3393 = vmatpush.bf16.msrb.mxu3 %v5726_v36 }
 0x23a   :  { %v1507_v32 = vpack.c.bf16 %v1482_v9, %v1482_v9  ;;  %v1404_v5 = vmax.f32 %v1053_v2, %v1352_v8  ;;  %v5745_v2 = vld [vmem:[%s7610_s5 + $0x28] sm:$0xff] }
 0x23b   :  { %3157 = vmatpush.bf16.msrb.mxu0 %v5701_v63  ;;  %3236 = vmatpush.bf16.msrb.mxu1 %v5709_v30 }
 0x23c   :  { %3315 = vmatpush.bf16.msrb.mxu2 %v5717_v44  ;;  %v1280_v14 = vpop.f32.mrf.mxu2  ;;  %v1429_v10 = vmax.f32 %v7716_v56, %v1404_v5  ;;  %v5742_v5 = vld [vmem:[%s7610_s5 + $0x10] sm:$0xff] }
 0x23d   :  { %3394 = vmatpush.bf16.msrb.mxu3 %v5725_v39 }
 0x23e   :  { %v1599_v51 = vpop.f32.mrf.mxu0  ;;  %v1458_v58 = vadd.f32 %v5760_v52, %v1429_v10  ;;  %v5755_v10 = vld [vmem:[%s7611_s7 + $0x38] sm:$0xff] }
 0x23f   :  { %3158 = vmatpush.bf16.msrb.mxu0 %v5700_v62  ;;  %3237 = vmatpush.bf16.msrb.mxu1 %v5708_v16  ;;  %v1353_v1 = vpop.f32.mrf.mxu3  ;;  %v1660_v11 = vpop.f32.mrf.mxu1 }
 0x240   :  { %3316 = vmatpush.bf16.msrb.mxu2 %v5716_v42  ;;  %v1661_v21 = vadd.f32 %v1660_v11, %v1599_v51  ;;  %v1483_v33 = vmax.f32 %v1458_v58, 0.0  ;;  %v5753_v58 = vld [vmem:[%s7611_s7 + $0x28] sm:$0xff] }
 0x241   :  { %3395 = vmatpush.bf16.msrb.mxu3 %v5724_v37 }
 0x242   :  { %3159 = vmatmul.bf16.vlgmr.msrb.gmra.mxu0 %v1504_v60  ;;  %3238 = vmatmul.bf16.vlgmr.msrb.gmra.mxu1 %v1505_v3  ;;  %v1508_v40 = vpack.c.bf16 %v1483_v33, %v1483_v33  ;;  %v5752_v33 = vld [vmem:[%s7611_s7 + $0x20] sm:$0xff] }
 0x243   :  { %3467 = vmatpush.bf16.msra.mxu0 %v5739_v34  ;;  %3317 = vmatmul.bf16.vlgmr.msrb.gmra.mxu2 %v1506_v35 }
 0x244   :  { %3396 = vmatmul.bf16.vlgmr.msrb.gmra.mxu3 %v1507_v32  ;;  %v1738_v28 = vpop.f32.mrf.mxu2  ;;  %3639 = vmatpush.bf16.msra.mxu2 %v5755_v10 }
 0x245   :  { %v1742_v31 = vadd.f32 %v1738_v28, %v1661_v21 }
 0x246   :  { %v1601_v29 = vpop.f32.mrf.mxu0 }
 0x247   :  { %3468 = vmatpush.bf16.msra.mxu0 %v5738_v0  ;;  %v1817_v12 = vpop.f32.mrf.mxu3  ;;  %v1662_v25 = vpop.f32.mrf.mxu1 }
 0x248   :  { %v1821_v59 = vadd.f32 %v1817_v12, %v1742_v31  ;;  %v5746_v12 = vld [vmem:[%s7610_s5 + $0x30] sm:$0xff]  ;;  %v5744_v25 = vld [vmem:[%s7610_s5 + $0x20] sm:$0xff] }
 0x24b   :  { %3469 = vmatpush.bf16.msra.mxu0 %v5737_v17  ;;  %v5747_v17 = vld [vmem:[%s7610_s5 + $0x38] sm:$0xff] }
 0x24c   :  { %v1740_v6 = vpop.f32.mrf.mxu2  ;;  %3556 = vmatpush.bf16.msra.mxu1 %v5747_v17 }
 0x24e   :  { %v1896_v55 = vpop.f32.mrf.mxu0 }
 0x24f   :  { %3470 = vmatpush.bf16.msra.mxu0 %v5736_v43  ;;  %v1819_v20 = vpop.f32.mrf.mxu3  ;;  %v1975_v38 = vpop.f32.mrf.mxu1  ;;  %v1900_v46 = vadd.f32 %v1896_v55, %v1821_v59  ;;  %v5741_v59 = vld [vmem:[%s7610_s5 + $0x8] sm:$0xff] }
 0x250   :  { %3557 = vmatpush.bf16.msra.mxu1 %v5746_v12 }
 0x251   :  { %v1979_v13 = vadd.f32 %v1975_v38, %v1900_v46  ;;  %v5754_v38 = vld [vmem:[%s7611_s7 + $0x30] sm:$0xff] }
 0x252   :  { %3640 = vmatpush.bf16.msra.mxu2 %v5754_v38 }
 0x253   :  { %3471 = vmatpush.bf16.msra.mxu0 %v5735_v45  ;;  %v5743_v45 = vld [vmem:[%s7610_s5 + $0x18] sm:$0xff] }
 0x254   :  { %3558 = vmatpush.bf16.msra.mxu1 %v5745_v2 }
 0x255   :  { %v2054_v36 = vpop.f32.mrf.mxu2 }
 0x256   :  { %v2058_v18 = vadd.f32 %v2054_v36, %v1979_v13  ;;  %v1898_v23 = vpop.f32.mrf.mxu0  ;;  %3641 = vmatpush.bf16.msra.mxu2 %v5753_v58 }
 0x257   :  { %3472 = vmatpush.bf16.msra.mxu0 %v5734_v24  ;;  %v2133_v63 = vpop.f32.mrf.mxu3  ;;  %v1977_v26 = vpop.f32.mrf.mxu1 }
 0x258   :  { %v2137_v27 = vadd.f32 %v2133_v63, %v2058_v18  ;;  %3559 = vmatpush.bf16.msra.mxu1 %v5744_v25  ;;  %v5751_v18 = vld [vmem:[%s7611_s7 + $0x18] sm:$0xff] }
 0x25a   :  { %3642 = vmatpush.bf16.msra.mxu2 %v5752_v33 }
 0x25b   :  { %3473 = vmatpush.bf16.msra.mxu0 %v5733_v4 }
 0x25c   :  { %3560 = vmatpush.bf16.msra.mxu1 %v5743_v45 }
 0x25d   :  { %v2056_v30 = vpop.f32.mrf.mxu2 }
 0x25e   :  { %3643 = vmatpush.bf16.msra.mxu2 %v5751_v18  ;;  %v5757_v30 = vld [vmem:[%s7608_s4] ss:$0 sm:$0xff] }
 0x25f   :  { %3474 = vmatpush.bf16.msra.mxu0 %v5732_v22  ;;  %v2135_v44 = vpop.f32.mrf.mxu3  ;;  %v2212_v7 = vpop.f32.mrf.mxu0 }
 0x260   :  { %v2291_v19 = vpop.f32.mrf.mxu1  ;;  %v2216_v50 = vadd.f32 %v2212_v7, %v2137_v27  ;;  %3561 = vmatpush.bf16.msra.mxu1 %v5742_v5 }
 0x262   :  { %3475 = vmatmul.bf16.vlgmr.msra.gmra.mxu0 %v1508_v40  ;;  %v2295_v39 = vadd.f32 %v2291_v19, %v2216_v50  ;;  %v5750_v40 = vld [vmem:[%s7611_s7 + $0x10] sm:$0xff] }
 0x263   :  { %3644 = vmatpush.bf16.msra.mxu2 %v5750_v40 }
 0x264   :  { %3562 = vmatpush.bf16.msra.mxu1 %v5741_v59 }
 0x267   :  { %v2449_v47 = vpop.f32.mrf.mxu3  ;;  %v2214_v48 = vpop.f32.mrf.mxu0 }
 0x268   :  { %v2370_v15 = vpop.f32.mrf.mxu2  ;;  %v2293_v16 = vpop.f32.mrf.mxu1  ;;  %3563 = vmatpush.bf16.msra.mxu1 %v5740_v53  ;;  %v5758_v48 = vld [vmem:[%s7609_s6] ss:$0 sm:$0xff] }
 0x269   :  { %v2374_v62 = vadd.f32 %v2370_v15, %v2295_v39 }
 0x26b   :  { %v2453_v42 = vadd.f32 %v2449_v47, %v2374_v62  ;;  %v5749_v47 = vld [vmem:[%s7611_s7 + $0x8] sm:$0xff]  ;;  %v5748_v62 = vld [vmem:[%s7611_s7] sm:$0xff] }
 0x26c   :  { %3645 = vmatpush.bf16.msra.mxu2 %v5749_v47 }
 0x26f   :  { %v2451_v41 = vpop.f32.mrf.mxu3 }
 0x270   :  { %v2372_v61 = vpop.f32.mrf.mxu2  ;;  %3646 = vmatpush.bf16.msra.mxu2 %v5748_v62 }
 0x27f   :  { %v2528_v57 = vpop.f32.mrf.mxu0  ;;  %v2607_v34 = vpop.f32.mrf.mxu1 }
 0x280   :  { %v2532_v54 = vadd.f32 %v2528_v57, %v2453_v42 }
 0x282   :  { %v2611_v9 = vadd.f32 %v2607_v34, %v2532_v54  ;;  %v5759_v34 = vld [vmem:[%s7612_s8] ss:$0 sm:$0xff] }
 0x287   :  { %v2765_v60 = vpop.f32.mrf.mxu3  ;;  %v2530_v0 = vpop.f32.mrf.mxu0 }
 0x288   :  { %v2686_v37 = vpop.f32.mrf.mxu2  ;;  %v2609_v35 = vpop.f32.mrf.mxu1 }
 0x289   :  { %v2690_v3 = vadd.f32 %v2686_v37, %v2611_v9 }
 0x28b   :  { %v2769_v32 = vadd.f32 %v2765_v60, %v2690_v3 }
 0x28f   :  { %v2767_v1 = vpop.f32.mrf.mxu3 }
 0x290   :  { %v2688_v14 = vpop.f32.mrf.mxu2 }
 0x29f   :  { %v2844_v51 = vpop.f32.mrf.mxu0  ;;  %v2923_v11 = vpop.f32.mrf.mxu1 }
 0x2a0   :  { %v2848_v56 = vadd.f32 %v2844_v51, %v2769_v32 }
 0x2a2   :  { %v2927_v46 = vadd.f32 %v2923_v11, %v2848_v56 }
 0x2a7   :  { %v3081_v43 = vpop.f32.mrf.mxu3  ;;  %v2846_v8 = vpop.f32.mrf.mxu0 }
 0x2a8   :  { %v3002_v21 = vpop.f32.mrf.mxu2  ;;  %v2925_v28 = vpop.f32.mrf.mxu1 }
 0x2a9   :  { %v3006_v52 = vadd.f32 %v3002_v21, %v2927_v46 }
 0x2ab   :  { %v3085_v22 = vadd.f32 %v3081_v43, %v3006_v52 }
 0x2af   :  { %v3083_v29 = vpop.f32.mrf.mxu3 }
 0x2b0   :  { %v3004_v31 = vpop.f32.mrf.mxu2 }
 0x2bf   :  { %v3160_v24 = vpop.f32.mrf.mxu0  ;;  %v3239_v49 = vpop.f32.mrf.mxu1 }
 0x2c0   :  { %v3164_v63 = vadd.f32 %v3160_v24, %v3085_v22 }
 0x2c2   :  { %v3243_v23 = vadd.f32 %v3239_v49, %v3164_v63 }
 0x2c6   :  { %v3318_v6 = vpop.f32.mrf.mxu2 }
 0x2c7   :  { %v3162_v20 = vpop.f32.mrf.mxu0  ;;  %v3241_v55 = vpop.f32.mrf.mxu1  ;;  %v3322_v26 = vadd.f32 %v3318_v6, %v3243_v23 }
 0x2c8   :  { %v3397_v4 = vpop.f32.mrf.mxu3 }
 0x2c9   :  { %v3401_v27 = vadd.f32 %v3397_v4, %v3322_v26 }
 0x2ce   :  { %v3320_v13 = vpop.f32.mrf.mxu2 }
 0x2d0   :  { %v3399_v36 = vpop.f32.mrf.mxu3 }
 0x2df   :  { %v3476_v44 = vpop.f32.mrf.mxu0 }
 0x2e0   :  { %v3480_v7 = vadd.f32 %v3476_v44, %v3401_v27 }
 0x2e2   :  { %v3485_v19 = vadd.f32 %v5757_v30, %v3480_v7 }
 0x2e4   :  { %v3486_v50 = vmax.f32 %v3485_v19, 0.0 }
 0x2e6   :  { %v3487_v39 = vpack.c.bf16 %v3486_v50, %v3486_v50 }
 0x2e7   :  { %v3478_v15 = vpop.f32.mrf.mxu0 }
 0x2e8   :  { %3564 = vmatmul.bf16.vlgmr.msra.gmra.mxu1 %v3487_v39 }
 0x365   :  { %v3565_v16 = vpop.f32.mrf.mxu1 }
 0x366   :  { %v3566_v42 = vadd.f32 %v5758_v48, %v3565_v16 }
 0x368   :  { %v3569_v61 = vmax.f32 %v3566_v42, 0.0 }
 0x36a   :  { %v3570_v41 = vpack.c.bf16 %v3569_v61, %v3569_v61 }
 0x36c   :  { %3647 = vmatmul.bf16.vlgmr.msra.gmra.mxu2 %v3570_v41 }
 0x36d   :  { %v3567_v57 = vpop.f32.mrf.mxu1 }
 0x3ef   :  { %v3648_v54 = vpop.f32.mrf.mxu2 }
 0x3f0   :  { %v3649_v9 = vadd.f32 %v5759_v34, %v3648_v54 }
 0x3f2   :  { %3652 = vst [vmem:[%s7613_s9] sm:$0xff] %v3649_v9 }
 0x3f7   :  { %v3650_v37 = vpop.f32.mrf.mxu2 }

</bundles_post_ra>
